<compile_context>
chip_gen: v5e
topology: v5e:2x2
jax: 0.10.0
libtpu: 0.0.40
codegen_flags: <defaults>
</compile_context>

<pallas_src>
import jax
import jax.numpy as jnp
from jax import lax
from jax.experimental import pallas as pl
from jax.experimental.pallas import tpu as pltpu


def _gelu_exact(x):
    # PyTorch nn.GELU() default: 0.5 * x * (1 + erf(x / sqrt(2)))
    return 0.5 * x * (1.0 + lax.erf(x * (1.0 / jnp.sqrt(2.0).astype(x.dtype))))


def temporal_q_kernel(
    state_ref,                   # (TB, S)
    w_e1_ref, b_e1_ref,          # state_encoder Linear(S -> H)
    ln_g_ref, ln_b_ref,          # LayerNorm(H)
    w_e2_ref, b_e2_ref,          # state_encoder Linear(H -> H)
    w_q1_ref, b_q1_ref,          # q_network Linear(H -> H)
    w_q2_ref, b_q2_ref,          # q_network Linear(H -> A_pad)
    out_ref,                     # (TB, A_pad)
):
    x = state_ref[...]           # f32 input, no redundant cast

    # --- state encoder ---
    h = jnp.dot(x, w_e1_ref[...], preferred_element_type=jnp.float32) + b_e1_ref[...]

    # LayerNorm over last dim, eps=1e-5 (PyTorch default).
    mu = jnp.mean(h, axis=-1, keepdims=True)
    var = jnp.maximum(jnp.mean(h * h, axis=-1, keepdims=True) - mu * mu, 0.0)
    h = (h - mu) * lax.rsqrt(var + 1e-5)
    h = h * ln_g_ref[...] + ln_b_ref[...]

    h = _gelu_exact(h)
    feat = jnp.dot(h, w_e2_ref[...], preferred_element_type=jnp.float32) + b_e2_ref[...]

    # --- q network ---
    q = jnp.dot(feat, w_q1_ref[...], preferred_element_type=jnp.float32) + b_q1_ref[...]
    q = _gelu_exact(q)
    # Dropout(0.1) -> identity in eval mode.
    q = jnp.dot(q, w_q2_ref[...], preferred_element_type=jnp.float32) + b_q2_ref[...]

    out_ref[...] = q.astype(out_ref.dtype)


def temporal_q_forward(state, params, *, tb=256):
    """state: [B, state_dim] float32 -> q values [B, action_dim] float32."""
    B, S = state.shape
    H = params["w_e1"].shape[1]
    A = params["w_q2"].shape[1]

    # Lane-dense output: pad action dim to a multiple of 128 lanes.
    A_pad = max(128, ((A + 127) // 128) * 128)
    w_q2 = jnp.pad(params["w_q2"], ((0, 0), (0, A_pad - A)))
    b_q2 = jnp.pad(params["b_q2"], ((0, 0), (0, A_pad - A)))

    # Adaptive batch tile: sublane-aligned, no over-padding for small batches.
    B8 = ((B + 7) // 8) * 8
    tb = min(tb, B8)
    tb = ((tb + 7) // 8) * 8
    B_pad = ((B8 + tb - 1) // tb) * tb
    if B_pad != B:
        state = jnp.pad(state, ((0, B_pad - B), (0, 0)))
    grid = (B_pad // tb,)

    # Weights/biases: constant index_maps -> DMA'd once, VMEM-resident.
    def const_spec(shape):
        return pl.BlockSpec(shape, lambda i, _n=len(shape): (0,) * _n)

    in_specs = [
        pl.BlockSpec((tb, S), lambda i: (i, 0)),         # state: tiled over batch
        const_spec((S, H)), const_spec((1, H)),          # w_e1, b_e1
        const_spec((1, H)), const_spec((1, H)),          # ln_g, ln_b
        const_spec((H, H)), const_spec((1, H)),          # w_e2, b_e2
        const_spec((H, H)), const_spec((1, H)),          # w_q1, b_q1
        const_spec((H, A_pad)), const_spec((1, A_pad)),  # w_q2, b_q2
    ]
    out_specs = pl.BlockSpec((tb, A_pad), lambda i: (i, 0))

    flops = 2 * B_pad * (S * H + 2 * H * H + H * A_pad)
    transcendentals = 2 * B_pad * H  # two GELUs over H features
    bytes_accessed = 4 * (
        B_pad * S + B_pad * A_pad              # activations in/out
        + S * H + 2 * H * H + H * A_pad        # weights
        + 6 * H + A_pad                        # biases + LN params
    )

    out = pl.pallas_call(
        temporal_q_kernel,
        out_shape=jax.ShapeDtypeStruct((B_pad, A_pad), jnp.float32),
        grid_spec=pltpu.PrefetchScalarGridSpec(
            num_scalar_prefetch=0,
            grid=grid,
            in_specs=in_specs,
            out_specs=out_specs,
        ),
        compiler_params=pltpu.CompilerParams(
            dimension_semantics=("parallel",),   # batch grid shards across TCs on v7x
        ),
        cost_estimate=pl.CostEstimate(
            flops=flops,
            transcendentals=transcendentals,
            bytes_accessed=bytes_accessed,
        ),
    )(
        state,
        params["w_e1"], params["b_e1"],
        params["ln_g"], params["ln_b"],
        params["w_e2"], params["b_e2"],
        params["w_q1"], params["b_q1"],
        w_q2, b_q2,
    )
    return out[:B, :A]


def init_params(key, state_dim, hidden_dim, action_dim):
    """Deterministic synthetic init. Linear weights stored as [in, out]."""
    ks = jax.random.split(key, 4)

    def lin(k, fan_in, fan_out):
        # Kaiming-uniform-ish bound like PyTorch Linear default.
        bound = 1.0 / jnp.sqrt(fan_in)
        kw, kb = jax.random.split(k)
        w = jax.random.uniform(kw, (fan_in, fan_out), jnp.float32, -bound, bound)
        b = jax.random.uniform(kb, (1, fan_out), jnp.float32, -bound, bound)
        return w, b

    w_e1, b_e1 = lin(ks[0], state_dim, hidden_dim)
    w_e2, b_e2 = lin(ks[1], hidden_dim, hidden_dim)
    w_q1, b_q1 = lin(ks[2], hidden_dim, hidden_dim)
    w_q2, b_q2 = lin(ks[3], hidden_dim, action_dim)
    ln_g = jnp.ones((1, hidden_dim), jnp.float32)
    ln_b = jnp.zeros((1, hidden_dim), jnp.float32)
    return dict(
        w_e1=w_e1, b_e1=b_e1, ln_g=ln_g, ln_b=ln_b,
        w_e2=w_e2, b_e2=b_e2,
        w_q1=w_q1, b_q1=b_q1, w_q2=w_q2, b_q2=b_q2,
    )


def reference_forward(state, p):
    """Pure-JAX reference with identical math for a sanity check."""
    def gelu(x):
        return 0.5 * x * (1.0 + lax.erf(x / jnp.sqrt(2.0)))

    h = state @ p["w_e1"] + p["b_e1"]
    mu = h.mean(-1, keepdims=True)
    var = ((h - mu) ** 2).mean(-1, keepdims=True)
    h = (h - mu) / jnp.sqrt(var + 1e-5) * p["ln_g"] + p["ln_b"]
    h = gelu(h)
    feat = h @ p["w_e2"] + p["b_e2"]
    q = gelu(feat @ p["w_q1"] + p["b_q1"])
    return q @ p["w_q2"] + p["b_q2"]


if __name__ == "__main__":
    # hidden_dim=256 is the module default (lane-dense); B=200 exercises the
    # non-128-multiple batch path (handled with an adaptive 200-row tile).
    B, STATE_DIM, HIDDEN_DIM, ACTION_DIM = 200, 16, 256, 4

    key = jax.random.PRNGKey(0)
    k_state, k_params = jax.random.split(key)
    state = jax.random.normal(k_state, (B, STATE_DIM), jnp.float32)
    params = init_params(k_params, STATE_DIM, HIDDEN_DIM, ACTION_DIM)

    q = temporal_q_forward(state, params)
    q = jax.block_until_ready(q)

    q_ref = reference_forward(state, params)
    assert q.shape == (B, ACTION_DIM)
    assert jnp.allclose(q, q_ref, atol=1e-3, rtol=1e-3), "mismatch vs reference"

    print("KERNEL_OK")
</pallas_src>

<mosaic_0001>
module attributes {stable_mosaic.version = 11 : i64} {
  func.func @temporal_q_kernel(%arg0: i32, %arg1: memref<200x16xf32, #tpu.memory_space<vmem>>, %arg2: memref<16x256xf32, #tpu.memory_space<vmem>>, %arg3: memref<1x256xf32, #tpu.memory_space<vmem>>, %arg4: memref<1x256xf32, #tpu.memory_space<vmem>>, %arg5: memref<1x256xf32, #tpu.memory_space<vmem>>, %arg6: memref<256x256xf32, #tpu.memory_space<vmem>>, %arg7: memref<1x256xf32, #tpu.memory_space<vmem>>, %arg8: memref<256x256xf32, #tpu.memory_space<vmem>>, %arg9: memref<1x256xf32, #tpu.memory_space<vmem>>, %arg10: memref<256x128xf32, #tpu.memory_space<vmem>>, %arg11: memref<1x128xf32, #tpu.memory_space<vmem>>, %arg12: memref<200x128xf32, #tpu.memory_space<vmem>>) attributes {dimension_semantics = [#tpu.dimension_semantics<parallel>], iteration_bounds = array<i64: 1>, scalar_prefetch = 0 : i64, scratch_operands = 0 : i64, tpu.core_type = #tpu.core_type<tc>, window_params = [{transform_indices = @transform_0, window_bounds = array<i64: 200, 16>}, {pipeline_mode = #tpu.pipeline_mode<synchronous>, transform_indices = @transform_1, window_bounds = array<i64: 16, 256>}, {pipeline_mode = #tpu.pipeline_mode<synchronous>, transform_indices = @transform_2, window_bounds = array<i64: 1, 256>}, {pipeline_mode = #tpu.pipeline_mode<synchronous>, transform_indices = @transform_3, window_bounds = array<i64: 1, 256>}, {pipeline_mode = #tpu.pipeline_mode<synchronous>, transform_indices = @transform_4, window_bounds = array<i64: 1, 256>}, {pipeline_mode = #tpu.pipeline_mode<synchronous>, transform_indices = @transform_5, window_bounds = array<i64: 256, 256>}, {pipeline_mode = #tpu.pipeline_mode<synchronous>, transform_indices = @transform_6, window_bounds = array<i64: 1, 256>}, {pipeline_mode = #tpu.pipeline_mode<synchronous>, transform_indices = @transform_7, window_bounds = array<i64: 256, 256>}, {pipeline_mode = #tpu.pipeline_mode<synchronous>, transform_indices = @transform_8, window_bounds = array<i64: 1, 256>}, {pipeline_mode = #tpu.pipeline_mode<synchronous>, transform_indices = @transform_9, window_bounds = array<i64: 256, 128>}, {pipeline_mode = #tpu.pipeline_mode<synchronous>, transform_indices = @transform_10, window_bounds = array<i64: 1, 128>}, {transform_indices = @transform_11, window_bounds = array<i64: 200, 128>}]} {
    %c0 = arith.constant 0 : index
    %c0_0 = arith.constant 0 : index
    %0 = vector.load %arg1[%c0, %c0_0] : memref<200x16xf32, #tpu.memory_space<vmem>>, vector<200x16xf32>
    %c0_1 = arith.constant 0 : index
    %c0_2 = arith.constant 0 : index
    %1 = vector.load %arg2[%c0_1, %c0_2] : memref<16x256xf32, #tpu.memory_space<vmem>>, vector<16x256xf32>
    %cst = arith.constant dense<0.000000e+00> : vector<200x256xf32>
    %2 = tpu.matmul %0, %1, %cst {dimension_numbers = #tpu.dot_dimension_numbers<[1], [0], [0], [1], [0, 0, 1, 1], [], []>} : vector<200x16xf32>, vector<16x256xf32>, vector<200x256xf32> -> vector<200x256xf32>
    %c0_3 = arith.constant 0 : index
    %c0_4 = arith.constant 0 : index
    %3 = vector.load %arg3[%c0_3, %c0_4] : memref<1x256xf32, #tpu.memory_space<vmem>>, vector<1x256xf32>
    %4 = vector.broadcast %3 : vector<1x256xf32> to vector<200x256xf32>
    %5 = arith.addf %2, %4 : vector<200x256xf32>
    %cst_5 = arith.constant dense<0.000000e+00> : vector<200xf32>
    %6 = vector.multi_reduction <add>, %5, %cst_5 [1] : vector<200x256xf32> to vector<200xf32>
    %7 = vector.shape_cast %6 : vector<200xf32> to vector<200x1xf32>
    %cst_6 = arith.constant 2.560000e+02 : f32
    %8 = vector.broadcast %cst_6 : f32 to vector<200x1xf32>
    %9 = arith.divf %7, %8 : vector<200x1xf32>
    %10 = arith.mulf %5, %5 : vector<200x256xf32>
    %cst_7 = arith.constant dense<0.000000e+00> : vector<200xf32>
    %11 = vector.multi_reduction <add>, %10, %cst_7 [1] : vector<200x256xf32> to vector<200xf32>
    %12 = vector.shape_cast %11 : vector<200xf32> to vector<200x1xf32>
    %cst_8 = arith.constant 2.560000e+02 : f32
    %13 = vector.broadcast %cst_8 : f32 to vector<200x1xf32>
    %14 = arith.divf %12, %13 : vector<200x1xf32>
    %15 = arith.mulf %9, %9 : vector<200x1xf32>
    %16 = arith.subf %14, %15 : vector<200x1xf32>
    %cst_9 = arith.constant 0.000000e+00 : f32
    %17 = vector.broadcast %cst_9 : f32 to vector<200x1xf32>
    %18 = arith.maximumf %16, %17 : vector<200x1xf32>
    %19 = vector.broadcast %9 : vector<200x1xf32> to vector<200x256xf32>
    %20 = arith.subf %5, %19 : vector<200x256xf32>
    %cst_10 = arith.constant 9.99999974E-6 : f32
    %21 = vector.broadcast %cst_10 : f32 to vector<200x1xf32>
    %22 = arith.addf %18, %21 : vector<200x1xf32>
    %23 = math.rsqrt %22 : vector<200x1xf32>
    %24 = vector.broadcast %23 : vector<200x1xf32> to vector<200x256xf32>
    %25 = arith.mulf %20, %24 : vector<200x256xf32>
    %c0_11 = arith.constant 0 : index
    %c0_12 = arith.constant 0 : index
    %26 = vector.load %arg4[%c0_11, %c0_12] : memref<1x256xf32, #tpu.memory_space<vmem>>, vector<1x256xf32>
    %27 = vector.broadcast %26 : vector<1x256xf32> to vector<200x256xf32>
    %28 = arith.mulf %25, %27 : vector<200x256xf32>
    %c0_13 = arith.constant 0 : index
    %c0_14 = arith.constant 0 : index
    %29 = vector.load %arg5[%c0_13, %c0_14] : memref<1x256xf32, #tpu.memory_space<vmem>>, vector<1x256xf32>
    %30 = vector.broadcast %29 : vector<1x256xf32> to vector<200x256xf32>
    %31 = arith.addf %28, %30 : vector<200x256xf32>
    %cst_15 = arith.constant 5.000000e-01 : f32
    %32 = vector.broadcast %cst_15 : f32 to vector<200x256xf32>
    %33 = arith.mulf %32, %31 : vector<200x256xf32>
    %cst_16 = arith.constant 2.000000e+00 : f32
    %34 = math.sqrt %cst_16 : f32
    %cst_17 = arith.constant 1.000000e+00 : f32
    %35 = arith.divf %cst_17, %34 : f32
    %36 = vector.broadcast %35 : f32 to vector<200x256xf32>
    %37 = arith.mulf %31, %36 : vector<200x256xf32>
    %38 = math.erf %37 : vector<200x256xf32>
    %cst_18 = arith.constant 1.000000e+00 : f32
    %39 = vector.broadcast %cst_18 : f32 to vector<200x256xf32>
    %40 = arith.addf %39, %38 : vector<200x256xf32>
    %41 = arith.mulf %33, %40 : vector<200x256xf32>
    %c0_19 = arith.constant 0 : index
    %c0_20 = arith.constant 0 : index
    %42 = vector.load %arg6[%c0_19, %c0_20] : memref<256x256xf32, #tpu.memory_space<vmem>>, vector<256x256xf32>
    %cst_21 = arith.constant dense<0.000000e+00> : vector<200x256xf32>
    %43 = tpu.matmul %41, %42, %cst_21 {dimension_numbers = #tpu.dot_dimension_numbers<[1], [0], [0], [1], [0, 0, 1, 1], [], []>} : vector<200x256xf32>, vector<256x256xf32>, vector<200x256xf32> -> vector<200x256xf32>
    %c0_22 = arith.constant 0 : index
    %c0_23 = arith.constant 0 : index
    %44 = vector.load %arg7[%c0_22, %c0_23] : memref<1x256xf32, #tpu.memory_space<vmem>>, vector<1x256xf32>
    %45 = vector.broadcast %44 : vector<1x256xf32> to vector<200x256xf32>
    %46 = arith.addf %43, %45 : vector<200x256xf32>
    %c0_24 = arith.constant 0 : index
    %c0_25 = arith.constant 0 : index
    %47 = vector.load %arg8[%c0_24, %c0_25] : memref<256x256xf32, #tpu.memory_space<vmem>>, vector<256x256xf32>
    %cst_26 = arith.constant dense<0.000000e+00> : vector<200x256xf32>
    %48 = tpu.matmul %46, %47, %cst_26 {dimension_numbers = #tpu.dot_dimension_numbers<[1], [0], [0], [1], [0, 0, 1, 1], [], []>} : vector<200x256xf32>, vector<256x256xf32>, vector<200x256xf32> -> vector<200x256xf32>
    %c0_27 = arith.constant 0 : index
    %c0_28 = arith.constant 0 : index
    %49 = vector.load %arg9[%c0_27, %c0_28] : memref<1x256xf32, #tpu.memory_space<vmem>>, vector<1x256xf32>
    %50 = vector.broadcast %49 : vector<1x256xf32> to vector<200x256xf32>
    %51 = arith.addf %48, %50 : vector<200x256xf32>
    %cst_29 = arith.constant 5.000000e-01 : f32
    %52 = vector.broadcast %cst_29 : f32 to vector<200x256xf32>
    %53 = arith.mulf %52, %51 : vector<200x256xf32>
    %cst_30 = arith.constant 2.000000e+00 : f32
    %54 = math.sqrt %cst_30 : f32
    %cst_31 = arith.constant 1.000000e+00 : f32
    %55 = arith.divf %cst_31, %54 : f32
    %56 = vector.broadcast %55 : f32 to vector<200x256xf32>
    %57 = arith.mulf %51, %56 : vector<200x256xf32>
    %58 = math.erf %57 : vector<200x256xf32>
    %cst_32 = arith.constant 1.000000e+00 : f32
    %59 = vector.broadcast %cst_32 : f32 to vector<200x256xf32>
    %60 = arith.addf %59, %58 : vector<200x256xf32>
    %61 = arith.mulf %53, %60 : vector<200x256xf32>
    %c0_33 = arith.constant 0 : index
    %c0_34 = arith.constant 0 : index
    %62 = vector.load %arg10[%c0_33, %c0_34] : memref<256x128xf32, #tpu.memory_space<vmem>>, vector<256x128xf32>
    %cst_35 = arith.constant dense<0.000000e+00> : vector<200x128xf32>
    %63 = tpu.matmul %61, %62, %cst_35 {dimension_numbers = #tpu.dot_dimension_numbers<[1], [0], [0], [1], [0, 0, 1, 1], [], []>} : vector<200x256xf32>, vector<256x128xf32>, vector<200x128xf32> -> vector<200x128xf32>
    %c0_36 = arith.constant 0 : index
    %c0_37 = arith.constant 0 : index
    %64 = vector.load %arg11[%c0_36, %c0_37] : memref<1x128xf32, #tpu.memory_space<vmem>>, vector<1x128xf32>
    %65 = vector.broadcast %64 : vector<1x128xf32> to vector<200x128xf32>
    %66 = arith.addf %63, %65 : vector<200x128xf32>
    %c0_38 = arith.constant 0 : index
    %c0_39 = arith.constant 0 : index
    %67 = vector.load %arg12[%c0_38, %c0_39] : memref<200x128xf32, #tpu.memory_space<vmem>>, vector<200x128xf32>
    tpu.vector_store %arg12[%c0_38, %c0_39], %66 {strides = array<i32>} : memref<200x128xf32, #tpu.memory_space<vmem>>, vector<200x128xf32>,
    return
  }
  func.func @transform_0(%arg0: i32) -> (i32, i32) {
    %c0_i32 = arith.constant 0 : i32
    %c0_i32_0 = arith.constant 0 : i32
    return %arg0, %c0_i32 : i32, i32
  }
  func.func @transform_1(%arg0: i32) -> (i32, i32) {
    %c0_i32 = arith.constant 0 : i32
    %c0_i32_0 = arith.constant 0 : i32
    %c0_i32_1 = arith.constant 0 : i32
    return %c0_i32, %c0_i32_0 : i32, i32
  }
  func.func @transform_2(%arg0: i32) -> (i32, i32) {
    %c0_i32 = arith.constant 0 : i32
    %c0_i32_0 = arith.constant 0 : i32
    %c0_i32_1 = arith.constant 0 : i32
    return %c0_i32, %c0_i32_0 : i32, i32
  }
  func.func @transform_3(%arg0: i32) -> (i32, i32) {
    %c0_i32 = arith.constant 0 : i32
    %c0_i32_0 = arith.constant 0 : i32
    %c0_i32_1 = arith.constant 0 : i32
    return %c0_i32, %c0_i32_0 : i32, i32
  }
  func.func @transform_4(%arg0: i32) -> (i32, i32) {
    %c0_i32 = arith.constant 0 : i32
    %c0_i32_0 = arith.constant 0 : i32
    %c0_i32_1 = arith.constant 0 : i32
    return %c0_i32, %c0_i32_0 : i32, i32
  }
  func.func @transform_5(%arg0: i32) -> (i32, i32) {
    %c0_i32 = arith.constant 0 : i32
    %c0_i32_0 = arith.constant 0 : i32
    %c0_i32_1 = arith.constant 0 : i32
    return %c0_i32, %c0_i32_0 : i32, i32
  }
  func.func @transform_6(%arg0: i32) -> (i32, i32) {
    %c0_i32 = arith.constant 0 : i32
    %c0_i32_0 = arith.constant 0 : i32
    %c0_i32_1 = arith.constant 0 : i32
    return %c0_i32, %c0_i32_0 : i32, i32
  }
  func.func @transform_7(%arg0: i32) -> (i32, i32) {
    %c0_i32 = arith.constant 0 : i32
    %c0_i32_0 = arith.constant 0 : i32
    %c0_i32_1 = arith.constant 0 : i32
    return %c0_i32, %c0_i32_0 : i32, i32
  }
  func.func @transform_8(%arg0: i32) -> (i32, i32) {
    %c0_i32 = arith.constant 0 : i32
    %c0_i32_0 = arith.constant 0 : i32
    %c0_i32_1 = arith.constant 0 : i32
    return %c0_i32, %c0_i32_0 : i32, i32
  }
  func.func @transform_9(%arg0: i32) -> (i32, i32) {
    %c0_i32 = arith.constant 0 : i32
    %c0_i32_0 = arith.constant 0 : i32
    %c0_i32_1 = arith.constant 0 : i32
    return %c0_i32, %c0_i32_0 : i32, i32
  }
  func.func @transform_10(%arg0: i32) -> (i32, i32) {
    %c0_i32 = arith.constant 0 : i32
    %c0_i32_0 = arith.constant 0 : i32
    %c0_i32_1 = arith.constant 0 : i32
    return %c0_i32, %c0_i32_0 : i32, i32
  }
  func.func @transform_11(%arg0: i32) -> (i32, i32) {
    %c0_i32 = arith.constant 0 : i32
    %c0_i32_0 = arith.constant 0 : i32
    return %arg0, %c0_i32 : i32, i32
  }
}

</mosaic_0001>

<bundles_post_ra>
// kernel: tpu_custom_call.1
= control target key start
LH: loop header
LB: loop body
LE: loop exit
PB: predicated region body
PF: predicated region fallthrough
CT: control target
= control target key end

     0   :  { %16 = vsyncpa [#allocation3], 0  ;;  %s13371_s0 = inlined_call_operand.vmem [shape: f32[200,16], index: 0, kind: input, shape index: {}]   ;;  %s13372_s1 = inlined_call_operand.vmem [shape: f32[16,256], index: 1, kind: input, shape index: {}]   ;;  %s13373_s2 = inlined_call_operand.vmem [shape: f32[1,256], index: 2, kind: input, shape index: {}]   ;;  %s13374_s3 = inlined_call_operand.vmem [shape: f32[1,256], index: 3, kind: input, shape index: {}]   ;;  %s13375_s4 = inlined_call_operand.vmem [shape: f32[1,256], index: 4, kind: input, shape index: {}]   ;;  %s13376_s5 = inlined_call_operand.hbm [shape: f32[256,256], index: 5, kind: input, shape index: {}]   ;;  %s13377_s6 = inlined_call_operand.vmem [shape: f32[1,256], index: 6, kind: input, shape index: {}]   ;;  %s13378_s7 = inlined_call_operand.hbm [shape: f32[256,256], index: 7, kind: input, shape index: {}]   ;;  %s13379_s8 = inlined_call_operand.vmem [shape: f32[1,256], index: 8, kind: input, shape index: {}]   ;;  %s13380_s9 = inlined_call_operand.hbm [shape: f32[256,128], index: 9, kind: input, shape index: {}]   ;;  %s13381_s10 = inlined_call_operand.vmem [shape: f32[1,128], index: 10, kind: input, shape index: {}]   ;;  %s13382_s11 = inlined_call_operand.hbm [shape: f32[200,128], index: 11, kind: output, shape index: {}]  }
   0x1   :  { %17 = vsyncpa [#allocation6], 0 }
   0x2   :  { %18 = vsyncpa [#allocation4], 0  ;;  %s48_s19 = sshll.u32 %s13378_s7, 4  ;;  %s7287_s20 = smov [#allocation5]   ;;  %s49_s19 = int_to_ptr.hbm [resolvable:$true] %s48_s19 }
   0x3   :  { %s50_s21 = sshll.u32 %s7287_s20, 4  ;;  %s33_s24 = sshll.u32 %s13376_s5, 4  ;;  %s51_s21 = int_to_ptr.vmem [resolvable:$true] %s50_s21  ;;  %s34_s24 = int_to_ptr.hbm [resolvable:$true] %s33_s24 }
   0x4   :  { %s7288_s25 = smov 256   ;;  %s7289_s26 = smov 16  }
   0x5   :  { %56 = dma.hbm_to_vmem [thread:$0]  %s49_s19, 8192, %s51_s21, [#allocation6], %s7288_s25, %s7288_s25, %s7289_s26  }
   0x6   :  { %s7290_s27 = smov [#allocation2]   ;;  %s63_s12 = sshll.u32 %s13380_s9, 4  ;;  %s64_s12 = int_to_ptr.hbm [resolvable:$true] %s63_s12 }
   0x7   :  { %s35_s28 = sshll.u32 %s7290_s27, 4  ;;  %s7291_s7 = smov [#allocation7]   ;;  %s36_s28 = int_to_ptr.vmem [resolvable:$true] %s35_s28 }
   0x8   :  { %41 = dma.hbm_to_vmem [thread:$0]  %s34_s24, 8192, %s36_s28, [#allocation3], %s7288_s25, %s7288_s25, %s7289_s26  }
   0x9   :  { %s65_s13 = sshll.u32 %s7291_s7, 4  ;;  %s7292_s14 = smov 128   ;;  %s66_s13 = int_to_ptr.vmem [resolvable:$true] %s65_s13 }
   0xa   :  { %s7293_s15 = smov 8  }
   0xb   :  { %71 = dma.hbm_to_vmem [thread:$0]  %s64_s12, 4096, %s66_s13, [#allocation6], %s7292_s14, %s7292_s14, %s7293_s15  }
   0xc   :  { %7281 = dma.done.wait [#allocation3], 8192  }
   0xd   :  { %7282 = vsyncadd [#allocation3], 4294959104 }
   0xe   :  { %7283 = dma.done.wait [#allocation6], 12288  }
   0xf   :  { %7284 = vsyncadd [#allocation6], 4294955008  ;;  %v113_v0 = vld [vmem:[%s13372_s1 + $0x10] sm:$0xff]  ;;  %v114_v1 = vld [vmem:[%s13372_s1 + $0x18] sm:$0xff]  ;;  %vm121_vm0 = vcmask 130048   ;;  %s6727_s17 = sshll.u32 %s13382_s11, 4  ;;  %s6728_s17 = int_to_ptr.hbm [resolvable:$true] %s6727_s17 }
  0x10   :  { %v111_v2 = vld [vmem:[%s13372_s1] sm:$0xff]  ;;  %211 = vmatpush.msra.mxu0 %v113_v0  ;;  %303 = vmatpush.msra.mxu1 %v114_v1  ;;  %v112_v3 = vld [vmem:[%s13372_s1 + $0x8] sm:$0xff]  ;;  %v88_v6 = vld [vmem:[%s13371_s0 + $0x10] sm:$0xff] }
  0x11   :  { %v86_v4 = vld [vmem:[%s13371_s0] sm:$0xff]  ;;  %v87_v5 = vld [vmem:[%s13371_s0 + $0x8] sm:$0xff]  ;;  %v89_v7 = vld [vmem:[%s13371_s0 + $0x18] sm:$0xff] }
  0x12   :  { %212 = vmatpush.msra.mxu0 %v111_v2  ;;  %304 = vmatpush.msra.mxu1 %v112_v3  ;;  %v90_v8 = vld [vmem:[%s13371_s0 + $0x20] sm:$0xff]  ;;  %v91_v9 = vld [vmem:[%s13371_s0 + $0x28] sm:$0xff]  ;;  %v92_v10 = vld [vmem:[%s13371_s0 + $0x30] sm:$0xff] }
  0x13   :  { %6741 = vmatmul.msk.f32.vlgmr.msra.gmra.mxu0 %vm121_vm0, %v86_v4  ;;  %6766 = vmatmul.msk.f32.vlgmr.msra.gmra.mxu1 %vm121_vm0, %v86_v4  ;;  %v93_v11 = vld [vmem:[%s13371_s0 + $0x38] sm:$0xff]  ;;  %v94_v12 = vld [vmem:[%s13371_s0 + $0x40] sm:$0xff]  ;;  %v95_v13 = vld [vmem:[%s13371_s0 + $0x48] sm:$0xff] }
  0x14   :  { %v96_v14 = vld [vmem:[%s13371_s0 + $0x50] sm:$0xff]  ;;  %v97_v15 = vld [vmem:[%s13371_s0 + $0x58] sm:$0xff]  ;;  %v98_v16 = vld [vmem:[%s13371_s0 + $0x60] sm:$0xff] }
  0x15   :  { %v99_v17 = vld [vmem:[%s13371_s0 + $0x68] sm:$0xff]  ;;  %v100_v18 = vld [vmem:[%s13371_s0 + $0x70] sm:$0xff]  ;;  %v101_v19 = vld [vmem:[%s13371_s0 + $0x78] sm:$0xff] }
  0x16   :  { %v3431_v20 = vld [vmem:[#allocation2 + $0xf8] sm:$0xff]  ;;  %v115_v21 = vld [vmem:[%s13373_s2] sm:$0x3]  ;;  %v3429_v31 = vld [vmem:[#allocation2 + $0xe8] sm:$0xff] }
  0x17   :  { %3654 = vmatpush.msrb.mxu0 %v3431_v20  ;;  %v3463_v22 = vld [vmem:[#allocation2 + $0x1f8] sm:$0xff]  ;;  %v7463_v23 = vperm.slane %v115_v21, 0  ;;  %v7465_v24 = vperm.slane %v115_v21, 1  ;;  %v102_v27 = vld [vmem:[%s13371_s0 + $0x80] sm:$0xff]  ;;  %v103_v36 = vld [vmem:[%s13371_s0 + $0x88] sm:$0xff] }
  0x18   :  { %3746 = vmatpush.msrb.mxu1 %v3463_v22  ;;  %v3461_v39 = vld [vmem:[#allocation2 + $0x1e8] sm:$0xff]  ;;  %v104_v46 = vld [vmem:[%s13371_s0 + $0x90] sm:$0xff]  ;;  %v3427_v49 = vld [vmem:[#allocation2 + $0xd8] sm:$0xff] }
  0x19   :  { %3655 = vmatpush.msrb.mxu0 %v3429_v31  ;;  %v3459_v52 = vld [vmem:[#allocation2 + $0x1d8] sm:$0xff]  ;;  %v3425_v1 = vld [vmem:[#allocation2 + $0xc8] sm:$0xff]  ;;  %v106_v4 = vld [vmem:[%s13371_s0 + $0xa0] sm:$0xff] }
  0x1a   :  { %3747 = vmatpush.msrb.mxu1 %v3461_v39  ;;  %v105_v57 = vld [vmem:[%s13371_s0 + $0x98] sm:$0xff] }
  0x1b   :  { %6742 = vmatmul.msk.f32.gmra.mxu0 %vm121_vm0, %v87_v5  ;;  %6767 = vmatmul.msk.f32.gmra.mxu1 %vm121_vm0, %v87_v5 }
  0x1c   :  { %3656 = vmatpush.msrb.mxu0 %v3427_v49  ;;  %3748 = vmatpush.msrb.mxu1 %v3459_v52 }
  0x1e   :  { %3657 = vmatpush.msrb.mxu0 %v3425_v1 }
  0x23   :  { %6743 = vmatmul.msk.f32.gmra.mxu0 %vm121_vm0, %v88_v6  ;;  %6768 = vmatmul.msk.f32.gmra.mxu1 %vm121_vm0, %v88_v6 }
  0x2b   :  { %6744 = vmatmul.msk.f32.gmra.mxu0 %vm121_vm0, %v89_v7  ;;  %6769 = vmatmul.msk.f32.gmra.mxu1 %vm121_vm0, %v89_v7  ;;  %v3457_v7 = vld [vmem:[#allocation2 + $0x1c8] sm:$0xff] }
  0x2c   :  { %3749 = vmatpush.msrb.mxu1 %v3457_v7 }
  0x33   :  { %6745 = vmatmul.msk.f32.gmra.mxu0 %vm121_vm0, %v90_v8  ;;  %6770 = vmatmul.msk.f32.gmra.mxu1 %vm121_vm0, %v90_v8 }
  0x3b   :  { %6746 = vmatmul.msk.f32.gmra.mxu0 %vm121_vm0, %v91_v9  ;;  %6771 = vmatmul.msk.f32.gmra.mxu1 %vm121_vm0, %v91_v9 }
  0x43   :  { %6747 = vmatmul.msk.f32.gmra.mxu0 %vm121_vm0, %v92_v10  ;;  %6772 = vmatmul.msk.f32.gmra.mxu1 %vm121_vm0, %v92_v10 }
  0x4b   :  { %6748 = vmatmul.msk.f32.gmra.mxu0 %vm121_vm0, %v93_v11  ;;  %6773 = vmatmul.msk.f32.gmra.mxu1 %vm121_vm0, %v93_v11 }
  0x53   :  { %6749 = vmatmul.msk.f32.gmra.mxu0 %vm121_vm0, %v94_v12  ;;  %6774 = vmatmul.msk.f32.gmra.mxu1 %vm121_vm0, %v94_v12 }
  0x5b   :  { %6750 = vmatmul.msk.f32.gmra.mxu0 %vm121_vm0, %v95_v13  ;;  %6775 = vmatmul.msk.f32.gmra.mxu1 %vm121_vm0, %v95_v13 }
  0x63   :  { %6751 = vmatmul.msk.f32.gmra.mxu0 %vm121_vm0, %v96_v14  ;;  %6776 = vmatmul.msk.f32.gmra.mxu1 %vm121_vm0, %v96_v14  ;;  %v107_v14 = vld [vmem:[%s13371_s0 + $0xa8] sm:$0xff] }
  0x6b   :  { %6752 = vmatmul.msk.f32.gmra.mxu0 %vm121_vm0, %v97_v15  ;;  %6777 = vmatmul.msk.f32.gmra.mxu1 %vm121_vm0, %v97_v15 }
  0x73   :  { %6753 = vmatmul.msk.f32.gmra.mxu0 %vm121_vm0, %v98_v16  ;;  %6778 = vmatmul.msk.f32.gmra.mxu1 %vm121_vm0, %v98_v16 }
  0x7b   :  { %6754 = vmatmul.msk.f32.gmra.mxu0 %vm121_vm0, %v99_v17  ;;  %6779 = vmatmul.msk.f32.gmra.mxu1 %vm121_vm0, %v99_v17  ;;  %v3423_v17 = vld [vmem:[#allocation2 + $0xb8] sm:$0xff] }
  0x7c   :  { %3658 = vmatpush.msrb.mxu0 %v3423_v17  ;;  %v3449_v17 = vld [vmem:[#allocation2 + $0x188] sm:$0xff] }
  0x83   :  { %6755 = vmatmul.msk.f32.gmra.mxu0 %vm121_vm0, %v100_v18  ;;  %6780 = vmatmul.msk.f32.gmra.mxu1 %vm121_vm0, %v100_v18  ;;  %v3455_v18 = vld [vmem:[#allocation2 + $0x1b8] sm:$0xff] }
  0x84   :  { %3750 = vmatpush.msrb.mxu1 %v3455_v18 }
  0x8b   :  { %6756 = vmatmul.msk.f32.gmra.mxu0 %vm121_vm0, %v101_v19  ;;  %6781 = vmatmul.msk.f32.gmra.mxu1 %vm121_vm0, %v101_v19 }
  0x90   :  { %v214_v25 = vpop.f32.mrf.mxu0  ;;  %v306_v26 = vpop.f32.mrf.mxu1 }
  0x91   :  { %v7471_v28 = vadd.f32 %v214_v25, %v7463_v23  ;;  %v7474_v29 = vadd.f32 %v306_v26, %v7465_v24 }
  0x93   :  { %6757 = vmatmul.msk.f32.gmra.mxu0 %vm121_vm0, %v102_v27  ;;  %6782 = vmatmul.msk.f32.gmra.mxu1 %vm121_vm0, %v102_v27  ;;  %v381_v30 = vadd.f32 %v7474_v29, %v7471_v28  ;;  %v488_v32 = vmul.f32 %v7471_v28, %v7471_v28  ;;  %v489_v33 = vmul.f32 %v7474_v29, %v7474_v29  ;;  %v108_v27 = vld [vmem:[%s13371_s0 + $0xb0] sm:$0xff] }
  0x95   :  { %382 = vadd.xlane.f32.xlu0 %v381_v30  ;;  %v538_v41 = vadd.f32 %v489_v33, %v488_v32 }
  0x98   :  { %v217_v34 = vpop.f32.mrf.mxu0  ;;  %v309_v35 = vpop.f32.mrf.mxu1 }
  0x99   :  { %v7488_v37 = vadd.f32 %v217_v34, %v7463_v23  ;;  %v7491_v38 = vadd.f32 %v309_v35, %v7465_v24 }
  0x9b   :  { %6758 = vmatmul.msk.f32.gmra.mxu0 %vm121_vm0, %v103_v36  ;;  %6783 = vmatmul.msk.f32.gmra.mxu1 %vm121_vm0, %v103_v36  ;;  %v384_v40 = vadd.f32 %v7491_v38, %v7488_v37  ;;  %v490_v42 = vmul.f32 %v7488_v37, %v7488_v37  ;;  %v491_v43 = vmul.f32 %v7491_v38, %v7491_v38 }
  0x9d   :  { %385 = vadd.xlane.f32.xlu1 %v384_v40  ;;  %539 = vadd.xlane.f32.xlu0 %v538_v41  ;;  %v541_v51 = vadd.f32 %v491_v43, %v490_v42  ;;  %v109_v40 = vld [vmem:[%s13371_s0 + $0xb8] sm:$0xff]  ;;  %v3421_v43 = vld [vmem:[#allocation2 + $0xa8] sm:$0xff] }
  0x9e   :  { %3659 = vmatpush.msrb.mxu0 %v3421_v43 }
  0xa0   :  { %v220_v44 = vpop.f32.mrf.mxu0  ;;  %v312_v45 = vpop.f32.mrf.mxu1 }
  0xa1   :  { %v7505_v47 = vadd.f32 %v220_v44, %v7463_v23  ;;  %v7508_v48 = vadd.f32 %v312_v45, %v7465_v24  ;;  %v3453_v44 = vld [vmem:[#allocation2 + $0x1a8] sm:$0xff] }
  0xa2   :  { %3751 = vmatpush.msrb.mxu1 %v3453_v44 }
  0xa3   :  { %6759 = vmatmul.msk.f32.gmra.mxu0 %vm121_vm0, %v104_v46  ;;  %6784 = vmatmul.msk.f32.gmra.mxu1 %vm121_vm0, %v104_v46  ;;  %v387_v50 = vadd.f32 %v7508_v48, %v7505_v47  ;;  %v492_v53 = vmul.f32 %v7505_v47, %v7505_v47  ;;  %v493_v54 = vmul.f32 %v7508_v48, %v7508_v48 }
  0xa5   :  { %388 = vadd.xlane.f32.xlu2 %v387_v50  ;;  %542 = vadd.xlane.f32.xlu1 %v541_v51  ;;  %v544_v60 = vadd.f32 %v493_v54, %v492_v53  ;;  %v110_v53 = vld [vmem:[%s13371_s0 + $0xc0] sm:$0xff] }
  0xa8   :  { %v223_v55 = vpop.f32.mrf.mxu0  ;;  %v315_v56 = vpop.f32.mrf.mxu1 }
  0xa9   :  { %v7522_v58 = vadd.f32 %v223_v55, %v7463_v23  ;;  %v7525_v59 = vadd.f32 %v315_v56, %v7465_v24  ;;  %v3419_v56 = vld [vmem:[#allocation2 + $0x98] sm:$0xff] }
  0xaa   :  { %3660 = vmatpush.msrb.mxu0 %v3419_v56 }
  0xab   :  { %6760 = vmatmul.msk.f32.gmra.mxu0 %vm121_vm0, %v105_v57  ;;  %6785 = vmatmul.msk.f32.gmra.mxu1 %vm121_vm0, %v105_v57  ;;  %v390_v61 = vadd.f32 %v7525_v59, %v7522_v58  ;;  %v494_v62 = vmul.f32 %v7522_v58, %v7522_v58  ;;  %v495_v63 = vmul.f32 %v7525_v59, %v7525_v59 }
  0xad   :  { %545 = vadd.xlane.f32.xlu2 %v544_v60  ;;  %391 = vadd.xlane.f32.xlu0 %v390_v61  ;;  %v547_v0 = vadd.f32 %v495_v63, %v494_v62  ;;  %v3451_v63 = vld [vmem:[#allocation2 + $0x198] sm:$0xff] }
  0xae   :  { %3752 = vmatpush.msrb.mxu1 %v3451_v63 }
  0xaf   :  { %548 = vadd.xlane.f32.xlu1 %v547_v0 }
  0xb0   :  { %v226_v2 = vpop.f32.mrf.mxu0  ;;  %v318_v3 = vpop.f32.mrf.mxu1  ;;  %3753 = vmatpush.msrb.mxu1 %v3449_v17 }
  0xb1   :  { %v7539_v5 = vadd.f32 %v226_v2, %v7463_v23  ;;  %v7542_v6 = vadd.f32 %v318_v3, %v7465_v24 }
  0xb3   :  { %6761 = vmatmul.msk.f32.gmra.mxu0 %vm121_vm0, %v106_v4  ;;  %6786 = vmatmul.msk.f32.gmra.mxu1 %vm121_vm0, %v106_v4  ;;  %v393_v8 = vadd.f32 %v7542_v6, %v7539_v5  ;;  %v496_v9 = vmul.f32 %v7539_v5, %v7539_v5  ;;  %v497_v10 = vmul.f32 %v7542_v6, %v7542_v6 }
  0xb5   :  { %394 = vadd.xlane.f32.xlu2 %v393_v8  ;;  %v550_v11 = vadd.f32 %v497_v10, %v496_v9 }
  0xb7   :  { %551 = vadd.xlane.f32.xlu0 %v550_v11 }
  0xb8   :  { %v229_v12 = vpop.f32.mrf.mxu0  ;;  %v321_v13 = vpop.f32.mrf.mxu1 }
  0xb9   :  { %v7556_v15 = vadd.f32 %v229_v12, %v7463_v23  ;;  %v7559_v16 = vadd.f32 %v321_v13, %v7465_v24 }
  0xbb   :  { %13523 = vst [vmem:[#allocation12_spill] sm:$0xff] %v7556_v15  ;;  %6762 = vmatmul.msk.f32.gmra.mxu0 %vm121_vm0, %v107_v14  ;;  %6787 = vmatmul.msk.f32.gmra.mxu1 %vm121_vm0, %v107_v14  ;;  %v396_v19 = vadd.f32 %v7559_v16, %v7556_v15  ;;  %v498_v20 = vmul.f32 %v7556_v15, %v7556_v15  ;;  %v3417_v14 = vld [vmem:[#allocation2 + $0x88] sm:$0xff] }
  0xbc   :  { %13524 = vst [vmem:[#allocation13_spill] sm:$0xff] %v7559_v16  ;;  %v499_v21 = vmul.f32 %v7559_v16, %v7559_v16  ;;  %3661 = vmatpush.msrb.mxu0 %v3417_v14 }
  0xbd   :  { %397 = vadd.xlane.f32.xlu1 %v396_v19 }
  0xbe   :  { %v553_v22 = vadd.f32 %v499_v21, %v498_v20 }
  0xc0   :  { %554 = vadd.xlane.f32.xlu2 %v553_v22  ;;  %v232_v25 = vpop.f32.mrf.mxu0  ;;  %v324_v26 = vpop.f32.mrf.mxu1 }
  0xc1   :  { %v7573_v30 = vadd.f32 %v232_v25, %v7463_v23  ;;  %v7576_v31 = vadd.f32 %v324_v26, %v7465_v24 }
  0xc3   :  { %13525 = vst [vmem:[#allocation14_spill] sm:$0xff] %v7573_v30  ;;  %6763 = vmatmul.msk.f32.gmra.mxu0 %vm121_vm0, %v108_v27  ;;  %6788 = vmatmul.msk.f32.gmra.mxu1 %vm121_vm0, %v108_v27  ;;  %v399_v32 = vadd.f32 %v7576_v31, %v7573_v30  ;;  %v500_v33 = vmul.f32 %v7573_v30, %v7573_v30 }
  0xc4   :  { %13526 = vst [vmem:[#allocation15_spill] sm:$0xff] %v7576_v31  ;;  %v501_v34 = vmul.f32 %v7576_v31, %v7576_v31 }
  0xc5   :  { %400 = vadd.xlane.f32.xlu0 %v399_v32 }
  0xc6   :  { %v556_v35 = vadd.f32 %v501_v34, %v500_v33 }
  0xc8   :  { %557 = vadd.xlane.f32.xlu1 %v556_v35  ;;  %v235_v36 = vpop.f32.mrf.mxu0  ;;  %v327_v39 = vpop.f32.mrf.mxu1  ;;  %v3415_v35 = vld [vmem:[#allocation2 + $0x78] sm:$0xff] }
  0xc9   :  { %v7590_v41 = vadd.f32 %v235_v36, %v7463_v23  ;;  %v7593_v42 = vadd.f32 %v327_v39, %v7465_v24  ;;  %3662 = vmatpush.msrb.mxu0 %v3415_v35  ;;  %v3447_v39 = vld [vmem:[#allocation2 + $0x178] sm:$0xff] }
  0xca   :  { %3754 = vmatpush.msrb.mxu1 %v3447_v39 }
  0xcb   :  { %13527 = vst [vmem:[#allocation16_spill] sm:$0xff] %v7593_v42  ;;  %6764 = vmatmul.msk.f32.gmra.mxu0 %vm121_vm0, %v109_v40  ;;  %6789 = vmatmul.msk.f32.gmra.mxu1 %vm121_vm0, %v109_v40  ;;  %v402_v45 = vadd.f32 %v7593_v42, %v7590_v41  ;;  %v502_v46 = vmul.f32 %v7590_v41, %v7590_v41 }
  0xcc   :  { %v503_v49 = vmul.f32 %v7593_v42, %v7593_v42 }
  0xcd   :  { %403 = vadd.xlane.f32.xlu2 %v402_v45 }
  0xce   :  { %v559_v50 = vadd.f32 %v503_v49, %v502_v46  ;;  %v7294_v46 = vmov 256.0  }
  0xcf   :  { %6933 = vrcp.f32 %v7294_v46 }
  0xd0   :  { %560 = vadd.xlane.f32.xlu0 %v559_v50  ;;  %v238_v51 = vpop.f32.mrf.mxu0  ;;  %v330_v52 = vpop.f32.mrf.mxu1 }
  0xd1   :  { %v7607_v54 = vadd.f32 %v238_v51, %v7463_v23  ;;  %v7610_v55 = vadd.f32 %v330_v52, %v7465_v24 }
  0xd3   :  { %13528 = vst [vmem:[#allocation17_spill] sm:$0xff] %v7607_v54  ;;  %6765 = vmatmul.msk.f32.gmra.mxu0 %vm121_vm0, %v110_v53  ;;  %6790 = vmatmul.msk.f32.gmra.mxu1 %vm121_vm0, %v110_v53  ;;  %v405_v57 = vadd.f32 %v7610_v55, %v7607_v54  ;;  %v504_v60 = vmul.f32 %v7607_v54, %v7607_v54 }
  0xd4   :  { %13529 = vst [vmem:[#allocation18_spill] sm:$0xff] %v7610_v55  ;;  %v505_v61 = vmul.f32 %v7610_v55, %v7610_v55 }
  0xd5   :  { %406 = vadd.xlane.f32.xlu1 %v405_v57  ;;  %v6934_v53 = vpop.eup %6933 }
  0xd6   :  { %v562_v62 = vadd.f32 %v505_v61, %v504_v60  ;;  %vm461_vm1 = vweird.f32 %v6934_v53 }
  0xd8   :  { %563 = vadd.xlane.f32.xlu2 %v562_v62  ;;  %v241_v0 = vpop.f32.mrf.mxu0  ;;  %v333_v1 = vpop.f32.mrf.mxu1 }
  0xd9   :  { %v7621_v2 = vadd.f32 %v241_v0, %v7463_v23  ;;  %v7624_v3 = vadd.f32 %v333_v1, %v7465_v24  ;;  %v457_v1 = vmul.f32 256.0, %v6934_v53 }
  0xdb   :  { %13530 = vst [vmem:[#allocation19_spill] sm:$0xff] %v7621_v2  ;;  %v408_v4 = vadd.f32 %v7624_v3, %v7621_v2  ;;  %v506_v7 = vmul.f32 %v7621_v2, %v7621_v2  ;;  %v507_v8 = vmul.f32 %v7624_v3, %v7624_v3 }
  0xdc   :  { %13531 = vst [vmem:[#allocation20_spill] sm:$0xff] %v7624_v3 }
  0xdd   :  { %409 = vadd.xlane.f32.xlu0 %v408_v4  ;;  %v565_v9 = vadd.f32 %v507_v8, %v506_v7  ;;  %v458_v7 = vsub.f32 1.0, %v457_v1 }
  0xdf   :  { %566 = vadd.xlane.f32.xlu1 %v565_v9 }
  0xe0   :  { %v244_v10 = vpop.f32.mrf.mxu0  ;;  %v336_v11 = vpop.f32.mrf.mxu1 }
  0xe1   :  { %v7633_v12 = vadd.f32 %v244_v10, %v7463_v23  ;;  %v7636_v13 = vadd.f32 %v336_v11, %v7465_v24 }
  0xe3   :  { %13532 = vst [vmem:[#allocation21_spill] sm:$0xff] %v7633_v12  ;;  %v411_v18 = vadd.f32 %v7636_v13, %v7633_v12  ;;  %v508_v19 = vmul.f32 %v7633_v12, %v7633_v12  ;;  %v509_v20 = vmul.f32 %v7636_v13, %v7636_v13 }
  0xe4   :  { %13533 = vst [vmem:[#allocation22_spill] sm:$0xff] %v7636_v13 }
  0xe5   :  { %412 = vadd.xlane.f32.xlu2 %v411_v18  ;;  %v568_v21 = vadd.f32 %v509_v20, %v508_v19  ;;  %v459_v19 = vmul.f32 %v6934_v53, %v458_v7 }
  0xe7   :  { %569 = vadd.xlane.f32.xlu0 %v568_v21  ;;  %v460_v21 = vadd.f32 %v6934_v53, %v459_v19 }
  0xe8   :  { %v247_v22 = vpop.f32.mrf.mxu0  ;;  %v339_v25 = vpop.f32.mrf.mxu1 }
  0xe9   :  { %v7645_v26 = vadd.f32 %v247_v22, %v7463_v23  ;;  %v7648_v27 = vadd.f32 %v339_v25, %v7465_v24  ;;  %v7698_v35 = vsel %vm461_vm1, %v6934_v53, %v460_v21 }
  0xeb   :  { %13534 = vst [vmem:[#allocation23_spill] sm:$0xff] %v7645_v26  ;;  %v414_v32 = vadd.f32 %v7648_v27, %v7645_v26  ;;  %v510_v33 = vmul.f32 %v7645_v26, %v7645_v26  ;;  %v511_v34 = vmul.f32 %v7648_v27, %v7648_v27  ;;  %v3432_v26 = vld [vmem:[#allocation2 + $0x100] sm:$0xff] }
  0xec   :  { %13535 = vst [vmem:[#allocation24_spill] sm:$0xff] %v7648_v27 }
  0xed   :  { %415 = vadd.xlane.f32.xlu1 %v414_v32  ;;  %v571_v36 = vadd.f32 %v511_v34, %v510_v33 }
  0xef   :  { %572 = vadd.xlane.f32.xlu2 %v571_v36 }
  0xf0   :  { %v250_v40 = vpop.f32.mrf.mxu0  ;;  %v342_v43 = vpop.f32.mrf.mxu1 }
  0xf1   :  { %v7657_v44 = vadd.f32 %v250_v40, %v7463_v23  ;;  %v7660_v45 = vadd.f32 %v342_v43, %v7465_v24 }
  0xf3   :  { %13536 = vst [vmem:[#allocation25_spill] sm:$0xff] %v7657_v44  ;;  %v417_v49 = vadd.f32 %v7660_v45, %v7657_v44  ;;  %v512_v50 = vmul.f32 %v7657_v44, %v7657_v44  ;;  %v513_v51 = vmul.f32 %v7660_v45, %v7660_v45 }
  0xf4   :  { %13537 = vst [vmem:[#allocation26_spill] sm:$0xff] %v7660_v45  ;;  %v3436_v45 = vld [vmem:[#allocation2 + $0x120] sm:$0xff] }
  0xf5   :  { %418 = vadd.xlane.f32.xlu0 %v417_v49  ;;  %v574_v52 = vadd.f32 %v513_v51, %v512_v50 }
  0xf7   :  { %575 = vadd.xlane.f32.xlu1 %v574_v52 }
  0xf8   :  { %v253_v56 = vpop.f32.mrf.mxu0  ;;  %v345_v57 = vpop.f32.mrf.mxu1 }
  0xf9   :  { %v7669_v60 = vadd.f32 %v253_v56, %v7463_v23  ;;  %v7672_v61 = vadd.f32 %v345_v57, %v7465_v24  ;;  %v3413_v56 = vld [vmem:[#allocation2 + $0x68] sm:$0xff] }
  0xfa   :  { %v3445_v57 = vld [vmem:[#allocation2 + $0x168] sm:$0xff]  ;;  %3663 = vmatpush.msrb.mxu0 %v3413_v56 }
  0xfb   :  { %13538 = vst [vmem:[#allocation27_spill] sm:$0xff] %v7669_v60  ;;  %v420_v62 = vadd.f32 %v7672_v61, %v7669_v60  ;;  %v514_v63 = vmul.f32 %v7669_v60, %v7669_v60  ;;  %v515_v0 = vmul.f32 %v7672_v61, %v7672_v61  ;;  %3755 = vmatpush.msrb.mxu1 %v3445_v57 }
  0xfc   :  { %13539 = vst [vmem:[#allocation28_spill] sm:$0xff] %v7672_v61 }
  0xfd   :  { %421 = vadd.xlane.f32.xlu2 %v420_v62  ;;  %v577_v4 = vadd.f32 %v515_v0, %v514_v63 }
  0xff   :  { %578 = vadd.xlane.f32.xlu0 %v577_v4 }
 0x100   :  { %v256_v8 = vpop.f32.mrf.mxu0  ;;  %v348_v9 = vpop.f32.mrf.mxu1 }
 0x101   :  { %v7681_v10 = vadd.f32 %v256_v8, %v7463_v23  ;;  %v7684_v11 = vadd.f32 %v348_v9, %v7465_v24 }
 0x103   :  { %13540 = vst [vmem:[#allocation29_spill] sm:$0xff] %v7681_v10  ;;  %v423_v14 = vadd.f32 %v7684_v11, %v7681_v10  ;;  %v516_v17 = vmul.f32 %v7681_v10, %v7681_v10  ;;  %v517_v18 = vmul.f32 %v7684_v11, %v7684_v11 }
 0x104   :  { %13541 = vst [vmem:[#allocation30_spill] sm:$0xff] %v7684_v11 }
 0x105   :  { %424 = vadd.xlane.f32.xlu1 %v423_v14  ;;  %v580_v20 = vadd.f32 %v517_v18, %v516_v17 }
 0x107   :  { %581 = vadd.xlane.f32.xlu2 %v580_v20 }
 0x108   :  { %v259_v22 = vpop.f32.mrf.mxu0  ;;  %v351_v25 = vpop.f32.mrf.mxu1 }
 0x109   :  { %v7693_v32 = vadd.f32 %v259_v22, %v7463_v23  ;;  %v7696_v33 = vadd.f32 %v351_v25, %v7465_v24  ;;  %v383_v34 = vpop.xlane.xlu0 %382 }
 0x10a   :  { %v7707_v46 = vmul.f32 %v7698_v35, %v383_v34 }
 0x10b   :  { %13542 = vst [vmem:[#allocation31_spill] sm:$0xff] %v7693_v32  ;;  %v426_v36 = vadd.f32 %v7696_v33, %v7693_v32  ;;  %v518_v39 = vmul.f32 %v7693_v32, %v7693_v32  ;;  %v519_v40 = vmul.f32 %v7696_v33, %v7696_v33 }
 0x10c   :  { %13543 = vst [vmem:[#allocation32_spill] sm:$0xff] %v7696_v33  ;;  %v638_v63 = vmul.f32 %v7707_v46, %v7707_v46  ;;  %v3408_v33 = vld [vmem:[#allocation2 + $0x40] sm:$0xff] }
 0x10d   :  { %427 = vadd.xlane.f32.xlu0 %v426_v36  ;;  %v583_v43 = vadd.f32 %v519_v40, %v518_v39  ;;  %v3411_v36 = vld [vmem:[#allocation2 + $0x58] sm:$0xff] }
 0x10e   :  { %v3443_v39 = vld [vmem:[#allocation2 + $0x158] sm:$0xff]  ;;  %3664 = vmatpush.msrb.mxu0 %v3411_v36  ;;  %v3430_v36 = vld [vmem:[#allocation2 + $0xf0] sm:$0xff] }
 0x10f   :  { %584 = vadd.xlane.f32.xlu1 %v583_v43  ;;  %3756 = vmatpush.msrb.mxu1 %v3443_v39  ;;  %v3462_v39 = vld [vmem:[#allocation2 + $0x1f0] sm:$0xff] }
 0x110   :  { %v262_v49 = vpop.f32.mrf.mxu0  ;;  %v354_v50 = vpop.f32.mrf.mxu1  ;;  %3470 = vmatpush.msra.mxu2 %v3430_v36  ;;  %3562 = vmatpush.msra.mxu3 %v3462_v39  ;;  %v713_v36 = vsub.f32 %v7471_v28, %v7707_v46  ;;  %v3456_v39 = vld [vmem:[#allocation2 + $0x1c0] sm:$0xff] }
 0x111   :  { %v7710_v51 = vadd.f32 %v262_v49, %v7463_v23  ;;  %v7713_v52 = vadd.f32 %v354_v50, %v7465_v24  ;;  %v540_v53 = vpop.xlane.xlu0 %539  ;;  %v386_v62 = vpop.xlane.xlu1 %385 }
 0x112   :  { %v613_v0 = vmul.f32 %v540_v53, %v7698_v35  ;;  %v7740_v43 = vmul.f32 %v7698_v35, %v386_v62 }
 0x113   :  { %13544 = vst [vmem:[#allocation33_spill] sm:$0xff] %v7710_v51  ;;  %v429_v1 = vadd.f32 %v7713_v52, %v7710_v51  ;;  %v520_v4 = vmul.f32 %v7710_v51, %v7710_v51  ;;  %v521_v7 = vmul.f32 %v7713_v52, %v7713_v52  ;;  %v3442_v51 = vld [vmem:[#allocation2 + $0x150] sm:$0xff] }
 0x114   :  { %13545 = vst [vmem:[#allocation34_spill] sm:$0xff] %v7713_v52  ;;  %v663_v8 = vsub.f32 %v613_v0, %v638_v63  ;;  %v639_v0 = vmul.f32 %v7740_v43, %v7740_v43 }
 0x115   :  { %430 = vadd.xlane.f32.xlu2 %v429_v1  ;;  %v586_v9 = vadd.f32 %v521_v7, %v520_v4 }
 0x116   :  { %v688_v14 = vmax.f32 %v663_v8, 0.0 }
 0x117   :  { %587 = vadd.xlane.f32.xlu0 %v586_v9 }
 0x118   :  { %v7724_v17 = vadd.f32 1e-05, %v688_v14  ;;  %v265_v18 = vpop.f32.mrf.mxu0  ;;  %v357_v19 = vpop.f32.mrf.mxu1 }
 0x119   :  { %v7727_v20 = vadd.f32 %v265_v18, %v7463_v23  ;;  %v7730_v21 = vadd.f32 %v357_v19, %v7465_v24  ;;  %v543_v40 = vpop.xlane.xlu1 %542  ;;  %v7756_v18 = vpop.xlane.xlu2 %388 }
 0x11a   :  { %6935 = vrsqrt.f32 %v7724_v17  ;;  %v614_v50 = vmul.f32 %v543_v40, %v7698_v35  ;;  %vm794_vm3 = vweird.f32 %v7724_v17 }
 0x11b   :  { %13546 = vst [vmem:[#allocation35_spill] sm:$0xff] %v7727_v20  ;;  %v432_v22 = vadd.f32 %v7730_v21, %v7727_v20  ;;  %v522_v25 = vmul.f32 %v7727_v20, %v7727_v20  ;;  %v523_v34 = vmul.f32 %v7730_v21, %v7730_v21 }
 0x11c   :  { %13547 = vst [vmem:[#allocation36_spill] sm:$0xff] %v7730_v21  ;;  %v664_v7 = vsub.f32 %v614_v50, %v639_v0 }
 0x11d   :  { %433 = vadd.xlane.f32.xlu1 %v432_v22  ;;  %v589_v49 = vadd.f32 %v523_v34, %v522_v25 }
 0x11e   :  { %v689_v25 = vmax.f32 %v664_v7, 0.0 }
 0x11f   :  { %590 = vadd.xlane.f32.xlu2 %v589_v49 }
 0x120   :  { %v6936_v53 = vpop.eup %6935  ;;  %v268_v56 = vpop.f32.mrf.mxu0 }
 0x121   :  { %v360_v57 = vpop.f32.mrf.mxu1  ;;  %v789_v63 = vmul.f32 %v6936_v53, %v7724_v17  ;;  %v7747_v1 = vadd.f32 %v268_v56, %v7463_v23  ;;  %v3428_v56 = vld [vmem:[#allocation2 + $0xe0] sm:$0xff]  ;;  %vm795_vm2 = vweird.f32 %v6936_v53 }
 0x122   :  { %v7750_v62 = vadd.f32 %v360_v57, %v7465_v24  ;;  %v3460_v57 = vld [vmem:[#allocation2 + $0x1e0] sm:$0xff]  ;;  %3471 = vmatpush.msra.mxu2 %v3428_v56  ;;  %vm796_vm4 = vmor %vm794_vm3, %vm795_vm2  ;;  %v546_v56 = vpop.xlane.xlu2 %545 }
 0x123   :  { %13548 = vst [vmem:[#allocation37_spill] sm:$0xff] %v7747_v1  ;;  %v790_v4 = vmul.f32 %v6936_v53, %v789_v63  ;;  %v524_v9 = vmul.f32 %v7747_v1, %v7747_v1  ;;  %3563 = vmatpush.msra.mxu3 %v3460_v57  ;;  %v3424_v17 = vld [vmem:[#allocation2 + $0xc0] sm:$0xff]  ;;  %v3422_v57 = vld [vmem:[#allocation2 + $0xb0] sm:$0xff] }
 0x124   :  { %13549 = vst [vmem:[#allocation38_spill] sm:$0xff] %v7750_v62  ;;  %v435_v8 = vadd.f32 %v7750_v62, %v7747_v1  ;;  %v525_v19 = vmul.f32 %v7750_v62, %v7750_v62 }
 0x125   :  { %v791_v14 = vmul.f32 0.5, %v790_v4  ;;  %v7766_v4 = vadd.f32 1e-05, %v689_v25  ;;  %v1088_v25 = vld [vmem:[%s13374_s3] sm:$0x3] }
 0x126   :  { %436 = vadd.xlane.f32.xlu0 %v435_v8  ;;  %v592_v34 = vadd.f32 %v525_v19, %v524_v9  ;;  %v3409_v8 = vld [vmem:[#allocation2 + $0x48] sm:$0xff] }
 0x127   :  { %v792_v22 = vsub.f32 1.5, %v791_v14  ;;  %v3441_v9 = vld [vmem:[#allocation2 + $0x148] sm:$0xff]  ;;  %v3426_v14 = vld [vmem:[#allocation2 + $0xd0] sm:$0xff]  ;;  %3665 = vmatpush.msrb.mxu0 %v3409_v8  ;;  %6937 = vrsqrt.f32 %v7766_v4  ;;  %vm804_vm6 = vweird.f32 %v7766_v4 }
 0x128   :  { %v271_v40 = vpop.f32.mrf.mxu0  ;;  %593 = vadd.xlane.f32.xlu1 %v592_v34  ;;  %3757 = vmatpush.msrb.mxu1 %v3441_v9  ;;  %v3458_v34 = vld [vmem:[#allocation2 + $0x1d0] sm:$0xff] }
 0x129   :  { %v363_v49 = vpop.f32.mrf.mxu1  ;;  %v7761_v50 = vadd.f32 %v271_v40, %v7463_v23  ;;  %v793_v63 = vmul.f32 %v6936_v53, %v792_v22  ;;  %3472 = vmatpush.msra.mxu2 %v3426_v14  ;;  %3564 = vmatpush.msra.mxu3 %v3458_v34  ;;  %v3454_v8 = vld [vmem:[#allocation2 + $0x1b0] sm:$0xff]  ;;  %v1144_v14 = vld [vmem:[%s13375_s4] sm:$0x3] }
 0x12a   :  { %v7764_v0 = vadd.f32 %v363_v49, %v7465_v24 }
 0x12b   :  { %13550 = vst [vmem:[#allocation39_spill] sm:$0xff] %v7761_v50  ;;  %v526_v7 = vmul.f32 %v7761_v50, %v7761_v50  ;;  %v797_v49 = vsel %vm796_vm4, %v6936_v53, %v793_v63  ;;  %3473 = vmatpush.msra.mxu2 %v3424_v17  ;;  %3565 = vmatpush.msra.mxu3 %v3456_v39  ;;  %v3420_v53 = vld [vmem:[#allocation2 + $0xa0] sm:$0xff]  ;;  %v392_v39 = vpop.xlane.xlu0 %391 }
 0x12c   :  { %13551 = vst [vmem:[#allocation40_spill] sm:$0xff] %v7764_v0  ;;  %v438_v19 = vadd.f32 %v7764_v0, %v7761_v50  ;;  %v527_v22 = vmul.f32 %v7764_v0, %v7764_v0  ;;  %v1038_v9 = vmul.f32 %v797_v49, %v713_v36  ;;  %v7782_v0 = vperm.slane %v1088_v25, 0  ;;  %v3452_v63 = vld [vmem:[#allocation2 + $0x1a0] sm:$0xff] }
 0x12d   :  { %3474 = vmatpush.msra.mxu2 %v3422_v57  ;;  %3566 = vmatpush.msra.mxu3 %v3454_v8  ;;  %v7794_v36 = vperm.slane %v1144_v14, 0  ;;  %v714_v17 = vsub.f32 %v7474_v29, %v7707_v46  ;;  %v3439_v57 = vld [vmem:[#allocation2 + $0x138] sm:$0xff]  ;;  %v3450_v8 = vld [vmem:[#allocation2 + $0x190] sm:$0xff]  ;;  %v7798_v62 = vpop.eup %6937  ;;  %v3448_v46 = vld [vmem:[#allocation2 + $0x180] sm:$0xff]  ;;  %v7809_v21 = vmul.f32 %v7698_v35, %v392_v39 }
 0x12e   :  { %439 = vadd.xlane.f32.xlu2 %v438_v19  ;;  %v595_v40 = vadd.f32 %v527_v22, %v526_v7  ;;  %v3418_v22 = vld [vmem:[#allocation2 + $0x90] sm:$0xff]  ;;  %v1094_v34 = vmul.f32 %v7782_v0, %v1038_v9  ;;  %3758 = vmatpush.msrb.mxu1 %v3439_v57  ;;  %v799_v57 = vmul.f32 %v7798_v62, %v7766_v4  ;;  %v3412_v39 = vld [vmem:[#allocation2 + $0x60] sm:$0xff]  ;;  %vm805_vm5 = vweird.f32 %v7798_v62 }
 0x12f   :  { %3475 = vmatpush.msra.mxu2 %v3420_v53  ;;  %3567 = vmatpush.msra.mxu3 %v3452_v63  ;;  %v549_v53 = vpop.xlane.xlu1 %548  ;;  %v1039_v1 = vmul.f32 %v797_v49, %v714_v17  ;;  %v7818_v49 = vmul.f32 %v7698_v35, %v7756_v18  ;;  %v7831_v18 = vperm.slane %v1144_v14, 1  ;;  %vm806_vm7 = vmor %vm804_vm6, %vm805_vm5 }
 0x130   :  { %596 = vadd.xlane.f32.xlu0 %v595_v40  ;;  %v274_v28 = vpop.f32.mrf.mxu0  ;;  %v3407_v40 = vld [vmem:[#allocation2 + $0x38] sm:$0xff] }
 0x131   :  { %v366_v50 = vpop.f32.mrf.mxu1  ;;  %v7788_v7 = vadd.f32 %v274_v28, %v7463_v23  ;;  %3666 = vmatpush.msrb.mxu0 %v3407_v40  ;;  %v7800_v28 = vperm.slane %v1088_v25, 1  ;;  %3476 = vmatpush.msra.mxu2 %v3418_v22  ;;  %v3414_v40 = vld [vmem:[#allocation2 + $0x70] sm:$0xff]  ;;  %v7812_v25 = vadd.f32 %v7794_v36, %v1094_v34  ;;  %v395_v22 = vpop.xlane.xlu2 %394  ;;  %v640_v14 = vmul.f32 %v7818_v49, %v7818_v49 }
 0x132   :  { %v7791_v19 = vadd.f32 %v366_v50, %v7465_v24  ;;  %v3416_v50 = vld [vmem:[#allocation2 + $0x80] sm:$0xff]  ;;  %3568 = vmatpush.msra.mxu3 %v3450_v8  ;;  %v615_v8 = vmul.f32 %v546_v56, %v7698_v35 }
 0x133   :  { %13552 = vst [vmem:[#allocation41_spill] sm:$0xff] %v7788_v7  ;;  %v528_v63 = vmul.f32 %v7788_v7, %v7788_v7  ;;  %3477 = vmatpush.msra.mxu2 %v3416_v50  ;;  %v7828_v50 = vmul.f32 0.70710677, %v7812_v25 }
 0x134   :  { %13553 = vst [vmem:[#allocation42_spill] sm:$0xff] %v7791_v19  ;;  %v441_v9 = vadd.f32 %v7791_v19, %v7788_v7  ;;  %v529_v29 = vmul.f32 %v7791_v19, %v7791_v19  ;;  %v3446_v19 = vld [vmem:[#allocation2 + $0x170] sm:$0xff]  ;;  %3569 = vmatpush.msra.mxu3 %v3448_v46  ;;  %v800_v46 = vmul.f32 %v7798_v62, %v799_v57 }
 0x135   :  { %3478 = vmatpush.msra.mxu2 %v3414_v40 }
 0x136   :  { %442 = vadd.xlane.f32.xlu1 %v441_v9  ;;  %v598_v20 = vadd.f32 %v529_v29, %v528_v63  ;;  %v1095_v9 = vmul.f32 %v7800_v28, %v1039_v1  ;;  %v616_v63 = vmul.f32 %v549_v53, %v7698_v35  ;;  %3570 = vmatpush.msra.mxu3 %v3446_v19  ;;  %v3410_v29 = vld [vmem:[#allocation2 + $0x50] sm:$0xff]  ;;  %v552_v53 = vpop.xlane.xlu0 %551  ;;  %v801_v11 = vmul.f32 0.5, %v800_v46 }
 0x137   :  { %v7842_v1 = vmul.f32 %v7698_v35, %v395_v22  ;;  %3479 = vmatpush.msra.mxu2 %v3412_v39  ;;  %v1300_v19 = vmul.f32 %v7828_v50, %v7828_v50  ;;  %v665_v22 = vsub.f32 %v615_v8, %v640_v14 }
 0x138   :  { %v277_v7 = vpop.f32.mrf.mxu0  ;;  %599 = vadd.xlane.f32.xlu2 %v598_v20  ;;  %v3444_v20 = vld [vmem:[#allocation2 + $0x160] sm:$0xff]  ;;  %v7851_v57 = vadd.f32 %v7831_v18, %v1095_v9 }
 0x139   :  { %v369_v52 = vpop.f32.mrf.mxu1  ;;  %v7821_v17 = vadd.f32 %v277_v7, %v7463_v23  ;;  %v641_v7 = vmul.f32 %v7809_v21, %v7809_v21  ;;  %3571 = vmatpush.msra.mxu3 %v3444_v20  ;;  %3480 = vmatpush.msra.mxu2 %v3410_v29  ;;  %v3440_v20 = vld [vmem:[#allocation2 + $0x140] sm:$0xff]  ;;  %v3406_v29 = vld [vmem:[#allocation2 + $0x30] sm:$0xff]  ;;  %v7856_v60 = vmin.f32 %v1300_v19, 16.0  ;;  %v555_v46 = vpop.xlane.xlu2 %554  ;;  %v690_v14 = vmax.f32 %v665_v22, 0.0 }
 0x13a   :  { %v7824_v34 = vadd.f32 %v369_v52, %v7465_v24 }
 0x13b   :  { %13554 = vst [vmem:[#allocation43_spill] sm:$0xff] %v7821_v17  ;;  %v530_v56 = vmul.f32 %v7821_v17, %v7821_v17  ;;  %v666_v39 = vsub.f32 %v616_v63, %v641_v7  ;;  %3572 = vmatpush.msra.mxu3 %v3442_v51  ;;  %3481 = vmatpush.msra.mxu2 %v3408_v33  ;;  %v3405_v7 = vld [vmem:[#allocation2 + $0x28] sm:$0xff]  ;;  %v3438_v33 = vld [vmem:[#allocation2 + $0x130] sm:$0xff]  ;;  %v7868_v51 = vmul.f32 0.70710677, %v7851_v57 }
 0x13c   :  { %13555 = vst [vmem:[#allocation44_spill] sm:$0xff] %v7824_v34  ;;  %v444_v52 = vadd.f32 %v7824_v34, %v7821_v17  ;;  %v531_v40 = vmul.f32 %v7824_v34, %v7824_v34  ;;  %v398_v17 = vpop.xlane.xlu1 %397  ;;  %v617_v34 = vmul.f32 %v552_v53, %v7698_v35  ;;  %3667 = vmatpush.msrb.mxu0 %v3405_v7  ;;  %v3403_v53 = vld [vmem:[#allocation2 + $0x18] sm:$0xff] }
 0x13d   :  { %v7859_v9 = vmul.f32 %v7698_v35, %v398_v17  ;;  %v3435_v17 = vld [vmem:[#allocation2 + $0x118] sm:$0xff]  ;;  %3573 = vmatpush.msra.mxu3 %v3440_v20  ;;  %3482 = vmatpush.msra.mxu2 %v3406_v29  ;;  %v618_v7 = vmul.f32 %v555_v46, %v7698_v35  ;;  %v3402_v20 = vld [vmem:[#allocation2 + $0x10] sm:$0xff]  ;;  %v3401_v29 = vld [vmem:[#allocation2 + $0x8] sm:$0xff] }
 0x13e   :  { %445 = vadd.xlane.f32.xlu0 %v444_v52  ;;  %v601_v32 = vadd.f32 %v531_v40, %v530_v56  ;;  %v642_v52 = vmul.f32 %v7842_v1, %v7842_v1  ;;  %v3437_v56 = vld [vmem:[#allocation2 + $0x128] sm:$0xff]  ;;  %v802_v40 = vsub.f32 1.5, %v801_v11  ;;  %3668 = vmatpush.msrb.mxu0 %v3403_v53  ;;  %v401_v46 = vpop.xlane.xlu0 %400 }
 0x13f   :  { %13556 = vst [vmem:[#allocation45_spill] sm:$0xff] %v7859_v9  ;;  %3759 = vmatpush.msrb.mxu1 %v3437_v56  ;;  %v643_v56 = vmul.f32 %v7859_v9, %v7859_v9  ;;  %3574 = vmatpush.msra.mxu3 %v3438_v33  ;;  %v3400_v33 = vld [vmem:[#allocation2] sm:$0xff] }
 0x140   :  { %v280_v10 = vpop.f32.mrf.mxu0  ;;  %602 = vadd.xlane.f32.xlu1 %v601_v32  ;;  %v3404_v32 = vld [vmem:[#allocation2 + $0x20] sm:$0xff]  ;;  %v667_v19 = vsub.f32 %v617_v34, %v642_v52  ;;  %v3434_v34 = vld [vmem:[#allocation2 + $0x110] sm:$0xff]  ;;  %3669 = vmatpush.msrb.mxu0 %v3401_v29  ;;  %v7881_v52 = vadd.f32 1e-05, %v690_v14  ;;  %v1302_v14 = vmul.f32 2.1237322e-06, %v7856_v60 }
 0x141   :  { %v372_v61 = vpop.f32.mrf.mxu1  ;;  %v7862_v8 = vadd.f32 %v280_v10, %v7463_v23  ;;  %v1313_v10 = vmul.f32 3.8918573e-05, %v7856_v60  ;;  %3760 = vmatpush.msrb.mxu1 %v3435_v17  ;;  %3483 = vmatpush.msra.mxu2 %v3404_v32  ;;  %v1340_v17 = vmul.f32 %v7868_v51, %v7868_v51 }
 0x142   :  { %v7865_v63 = vadd.f32 %v372_v61, %v7465_v24  ;;  %v691_v61 = vmax.f32 %v666_v39, 0.0  ;;  %v3433_v39 = vld [vmem:[#allocation2 + $0x108] sm:$0xff]  ;;  %3575 = vmatpush.msra.mxu3 %v3436_v45  ;;  %v692_v13 = vmax.f32 %v667_v19, 0.0  ;;  %6939 = vrsqrt.f32 %v7881_v52 }
 0x143   :  { %13557 = vst [vmem:[#allocation46_spill] sm:$0xff] %v7862_v8  ;;  %v532_v44 = vmul.f32 %v7862_v8, %v7862_v8  ;;  %v1314_v53 = vadd.f32 0.001143296, %v1313_v10  ;;  %3484 = vmatpush.msra.mxu2 %v3402_v20  ;;  %3761 = vmatpush.msrb.mxu1 %v3433_v39  ;;  %v7907_v4 = vmin.f32 %v1340_v17, 16.0  ;;  %v715_v20 = vsub.f32 %v7488_v37, %v7740_v43 }
 0x144   :  { %13558 = vst [vmem:[#allocation47_spill] sm:$0xff] %v7865_v63  ;;  %v447_v22 = vadd.f32 %v7865_v63, %v7862_v8  ;;  %v533_v11 = vmul.f32 %v7865_v63, %v7865_v63  ;;  %v803_v8 = vmul.f32 %v7798_v62, %v802_v40  ;;  %v7886_v27 = vadd.f32 1e-05, %v691_v61  ;;  %3576 = vmatpush.msra.mxu3 %v3434_v34 }
 0x145   :  { %3485 = vmatpush.msra.mxu2 %v3400_v33  ;;  %v1315_v40 = vmul.f32 %v1314_v53, %v7856_v60  ;;  %vm814_vm9 = vweird.f32 %v7881_v52 }
 0x146   :  { %448 = vadd.xlane.f32.xlu2 %v447_v22  ;;  %v604_v32 = vadd.f32 %v533_v11, %v532_v44  ;;  %v668_v22 = vsub.f32 %v618_v7, %v643_v56  ;;  %v7897_v44 = vmul.f32 %v7698_v35, %v401_v46  ;;  %3577 = vmatpush.msra.mxu3 %v3432_v26  ;;  %6941 = vrsqrt.f32 %v7886_v27 }
 0x147   :  { %v1303_v7 = vadd.f32 0.00028619796, %v1302_v14  ;;  %v7911_v56 = vsel %vm806_vm7, %v7798_v62, %v803_v8  ;;  %v7915_v11 = vadd.f32 1e-05, %v692_v13  ;;  %v1316_v33 = vadd.f32 0.014752088, %v1315_v40 }
 0x148   :  { %v283_v63 = vpop.f32.mrf.mxu0  ;;  %13561 = vst [vmem:[#allocation50_spill] sm:$0xff] %v7897_v44  ;;  %605 = vadd.xlane.f32.xlu0 %v604_v32  ;;  %v693_v34 = vmax.f32 %v668_v22, 0.0  ;;  %v644_v46 = vmul.f32 %v7897_v44, %v7897_v44  ;;  %v1353_v62 = vmul.f32 3.8918573e-05, %v7907_v4  ;;  %v1040_v8 = vmul.f32 %v7911_v56, %v715_v20 }
 0x149   :  { %v375_v29 = vpop.f32.mrf.mxu1  ;;  %v7890_v45 = vadd.f32 %v283_v63, %v7463_v23  ;;  %v558_v63 = vpop.xlane.xlu1 %557  ;;  %13562 = vst [vmem:[#allocation51_spill] sm:$0xff] %v7915_v11  ;;  %v1304_v13 = vmul.f32 %v1303_v7, %v7856_v60  ;;  %v1317_v32 = vmul.f32 %v1316_v33, %v7856_v60  ;;  %6943 = vrsqrt.f32 %v7915_v11 }
 0x14a   :  { %v7893_v10 = vadd.f32 %v375_v29, %v7465_v24  ;;  %v619_v26 = vmul.f32 %v558_v63, %v7698_v35  ;;  %v7926_v29 = vpop.eup %6939  ;;  %v7929_v14 = vadd.f32 1e-05, %v693_v34  ;;  %v1342_v20 = vmul.f32 2.1237322e-06, %v7907_v4 }
 0x14b   :  { %13559 = vst [vmem:[#allocation48_spill] sm:$0xff] %v7890_v45  ;;  %v534_v19 = vmul.f32 %v7890_v45, %v7890_v45  ;;  %v1318_v7 = vadd.f32 0.112945676, %v1317_v32  ;;  %v1096_v33 = vmul.f32 %v7782_v0, %v1040_v8  ;;  %v809_v34 = vmul.f32 %v7926_v29, %v7881_v52 }
 0x14c   :  { %13560 = vst [vmem:[#allocation49_spill] sm:$0xff] %v7893_v10  ;;  %v450_v61 = vadd.f32 %v7893_v10, %v7890_v45  ;;  %v535_v39 = vmul.f32 %v7893_v10, %v7893_v10  ;;  %v7937_v63 = vpop.eup %6941  ;;  %6945 = vrsqrt.f32 %v7929_v14  ;;  %v1343_v32 = vadd.f32 0.00028619796, %v1342_v20 }
 0x14d   :  { %13563 = vst [vmem:[#allocation52_spill] sm:$0xff] %v7929_v14  ;;  %v7960_v10 = vadd.f32 %v7794_v36, %v1096_v33  ;;  %vm815_vm8 = vweird.f32 %v7926_v29  ;;  %vm824_vm3 = vweird.f32 %v7886_v27  ;;  %vm825_vm4 = vweird.f32 %v7937_v63 }
 0x14e   :  { %451 = vadd.xlane.f32.xlu1 %v450_v61  ;;  %v607_v53 = vadd.f32 %v535_v39, %v534_v19  ;;  %v669_v61 = vsub.f32 %v619_v26, %v644_v46  ;;  %v404_v19 = vpop.xlane.xlu2 %403  ;;  %v1354_v39 = vadd.f32 0.001143296, %v1353_v62  ;;  %vm816_vm10 = vmor %vm814_vm9, %vm815_vm8 }
 0x14f   :  { %vm826_vm5 = vmor %vm824_vm3, %vm825_vm4 }
 0x150   :  { %v286_v17 = vpop.f32.mrf.mxu0  ;;  %608 = vadd.xlane.f32.xlu2 %v607_v53  ;;  %v1305_v53 = vadd.f32 0.0036580483, %v1304_v13  ;;  %v694_v46 = vmax.f32 %v669_v61, 0.0  ;;  %v1319_v13 = vmul.f32 %v1318_v7, %v7856_v60  ;;  %v810_v61 = vmul.f32 %v7926_v29, %v809_v34 }
 0x151   :  { %v378_v37 = vpop.f32.mrf.mxu1  ;;  %v7932_v22 = vadd.f32 %v286_v17, %v7463_v23  ;;  %v819_v23 = vmul.f32 %v7937_v63, %v7886_v27  ;;  %v561_v17 = vpop.xlane.xlu0 %560  ;;  %v1344_v34 = vmul.f32 %v1343_v32, %v7907_v4 }
 0x152   :  { %v7935_v40 = vadd.f32 %v378_v37, %v7465_v24  ;;  %v7947_v24 = vmul.f32 %v7698_v35, %v404_v19  ;;  %v7955_v37 = vpop.eup %6943  ;;  %v1355_v19 = vmul.f32 %v1354_v39, %v7907_v4  ;;  %v1306_v12 = vmul.f32 %v1305_v53, %v7856_v60 }
 0x153   :  { %13564 = vst [vmem:[#allocation53_spill] sm:$0xff] %v7932_v22  ;;  %v536_v62 = vmul.f32 %v7932_v22, %v7932_v22  ;;  %v1320_v3 = vadd.f32 0.4994258, %v1319_v13  ;;  %v829_v7 = vmul.f32 %v7955_v37, %v7915_v11  ;;  %v7970_v20 = vadd.f32 1e-05, %v694_v46  ;;  %v7972_v33 = vpop.eup %6945 }
 0x154   :  { %13565 = vst [vmem:[#allocation54_spill] sm:$0xff] %v7935_v40  ;;  %v453_v26 = vadd.f32 %v7935_v40, %v7932_v22  ;;  %v537_v8 = vmul.f32 %v7935_v40, %v7935_v40  ;;  %v820_v22 = vmul.f32 %v7937_v63, %v819_v23  ;;  %v645_v40 = vmul.f32 %v7947_v24, %v7947_v24 }
 0x155   :  { %13566 = vst [vmem:[#allocation55_spill] sm:$0xff] %v7970_v20  ;;  %v1356_v39 = vadd.f32 0.014752088, %v1355_v19  ;;  %v7976_v53 = vmul.f32 0.70710677, %v7960_v10  ;;  %v716_v23 = vsub.f32 %v7491_v38, %v7740_v43  ;;  %v830_v19 = vmul.f32 %v7955_v37, %v829_v7 }
 0x156   :  { %454 = vadd.xlane.f32.xlu0 %v453_v26  ;;  %v610_v45 = vadd.f32 %v537_v8, %v536_v62  ;;  %v620_v26 = vmul.f32 %v561_v17, %v7698_v35  ;;  %v811_v62 = vmul.f32 0.5, %v810_v61  ;;  %v1307_v17 = vadd.f32 0.05243302, %v1306_v12 }
 0x157   :  { %v821_v13 = vmul.f32 0.5, %v820_v22  ;;  %v839_v32 = vmul.f32 %v7972_v33, %v7929_v14  ;;  %6947 = vrsqrt.f32 %v7970_v20  ;;  %v1357_v11 = vmul.f32 %v1356_v39, %v7907_v4 }
 0x158   :  { %611 = vadd.xlane.f32.xlu1 %v610_v45  ;;  %v670_v46 = vsub.f32 %v620_v26, %v645_v40  ;;  %v1321_v45 = vmul.f32 %v1320_v3, %v7856_v60  ;;  %v1345_v43 = vadd.f32 0.0036580483, %v1344_v34  ;;  %v1380_v22 = vmul.f32 %v7976_v53, %v7976_v53 }
 0x159   :  { %v812_v40 = vsub.f32 1.5, %v811_v62  ;;  %v1308_v26 = vmul.f32 %v1307_v17, %v7856_v60  ;;  %v822_v7 = vsub.f32 1.5, %v821_v13  ;;  %v831_v62 = vmul.f32 0.5, %v830_v19  ;;  %v3900_v19 = vld [vmem:[#allocation5 + $0x1f0] sm:$0xff] }
 0x15a   :  { %v7990_v12 = vadd.f32 1.0, %v1321_v45  ;;  %v695_v38 = vmax.f32 %v670_v46, 0.0  ;;  %v407_v45 = vpop.xlane.xlu1 %406  ;;  %v840_v8 = vmul.f32 %v7972_v33, %v839_v32  ;;  %v1358_v3 = vadd.f32 0.112945676, %v1357_v11  ;;  %4000 = vmatpush.msrb.mxu3 %v3900_v19 }
 0x15b   :  { %v1346_v13 = vmul.f32 %v1345_v43, %v7907_v4  ;;  %v8009_v61 = vmin.f32 %v1380_v22, 16.0  ;;  %v813_v39 = vmul.f32 %v7926_v29, %v812_v40  ;;  %v8018_v11 = vmul.f32 %v7698_v35, %v407_v45  ;;  %v564_v43 = vpop.xlane.xlu2 %563 }
 0x15c   :  { %6949 = vrcp.f32 %v7990_v12  ;;  %v1309_v32 = vadd.f32 0.18741608, %v1308_v26  ;;  %v8021_v34 = vmul.f32 %v7937_v63, %v822_v7  ;;  %v8023_v17 = vadd.f32 1e-05, %v695_v38 }
 0x15d   :  { %v8011_v46 = vpop.eup %6947  ;;  %13567 = vst [vmem:[#allocation56_spill] sm:$0xff] %v8018_v11  ;;  %v8026_v22 = vmul.f32 0.5, %v7812_v25  ;;  %v1041_v40 = vmul.f32 %v7911_v56, %v716_v23  ;;  %v832_v15 = vsub.f32 1.5, %v831_v62  ;;  %v8029_v14 = vmul.f32 0.5, %v840_v8 }
 0x15e   :  { %13568 = vst [vmem:[#allocation57_spill] sm:$0xff] %v8023_v17  ;;  %v1359_v45 = vmul.f32 %v1358_v3, %v7907_v4  ;;  %v849_v38 = vmul.f32 %v8011_v46, %v7970_v20  ;;  %v1347_v16 = vadd.f32 0.05243302, %v1346_v13  ;;  %v1382_v25 = vmul.f32 2.1237322e-06, %v8009_v61  ;;  %v3868_v3 = vld [vmem:[#allocation5 + $0xf0] sm:$0xff]  ;;  %v410_v20 = vpop.xlane.xlu0 %409 }
 0x15f   :  { %v621_v56 = vmul.f32 %v564_v43, %v7698_v35  ;;  %v646_v23 = vmul.f32 %v8018_v11, %v8018_v11  ;;  %v1310_v8 = vmul.f32 %v1309_v32, %v7856_v60  ;;  %6951 = vrsqrt.f32 %v8023_v17  ;;  %3908 = vmatpush.msrb.mxu2 %v3868_v3 }
 0x160   :  { %v8046_v7 = vmul.f32 0.5, %v7851_v57  ;;  %v1360_v31 = vadd.f32 0.4994258, %v1359_v45  ;;  %v1097_v13 = vmul.f32 %v7800_v28, %v1041_v40  ;;  %v8050_v43 = vmul.f32 %v7955_v37, %v832_v15 }
 0x161   :  { %v842_v44 = vsub.f32 1.5, %v8029_v14  ;;  %v1393_v32 = vmul.f32 3.8918573e-05, %v8009_v61  ;;  %v850_v30 = vmul.f32 %v8011_v46, %v849_v38  ;;  %v1348_v9 = vmul.f32 %v1347_v16, %v7907_v4 }
 0x162   :  { %v6950_v26 = vpop.eup %6949  ;;  %v1361_v57 = vmul.f32 %v1360_v31, %v7907_v4  ;;  %v1383_v45 = vadd.f32 0.00028619796, %v1382_v25  ;;  %v671_v3 = vsub.f32 %v621_v56, %v646_v23  ;;  %v1311_v19 = vadd.f32 1.1283791, %v1310_v8  ;;  %v567_v8 = vpop.xlane.xlu1 %566 }
 0x163   :  { %v1324_v62 = vmul.f32 %v6950_v26, %v7990_v12  ;;  %v1332_v40 = vand.u32 2147483647, %v7990_v12  ;;  %v1334_v15 = vand.u32 2147483648, %v7990_v12  ;;  %vm1329_vm11 = vweird.f32 %v6950_v26 }
 0x164   :  { %v8063_v38 = vadd.f32 1.0, %v1361_v57  ;;  %v8066_v16 = vadd.f32 %v7831_v18, %v1097_v13  ;;  %v8069_v31 = vmul.f32 %v7698_v35, %v410_v20  ;;  %vm1328_vm12 = vweird.f32 %v7990_v12 }
 0x165   :  { %v1325_v60 = vsub.f32 1.0, %v1324_v62  ;;  %v1394_v25 = vadd.f32 0.001143296, %v1393_v32  ;;  %v817_v56 = vsel %vm816_vm10, %v7926_v29, %v813_v39  ;;  %v8073_v23 = vpop.eup %6951  ;;  %v1349_v62 = vadd.f32 0.18741608, %v1348_v9  ;;  %vm1330_vm13 = vmor %vm1328_vm12, %vm1329_vm11 }
 0x166   :  { %13569 = vst [vmem:[#allocation58_spill] sm:$0xff] %v8069_v31  ;;  %6953 = vrcp.f32 %v8063_v38  ;;  %v696_v57 = vmax.f32 %v671_v3, 0.0  ;;  %v1312_v13 = vmul.f32 %v1311_v19, %v7828_v50  ;;  %vm1333_vm14 = vcmp.eq.f32.partialorder %v1332_v40, 8.507059e+37  ;;  %v570_v2 = vpop.xlane.xlu0 %569 }
 0x167   :  { %v1326_v14 = vmul.f32 %v6950_v26, %v1325_v60  ;;  %v1384_v60 = vmul.f32 %v1383_v45, %v8009_v61  ;;  %v1335_v20 = vor.u32 1.1754944e-38, %v1334_v15  ;;  %v1395_v32 = vmul.f32 %v1394_v25, %v8009_v61 }
 0x168   :  { %v8081_v29 = vmul.f32 0.70710677, %v8066_v16  ;;  %v13570_v9 = vsub.f32 %v7505_v47, %v7818_v49  ;;  %v859_v45 = vmul.f32 %v8073_v23, %v8023_v17  ;;  %v8089_v3 = vmul.f32 %v567_v8, %v7698_v35 }
 0x169   :  { %v1327_v52 = vadd.f32 %v6950_v26, %v1326_v14  ;;  %v8093_v50 = vmul.f32 %v8069_v31, %v8069_v31  ;;  %v1350_v15 = vmul.f32 %v1349_v62, %v7907_v4  ;;  %v1385_v14 = vadd.f32 0.0036580483, %v1384_v60 }
 0x16a   :  { %v1042_v39 = vmul.f32 %v817_v56, %v13570_v9  ;;  %v8099_v47 = vmul.f32 %v7972_v33, %v842_v44  ;;  %v1396_v8 = vadd.f32 0.014752088, %v1395_v32  ;;  %v8105_v17 = vmul.f32 0.5, %v850_v30 }
 0x16b   :  { %v1331_v12 = vsel %vm1330_vm13, %v6950_v26, %v1327_v52  ;;  %v1420_v52 = vmul.f32 %v8081_v29, %v8081_v29  ;;  %v860_v62 = vmul.f32 %v8073_v23, %v859_v45  ;;  %v8111_v44 = vadd.f32 1e-05, %v696_v57 }
 0x16c   :  { %v1336_v26 = vsel %vm1333_vm14, %v1335_v20, %v1331_v12  ;;  %v6954_v9 = vpop.eup %6953  ;;  %v1098_v4 = vmul.f32 %v7782_v0, %v1042_v39  ;;  %v672_v60 = vsub.f32 %v8089_v3, %v8093_v50  ;;  %v1386_v30 = vmul.f32 %v1385_v14, %v8009_v61 }
 0x16d   :  { %v1337_v40 = vmul.f32 %v1336_v26, %v1312_v13  ;;  %13571 = vst [vmem:[#allocation59_spill] sm:$0xff] %v8111_v44  ;;  %v1364_v12 = vmul.f32 %v6954_v9, %v8063_v38  ;;  %v1351_v26 = vadd.f32 1.1283791, %v1350_v15  ;;  %v1397_v25 = vmul.f32 %v1396_v8, %v8009_v61 }
 0x16e   :  { %v8118_v20 = vmin.f32 %v1420_v52, 16.0  ;;  %v8121_v39 = vadd.f32 %v7794_v36, %v1098_v4  ;;  %v13572_v57 = vsub.f32 %v7508_v48, %v7818_v49  ;;  %v1372_v50 = vand.u32 2147483647, %v8063_v38 }
 0x16f   :  { %v6791_v13 = vclamps-f32 %v1337_v40, 1.0  ;;  %v1365_v19 = vsub.f32 1.0, %v1364_v12  ;;  %v1374_v40 = vand.u32 2147483648, %v8063_v38  ;;  %v1398_v15 = vadd.f32 0.112945676, %v1397_v25 }
 0x170   :  { %v1043_v45 = vmul.f32 %v817_v56, %v13572_v57  ;;  %vm1369_vm15 = vweird.f32 %v6954_v9  ;;  %v1422_v8 = vmul.f32 2.1237322e-06, %v8118_v20  ;;  %v1433_v52 = vmul.f32 3.8918573e-05, %v8118_v20 }
 0x171   :  { %v3300_v32 = vadd.f32 1.0, %v6791_v13  ;;  %v1366_v14 = vmul.f32 %v6954_v9, %v1365_v19  ;;  %vm1368_vm0 = vweird.f32 %v8063_v38  ;;  %v1387_v13 = vadd.f32 0.05243302, %v1386_v30 }
 0x172   :  { %v1399_v48 = vmul.f32 %v1398_v15, %v8009_v61  ;;  %v8134_v49 = vmul.f32 0.70710677, %v8121_v39  ;;  %v1423_v56 = vadd.f32 0.00028619796, %v1422_v8  ;;  %v1434_v4 = vadd.f32 0.001143296, %v1433_v52  ;;  %vm1370_vm1 = vmor %vm1368_vm0, %vm1369_vm15  ;;  %v413_v52 = vpop.xlane.xlu2 %412 }
 0x173   :  { %v3350_v3 = vmul.f32 %v3300_v32, %v8026_v22  ;;  %v1367_v22 = vadd.f32 %v6954_v9, %v1366_v14  ;;  %v1099_v19 = vmul.f32 %v7800_v28, %v1043_v45  ;;  %v1352_v25 = vmul.f32 %v1351_v26, %v7868_v51 }
 0x174   :  { %vm1373_vm2 = vcmp.eq.f32.partialorder %v1372_v50, 8.507059e+37  ;;  %v1375_v12 = vor.u32 1.1754944e-38, %v1374_v40  ;;  %v1400_v32 = vadd.f32 0.4994258, %v1399_v48  ;;  %v1424_v38 = vmul.f32 %v1423_v56, %v8118_v20 }
 0x175   :  { %3486 = vmatmul.f32.vlgmr.msra.gmra.mxu2 %v3350_v3  ;;  %3670 = vmatmul.f32.vlgmr.msrb.gmra.mxu0 %v3350_v3  ;;  %v1371_v57 = vsel %vm1370_vm1, %v6954_v9, %v1367_v22  ;;  %v1435_v30 = vmul.f32 %v1434_v4, %v8118_v20  ;;  %v1460_v3 = vmul.f32 %v8134_v49, %v8134_v49  ;;  %v861_v51 = vmul.f32 0.5, %v860_v62 }
 0x176   :  { %v1376_v15 = vsel %vm1373_vm2, %v1375_v12, %v1371_v57  ;;  %v1388_v14 = vmul.f32 %v1387_v13, %v8009_v61  ;;  %v1401_v8 = vmul.f32 %v1400_v32, %v8009_v61  ;;  %v8145_v45 = vadd.f32 %v7831_v18, %v1099_v19 }
 0x177   :  { %v1377_v26 = vmul.f32 %v1376_v15, %v1352_v25  ;;  %v1436_v50 = vadd.f32 0.014752088, %v1435_v30  ;;  %v8147_v40 = vmin.f32 %v1460_v3, 16.0  ;;  %v852_v9 = vsub.f32 1.5, %v8105_v17 }
 0x178   :  { %6955 = vrsqrt.f32 %v8111_v44  ;;  %v8151_v48 = vadd.f32 1.0, %v1401_v8  ;;  %v1425_v22 = vadd.f32 0.0036580483, %v1424_v38  ;;  %v697_v13 = vmax.f32 %v672_v60, 0.0 }
 0x179   :  { %v6792_v56 = vclamps-f32 %v1377_v26, 1.0  ;;  %v1437_v62 = vmul.f32 %v1436_v50, %v8118_v20  ;;  %v1462_v4 = vmul.f32 2.1237322e-06, %v8147_v40  ;;  %v1389_v17 = vadd.f32 0.18741608, %v1388_v14 }
 0x17a   :  { %6957 = vrcp.f32 %v8151_v48  ;;  %v8161_v25 = vmul.f32 0.70710677, %v8145_v45  ;;  %v862_v12 = vsub.f32 1.5, %v861_v51  ;;  %v8164_v32 = vmul.f32 %v7698_v35, %v413_v52 }
 0x17b   :  { %v3301_v57 = vadd.f32 1.0, %v6792_v56  ;;  %v1438_v60 = vadd.f32 0.112945676, %v1437_v62  ;;  %v8167_v38 = vmul.f32 %v8011_v46, %v852_v9  ;;  %v1426_v30 = vmul.f32 %v1425_v22, %v8118_v20  ;;  %v3866_v9 = vld [vmem:[#allocation5 + $0xe0] sm:$0xff]  ;;  %v3869_v56 = vld [vmem:[#allocation5 + $0xf8] sm:$0xff] }
 0x17c   :  { %13573 = vst [vmem:[#allocation60_spill] sm:$0xff] %v8164_v32  ;;  %v1463_v3 = vadd.f32 0.00028619796, %v1462_v4  ;;  %v1473_v15 = vmul.f32 3.8918573e-05, %v8147_v40  ;;  %v1390_v52 = vmul.f32 %v1389_v17, %v8009_v61  ;;  %v3898_v62 = vld [vmem:[#allocation5 + $0x1e0] sm:$0xff]  ;;  %v1500_v19 = vmul.f32 %v8161_v25, %v8161_v25  ;;  %3909 = vmatpush.msrb.mxu2 %v3866_v9  ;;  %4092 = vmatpush.msra.mxu0 %v3869_v56 }
 0x17d   :  { %v8173_v8 = vadd.f32 1e-05, %v697_v13  ;;  %v3351_v51 = vmul.f32 %v3301_v57, %v8046_v7  ;;  %v1439_v26 = vmul.f32 %v1438_v60, %v8118_v20  ;;  %v8184_v13 = vmul.f32 %v8073_v23, %v862_v12  ;;  %v3901_v17 = vld [vmem:[#allocation5 + $0x1f8] sm:$0xff]  ;;  %4001 = vmatpush.msrb.mxu3 %v3898_v62 }
 0x17e   :  { %v8177_v50 = vpop.eup %6955  ;;  %v1464_v22 = vmul.f32 %v1463_v3, %v8147_v40  ;;  %v1474_v4 = vadd.f32 0.001143296, %v1473_v15  ;;  %v648_v3 = vmul.f32 %v8164_v32, %v8164_v32  ;;  %v1427_v15 = vadd.f32 0.05243302, %v1426_v30  ;;  %4184 = vmatpush.msra.mxu1 %v3901_v17 }
 0x17f   :  { %3578 = vmatmul.f32.vlgmr.msra.gmra.mxu3 %v3351_v51  ;;  %3762 = vmatmul.f32.vlgmr.msrb.gmra.mxu1 %v3351_v51  ;;  %v1440_v61 = vadd.f32 0.4994258, %v1439_v26  ;;  %v8193_v11 = vmin.f32 %v1500_v19, 16.0  ;;  %v869_v57 = vmul.f32 %v8177_v50, %v8111_v44  ;;  %v8198_v14 = vmul.f32 0.5, %v7960_v10 }
 0x180   :  { %v6958_v55 = vpop.eup %6957  ;;  %v1475_v12 = vmul.f32 %v1474_v4, %v8147_v40  ;;  %6959 = vrsqrt.f32 %v8173_v8  ;;  %v623_v30 = vmul.f32 %v570_v2, %v7698_v35  ;;  %v1391_v9 = vadd.f32 1.1283791, %v1390_v52 }
 0x181   :  { %v1404_v51 = vmul.f32 %v6958_v55, %v8151_v48  ;;  %v1441_v26 = vmul.f32 %v1440_v61, %v8118_v20  ;;  %v1465_v56 = vadd.f32 0.0036580483, %v1464_v22  ;;  %v1412_v4 = vand.u32 2147483647, %v8151_v48 }
 0x182   :  { %v1476_v7 = vadd.f32 0.014752088, %v1475_v12  ;;  %v1414_v10 = vand.u32 2147483648, %v8151_v48  ;;  %v1428_v62 = vmul.f32 %v1427_v15, %v8118_v20  ;;  %v1502_v61 = vmul.f32 2.1237322e-06, %v8193_v11 }
 0x183   :  { %v1405_v19 = vsub.f32 1.0, %v1404_v51  ;;  %v8205_v60 = vadd.f32 1.0, %v1441_v26  ;;  %v1513_v2 = vmul.f32 3.8918573e-05, %v8193_v11  ;;  %vm1409_vm6 = vweird.f32 %v6958_v55 }
 0x184   :  { %v827_v22 = vsel %vm826_vm5, %v7937_v63, %v8021_v34  ;;  %v673_v17 = vsub.f32 %v623_v30, %v648_v3  ;;  %v1392_v12 = vmul.f32 %v1391_v9, %v7976_v53  ;;  %vm1408_vm7 = vweird.f32 %v8151_v48  ;;  %v416_v53 = vpop.xlane.xlu1 %415 }
 0x185   :  { %v1406_v52 = vmul.f32 %v6958_v55, %v1405_v19  ;;  %6961 = vrcp.f32 %v8205_v60  ;;  %v1466_v27 = vmul.f32 %v1465_v56, %v8147_v40  ;;  %v1477_v15 = vmul.f32 %v1476_v7, %v8147_v40  ;;  %vm1410_vm8 = vmor %vm1408_vm7, %vm1409_vm6 }
 0x186   :  { %v1503_v26 = vadd.f32 0.00028619796, %v1502_v61  ;;  %v1514_v31 = vadd.f32 0.001143296, %v1513_v2  ;;  %v8222_v54 = vpop.eup %6959  ;;  %vm1413_vm9 = vcmp.eq.f32.partialorder %v1412_v4, 8.507059e+37  ;;  %v1415_v19 = vor.u32 1.1754944e-38, %v1414_v10 }
 0x187   :  { %v1407_v51 = vadd.f32 %v6958_v55, %v1406_v52  ;;  %v1429_v44 = vadd.f32 0.18741608, %v1428_v62  ;;  %v13576_v63 = vsub.f32 %v7522_v58, %v7809_v21  ;;  %v1478_v48 = vadd.f32 0.112945676, %v1477_v15 }
 0x188   :  { %v1504_v30 = vmul.f32 %v1503_v26, %v8193_v11  ;;  %v1515_v9 = vmul.f32 %v1514_v31, %v8193_v11  ;;  %v870_v7 = vmul.f32 %v8177_v50, %v869_v57  ;;  %v698_v56 = vmax.f32 %v673_v17, 0.0 }
 0x189   :  { %v1044_v34 = vmul.f32 %v827_v22, %v13576_v63  ;;  %v1411_v3 = vsel %vm1410_vm8, %v6958_v55, %v1407_v51  ;;  %v1467_v2 = vadd.f32 0.05243302, %v1466_v27  ;;  %v1479_v10 = vmul.f32 %v1478_v48, %v8147_v40 }
 0x18a   :  { %v1416_v61 = vsel %vm1413_vm9, %v1415_v19, %v1411_v3  ;;  %v1505_v62 = vadd.f32 0.0036580483, %v1504_v30  ;;  %v1516_v42 = vadd.f32 0.014752088, %v1515_v9  ;;  %v8232_v58 = vmul.f32 %v7698_v35, %v416_v53 }
 0x18b   :  { %v6962_v52 = vpop.eup %6961  ;;  %v1417_v4 = vmul.f32 %v1416_v61, %v1392_v12  ;;  %v1430_v55 = vmul.f32 %v1429_v44, %v8118_v20  ;;  %v1100_v31 = vmul.f32 %v7782_v0, %v1044_v34  ;;  %v1480_v57 = vadd.f32 0.4994258, %v1479_v10  ;;  %v13578_v34 = vld [vmem:[#allocation51_spill] sm:$0xff] }
 0x18c   :  { %13577 = vst [vmem:[#allocation61_spill] sm:$0xff] %v8232_v58  ;;  %v1444_v51 = vmul.f32 %v6962_v52, %v8205_v60  ;;  %v1506_v17 = vmul.f32 %v1505_v62, %v8193_v11  ;;  %v1517_v27 = vmul.f32 %v1516_v42, %v8193_v11  ;;  %v1454_v26 = vand.u32 2147483648, %v8205_v60 }
 0x18d   :  { %v6793_v15 = vclamps-f32 %v1417_v4, 1.0  ;;  %v1468_v19 = vmul.f32 %v1467_v2, %v8147_v40  ;;  %v8242_v63 = vadd.f32 %v7794_v36, %v1100_v31  ;;  %v1481_v20 = vmul.f32 %v1480_v57, %v8147_v40  ;;  %v419_v4 = vpop.xlane.xlu0 %418  ;;  %v573_v57 = vpop.xlane.xlu2 %572 }
 0x18e   :  { %v1445_v12 = vsub.f32 1.0, %v1444_v51  ;;  %v1507_v44 = vadd.f32 0.05243302, %v1506_v17  ;;  %v1518_v3 = vadd.f32 0.112945676, %v1517_v27  ;;  %vm834_vm10 = vweird.f32 %v13578_v34 }
 0x18f   :  { %v3302_v53 = vadd.f32 1.0, %v6793_v15  ;;  %vm835_vm11 = vweird.f32 %v7955_v37  ;;  %v1431_v48 = vadd.f32 1.1283791, %v1430_v55  ;;  %vm1449_vm12 = vweird.f32 %v6962_v52 }
 0x190   :  { %v1446_v30 = vmul.f32 %v6962_v52, %v1445_v12  ;;  %v1452_v42 = vand.u32 2147483647, %v8205_v60  ;;  %vm1448_vm13 = vweird.f32 %v8205_v60  ;;  %v8250_v61 = vadd.f32 1.0, %v1481_v20  ;;  %vm836_vm0 = vmor %vm834_vm10, %vm835_vm11 }
 0x191   :  { %v3352_v9 = vmul.f32 %v3302_v53, %v8198_v14  ;;  %v8253_v2 = vmul.f32 0.70710677, %v8242_v63  ;;  %v1508_v62 = vmul.f32 %v1507_v44, %v8193_v11  ;;  %v1519_v51 = vmul.f32 %v1518_v3, %v8193_v11  ;;  %vm1450_vm14 = vmor %vm1448_vm13, %vm1449_vm12 }
 0x192   :  { %v1447_v10 = vadd.f32 %v6962_v52, %v1446_v30  ;;  %v13579_v55 = vsub.f32 %v7525_v59, %v7809_v21  ;;  %v8260_v15 = vadd.f32 1e-05, %v698_v56  ;;  %v1455_v14 = vor.u32 1.1754944e-38, %v1454_v26 }
 0x193   :  { %3489 = vmatmul.f32.gmra.mxu2 %v3352_v9  ;;  %3673 = vmatmul.f32.gmra.mxu0 %v3352_v9  ;;  %v1469_v60 = vadd.f32 0.18741608, %v1468_v19  ;;  %6963 = vrcp.f32 %v8250_v61  ;;  %v1432_v17 = vmul.f32 %v1431_v48, %v8081_v29  ;;  %vm1453_vm15 = vcmp.eq.f32.partialorder %v1452_v42, 8.507059e+37  ;;  %v576_v19 = vpop.xlane.xlu1 %575 }
 0x194   :  { %v1045_v31 = vmul.f32 %v827_v22, %v13579_v55  ;;  %13580 = vst [vmem:[#allocation51_spill] sm:$0xff] %v8260_v15  ;;  %v1451_v27 = vsel %vm1450_vm14, %v6962_v52, %v1447_v10  ;;  %v1520_v12 = vadd.f32 0.4994258, %v1519_v51  ;;  %v8265_v53 = vmul.f32 %v7698_v35, %v419_v4 }
 0x195   :  { %v1456_v59 = vsel %vm1453_vm15, %v1455_v14, %v1451_v27  ;;  %v1509_v21 = vadd.f32 0.18741608, %v1508_v62  ;;  %v1540_v22 = vmul.f32 %v8253_v2, %v8253_v2  ;;  %v8273_v52 = vmul.f32 0.5, %v870_v7 }
 0x196   :  { %13581 = vst [vmem:[#allocation62_spill] sm:$0xff] %v8265_v53  ;;  %v1457_v20 = vmul.f32 %v1456_v59, %v1432_v17  ;;  %v1521_v44 = vmul.f32 %v1520_v12, %v8193_v11  ;;  %v1101_v29 = vmul.f32 %v7800_v28, %v1045_v31  ;;  %v8276_v3 = vmul.f32 %v573_v57, %v7698_v35 }
 0x197   :  { %v8280_v48 = vmul.f32 %v8232_v58, %v8232_v58  ;;  %v1470_v30 = vmul.f32 %v1469_v60, %v8147_v40  ;;  %v8285_v42 = vmul.f32 %v8222_v54, %v8173_v8  ;;  %6965 = vrsqrt.f32 %v8260_v15 }
 0x198   :  { %v6794_v9 = vclamps-f32 %v1457_v20, 1.0  ;;  %v8288_v4 = vadd.f32 1.0, %v1521_v44  ;;  %v8291_v10 = vmul.f32 %v576_v19, %v7698_v35  ;;  %v8295_v62 = vmul.f32 %v8265_v53, %v8265_v53  ;;  %v13613_v53 = vld [vmem:[#allocation57_spill] sm:$0xff] }
 0x199   :  { %v6964_v7 = vpop.eup %6963  ;;  %v1510_v51 = vmul.f32 %v1509_v21, %v8193_v11  ;;  %v8298_v40 = vmin.f32 %v1540_v22, 16.0  ;;  %v1203_v55 = vmul.f32 0.5, %v8066_v16  ;;  %v8303_v60 = vadd.f32 %v7831_v18, %v1101_v29 }
 0x19a   :  { %v3303_v31 = vadd.f32 1.0, %v6794_v9  ;;  %v1484_v14 = vmul.f32 %v6964_v7, %v8250_v61  ;;  %v1471_v17 = vadd.f32 1.1283791, %v1470_v30  ;;  %v1492_v11 = vand.u32 2147483647, %v8250_v61 }
 0x19b   :  { %6967 = vrcp.f32 %v8288_v4  ;;  %v1542_v12 = vmul.f32 2.1237322e-06, %v8298_v40  ;;  %v837_v59 = vsel %vm836_vm0, %v7955_v37, %v8050_v43  ;;  %v1494_v34 = vand.u32 2147483648, %v8250_v61 }
 0x19c   :  { %v3353_v16 = vmul.f32 %v3303_v31, %v1203_v55  ;;  %v1485_v27 = vsub.f32 1.0, %v1484_v14  ;;  %v1511_v22 = vadd.f32 1.1283791, %v1510_v51  ;;  %v1553_v19 = vmul.f32 3.8918573e-05, %v8298_v40 }
 0x19d   :  { %v8320_v20 = vpop.eup %6965  ;;  %vm1489_vm1 = vweird.f32 %v6964_v7  ;;  %v1543_v29 = vadd.f32 0.00028619796, %v1542_v12  ;;  %v8323_v30 = vmul.f32 0.70710677, %v8303_v60  ;;  %v1204_v37 = vmul.f32 0.5, %v8121_v39 }
 0x19e   :  { %3581 = vmatmul.f32.gmra.mxu3 %v3353_v16  ;;  %3765 = vmatmul.f32.gmra.mxu1 %v3353_v16  ;;  %v1486_v44 = vmul.f32 %v6964_v7, %v1485_v27  ;;  %v1472_v43 = vmul.f32 %v1471_v17, %v8134_v49  ;;  %v1554_v9 = vadd.f32 0.001143296, %v1553_v19  ;;  %v13583_v51 = vsub.f32 %v7539_v5, %v7842_v1 }
 0x19f   :  { %vm1488_vm2 = vweird.f32 %v8250_v61  ;;  %v1544_v14 = vmul.f32 %v1543_v29, %v8298_v40  ;;  %v1580_v16 = vmul.f32 %v8323_v30, %v8323_v30  ;;  %vm1493_vm4 = vcmp.eq.f32.partialorder %v1492_v11, 8.507059e+37 }
 0x1a0   :  { %v1046_v55 = vmul.f32 %v837_v59, %v13583_v51  ;;  %v1487_v31 = vadd.f32 %v6964_v7, %v1486_v44  ;;  %vm1490_vm3 = vmor %vm1488_vm2, %vm1489_vm1  ;;  %v1495_v12 = vor.u32 1.1754944e-38, %v1494_v34  ;;  %v1555_v39 = vmul.f32 %v1554_v9, %v8298_v40 }
 0x1a1   :  { %v6968_v27 = vpop.eup %6967  ;;  %v13584_v49 = vsub.f32 %v7542_v6, %v7842_v1  ;;  %v1512_v19 = vmul.f32 %v1511_v22, %v8161_v25  ;;  %v1532_v44 = vand.u32 2147483647, %v8288_v4  ;;  %v1545_v51 = vadd.f32 0.0036580483, %v1544_v14 }
 0x1a2   :  { %v1491_v5 = vsel %vm1490_vm3, %v6964_v7, %v1487_v31  ;;  %v1524_v61 = vmul.f32 %v6968_v27, %v8288_v4  ;;  %v1556_v26 = vadd.f32 0.014752088, %v1555_v39  ;;  %v1102_v21 = vmul.f32 %v7782_v0, %v1046_v55  ;;  %v13585_v7 = vld [vmem:[#allocation52_spill] sm:$0xff] }
 0x1a3   :  { %v1047_v17 = vmul.f32 %v837_v59, %v13584_v49  ;;  %v1496_v29 = vsel %vm1493_vm4, %v1495_v12, %v1491_v5  ;;  %v1534_v9 = vand.u32 2147483648, %v8288_v4  ;;  %v8343_v57 = vmin.f32 %v1580_v16, 16.0 }
 0x1a4   :  { %v1497_v11 = vmul.f32 %v1496_v29, %v1472_v43  ;;  %v1525_v34 = vsub.f32 1.0, %v1524_v61  ;;  %vm1529_vm5 = vweird.f32 %v6968_v27  ;;  %v1546_v6 = vmul.f32 %v1545_v51, %v8298_v40 }
 0x1a5   :  { %v1557_v1 = vmul.f32 %v1556_v26, %v8298_v40  ;;  %v1103_v25 = vmul.f32 %v7800_v28, %v1047_v17  ;;  %vm844_vm6 = vweird.f32 %v13585_v7  ;;  %vm845_vm7 = vweird.f32 %v7972_v33 }
 0x1a6   :  { %v6795_v59 = vclamps-f32 %v1497_v11, 1.0  ;;  %v1526_v22 = vmul.f32 %v6968_v27, %v1525_v34  ;;  %v1582_v43 = vmul.f32 2.1237322e-06, %v8343_v57  ;;  %v1593_v55 = vmul.f32 3.8918573e-05, %v8343_v57  ;;  %vm846_vm11 = vmor %vm844_vm6, %vm845_vm7 }
 0x1a7   :  { %vm1528_vm8 = vweird.f32 %v8288_v4  ;;  %vm8353_vm9 = vcmp.eq.f32.partialorder %v1532_v44, 8.507059e+37  ;;  %v1558_v14 = vadd.f32 0.112945676, %v1557_v1  ;;  %v8358_v26 = vadd.f32 %v7794_v36, %v1102_v21 }
 0x1a8   :  { %v3304_v16 = vadd.f32 1.0, %v6795_v59  ;;  %v1527_v12 = vadd.f32 %v6968_v27, %v1526_v22  ;;  %v1583_v39 = vadd.f32 0.00028619796, %v1582_v43  ;;  %v1594_v49 = vadd.f32 0.001143296, %v1593_v55  ;;  %vm1530_vm10 = vmor %vm1528_vm8, %vm1529_vm5 }
 0x1a9   :  { %v1535_v17 = vor.u32 1.1754944e-38, %v1534_v9  ;;  %v1547_v5 = vadd.f32 0.05243302, %v1546_v6  ;;  %v1559_v61 = vmul.f32 %v1558_v14, %v8298_v40  ;;  %v8363_v4 = vadd.f32 %v7831_v18, %v1103_v25 }
 0x1aa   :  { %v3354_v44 = vmul.f32 %v3304_v16, %v1204_v37  ;;  %v1531_v29 = vsel %vm1530_vm10, %v6968_v27, %v1527_v12  ;;  %v1584_v51 = vmul.f32 %v1583_v39, %v8343_v57  ;;  %v1595_v21 = vmul.f32 %v1594_v49, %v8343_v57 }
 0x1ab   :  { %v880_v11 = vmul.f32 %v8222_v54, %v8285_v42  ;;  %v13588_v34 = vsub.f32 %v8276_v3, %v8280_v48  ;;  %v1536_v9 = vsel %vm8353_vm9, %v1535_v17, %v1531_v29  ;;  %v1560_v6 = vadd.f32 0.4994258, %v1559_v61 }
 0x1ac   :  { %3492 = vmatmul.f32.gmra.mxu2 %v3354_v44  ;;  %v1537_v25 = vmul.f32 %v1536_v9, %v1512_v19  ;;  %3676 = vmatmul.f32.gmra.mxu0 %v3354_v44  ;;  %v1585_v37 = vadd.f32 0.0036580483, %v1584_v51  ;;  %v1596_v27 = vadd.f32 0.014752088, %v1595_v21  ;;  %v8375_v59 = vmul.f32 0.70710677, %v8358_v26  ;;  %v422_v44 = vpop.xlane.xlu2 %421 }
 0x1ad   :  { %v699_v1 = vmax.f32 %v13588_v34, 0.0  ;;  %v13589_v22 = vsub.f32 %v8291_v10, %v8295_v62  ;;  %v1548_v43 = vmul.f32 %v1547_v5, %v8298_v40  ;;  %v1561_v3 = vmul.f32 %v1560_v6, %v8298_v40 }
 0x1ae   :  { %v8383_v48 = vmul.f32 0.70710677, %v8363_v4  ;;  %v6796_v55 = vclamps-f32 %v1537_v25, 1.0  ;;  %v1586_v19 = vmul.f32 %v1585_v37, %v8343_v57  ;;  %v1597_v31 = vmul.f32 %v1596_v27, %v8343_v57 }
 0x1af   :  { %v700_v42 = vmax.f32 %v13589_v22, 0.0  ;;  %v1620_v14 = vmul.f32 %v8375_v59, %v8375_v59  ;;  %v872_v16 = vsub.f32 1.5, %v8273_v52  ;;  %v8390_v12 = vmul.f32 0.5, %v880_v11 }
 0x1b0   :  { %v8392_v10 = vadd.f32 1.0, %v1561_v3  ;;  %v1660_v62 = vmul.f32 %v8383_v48, %v8383_v48  ;;  %v1205_v39 = vmul.f32 0.5, %v8145_v45  ;;  %v3305_v49 = vadd.f32 1.0, %v6796_v55  ;;  %v3896_v55 = vld [vmem:[#allocation5 + $0x1d0] sm:$0xff] }
 0x1b1   :  { %v1598_v17 = vadd.f32 0.112945676, %v1597_v31  ;;  %v8397_v5 = vmin.f32 %v1620_v14, 16.0  ;;  %v889_v52 = vmul.f32 %v8320_v20, %v8260_v15  ;;  %v8405_v61 = vadd.f32 1e-05, %v699_v1  ;;  %4002 = vmatpush.msrb.mxu3 %v3896_v55 }
 0x1b2   :  { %6969 = vrcp.f32 %v8392_v10  ;;  %v1587_v29 = vadd.f32 0.05243302, %v1586_v19  ;;  %v8408_v51 = vadd.f32 1e-05, %v700_v42  ;;  %v3355_v45 = vmul.f32 %v3305_v49, %v1205_v39  ;;  %v579_v42 = vpop.xlane.xlu0 %578  ;;  %v3899_v19 = vld [vmem:[#allocation5 + $0x1e8] sm:$0xff]  ;;  %v13595_v49 = vld [vmem:[#allocation45_spill] sm:$0xff] }
 0x1b3   :  { %13590 = vst [vmem:[#allocation52_spill] sm:$0xff] %v8405_v61  ;;  %v1549_v21 = vadd.f32 0.18741608, %v1548_v43  ;;  %v8412_v11 = vsel %vm846_vm11, %v7972_v33, %v8099_v47  ;;  %v1599_v7 = vmul.f32 %v1598_v17, %v8343_v57  ;;  %v1622_v34 = vmul.f32 2.1237322e-06, %v8397_v5  ;;  %v3864_v33 = vld [vmem:[#allocation5 + $0xd0] sm:$0xff]  ;;  %4185 = vmatpush.msra.mxu1 %v3899_v19 }
 0x1b4   :  { %13591 = vst [vmem:[#allocation63_spill] sm:$0xff] %v8408_v51  ;;  %v1633_v9 = vmul.f32 3.8918573e-05, %v8397_v5  ;;  %v8417_v1 = vmin.f32 %v1660_v62, 16.0  ;;  %v8420_v6 = vmul.f32 %v8177_v50, %v872_v16  ;;  %v8426_v22 = vmul.f32 %v7698_v35, %v422_v44  ;;  %3584 = vmatmul.f32.gmra.mxu3 %v3355_v45  ;;  %3768 = vmatmul.f32.gmra.mxu1 %v3355_v45  ;;  %v3867_v47 = vld [vmem:[#allocation5 + $0xe8] sm:$0xff] }
 0x1b5   :  { %6971 = vrsqrt.f32 %v8405_v61  ;;  %v1588_v43 = vmul.f32 %v1587_v29, %v8343_v57  ;;  %v1600_v3 = vadd.f32 0.4994258, %v1599_v7  ;;  %3910 = vmatpush.msrb.mxu2 %v3864_v33  ;;  %4093 = vmatpush.msra.mxu0 %v3867_v47  ;;  %v1623_v31 = vadd.f32 0.00028619796, %v1622_v34  ;;  %v13594_v39 = vld [vmem:[#allocation12_spill] sm:$0xff] }
 0x1b6   :  { %13593 = vst [vmem:[#allocation64_spill] sm:$0xff] %v8426_v22  ;;  %v1634_v14 = vadd.f32 0.001143296, %v1633_v9  ;;  %v1662_v16 = vmul.f32 2.1237322e-06, %v8417_v1  ;;  %v13596_v17 = vsub.f32 %v13594_v39, %v13595_v49  ;;  %v8437_v29 = vmul.f32 %v8320_v20, %v889_v52 }
 0x1b7   :  { %v1673_v62 = vmul.f32 3.8918573e-05, %v8417_v1  ;;  %6973 = vrsqrt.f32 %v8408_v51  ;;  %v1550_v7 = vmul.f32 %v1549_v21, %v8298_v40  ;;  %v1601_v34 = vmul.f32 %v1600_v3, %v8343_v57 }
 0x1b8   :  { %v1048_v44 = vmul.f32 %v8412_v11, %v13596_v17  ;;  %v6970_v45 = vpop.eup %6969  ;;  %v8444_v9 = vmul.f32 %v8426_v22, %v8426_v22  ;;  %v8447_v33 = vmul.f32 %v579_v42, %v7698_v35  ;;  %v1624_v55 = vmul.f32 %v1623_v31, %v8397_v5 }
 0x1b9   :  { %v1564_v47 = vmul.f32 %v6970_v45, %v8392_v10  ;;  %v1589_v19 = vadd.f32 0.18741608, %v1588_v43  ;;  %v8451_v52 = vadd.f32 1.0, %v1601_v34  ;;  %v1635_v39 = vmul.f32 %v1634_v14, %v8397_v5 }
 0x1ba   :  { %v1663_v17 = vadd.f32 0.00028619796, %v1662_v16  ;;  %v1625_v21 = vadd.f32 0.0036580483, %v1624_v55  ;;  %v1674_v3 = vadd.f32 0.001143296, %v1673_v62  ;;  %v1104_v27 = vmul.f32 %v7782_v0, %v1048_v44 }
 0x1bb   :  { %v1565_v40 = vsub.f32 1.0, %v1564_v47  ;;  %v8455_v25 = vpop.eup %6971  ;;  %v1551_v37 = vadd.f32 1.1283791, %v1550_v7  ;;  %v1572_v42 = vand.u32 2147483647, %v8392_v10  ;;  %v1574_v56 = vand.u32 2147483648, %v8392_v10 }
 0x1bc   :  { %6975 = vrcp.f32 %v8451_v52  ;;  %vm1569_vm12 = vweird.f32 %v6970_v45  ;;  %v1626_v31 = vmul.f32 %v1625_v21, %v8397_v5  ;;  %v1636_v14 = vadd.f32 0.014752088, %v1635_v39 }
 0x1bd   :  { %v1566_v43 = vmul.f32 %v6970_v45, %v1565_v40  ;;  %v8461_v16 = vpop.eup %6973  ;;  %v676_v62 = vsub.f32 %v8447_v33, %v8444_v9  ;;  %vm1568_vm13 = vweird.f32 %v8392_v10  ;;  %v1664_v44 = vmul.f32 %v1663_v17, %v8417_v1 }
 0x1be   :  { %v1675_v7 = vmul.f32 %v1674_v3, %v8417_v1  ;;  %v1590_v47 = vmul.f32 %v1589_v19, %v8343_v57  ;;  %v1627_v55 = vadd.f32 0.05243302, %v1626_v31  ;;  %v1637_v40 = vmul.f32 %v1636_v14, %v8397_v5  ;;  %vm1570_vm14 = vmor %vm1568_vm13, %vm1569_vm12 }
 0x1bf   :  { %v1567_v34 = vadd.f32 %v6970_v45, %v1566_v43  ;;  %v1206_v21 = vmul.f32 0.5, %v8242_v63  ;;  %v1575_v39 = vor.u32 1.1754944e-38, %v1574_v56  ;;  %v1665_v32 = vadd.f32 0.0036580483, %v1664_v44 }
 0x1c0   :  { %v1676_v15 = vadd.f32 0.014752088, %v1675_v7  ;;  %v1552_v9 = vmul.f32 %v1551_v37, %v8253_v2  ;;  %vm1573_vm15 = vcmp.eq.f32.partialorder %v1572_v42, 8.507059e+37  ;;  %v8473_v10 = vadd.f32 %v7794_v36, %v1104_v27 }
 0x1c1   :  { %v1571_v33 = vsel %vm1570_vm14, %v6970_v45, %v1567_v34  ;;  %v1638_v43 = vadd.f32 0.112945676, %v1637_v40  ;;  %v1666_v57 = vmul.f32 %v1665_v32, %v8417_v1  ;;  %v1591_v63 = vadd.f32 1.1283791, %v1590_v47  ;;  %v13597_v47 = vld [vmem:[#allocation13_spill] sm:$0xff] }
 0x1c2   :  { %v6976_v17 = vpop.eup %6975  ;;  %v1576_v3 = vsel %vm1573_vm15, %v1575_v39, %v1571_v33  ;;  %v1677_v19 = vmul.f32 %v1676_v15, %v8417_v1  ;;  %v1628_v14 = vmul.f32 %v1627_v55, %v8397_v5  ;;  %v1612_v2 = vand.u32 2147483647, %v8451_v52 }
 0x1c3   :  { %v1577_v31 = vmul.f32 %v1576_v3, %v1552_v9  ;;  %v1604_v56 = vmul.f32 %v6976_v17, %v8451_v52  ;;  %v1639_v37 = vmul.f32 %v1638_v43, %v8397_v5  ;;  %v1667_v45 = vadd.f32 0.05243302, %v1666_v57 }
 0x1c4   :  { %v1678_v27 = vadd.f32 0.112945676, %v1677_v19  ;;  %v1614_v7 = vand.u32 2147483648, %v8451_v52  ;;  %v8483_v32 = vmul.f32 0.70710677, %v8473_v10  ;;  %vm1609_vm0 = vweird.f32 %v6976_v17 }
 0x1c5   :  { %v6797_v42 = vclamps-f32 %v1577_v31, 1.0  ;;  %v1605_v44 = vsub.f32 1.0, %v1604_v56  ;;  %v1640_v15 = vadd.f32 0.4994258, %v1639_v37  ;;  %v13598_v55 = vsub.f32 %v13597_v47, %v13595_v49  ;;  %v13599_v31 = vld [vmem:[#allocation55_spill] sm:$0xff] }
 0x1c6   :  { %v1679_v34 = vmul.f32 %v1678_v27, %v8417_v1  ;;  %v1629_v33 = vadd.f32 0.18741608, %v1628_v14  ;;  %v1668_v3 = vmul.f32 %v1667_v45, %v8417_v1  ;;  %v701_v43 = vmax.f32 %v676_v62, 0.0  ;;  %v3865_v27 = vld [vmem:[#allocation5 + $0xd8] sm:$0xff] }
 0x1c7   :  { %v1049_v40 = vmul.f32 %v8412_v11, %v13598_v55  ;;  %v3306_v39 = vadd.f32 1.0, %v6797_v42  ;;  %v1606_v9 = vmul.f32 %v6976_v17, %v1605_v44  ;;  %v1592_v57 = vmul.f32 %v1591_v63, %v8323_v30  ;;  %v3862_v11 = vld [vmem:[#allocation5 + $0xc0] sm:$0xff]  ;;  %4094 = vmatpush.msra.mxu0 %v3865_v27 }
 0x1c8   :  { %vm1608_vm1 = vweird.f32 %v8451_v52  ;;  %v1641_v19 = vmul.f32 %v1640_v15, %v8397_v5  ;;  %vm854_vm2 = vweird.f32 %v13599_v31  ;;  %vm855_vm3 = vweird.f32 %v8011_v46  ;;  %3911 = vmatpush.msrb.mxu2 %v3862_v11 }
 0x1c9   :  { %v3356_v56 = vmul.f32 %v3306_v39, %v1206_v21  ;;  %v1607_v49 = vadd.f32 %v6976_v17, %v1606_v9  ;;  %v1680_v37 = vadd.f32 0.4994258, %v1679_v34  ;;  %v1700_v14 = vmul.f32 %v8483_v32, %v8483_v32  ;;  %vm8499_vm4 = vmor %vm1608_vm1, %vm1609_vm0 }
 0x1ca   :  { %vm1613_vm5 = vcmp.eq.f32.partialorder %v1612_v2, 8.507059e+37  ;;  %v1615_v30 = vor.u32 1.1754944e-38, %v1614_v7  ;;  %v8503_v52 = vadd.f32 1.0, %v1641_v19  ;;  %v1105_v21 = vmul.f32 %v7800_v28, %v1049_v40  ;;  %vm856_vm6 = vmor %vm854_vm2, %vm855_vm3 }
 0x1cb   :  { %3495 = vmatmul.f32.gmra.mxu2 %v3356_v56  ;;  %v1611_v63 = vsel %vm8499_vm4, %v6976_v17, %v1607_v49  ;;  %3679 = vmatmul.f32.gmra.mxu0 %v3356_v56  ;;  %v1630_v45 = vmul.f32 %v1629_v33, %v8397_v5  ;;  %v1669_v42 = vadd.f32 0.18741608, %v1668_v3  ;;  %v1681_v44 = vmul.f32 %v1680_v37, %v8417_v1  ;;  %v425_v49 = vpop.xlane.xlu1 %424  ;;  %v13611_v5 = vld [vmem:[#allocation50_spill] sm:$0xff] }
 0x1cc   :  { %v899_v7 = vmul.f32 %v8455_v25, %v8405_v61  ;;  %v1616_v34 = vsel %vm1613_vm5, %v1615_v30, %v1611_v63  ;;  %6977 = vrcp.f32 %v8503_v52  ;;  %v13603_v47 = vsub.f32 1.5, %v8390_v12 }
 0x1cd   :  { %v1617_v40 = vmul.f32 %v1616_v34, %v1592_v57  ;;  %v8522_v39 = vmin.f32 %v1700_v14, 16.0  ;;  %v8526_v3 = vadd.f32 1e-05, %v701_v43  ;;  %v8528_v19 = vadd.f32 1.0, %v1681_v44 }
 0x1ce   :  { %v8518_v55 = vmul.f32 %v8222_v54, %v13603_v47  ;;  %v8531_v56 = vadd.f32 %v7831_v18, %v1105_v21  ;;  %v8534_v12 = vmul.f32 0.5, %v8437_v29  ;;  %v1631_v11 = vadd.f32 1.1283791, %v1630_v45 }
 0x1cf   :  { %v6798_v37 = vclamps-f32 %v1617_v40, 1.0  ;;  %v1670_v57 = vmul.f32 %v1669_v42, %v8417_v1  ;;  %v8538_v27 = vmul.f32 %v8455_v25, %v899_v7  ;;  %v8542_v43 = vmul.f32 %v8461_v16, %v8408_v51 }
 0x1d0   :  { %13604 = vst [vmem:[#allocation12_spill] sm:$0xff] %v8518_v55  ;;  %v1207_v14 = vmul.f32 0.5, %v8303_v60  ;;  %6979 = vrcp.f32 %v8528_v19  ;;  %v1652_v29 = vand.u32 2147483647, %v8503_v52  ;;  %v1654_v30 = vand.u32 2147483648, %v8503_v52  ;;  %v582_v55 = vpop.xlane.xlu2 %581 }
 0x1d1   :  { %v3307_v62 = vadd.f32 1.0, %v6798_v37  ;;  %v1702_v21 = vmul.f32 2.1237322e-06, %v8522_v39  ;;  %6981 = vrsqrt.f32 %v8526_v3  ;;  %v8551_v1 = vmul.f32 %v7698_v35, %v425_v49 }
 0x1d2   :  { %v6978_v63 = vpop.eup %6977  ;;  %v1713_v45 = vmul.f32 3.8918573e-05, %v8522_v39  ;;  %v8555_v42 = vmul.f32 0.70710677, %v8531_v56  ;;  %v1632_v44 = vmul.f32 %v1631_v11, %v8375_v59  ;;  %v1671_v34 = vadd.f32 1.1283791, %v1670_v57 }
 0x1d3   :  { %13607 = vst [vmem:[#allocation45_spill] sm:$0xff] %v8551_v1  ;;  %v3357_v60 = vmul.f32 %v3307_v62, %v1207_v14  ;;  %v1644_v7 = vmul.f32 %v6978_v63, %v8503_v52  ;;  %vm1648_vm7 = vweird.f32 %v8503_v52  ;;  %v1703_v47 = vadd.f32 0.00028619796, %v1702_v21 }
 0x1d4   :  { %v1714_v40 = vadd.f32 0.001143296, %v1713_v45  ;;  %v1740_v49 = vmul.f32 %v8555_v42, %v8555_v42  ;;  %vm8566_vm8 = vcmp.eq.f32.partialorder %v1652_v29, 8.507059e+37  ;;  %v1655_v11 = vor.u32 1.1754944e-38, %v1654_v30  ;;  %v13610_v30 = vld [vmem:[#allocation14_spill] sm:$0xff] }
 0x1d5   :  { %3587 = vmatmul.f32.gmra.mxu3 %v3357_v60  ;;  %3771 = vmatmul.f32.gmra.mxu1 %v3357_v60  ;;  %v1645_v37 = vsub.f32 1.0, %v1644_v7  ;;  %v857_v57 = vsel %vm856_vm6, %v8011_v46, %v8167_v38  ;;  %v1692_v14 = vand.u32 2147483647, %v8528_v19  ;;  %v1704_v62 = vmul.f32 %v1703_v47, %v8522_v39 }
 0x1d6   :  { %v6980_v31 = vpop.eup %6979  ;;  %v1715_v21 = vmul.f32 %v1714_v40, %v8522_v39  ;;  %v8575_v45 = vmin.f32 %v1740_v49, 16.0  ;;  %vm1649_vm9 = vweird.f32 %v6978_v63  ;;  %v1672_v29 = vmul.f32 %v1671_v34, %v8383_v48 }
 0x1d7   :  { %v1646_v33 = vmul.f32 %v6978_v63, %v1645_v37  ;;  %v1684_v60 = vmul.f32 %v6980_v31, %v8528_v19  ;;  %v8579_v7 = vpop.eup %6981  ;;  %vm1688_vm10 = vweird.f32 %v8528_v19  ;;  %v1705_v46 = vadd.f32 0.0036580483, %v1704_v62  ;;  %vm1650_vm13 = vmor %vm1648_vm7, %vm1649_vm9 }
 0x1d8   :  { %v1716_v38 = vadd.f32 0.014752088, %v1715_v21  ;;  %v13612_v2 = vsub.f32 %v13610_v30, %v13611_v5  ;;  %v1742_v49 = vmul.f32 2.1237322e-06, %v8575_v45  ;;  %v1753_v37 = vmul.f32 3.8918573e-05, %v8575_v45 }
 0x1d9   :  { %v1647_v9 = vadd.f32 %v6978_v63, %v1646_v33  ;;  %v1685_v40 = vsub.f32 1.0, %v1684_v60  ;;  %vm864_vm11 = vweird.f32 %v13613_v53  ;;  %vm865_vm12 = vweird.f32 %v8073_v23 }
 0x1da   :  { %v1050_v47 = vmul.f32 %v857_v57, %v13612_v2  ;;  %vm1689_vm14 = vweird.f32 %v6980_v31  ;;  %vm8591_vm15 = vcmp.eq.f32.partialorder %v1692_v14, 8.507059e+37  ;;  %v1694_v2 = vand.u32 2147483648, %v8528_v19  ;;  %vm866_vm1 = vmor %vm864_vm11, %vm865_vm12 }
 0x1db   :  { %v1717_v33 = vmul.f32 %v1716_v38, %v8522_v39  ;;  %v1651_v34 = vsel %vm1650_vm13, %v6978_v63, %v1647_v9  ;;  %v1686_v62 = vmul.f32 %v6980_v31, %v1685_v40  ;;  %v1743_v21 = vadd.f32 0.00028619796, %v1742_v49  ;;  %vm1690_vm0 = vmor %vm1688_vm10, %vm1689_vm14 }
 0x1dc   :  { %v1754_v60 = vadd.f32 0.001143296, %v1753_v37  ;;  %v1656_v30 = vsel %vm8566_vm8, %v1655_v11, %v1651_v34  ;;  %v1706_v17 = vmul.f32 %v1705_v46, %v8522_v39  ;;  %v1106_v15 = vmul.f32 %v7782_v0, %v1050_v47  ;;  %v13616_v11 = vld [vmem:[#allocation15_spill] sm:$0xff] }
 0x1dd   :  { %v1718_v52 = vadd.f32 0.112945676, %v1717_v33  ;;  %v1657_v14 = vmul.f32 %v1656_v30, %v1632_v44  ;;  %v1687_v51 = vadd.f32 %v6980_v31, %v1686_v62  ;;  %v1744_v58 = vmul.f32 %v1743_v21, %v8575_v45 }
 0x1de   :  { %v1755_v61 = vmul.f32 %v1754_v60, %v8575_v45  ;;  %v1695_v9 = vor.u32 1.1754944e-38, %v1694_v2  ;;  %v8608_v59 = vadd.f32 %v7794_v36, %v1106_v15  ;;  %v13617_v46 = vsub.f32 %v13616_v11, %v13611_v5 }
 0x1df   :  { %v1719_v63 = vmul.f32 %v1718_v52, %v8522_v39  ;;  %v6799_v38 = vclamps-f32 %v1657_v14, 1.0  ;;  %v1691_v47 = vsel %vm1690_vm0, %v6980_v31, %v1687_v51  ;;  %v1745_v40 = vadd.f32 0.0036580483, %v1744_v58  ;;  %v428_v51 = vpop.xlane.xlu0 %427 }
 0x1e0   :  { %v1051_v44 = vmul.f32 %v857_v57, %v13617_v46  ;;  %v1756_v49 = vadd.f32 0.014752088, %v1755_v61  ;;  %v910_v37 = vmul.f32 %v8461_v16, %v8542_v43  ;;  %v1696_v19 = vsel %vm8591_vm15, %v1695_v9, %v1691_v47 }
 0x1e1   :  { %v1707_v2 = vadd.f32 0.05243302, %v1706_v17  ;;  %v1720_v33 = vadd.f32 0.4994258, %v1719_v63  ;;  %v627_v34 = vmul.f32 %v582_v55, %v7698_v35  ;;  %v1208_v15 = vmul.f32 0.5, %v8358_v26  ;;  %v585_v63 = vpop.xlane.xlu1 %584 }
 0x1e2   :  { %v3308_v62 = vadd.f32 1.0, %v6799_v38  ;;  %v1697_v21 = vmul.f32 %v1696_v19, %v1672_v29  ;;  %v652_v5 = vmul.f32 %v8551_v1, %v8551_v1  ;;  %v1757_v61 = vmul.f32 %v1756_v49, %v8575_v45  ;;  %v3897_v19 = vld [vmem:[#allocation5 + $0x1d8] sm:$0xff] }
 0x1e3   :  { %v1721_v58 = vmul.f32 %v1720_v33, %v8522_v39  ;;  %v1107_v43 = vmul.f32 %v7800_v28, %v1051_v44  ;;  %v1746_v17 = vmul.f32 %v1745_v40, %v8575_v45  ;;  %v8626_v55 = vmul.f32 0.70710677, %v8608_v59  ;;  %4186 = vmatpush.msra.mxu1 %v3897_v19 }
 0x1e4   :  { %v3358_v57 = vmul.f32 %v3308_v62, %v1208_v15  ;;  %v6800_v31 = vclamps-f32 %v1697_v21, 1.0  ;;  %v892_v26 = vsub.f32 1.5, %v8534_v12  ;;  %v1209_v29 = vmul.f32 0.5, %v8363_v4 }
 0x1e5   :  { %v1708_v48 = vmul.f32 %v1707_v2, %v8522_v39  ;;  %v8631_v60 = vadd.f32 1.0, %v1721_v58  ;;  %v8638_v30 = vmul.f32 %v7698_v35, %v428_v51  ;;  %v1758_v14 = vadd.f32 0.112945676, %v1757_v61 }
 0x1e6   :  { %3498 = vmatmul.f32.gmra.mxu2 %v3358_v57  ;;  %v3309_v52 = vadd.f32 1.0, %v6800_v31  ;;  %3682 = vmatmul.f32.gmra.mxu0 %v3358_v57  ;;  %v1780_v12 = vmul.f32 %v8626_v55, %v8626_v55  ;;  %v8643_v4 = vmul.f32 0.5, %v8538_v27  ;;  %v8645_v9 = vmul.f32 0.5, %v910_v37 }
 0x1e7   :  { %13618 = vst [vmem:[#allocation13_spill] sm:$0xff] %v8638_v30  ;;  %6983 = vrcp.f32 %v8631_v60  ;;  %v8650_v53 = vsel %vm866_vm1, %v8073_v23, %v8184_v13  ;;  %v677_v11 = vsub.f32 %v627_v34, %v652_v5  ;;  %v1747_v44 = vadd.f32 0.05243302, %v1746_v17  ;;  %v3894_v13 = vld [vmem:[#allocation5 + $0x1c0] sm:$0xff] }
 0x1e8   :  { %v3359_v46 = vmul.f32 %v3309_v52, %v1209_v29  ;;  %v8653_v38 = vadd.f32 %v7831_v18, %v1107_v43  ;;  %v919_v47 = vmul.f32 %v8579_v7, %v8526_v3  ;;  %v1709_v27 = vadd.f32 0.18741608, %v1708_v48  ;;  %4003 = vmatpush.msrb.mxu3 %v3894_v13 }
 0x1e9   :  { %v1759_v40 = vmul.f32 %v1758_v14, %v8575_v45  ;;  %v8658_v49 = vmin.f32 %v1780_v12, 16.0  ;;  %v628_v37 = vmul.f32 %v585_v63, %v7698_v35  ;;  %v653_v23 = vmul.f32 %v8638_v30, %v8638_v30 }
 0x1ea   :  { %3590 = vmatmul.f32.gmra.mxu3 %v3359_v46  ;;  %3774 = vmatmul.f32.gmra.mxu1 %v3359_v46  ;;  %v13619_v2 = vsub.f32 %v7590_v41, %v7947_v24  ;;  %v8668_v34 = vmul.f32 %v8320_v20, %v892_v26  ;;  %v902_v15 = vsub.f32 1.5, %v8643_v4  ;;  %v702_v5 = vmax.f32 %v677_v11, 0.0  ;;  %v3860_v4 = vld [vmem:[#allocation5 + $0xb0] sm:$0xff] }
 0x1eb   :  { %v1760_v62 = vadd.f32 0.4994258, %v1759_v40  ;;  %v1782_v21 = vmul.f32 2.1237322e-06, %v8658_v49  ;;  %v1748_v51 = vmul.f32 %v1747_v44, %v8575_v45  ;;  %v1793_v58 = vmul.f32 3.8918573e-05, %v8658_v49  ;;  %3912 = vmatpush.msrb.mxu2 %v3860_v4 }
 0x1ec   :  { %v1052_v33 = vmul.f32 %v8650_v53, %v13619_v2  ;;  %v8675_v61 = vmul.f32 0.70710677, %v8653_v38  ;;  %v912_v43 = vsub.f32 1.5, %v8645_v9  ;;  %v1710_v57 = vmul.f32 %v1709_v27, %v8522_v39 }
 0x1ed   :  { %v6984_v41 = vpop.eup %6983  ;;  %v1761_v31 = vmul.f32 %v1760_v62, %v8575_v45  ;;  %v8682_v26 = vmul.f32 %v8579_v7, %v919_v47  ;;  %v678_v29 = vsub.f32 %v628_v37, %v653_v23  ;;  %v1783_v52 = vadd.f32 0.00028619796, %v1782_v21 }
 0x1ee   :  { %v1108_v17 = vmul.f32 %v7782_v0, %v1052_v33  ;;  %v1724_v48 = vmul.f32 %v6984_v41, %v8631_v60  ;;  %v1734_v14 = vand.u32 2147483648, %v8631_v60  ;;  %v1794_v63 = vadd.f32 0.001143296, %v1793_v58 }
 0x1ef   :  { %v8686_v12 = vadd.f32 1.0, %v1761_v31  ;;  %v1820_v11 = vmul.f32 %v8675_v61, %v8675_v61  ;;  %v8690_v39 = vadd.f32 1e-05, %v702_v5  ;;  %v1749_v44 = vadd.f32 0.18741608, %v1748_v51 }
 0x1f0   :  { %v1725_v46 = vsub.f32 1.0, %v1724_v48  ;;  %v1784_v27 = vmul.f32 %v1783_v52, %v8658_v49  ;;  %v1711_v47 = vadd.f32 1.1283791, %v1710_v57  ;;  %v1732_v40 = vand.u32 2147483647, %v8631_v60 }
 0x1f1   :  { %13620 = vst [vmem:[#allocation55_spill] sm:$0xff] %v8690_v39  ;;  %6985 = vrcp.f32 %v8686_v12  ;;  %v8696_v37 = vadd.f32 %v7794_v36, %v1108_v17  ;;  %vm1729_vm2 = vweird.f32 %v6984_v41  ;;  %v1795_v19 = vmul.f32 %v1794_v63, %v8658_v49 }
 0x1f2   :  { %v1726_v23 = vmul.f32 %v6984_v41, %v1725_v46  ;;  %v1785_v13 = vadd.f32 0.0036580483, %v1784_v27  ;;  %v8699_v2 = vmax.f32 %v678_v29, 0.0  ;;  %vm1728_vm3 = vweird.f32 %v8631_v60 }
 0x1f3   :  { %v1735_v33 = vor.u32 1.1754944e-38, %v1734_v14  ;;  %v8702_v62 = vmin.f32 %v1820_v11, 16.0  ;;  %v1750_v5 = vmul.f32 %v1749_v44, %v8575_v45  ;;  %v1796_v58 = vadd.f32 0.014752088, %v1795_v19  ;;  %vm1730_vm4 = vmor %vm1728_vm3, %vm1729_vm2 }
 0x1f4   :  { %v1727_v21 = vadd.f32 %v6984_v41, %v1726_v23  ;;  %v1786_v51 = vmul.f32 %v1785_v13, %v8658_v49  ;;  %6987 = vrsqrt.f32 %v8690_v39  ;;  %v8710_v17 = vmul.f32 0.70710677, %v8696_v37 }
 0x1f5   :  { %v1822_v57 = vmul.f32 2.1237322e-06, %v8702_v62  ;;  %v1833_v31 = vmul.f32 3.8918573e-05, %v8702_v62  ;;  %v1210_v60 = vmul.f32 0.5, %v8473_v10  ;;  %v1712_v29 = vmul.f32 %v1711_v47, %v8483_v32 }
 0x1f6   :  { %v1731_v48 = vsel %vm1730_vm4, %v6984_v41, %v1727_v21  ;;  %vm1733_vm5 = vcmp.eq.f32.partialorder %v1732_v40, 8.507059e+37  ;;  %v1797_v14 = vmul.f32 %v1796_v58, %v8658_v49  ;;  %v1751_v44 = vadd.f32 1.1283791, %v1750_v5 }
 0x1f7   :  { %v6986_v45 = vpop.eup %6985  ;;  %v1736_v52 = vsel %vm1733_vm5, %v1735_v33, %v1731_v48  ;;  %v1823_v63 = vadd.f32 0.00028619796, %v1822_v57  ;;  %v1834_v11 = vadd.f32 0.001143296, %v1833_v31  ;;  %v1787_v23 = vadd.f32 0.05243302, %v1786_v51 }
 0x1f8   :  { %v1737_v46 = vmul.f32 %v1736_v52, %v1712_v29  ;;  %v1764_v27 = vmul.f32 %v6986_v45, %v8686_v12  ;;  %v1798_v13 = vadd.f32 0.112945676, %v1797_v14  ;;  %v1860_v32 = vmul.f32 %v8710_v17, %v8710_v17 }
 0x1f9   :  { %v1824_v19 = vmul.f32 %v1823_v63, %v8702_v62  ;;  %v1835_v10 = vmul.f32 %v1834_v11, %v8702_v62  ;;  %v1772_v40 = vand.u32 2147483647, %v8686_v12  ;;  %v1774_v33 = vand.u32 2147483648, %v8686_v12  ;;  %v13621_v11 = vld [vmem:[#allocation16_spill] sm:$0xff] }
 0x1fa   :  { %v6801_v41 = vclamps-f32 %v1737_v46, 1.0  ;;  %v1765_v47 = vsub.f32 1.0, %v1764_v27  ;;  %v8722_v21 = vpop.eup %6987  ;;  %v1799_v5 = vmul.f32 %v1798_v13, %v8658_v49  ;;  %v8725_v57 = vmin.f32 %v1860_v32, 16.0 }
 0x1fb   :  { %v1825_v58 = vadd.f32 0.0036580483, %v1824_v19  ;;  %v1836_v51 = vadd.f32 0.014752088, %v1835_v10  ;;  %v1752_v29 = vmul.f32 %v1751_v44, %v8555_v42  ;;  %vm1769_vm6 = vweird.f32 %v6986_v45 }
 0x1fc   :  { %v3310_v31 = vadd.f32 1.0, %v6801_v41  ;;  %v1766_v48 = vmul.f32 %v6986_v45, %v1765_v47  ;;  %v1788_v52 = vmul.f32 %v1787_v23, %v8658_v49  ;;  %v1800_v14 = vadd.f32 0.4994258, %v1799_v5 }
 0x1fd   :  { %v1826_v63 = vmul.f32 %v1825_v58, %v8702_v62  ;;  %v13622_v46 = vsub.f32 %v13621_v11, %v7947_v24  ;;  %vm1768_vm7 = vweird.f32 %v8686_v12  ;;  %v1837_v10 = vmul.f32 %v1836_v51, %v8702_v62 }
 0x1fe   :  { %v3360_v13 = vmul.f32 %v3310_v31, %v1210_v60  ;;  %v1767_v19 = vadd.f32 %v6986_v45, %v1766_v48  ;;  %vm1770_vm8 = vmor %vm1768_vm7, %vm1769_vm6  ;;  %vm1773_vm9 = vcmp.eq.f32.partialorder %v1772_v40, 8.507059e+37  ;;  %v1775_v42 = vor.u32 1.1754944e-38, %v1774_v33  ;;  %v13623_v60 = vld [vmem:[#allocation59_spill] sm:$0xff] }
 0x1ff   :  { %v1053_v27 = vmul.f32 %v8650_v53, %v13622_v46  ;;  %v1801_v44 = vmul.f32 %v1800_v14, %v8658_v49  ;;  %v1862_v23 = vmul.f32 2.1237322e-06, %v8725_v57  ;;  %v1827_v41 = vadd.f32 0.05243302, %v1826_v63  ;;  %v431_v63 = vpop.xlane.xlu2 %430 }
 0x200   :  { %3501 = vmatmul.f32.gmra.mxu2 %v3360_v13  ;;  %v1771_v32 = vsel %vm1770_vm8, %v6986_v45, %v1767_v19  ;;  %3685 = vmatmul.f32.gmra.mxu0 %v3360_v13  ;;  %v1838_v24 = vadd.f32 0.112945676, %v1837_v10  ;;  %v1873_v53 = vmul.f32 3.8918573e-05, %v8725_v57  ;;  %vm874_vm10 = vweird.f32 %v13623_v60  ;;  %v3895_v19 = vld [vmem:[#allocation5 + $0x1c8] sm:$0xff] }
 0x201   :  { %vm875_vm11 = vweird.f32 %v8177_v50  ;;  %v1776_v12 = vsel %vm1773_vm9, %v1775_v42, %v1771_v32  ;;  %v1789_v47 = vadd.f32 0.18741608, %v1788_v52  ;;  %v8741_v5 = vadd.f32 1.0, %v1801_v44  ;;  %v3863_v52 = vld [vmem:[#allocation5 + $0xc8] sm:$0xff]  ;;  %4187 = vmatpush.msra.mxu1 %v3895_v19 }
 0x202   :  { %v1109_v40 = vmul.f32 %v7800_v28, %v1053_v27  ;;  %v8747_v33 = vmul.f32 %v8455_v25, %v902_v15  ;;  %v929_v45 = vmul.f32 %v8722_v21, %v8690_v39  ;;  %v1777_v58 = vmul.f32 %v1776_v12, %v1752_v29  ;;  %v3892_v15 = vld [vmem:[#allocation5 + $0x1b0] sm:$0xff]  ;;  %4095 = vmatpush.msra.mxu0 %v3863_v52  ;;  %v588_v12 = vpop.xlane.xlu0 %587  ;;  %vm876_vm12 = vmor %vm874_vm10, %vm875_vm11 }
 0x203   :  { %v1839_v51 = vmul.f32 %v1838_v24, %v8702_v62  ;;  %v8755_v31 = vmul.f32 %v8461_v16, %v912_v43  ;;  %v8758_v48 = vmul.f32 0.5, %v8682_v26  ;;  %6989 = vrcp.f32 %v8741_v5  ;;  %4004 = vmatpush.msrb.mxu3 %v3892_v15 }
 0x204   :  { %v1863_v14 = vadd.f32 0.00028619796, %v1862_v23  ;;  %v6802_v11 = vclamps-f32 %v1777_v58, 1.0  ;;  %v1828_v29 = vmul.f32 %v1827_v41, %v8702_v62  ;;  %v1874_v9 = vadd.f32 0.001143296, %v1873_v53 }
 0x205   :  { %v1840_v46 = vadd.f32 0.4994258, %v1839_v51  ;;  %v8765_v26 = vadd.f32 1e-05, %v8699_v2  ;;  %v1790_v13 = vmul.f32 %v1789_v47, %v8658_v49  ;;  %v8769_v10 = vadd.f32 %v7831_v18, %v1109_v40 }
 0x206   :  { %v930_v42 = vmul.f32 %v8722_v21, %v929_v45  ;;  %v1211_v44 = vmul.f32 0.5, %v8531_v56  ;;  %v3311_v23 = vadd.f32 1.0, %v6802_v11  ;;  %v8778_v49 = vmul.f32 %v7698_v35, %v431_v63 }
 0x207   :  { %13625 = vst [vmem:[#allocation14_spill] sm:$0xff] %v8765_v26  ;;  %v1841_v32 = vmul.f32 %v1840_v46, %v8702_v62  ;;  %v1864_v53 = vmul.f32 %v1863_v14, %v8725_v57  ;;  %v1829_v40 = vadd.f32 0.18741608, %v1828_v29  ;;  %v1875_v56 = vmul.f32 %v1874_v9, %v8725_v57 }
 0x208   :  { %13627 = vst [vmem:[#allocation50_spill] sm:$0xff] %v8778_v49  ;;  %v3361_v47 = vmul.f32 %v3311_v23, %v1211_v44  ;;  %6991 = vrsqrt.f32 %v8765_v26  ;;  %v1791_v52 = vadd.f32 1.1283791, %v1790_v13  ;;  %v8788_v15 = vmul.f32 0.70710677, %v8769_v10 }
 0x209   :  { %v8781_v45 = vadd.f32 1.0, %v1841_v32  ;;  %v6990_v58 = vpop.eup %6989  ;;  %v8790_v63 = vmul.f32 0.5, %v930_v42  ;;  %v1865_v11 = vadd.f32 0.0036580483, %v1864_v53  ;;  %v8796_v29 = vmul.f32 %v8778_v49, %v8778_v49 }
 0x20a   :  { %3593 = vmatmul.f32.gmra.mxu3 %v3361_v47  ;;  %3777 = vmatmul.f32.gmra.mxu1 %v3361_v47  ;;  %v1804_v14 = vmul.f32 %v6990_v58, %v8741_v5  ;;  %v8799_v46 = vmul.f32 %v588_v12, %v7698_v35  ;;  %v1812_v9 = vand.u32 2147483647, %v8741_v5  ;;  %v1814_v13 = vand.u32 2147483648, %v8741_v5 }
 0x20b   :  { %6993 = vrcp.f32 %v8781_v45  ;;  %v1830_v42 = vmul.f32 %v1829_v40, %v8702_v62  ;;  %v1876_v44 = vadd.f32 0.014752088, %v1875_v56  ;;  %v1900_v23 = vmul.f32 %v8788_v15, %v8788_v15  ;;  %v13631_v40 = vld [vmem:[#allocation17_spill] sm:$0xff]  ;;  %v13632_v56 = vld [vmem:[#allocation56_spill] sm:$0xff] }
 0x20c   :  { %v1805_v19 = vsub.f32 1.0, %v1804_v14  ;;  %v1212_v32 = vmul.f32 0.5, %v8608_v59  ;;  %v1792_v53 = vmul.f32 %v1791_v52, %v8626_v55  ;;  %vm1809_vm13 = vweird.f32 %v6990_v58 }
 0x20d   :  { %v8814_v12 = vsel %vm876_vm12, %v8177_v50, %v8420_v6  ;;  %v1866_v60 = vmul.f32 %v1865_v11, %v8725_v57  ;;  %v1877_v14 = vmul.f32 %v1876_v44, %v8725_v57  ;;  %v8818_v4 = vmin.f32 %v1900_v23, 16.0 }
 0x20e   :  { %v1806_v47 = vmul.f32 %v6990_v58, %v1805_v19  ;;  %v8820_v62 = vpop.eup %6991  ;;  %vm1808_vm14 = vweird.f32 %v8741_v5  ;;  %vm8823_vm15 = vcmp.eq.f32.partialorder %v1812_v9, 8.507059e+37  ;;  %v1815_v55 = vor.u32 1.1754944e-38, %v1814_v13 }
 0x20f   :  { %v13633_v50 = vsub.f32 %v13631_v40, %v13632_v56  ;;  %v1831_v19 = vadd.f32 1.1283791, %v1830_v42  ;;  %v1878_v44 = vadd.f32 0.112945676, %v1877_v14  ;;  %v1902_v23 = vmul.f32 2.1237322e-06, %v8818_v4  ;;  %vm1810_vm0 = vmor %vm1808_vm14, %vm1809_vm13 }
 0x210   :  { %v1807_v11 = vadd.f32 %v6990_v58, %v1806_v47  ;;  %v1852_v9 = vand.u32 2147483647, %v8781_v45  ;;  %v1913_v24 = vmul.f32 3.8918573e-05, %v8818_v4  ;;  %v1867_v40 = vadd.f32 0.05243302, %v1866_v60 }
 0x211   :  { %v1054_v6 = vmul.f32 %v8814_v12, %v13633_v50  ;;  %v6994_v52 = vpop.eup %6993  ;;  %v1879_v50 = vmul.f32 %v1878_v44, %v8725_v57  ;;  %v1903_v2 = vadd.f32 0.00028619796, %v1902_v23  ;;  %v1854_v39 = vand.u32 2147483648, %v8781_v45 }
 0x212   :  { %v1844_v5 = vmul.f32 %v6994_v52, %v8781_v45  ;;  %v1811_v27 = vsel %vm1810_vm0, %v6990_v58, %v1807_v11  ;;  %v1914_v14 = vadd.f32 0.001143296, %v1913_v24  ;;  %vm1849_vm1 = vweird.f32 %v6994_v52 }
 0x213   :  { %v1110_v13 = vmul.f32 %v7782_v0, %v1054_v6  ;;  %v1816_v42 = vsel %vm8823_vm15, %v1815_v55, %v1811_v27  ;;  %v1880_v22 = vadd.f32 0.4994258, %v1879_v50  ;;  %v1904_v43 = vmul.f32 %v1903_v2, %v8818_v4 }
 0x214   :  { %v1845_v47 = vsub.f32 1.0, %v1844_v5  ;;  %v1817_v41 = vmul.f32 %v1816_v42, %v1792_v53  ;;  %v1915_v58 = vmul.f32 %v1914_v14, %v8818_v4  ;;  %v1832_v27 = vmul.f32 %v1831_v19, %v8675_v61  ;;  %v434_v53 = vpop.xlane.xlu1 %433 }
 0x215   :  { %v8841_v51 = vadd.f32 %v7794_v36, %v1110_v13  ;;  %vm1848_vm2 = vweird.f32 %v8781_v45  ;;  %v1868_v24 = vmul.f32 %v1867_v40, %v8725_v57  ;;  %v1881_v11 = vmul.f32 %v1880_v22, %v8725_v57  ;;  %v591_v40 = vpop.xlane.xlu2 %590 }
 0x216   :  { %v1846_v6 = vmul.f32 %v6994_v52, %v1845_v47  ;;  %v6803_v59 = vclamps-f32 %v1817_v41, 1.0  ;;  %v1905_v44 = vadd.f32 0.0036580483, %v1904_v43  ;;  %v1916_v2 = vadd.f32 0.014752088, %v1915_v58  ;;  %vm1850_vm3 = vmor %vm1848_vm2, %vm1849_vm1  ;;  %v13634_v47 = vld [vmem:[#allocation18_spill] sm:$0xff] }
 0x217   :  { %v8847_v60 = vmul.f32 0.70710677, %v8841_v51  ;;  %vm1853_vm4 = vcmp.eq.f32.partialorder %v1852_v9, 8.507059e+37  ;;  %v1855_v5 = vor.u32 1.1754944e-38, %v1854_v39  ;;  %vm884_vm5 = vweird.f32 %v8173_v8 }
 0x218   :  { %v1847_v55 = vadd.f32 %v6994_v52, %v1846_v6  ;;  %v3312_v23 = vadd.f32 1.0, %v6803_v59  ;;  %vm885_vm6 = vweird.f32 %v8222_v54  ;;  %v8857_v41 = vadd.f32 1.0, %v1881_v11 }
 0x219   :  { %v1940_v13 = vmul.f32 %v8847_v60, %v8847_v60  ;;  %v1906_v45 = vmul.f32 %v1905_v44, %v8818_v4  ;;  %v1917_v22 = vmul.f32 %v1916_v2, %v8818_v4  ;;  %v8862_v43 = vmul.f32 %v7698_v35, %v434_v53  ;;  %vm886_vm7 = vmor %vm884_vm5, %vm885_vm6 }
 0x21a   :  { %v1851_v61 = vsel %vm1850_vm3, %v6994_v52, %v1847_v55  ;;  %v3362_v19 = vmul.f32 %v3312_v23, %v1212_v32  ;;  %v1869_v42 = vadd.f32 0.18741608, %v1868_v24  ;;  %6995 = vrcp.f32 %v8857_v41  ;;  %v3858_v23 = vld [vmem:[#allocation5 + $0xa0] sm:$0xff] }
 0x21b   :  { %v1856_v9 = vsel %vm1853_vm4, %v1855_v5, %v1851_v61  ;;  %v8864_v39 = vmin.f32 %v1940_v13, 16.0  ;;  %v13635_v52 = vsub.f32 %v13634_v47, %v13632_v56  ;;  %v932_v6 = vsub.f32 1.5, %v8790_v63  ;;  %v3861_v5 = vld [vmem:[#allocation5 + $0xb8] sm:$0xff]  ;;  %3913 = vmatpush.msrb.mxu2 %v3858_v23 }
 0x21c   :  { %v1857_v50 = vmul.f32 %v1856_v9, %v1832_v27  ;;  %v939_v58 = vmul.f32 %v8820_v62, %v8765_v26  ;;  %3504 = vmatmul.f32.gmra.mxu2 %v3362_v19  ;;  %3688 = vmatmul.f32.gmra.mxu0 %v3362_v19  ;;  %v1907_v32 = vadd.f32 0.05243302, %v1906_v45  ;;  %v1918_v59 = vadd.f32 0.112945676, %v1917_v22 }
 0x21d   :  { %v1055_v14 = vmul.f32 %v8814_v12, %v13635_v52  ;;  %v679_v27 = vsub.f32 %v8799_v46, %v8796_v29  ;;  %v1942_v53 = vmul.f32 2.1237322e-06, %v8864_v39  ;;  %v1953_v55 = vmul.f32 3.8918573e-05, %v8864_v39  ;;  %4096 = vmatpush.msra.mxu0 %v3861_v5 }
 0x21e   :  { %v6804_v24 = vclamps-f32 %v1857_v50, 1.0  ;;  %v630_v56 = vmul.f32 %v591_v40, %v7698_v35  ;;  %v655_v63 = vmul.f32 %v8862_v43, %v8862_v43  ;;  %v1213_v12 = vmul.f32 0.5, %v8653_v38 }
 0x21f   :  { %v1919_v11 = vmul.f32 %v1918_v59, %v8818_v4  ;;  %v1870_v2 = vmul.f32 %v1869_v42, %v8725_v57  ;;  %v1943_v29 = vadd.f32 0.00028619796, %v1942_v53  ;;  %v1111_v46 = vmul.f32 %v7800_v28, %v1055_v14 }
 0x220   :  { %v3313_v44 = vadd.f32 1.0, %v6804_v24  ;;  %v13636_v13 = vsub.f32 1.5, %v8758_v48  ;;  %v1908_v38 = vmul.f32 %v1907_v32, %v8818_v4  ;;  %v6996_v9 = vpop.eup %6995  ;;  %v1954_v50 = vadd.f32 0.001143296, %v1953_v55 }
 0x221   :  { %v1920_v19 = vadd.f32 0.4994258, %v1919_v11  ;;  %v1944_v40 = vmul.f32 %v1943_v29, %v8864_v39  ;;  %v8895_v42 = vadd.f32 %v7831_v18, %v1111_v46  ;;  %v8898_v48 = vmul.f32 %v8722_v21, %v932_v6 }
 0x222   :  { %v8888_v61 = vmul.f32 %v8579_v7, %v13636_v13  ;;  %v3363_v57 = vmul.f32 %v3313_v44, %v1213_v12  ;;  %v940_v47 = vmul.f32 %v8820_v62, %v939_v58  ;;  %v1884_v52 = vmul.f32 %v6996_v9, %v8857_v41 }
 0x223   :  { %v1921_v14 = vmul.f32 %v1920_v19, %v8818_v4  ;;  %v704_v32 = vmax.f32 %v679_v27, 0.0  ;;  %v680_v59 = vsub.f32 %v630_v56, %v655_v63  ;;  %v1871_v24 = vadd.f32 1.1283791, %v1870_v2  ;;  %v13638_v63 = vld [vmem:[#allocation12_spill] sm:$0xff]  ;;  %v13641_v19 = vld [vmem:[#allocation58_spill] sm:$0xff] }
 0x224   :  { %3596 = vmatmul.f32.gmra.mxu3 %v3363_v57  ;;  %3780 = vmatmul.f32.gmra.mxu1 %v3363_v57  ;;  %v1892_v53 = vand.u32 2147483647, %v8857_v41  ;;  %v1885_v6 = vsub.f32 1.0, %v1884_v52  ;;  %v1894_v55 = vand.u32 2147483648, %v8857_v41  ;;  %v1955_v12 = vmul.f32 %v1954_v50, %v8864_v39 }
 0x225   :  { %v8909_v58 = vadd.f32 1.0, %v1921_v14  ;;  %v1909_v11 = vadd.f32 0.18741608, %v1908_v38  ;;  %v1945_v27 = vadd.f32 0.0036580483, %v1944_v40  ;;  %v8917_v44 = vsel %vm886_vm7, %v8222_v54, %v13638_v63  ;;  %v13640_v54 = vld [vmem:[#allocation19_spill] sm:$0xff] }
 0x226   :  { %v8913_v56 = vmul.f32 0.70710677, %v8895_v42  ;;  %v8919_v2 = vmul.f32 0.5, %v940_v47  ;;  %v1886_v8 = vmul.f32 %v6996_v9, %v1885_v6  ;;  %vm1889_vm8 = vweird.f32 %v6996_v9 }
 0x227   :  { %6997 = vrcp.f32 %v8909_v58  ;;  %v8922_v23 = vadd.f32 1e-05, %v704_v32  ;;  %v705_v5 = vmax.f32 %v680_v59, 0.0  ;;  %v1872_v29 = vmul.f32 %v1871_v24, %v8710_v17 }
 0x228   :  { %vm1888_vm9 = vweird.f32 %v8857_v41  ;;  %v1887_v46 = vadd.f32 %v6996_v9, %v1886_v8  ;;  %v1956_v13 = vadd.f32 0.014752088, %v1955_v12  ;;  %v1980_v38 = vmul.f32 %v8913_v56, %v8913_v56 }
 0x229   :  { %13639 = vst [vmem:[#allocation57_spill] sm:$0xff] %v8922_v23  ;;  %v13642_v57 = vsub.f32 %v13640_v54, %v13641_v19  ;;  %vm1890_vm10 = vmor %vm1888_vm9, %vm1889_vm8  ;;  %vm1893_vm11 = vcmp.eq.f32.partialorder %v1892_v53, 8.507059e+37  ;;  %v1895_v50 = vor.u32 1.1754944e-38, %v1894_v55  ;;  %v1910_v47 = vmul.f32 %v1909_v11, %v8818_v4  ;;  %v13644_v11 = vld [vmem:[#allocation51_spill] sm:$0xff] }
 0x22a   :  { %v1946_v52 = vmul.f32 %v1945_v27, %v8864_v39  ;;  %v1891_v17 = vsel %vm1890_vm10, %v6996_v9, %v1887_v46  ;;  %v1957_v41 = vmul.f32 %v1956_v13, %v8864_v39  ;;  %v8935_v14 = vmin.f32 %v1980_v38, 16.0 }
 0x22b   :  { %v1056_v40 = vmul.f32 %v8917_v44, %v13642_v57  ;;  %6999 = vrsqrt.f32 %v8922_v23  ;;  %v8939_v59 = vadd.f32 1e-05, %v705_v5  ;;  %v1214_v24 = vmul.f32 0.5, %v8696_v37 }
 0x22c   :  { %v1896_v6 = vsel %vm1893_vm11, %v1895_v50, %v1891_v17  ;;  %v1958_v12 = vadd.f32 0.112945676, %v1957_v41  ;;  %v1982_v4 = vmul.f32 2.1237322e-06, %v8935_v14  ;;  %v1993_v9 = vmul.f32 3.8918573e-05, %v8935_v14 }
 0x22d   :  { %v1112_v32 = vmul.f32 %v7782_v0, %v1056_v40  ;;  %13643 = vst [vmem:[#allocation15_spill] sm:$0xff] %v8939_v59  ;;  %v6998_v53 = vpop.eup %6997  ;;  %v1897_v55 = vmul.f32 %v1896_v6, %v1872_v29  ;;  %vm894_vm12 = vweird.f32 %v13644_v11  ;;  %vm895_vm13 = vweird.f32 %v8320_v20 }
 0x22e   :  { %v1911_v27 = vadd.f32 1.1283791, %v1910_v47  ;;  %v1924_v63 = vmul.f32 %v6998_v53, %v8909_v58  ;;  %v1947_v8 = vadd.f32 0.05243302, %v1946_v52  ;;  %v1959_v46 = vmul.f32 %v1958_v12, %v8864_v39  ;;  %vm896_vm2 = vmor %vm894_vm12, %vm895_vm13 }
 0x22f   :  { %v8948_v5 = vadd.f32 %v7794_v36, %v1112_v32  ;;  %v6805_v37 = vclamps-f32 %v1897_v55, 1.0  ;;  %v1983_v29 = vadd.f32 0.00028619796, %v1982_v4  ;;  %v1994_v13 = vadd.f32 0.001143296, %v1993_v9 }
 0x230   :  { %v1925_v38 = vsub.f32 1.0, %v1924_v63  ;;  %v1932_v54 = vand.u32 2147483647, %v8909_v58  ;;  %v1934_v57 = vand.u32 2147483648, %v8909_v58  ;;  %v1960_v47 = vadd.f32 0.4994258, %v1959_v46  ;;  %v437_v63 = vpop.xlane.xlu0 %436 }
 0x231   :  { %v8954_v40 = vmul.f32 0.70710677, %v8948_v5  ;;  %v3314_v50 = vadd.f32 1.0, %v6805_v37  ;;  %v1984_v52 = vmul.f32 %v1983_v29, %v8935_v14  ;;  %v1995_v17 = vmul.f32 %v1994_v13, %v8935_v14  ;;  %v8958_v41 = vpop.eup %6999 }
 0x232   :  { %v1912_v32 = vmul.f32 %v1911_v27, %v8788_v15  ;;  %v1926_v6 = vmul.f32 %v6998_v53, %v1925_v38  ;;  %vm1929_vm14 = vweird.f32 %v6998_v53  ;;  %vm1928_vm15 = vweird.f32 %v8909_v58 }
 0x233   :  { %v2020_v55 = vmul.f32 %v8954_v40, %v8954_v40  ;;  %v3364_v12 = vmul.f32 %v3314_v50, %v1214_v24  ;;  %v1948_v4 = vmul.f32 %v1947_v8, %v8864_v39  ;;  %v1961_v9 = vmul.f32 %v1960_v47, %v8864_v39  ;;  %vm1930_vm0 = vmor %vm1928_vm15, %vm1929_vm14  ;;  %v13645_v24 = vld [vmem:[#allocation20_spill] sm:$0xff] }
 0x234   :  { %v1927_v37 = vadd.f32 %v6998_v53, %v1926_v6  ;;  %v1985_v46 = vadd.f32 0.0036580483, %v1984_v52  ;;  %v1996_v29 = vadd.f32 0.014752088, %v1995_v17  ;;  %vm1933_vm1 = vcmp.eq.f32.partialorder %v1932_v54, 8.507059e+37 }
 0x235   :  { %v8966_v13 = vmin.f32 %v2020_v55, 16.0  ;;  %3507 = vmatmul.f32.gmra.mxu2 %v3364_v12  ;;  %v1935_v15 = vor.u32 1.1754944e-38, %v1934_v57  ;;  %3691 = vmatmul.f32.gmra.mxu0 %v3364_v12  ;;  %v8968_v27 = vadd.f32 1.0, %v1961_v9  ;;  %v13646_v58 = vsub.f32 %v13645_v24, %v13641_v19 }
 0x236   :  { %v1931_v38 = vsel %vm1930_vm0, %v6998_v53, %v1927_v37  ;;  %v1986_v50 = vmul.f32 %v1985_v46, %v8935_v14  ;;  %v1997_v47 = vmul.f32 %v1996_v29, %v8935_v14  ;;  %v8978_v17 = vmul.f32 %v7698_v35, %v437_v63 }
 0x237   :  { %v1057_v8 = vmul.f32 %v8917_v44, %v13646_v58  ;;  %v2022_v52 = vmul.f32 2.1237322e-06, %v8966_v13  ;;  %v1936_v54 = vsel %vm1933_vm1, %v1935_v15, %v1931_v38  ;;  %v1949_v57 = vadd.f32 0.18741608, %v1948_v4  ;;  %v594_v44 = vpop.xlane.xlu1 %593 }
 0x238   :  { %7001 = vrcp.f32 %v8968_v27  ;;  %v1937_v53 = vmul.f32 %v1936_v54, %v1912_v32  ;;  %v1987_v12 = vadd.f32 0.05243302, %v1986_v50  ;;  %v949_v9 = vmul.f32 %v8958_v41, %v8922_v23  ;;  %v3893_v54 = vld [vmem:[#allocation5 + $0x1b8] sm:$0xff] }
 0x239   :  { %v1998_v63 = vadd.f32 0.112945676, %v1997_v47  ;;  %v2023_v4 = vadd.f32 0.00028619796, %v2022_v52  ;;  %v1113_v37 = vmul.f32 %v7800_v28, %v1057_v8  ;;  %7003 = vrsqrt.f32 %v8939_v59  ;;  %v3890_v52 = vld [vmem:[#allocation5 + $0x1a0] sm:$0xff]  ;;  %4188 = vmatpush.msra.mxu1 %v3893_v54 }
 0x23a   :  { %v6806_v46 = vclamps-f32 %v1937_v53, 1.0  ;;  %v1988_v29 = vmul.f32 %v1987_v12, %v8935_v14  ;;  %v8995_v32 = vsel %vm896_vm2, %v8320_v20, %v8668_v34  ;;  %v631_v15 = vmul.f32 %v594_v44, %v7698_v35  ;;  %4005 = vmatpush.msrb.mxu3 %v3890_v52  ;;  %v13650_v12 = vld [vmem:[#allocation60_spill] sm:$0xff] }
 0x23b   :  { %v656_v11 = vmul.f32 %v8978_v17, %v8978_v17  ;;  %v1950_v24 = vmul.f32 %v1949_v57, %v8864_v39  ;;  %v1999_v58 = vmul.f32 %v1998_v63, %v8935_v14  ;;  %v1215_v50 = vmul.f32 0.5, %v8769_v10  ;;  %v13649_v57 = vld [vmem:[#allocation21_spill] sm:$0xff] }
 0x23c   :  { %v3315_v47 = vadd.f32 1.0, %v6806_v46  ;;  %v2033_v20 = vmul.f32 3.8918573e-05, %v8966_v13  ;;  %v2024_v44 = vmul.f32 %v2023_v4, %v8966_v13  ;;  %v9008_v39 = vadd.f32 %v7831_v18, %v1113_v37 }
 0x23d   :  { %v2000_v53 = vadd.f32 0.4994258, %v1999_v58  ;;  %v13651_v63 = vsub.f32 %v13649_v57, %v13650_v12  ;;  %v1989_v19 = vadd.f32 0.18741608, %v1988_v29  ;;  %v950_v58 = vmul.f32 %v8958_v41, %v949_v9 }
 0x23e   :  { %v7002_v34 = vpop.eup %7001  ;;  %v3365_v55 = vmul.f32 %v3315_v47, %v1215_v50  ;;  %v681_v52 = vsub.f32 %v631_v15, %v656_v11  ;;  %v1951_v54 = vadd.f32 1.1283791, %v1950_v24  ;;  %v1974_v8 = vand.u32 2147483648, %v8968_v27 }
 0x23f   :  { %v1058_v38 = vmul.f32 %v8995_v32, %v13651_v63  ;;  %v1964_v22 = vmul.f32 %v7002_v34, %v8968_v27  ;;  %v2001_v4 = vmul.f32 %v2000_v53, %v8935_v14  ;;  %v9019_v37 = vpop.eup %7003  ;;  %v1972_v63 = vand.u32 2147483647, %v8968_v27 }
 0x240   :  { %3599 = vmatmul.f32.gmra.mxu3 %v3365_v55  ;;  %3783 = vmatmul.f32.gmra.mxu1 %v3365_v55  ;;  %v2034_v46 = vadd.f32 0.001143296, %v2033_v20  ;;  %v2025_v47 = vadd.f32 0.0036580483, %v2024_v44  ;;  %v9026_v29 = vmul.f32 0.70710677, %v9008_v39  ;;  %vm1969_vm3 = vweird.f32 %v7002_v34 }
 0x241   :  { %v1965_v57 = vsub.f32 1.0, %v1964_v22  ;;  %v9023_v50 = vadd.f32 1.0, %v2001_v4  ;;  %v1114_v9 = vmul.f32 %v7782_v0, %v1058_v38  ;;  %v1990_v11 = vmul.f32 %v1989_v19, %v8935_v14  ;;  %v440_v4 = vpop.xlane.xlu2 %439 }
 0x242   :  { %v2035_v55 = vmul.f32 %v2034_v46, %v8966_v13  ;;  %v9031_v22 = vmul.f32 0.5, %v950_v58  ;;  %v9035_v24 = vmul.f32 %v9019_v37, %v8939_v59  ;;  %v706_v20 = vmax.f32 %v681_v52, 0.0 }
 0x243   :  { %v1966_v15 = vmul.f32 %v7002_v34, %v1965_v57  ;;  %7005 = vrcp.f32 %v9023_v50  ;;  %v1952_v53 = vmul.f32 %v1951_v54, %v8847_v60  ;;  %vm1968_vm4 = vweird.f32 %v8968_v27  ;;  %v597_v57 = vpop.xlane.xlu0 %596 }
 0x244   :  { %v2036_v38 = vadd.f32 0.014752088, %v2035_v55  ;;  %vm1970_vm5 = vmor %vm1968_vm4, %vm1969_vm3  ;;  %vm1973_vm6 = vcmp.eq.f32.partialorder %v1972_v63, 8.507059e+37  ;;  %v1975_v14 = vor.u32 1.1754944e-38, %v1974_v8  ;;  %v2060_v19 = vmul.f32 %v9026_v29, %v9026_v29 }
 0x245   :  { %v1967_v44 = vadd.f32 %v7002_v34, %v1966_v15  ;;  %v9043_v46 = vadd.f32 %v7794_v36, %v1114_v9  ;;  %v1991_v52 = vadd.f32 1.1283791, %v1990_v11  ;;  %v2026_v59 = vmul.f32 %v2025_v47, %v8966_v13 }
 0x246   :  { %v2037_v60 = vmul.f32 %v2036_v38, %v8966_v13  ;;  %v9047_v54 = vadd.f32 1e-05, %v706_v20  ;;  %v9049_v15 = vmin.f32 %v2060_v19, 16.0  ;;  %v9055_v8 = vmul.f32 %v7698_v35, %v440_v4 }
 0x247   :  { %v1971_v58 = vsel %vm1970_vm5, %v7002_v34, %v1967_v44  ;;  %v9052_v63 = vmul.f32 0.70710677, %v9043_v46  ;;  %v9058_v9 = vmul.f32 %v597_v57, %v7698_v35  ;;  %v1216_v34 = vmul.f32 0.5, %v8841_v51 }
 0x248   :  { %13653 = vst [vmem:[#allocation16_spill] sm:$0xff] %v9047_v54  ;;  %v1976_v27 = vsel %vm1973_vm6, %v1975_v14, %v1971_v58  ;;  %v2038_v55 = vadd.f32 0.112945676, %v2037_v60  ;;  %v2062_v20 = vmul.f32 2.1237322e-06, %v9049_v15  ;;  %v1992_v19 = vmul.f32 %v1991_v52, %v8913_v56 }
 0x249   :  { %13654 = vst [vmem:[#allocation59_spill] sm:$0xff] %v9055_v8  ;;  %v1977_v11 = vmul.f32 %v1976_v27, %v1952_v53  ;;  %v7006_v47 = vpop.eup %7005  ;;  %v2073_v44 = vmul.f32 3.8918573e-05, %v9049_v15  ;;  %v2100_v38 = vmul.f32 %v9052_v63, %v9052_v63  ;;  %v2027_v58 = vadd.f32 0.05243302, %v2026_v59  ;;  %v13655_v59 = vld [vmem:[#allocation52_spill] sm:$0xff] }
 0x24a   :  { %v2004_v4 = vmul.f32 %v7006_v47, %v9023_v50  ;;  %v2039_v57 = vmul.f32 %v2038_v55, %v8966_v13  ;;  %v2063_v10 = vadd.f32 0.00028619796, %v2062_v20  ;;  %v2012_v23 = vand.u32 2147483647, %v9023_v50 }
 0x24b   :  { %v6807_v14 = vclamps-f32 %v1977_v11, 1.0  ;;  %v2074_v51 = vadd.f32 0.001143296, %v2073_v44  ;;  %v9068_v53 = vmin.f32 %v2100_v38, 16.0  ;;  %v2014_v30 = vand.u32 2147483648, %v9023_v50 }
 0x24c   :  { %v2005_v27 = vsub.f32 1.0, %v2004_v4  ;;  %v2040_v6 = vadd.f32 0.4994258, %v2039_v57  ;;  %v2064_v11 = vmul.f32 %v2063_v10, %v9049_v15  ;;  %vm904_vm7 = vweird.f32 %v13655_v59 }
 0x24d   :  { %v3316_v60 = vadd.f32 1.0, %v6807_v14  ;;  %v2075_v56 = vmul.f32 %v2074_v51, %v9049_v15  ;;  %v2102_v52 = vmul.f32 2.1237322e-06, %v9068_v53  ;;  %vm905_vm8 = vweird.f32 %v8455_v25 }
 0x24e   :  { %v2006_v20 = vmul.f32 %v7006_v47, %v2005_v27  ;;  %vm2009_vm9 = vweird.f32 %v7006_v47  ;;  %v2113_v44 = vmul.f32 3.8918573e-05, %v9068_v53  ;;  %vm2008_vm10 = vweird.f32 %v9023_v50  ;;  %v13656_v27 = vld [vmem:[#allocation22_spill] sm:$0xff]  ;;  %vm906_vm13 = vmor %vm904_vm7, %vm905_vm8 }
 0x24f   :  { %v3366_v55 = vmul.f32 %v3316_v60, %v1216_v34  ;;  %v2028_v38 = vmul.f32 %v2027_v58, %v8966_v13  ;;  %v2041_v14 = vmul.f32 %v2040_v6, %v8966_v13  ;;  %v2065_v10 = vadd.f32 0.0036580483, %v2064_v11  ;;  %vm2010_vm11 = vmor %vm2008_vm10, %vm2009_vm9 }
 0x250   :  { %v2007_v4 = vadd.f32 %v7006_v47, %v2006_v20  ;;  %v2076_v57 = vadd.f32 0.014752088, %v2075_v56  ;;  %v2103_v51 = vadd.f32 0.00028619796, %v2102_v52  ;;  %v2114_v26 = vadd.f32 0.001143296, %v2113_v44 }
 0x251   :  { %3510 = vmatmul.f32.gmra.mxu2 %v3366_v55  ;;  %3694 = vmatmul.f32.gmra.mxu0 %v3366_v55  ;;  %v2015_v45 = vor.u32 1.1754944e-38, %v2014_v30  ;;  %v9081_v34 = vadd.f32 1.0, %v2041_v14  ;;  %v2066_v60 = vmul.f32 %v2065_v10, %v9049_v15  ;;  %v13657_v50 = vsub.f32 %v13656_v27, %v13650_v12  ;;  %v13667_v20 = vld [vmem:[#allocation24_spill] sm:$0xff] }
 0x252   :  { %v2011_v1 = vsel %vm2010_vm11, %v7006_v47, %v2007_v4  ;;  %vm2013_vm12 = vcmp.eq.f32.partialorder %v2012_v23, 8.507059e+37  ;;  %v2077_v6 = vmul.f32 %v2076_v57, %v9049_v15  ;;  %v2104_v11 = vmul.f32 %v2103_v51, %v9068_v53 }
 0x253   :  { %v1059_v58 = vmul.f32 %v8995_v32, %v13657_v50  ;;  %v657_v56 = vmul.f32 %v9055_v8, %v9055_v8  ;;  %v2016_v52 = vsel %vm2013_vm12, %v2015_v45, %v2011_v1  ;;  %v2029_v30 = vadd.f32 0.18741608, %v2028_v38  ;;  %v3856_v50 = vld [vmem:[#allocation5 + $0x90] sm:$0xff] }
 0x254   :  { %7007 = vrcp.f32 %v9081_v34  ;;  %v952_v12 = vsub.f32 1.5, %v9031_v22  ;;  %v2017_v44 = vmul.f32 %v2016_v52, %v1992_v19  ;;  %v2115_v32 = vmul.f32 %v2114_v26, %v9068_v53  ;;  %3914 = vmatpush.msrb.mxu2 %v3856_v50 }
 0x255   :  { %v2067_v23 = vadd.f32 0.05243302, %v2066_v60  ;;  %v2078_v47 = vadd.f32 0.112945676, %v2077_v6  ;;  %v2105_v14 = vadd.f32 0.0036580483, %v2104_v11  ;;  %v1115_v10 = vmul.f32 %v7800_v28, %v1059_v58 }
 0x256   :  { %v13659_v4 = vsub.f32 1.5, %v8919_v2  ;;  %v960_v45 = vmul.f32 %v9019_v37, %v9035_v24  ;;  %7009 = vrsqrt.f32 %v9047_v54  ;;  %v6808_v38 = vclamps-f32 %v2017_v44, 1.0  ;;  %v3859_v24 = vld [vmem:[#allocation5 + $0xa8] sm:$0xff]  ;;  %v3888_v58 = vld [vmem:[#allocation5 + $0x190] sm:$0xff] }
 0x257   :  { %v682_v22 = vsub.f32 %v9058_v9, %v657_v56  ;;  %v1217_v26 = vmul.f32 0.5, %v8895_v42  ;;  %v2030_v19 = vmul.f32 %v2029_v30, %v8966_v13  ;;  %v2079_v57 = vmul.f32 %v2078_v47, %v9049_v15  ;;  %4097 = vmatpush.msra.mxu0 %v3859_v24  ;;  %v3891_v9 = vld [vmem:[#allocation5 + $0x1a8] sm:$0xff]  ;;  %4006 = vmatpush.msrb.mxu3 %v3888_v58 }
 0x258   :  { %v9101_v1 = vmul.f32 %v8820_v62, %v13659_v4  ;;  %v9111_v51 = vmul.f32 %v8958_v41, %v952_v12  ;;  %v3317_v27 = vadd.f32 1.0, %v6808_v38  ;;  %v2116_v6 = vadd.f32 0.014752088, %v2115_v32  ;;  %4189 = vmatpush.msra.mxu1 %v3891_v9  ;;  %v443_v9 = vpop.xlane.xlu1 %442 }
 0x259   :  { %v2068_v42 = vmul.f32 %v2067_v23, %v9049_v15  ;;  %v2080_v13 = vadd.f32 0.4994258, %v2079_v57  ;;  %v2106_v56 = vmul.f32 %v2105_v14, %v9068_v53  ;;  %v9122_v52 = vadd.f32 %v7831_v18, %v1115_v10 }
 0x25a   :  { %v7008_v11 = vpop.eup %7007  ;;  %v3367_v30 = vmul.f32 %v3317_v27, %v1217_v26  ;;  %v9127_v59 = vsel %vm906_vm13, %v8455_v25, %v8747_v33  ;;  %v9129_v44 = vmul.f32 0.5, %v960_v45  ;;  %v707_v32 = vmax.f32 %v682_v22, 0.0  ;;  %v13661_v45 = vld [vmem:[#allocation23_spill] sm:$0xff]  ;;  %v13662_v22 = vld [vmem:[#allocation61_spill] sm:$0xff] }
 0x25b   :  { %v2044_v12 = vmul.f32 %v7008_v11, %v9081_v34  ;;  %v2031_v23 = vadd.f32 1.1283791, %v2030_v19  ;;  %v2081_v47 = vmul.f32 %v2080_v13, %v9049_v15  ;;  %v2052_v10 = vand.u32 2147483647, %v9081_v34 }
 0x25c   :  { %v9132_v4 = vpop.eup %7009  ;;  %3602 = vmatmul.f32.gmra.mxu3 %v3367_v30  ;;  %3786 = vmatmul.f32.gmra.mxu1 %v3367_v30  ;;  %v2054_v38 = vand.u32 2147483648, %v9081_v34  ;;  %v2117_v26 = vmul.f32 %v2116_v6, %v9068_v53  ;;  %v2069_v57 = vadd.f32 0.18741608, %v2068_v42  ;;  %v9140_v33 = vmul.f32 0.70710677, %v9122_v52 }
 0x25d   :  { %v2045_v14 = vsub.f32 1.0, %v2044_v12  ;;  %v9137_v25 = vadd.f32 1.0, %v2081_v47  ;;  %v13663_v19 = vsub.f32 %v13661_v45, %v13662_v22  ;;  %vm2049_vm14 = vweird.f32 %v7008_v11 }
 0x25e   :  { %v2107_v24 = vadd.f32 0.05243302, %v2106_v56  ;;  %v2118_v58 = vadd.f32 0.112945676, %v2117_v26  ;;  %v969_v6 = vmul.f32 %v9132_v4, %v9047_v54  ;;  %v9149_v42 = vadd.f32 1e-05, %v707_v32 }
 0x25f   :  { %v1060_v27 = vmul.f32 %v9127_v59, %v13663_v19  ;;  %v2046_v50 = vmul.f32 %v7008_v11, %v2045_v14  ;;  %7011 = vrcp.f32 %v9137_v25  ;;  %v2032_v30 = vmul.f32 %v2031_v23, %v8954_v40  ;;  %v600_v14 = vpop.xlane.xlu2 %599 }
 0x260   :  { %13664 = vst [vmem:[#allocation17_spill] sm:$0xff] %v9149_v42  ;;  %vm2048_vm15 = vweird.f32 %v9081_v34  ;;  %v2119_v47 = vmul.f32 %v2118_v58, %v9068_v53  ;;  %v2055_v56 = vor.u32 1.1754944e-38, %v2054_v38  ;;  %v2070_v26 = vmul.f32 %v2069_v57, %v9049_v15 }
 0x261   :  { %v2047_v12 = vadd.f32 %v7008_v11, %v2046_v50  ;;  %vm2050_vm0 = vmor %vm2048_vm15, %vm2049_vm14  ;;  %v2140_v45 = vmul.f32 %v9140_v33, %v9140_v33  ;;  %v1116_v32 = vmul.f32 %v7782_v0, %v1060_v27  ;;  %vm2053_vm1 = vcmp.eq.f32.partialorder %v2052_v10, 8.507059e+37  ;;  %v13666_v27 = vld [vmem:[#allocation63_spill] sm:$0xff] }
 0x262   :  { %v2108_v60 = vmul.f32 %v2107_v24, %v9068_v53  ;;  %v2120_v40 = vadd.f32 0.4994258, %v2119_v47  ;;  %v9161_v23 = vmul.f32 %v7698_v35, %v443_v9  ;;  %7013 = vrsqrt.f32 %v9149_v42 }
 0x263   :  { %v2051_v19 = vsel %vm2050_vm0, %v7008_v11, %v2047_v12  ;;  %v9163_v50 = vmin.f32 %v2140_v45, 16.0  ;;  %v9166_v38 = vadd.f32 %v7794_v36, %v1116_v32  ;;  %v633_v15 = vmul.f32 %v600_v14, %v7698_v35 }
 0x264   :  { %13665 = vst [vmem:[#allocation56_spill] sm:$0xff] %v9161_v23  ;;  %v2056_v34 = vsel %vm2053_vm1, %v2055_v56, %v2051_v19  ;;  %v1218_v57 = vmul.f32 0.5, %v8948_v5  ;;  %vm914_vm2 = vweird.f32 %v13666_v27  ;;  %vm915_vm3 = vweird.f32 %v8461_v16 }
 0x265   :  { %v2057_v11 = vmul.f32 %v2056_v34, %v2032_v30  ;;  %v7012_v10 = vpop.eup %7011  ;;  %v2071_v24 = vadd.f32 1.1283791, %v2070_v26  ;;  %v2121_v58 = vmul.f32 %v2120_v40, %v9068_v53  ;;  %v2142_v9 = vmul.f32 2.1237322e-06, %v9163_v50  ;;  %vm916_vm8 = vmor %vm914_vm2, %vm915_vm3 }
 0x266   :  { %v2153_v12 = vmul.f32 3.8918573e-05, %v9163_v50  ;;  %v2084_v56 = vmul.f32 %v7012_v10, %v9137_v25  ;;  %v2109_v45 = vadd.f32 0.18741608, %v2108_v60  ;;  %v9178_v14 = vmul.f32 0.70710677, %v9166_v38 }
 0x267   :  { %v6809_v47 = vclamps-f32 %v2057_v11, 1.0  ;;  %v658_v5 = vmul.f32 %v9161_v23, %v9161_v23  ;;  %v9182_v30 = vadd.f32 1.0, %v2121_v58  ;;  %v2143_v32 = vadd.f32 0.00028619796, %v2142_v9  ;;  %v449_v23 = vpop.xlane.xlu2 %448 }
 0x268   :  { %v2154_v26 = vadd.f32 0.001143296, %v2153_v12  ;;  %v2085_v40 = vsub.f32 1.0, %v2084_v56  ;;  %v2092_v34 = vand.u32 2147483647, %v9137_v25  ;;  %v2180_v11 = vmul.f32 %v9178_v14, %v9178_v14  ;;  %v9193_v54 = vpop.eup %7013 }
 0x269   :  { %v3318_v19 = vadd.f32 1.0, %v6809_v47  ;;  %vm2089_vm4 = vweird.f32 %v7012_v10  ;;  %v2094_v60 = vand.u32 2147483648, %v9137_v25  ;;  %7015 = vrcp.f32 %v9182_v30 }
 0x26a   :  { %v13668_v13 = vsub.f32 %v13667_v20, %v13662_v22  ;;  %v2086_v12 = vmul.f32 %v7012_v10, %v2085_v40  ;;  %v2144_v47 = vmul.f32 %v2143_v32, %v9163_v50  ;;  %v2155_v56 = vmul.f32 %v2154_v26, %v9163_v50 }
 0x26b   :  { %v3368_v9 = vmul.f32 %v3318_v19, %v1218_v57  ;;  %v9198_v2 = vmul.f32 %v9132_v4, %v969_v6  ;;  %v683_v55 = vsub.f32 %v633_v15, %v658_v5  ;;  %vm2088_vm5 = vweird.f32 %v9137_v25 }
 0x26c   :  { %v1061_v58 = vmul.f32 %v9127_v59, %v13668_v13  ;;  %v2110_v49 = vmul.f32 %v2109_v45, %v9068_v53  ;;  %v2087_v20 = vadd.f32 %v7012_v10, %v2086_v12  ;;  %v2145_v59 = vadd.f32 0.0036580483, %v2144_v47  ;;  %vm2090_vm6 = vmor %vm2088_vm5, %vm2089_vm4 }
 0x26d   :  { %3513 = vmatmul.f32.gmra.mxu2 %v3368_v9  ;;  %3697 = vmatmul.f32.gmra.mxu0 %v3368_v9  ;;  %v2156_v22 = vadd.f32 0.014752088, %v2155_v56  ;;  %v9202_v13 = vmin.f32 %v2180_v11, 16.0  ;;  %v9206_v57 = vmul.f32 %v9193_v54, %v9149_v42  ;;  %v2072_v32 = vmul.f32 %v2071_v24, %v9026_v29 }
 0x26e   :  { %v2095_v6 = vor.u32 1.1754944e-38, %v2094_v60  ;;  %v1117_v25 = vmul.f32 %v7800_v28, %v1061_v58  ;;  %v2091_v15 = vsel %vm2090_vm6, %v7012_v10, %v2087_v20  ;;  %vm2093_vm7 = vcmp.eq.f32.partialorder %v2092_v34, 8.507059e+37 }
 0x26f   :  { %v2157_v53 = vmul.f32 %v2156_v22, %v9163_v50  ;;  %v2182_v45 = vmul.f32 2.1237322e-06, %v9202_v13  ;;  %v7016_v5 = vpop.eup %7015  ;;  %v708_v26 = vmax.f32 %v683_v55, 0.0  ;;  %v1219_v19 = vmul.f32 0.5, %v9008_v39 }
 0x270   :  { %v2096_v40 = vsel %vm2093_vm7, %v2095_v6, %v2091_v15  ;;  %v2193_v11 = vmul.f32 3.8918573e-05, %v9202_v13  ;;  %v2111_v24 = vadd.f32 1.1283791, %v2110_v49  ;;  %v2124_v10 = vmul.f32 %v7016_v5, %v9182_v30 }
 0x271   :  { %v2097_v29 = vmul.f32 %v2096_v40, %v2072_v32  ;;  %v2146_v34 = vmul.f32 %v2145_v59, %v9163_v50  ;;  %v2158_v60 = vadd.f32 0.112945676, %v2157_v53  ;;  %v2183_v58 = vadd.f32 0.00028619796, %v2182_v45  ;;  %v13669_v40 = vld [vmem:[#allocation25_spill] sm:$0xff] }
 0x272   :  { %v9222_v55 = vadd.f32 %v7831_v18, %v1117_v25  ;;  %v917_v39 = vsel %vm916_vm8, %v8461_v16, %v8755_v31  ;;  %v2125_v12 = vsub.f32 1.0, %v2124_v10  ;;  %v2132_v47 = vand.u32 2147483647, %v9182_v30 }
 0x273   :  { %v6810_v9 = vclamps-f32 %v2097_v29, 1.0  ;;  %v2194_v27 = vadd.f32 0.001143296, %v2193_v11  ;;  %vm2129_vm9 = vweird.f32 %v7016_v5  ;;  %v2134_v49 = vand.u32 2147483648, %v9182_v30  ;;  %v13670_v11 = vld [vmem:[#allocation62_spill] sm:$0xff] }
 0x274   :  { %v2159_v56 = vmul.f32 %v2158_v60, %v9163_v50  ;;  %v2184_v20 = vmul.f32 %v2183_v58, %v9202_v13  ;;  %v2126_v22 = vmul.f32 %v7016_v5, %v2125_v12  ;;  %v2147_v32 = vadd.f32 0.05243302, %v2146_v34  ;;  %v446_v58 = vpop.xlane.xlu0 %445 }
 0x275   :  { %v3319_v59 = vadd.f32 1.0, %v6810_v9  ;;  %v2195_v6 = vmul.f32 %v2194_v27, %v9202_v13  ;;  %vm2128_vm10 = vweird.f32 %v9182_v30  ;;  %v9233_v25 = vmul.f32 0.70710677, %v9222_v55 }
 0x276   :  { %v2160_v16 = vadd.f32 0.4994258, %v2159_v56  ;;  %v2185_v31 = vadd.f32 0.0036580483, %v2184_v20  ;;  %v2127_v53 = vadd.f32 %v7016_v5, %v2126_v22  ;;  %v13671_v29 = vsub.f32 %v13669_v40, %v13670_v11  ;;  %vm2130_vm11 = vmor %vm2128_vm10, %vm2129_vm9 }
 0x277   :  { %v3369_v15 = vmul.f32 %v3319_v59, %v1219_v19  ;;  %v2196_v45 = vadd.f32 0.014752088, %v2195_v6  ;;  %v9238_v60 = vadd.f32 1e-05, %v708_v26  ;;  %v2112_v34 = vmul.f32 %v2111_v24, %v9052_v63 }
 0x278   :  { %v1062_v10 = vmul.f32 %v917_v39, %v13671_v29  ;;  %v2135_v30 = vor.u32 1.1754944e-38, %v2134_v49  ;;  %v2161_v9 = vmul.f32 %v2160_v16, %v9163_v50  ;;  %v2131_v12 = vsel %vm2130_vm11, %v7016_v5, %v2127_v53 }
 0x279   :  { %13672 = vst [vmem:[#allocation18_spill] sm:$0xff] %v9238_v60  ;;  %3605 = vmatmul.f32.gmra.mxu3 %v3369_v15  ;;  %3789 = vmatmul.f32.gmra.mxu1 %v3369_v15  ;;  %vm2133_vm12 = vcmp.eq.f32.partialorder %v2132_v47, 8.507059e+37  ;;  %v2148_v19 = vmul.f32 %v2147_v32, %v9163_v50  ;;  %v2197_v27 = vmul.f32 %v2196_v45, %v9202_v13  ;;  %v13674_v47 = vld [vmem:[#allocation36_spill] sm:$0xff]  ;;  %v13675_v32 = vsub.f32 1.5, %v9129_v44 }
 0x27a   :  { %v2136_v56 = vsel %vm2133_vm12, %v2135_v30, %v2131_v12  ;;  %v9245_v20 = vadd.f32 1.0, %v2161_v9  ;;  %v2186_v26 = vmul.f32 %v2185_v31, %v9202_v13  ;;  %v2220_v63 = vmul.f32 %v9233_v25, %v9233_v25  ;;  %v603_v31 = vpop.xlane.xlu1 %602 }
 0x27b   :  { %v9251_v24 = vmul.f32 %v7698_v35, %v446_v58  ;;  %v2137_v49 = vmul.f32 %v2136_v56, %v2112_v34  ;;  %v2198_v59 = vadd.f32 0.112945676, %v2197_v27  ;;  %v1118_v5 = vmul.f32 %v7782_v0, %v1062_v10 }
 0x27c   :  { %v9259_v6 = vmul.f32 %v9019_v37, %v13675_v32  ;;  %v9262_v16 = vmul.f32 0.5, %v9198_v2  ;;  %7017 = vrcp.f32 %v9245_v20  ;;  %v980_v15 = vmul.f32 %v9193_v54, %v9206_v57 }
 0x27d   :  { %13673 = vst [vmem:[#allocation12_spill] sm:$0xff] %v9251_v24  ;;  %v6811_v53 = vclamps-f32 %v2137_v49, 1.0  ;;  %v2149_v45 = vadd.f32 0.18741608, %v2148_v19  ;;  %v2199_v40 = vmul.f32 %v2198_v59, %v9202_v13  ;;  %7019 = vrsqrt.f32 %v9238_v60  ;;  %v13676_v19 = vld [vmem:[#allocation26_spill] sm:$0xff] }
 0x27e   :  { %v1220_v44 = vmul.f32 0.5, %v9043_v46  ;;  %v2187_v29 = vadd.f32 0.05243302, %v2186_v26  ;;  %v9270_v10 = vmin.f32 %v2220_v63, 16.0  ;;  %v634_v2 = vmul.f32 %v603_v31, %v7698_v35 }
 0x27f   :  { %v659_v58 = vmul.f32 %v9251_v24, %v9251_v24  ;;  %v3320_v34 = vadd.f32 1.0, %v6811_v53  ;;  %v9276_v30 = vadd.f32 %v7794_v36, %v1118_v5  ;;  %v2200_v57 = vadd.f32 0.4994258, %v2199_v40 }
 0x280   :  { %v2222_v9 = vmul.f32 2.1237322e-06, %v9270_v10  ;;  %v2233_v12 = vmul.f32 3.8918573e-05, %v9270_v10  ;;  %v13677_v46 = vsub.f32 %v13676_v19, %v13670_v11  ;;  %v2150_v59 = vmul.f32 %v2149_v45, %v9163_v50 }
 0x281   :  { %v3370_v49 = vmul.f32 %v3320_v34, %v1220_v44  ;;  %v2188_v5 = vmul.f32 %v2187_v29, %v9202_v13  ;;  %v2201_v31 = vmul.f32 %v2200_v57, %v9202_v13  ;;  %vm924_vm13 = vweird.f32 %v8526_v3  ;;  %v3886_v3 = vld [vmem:[#allocation5 + $0x180] sm:$0xff] }
 0x282   :  { %v1063_v27 = vmul.f32 %v917_v39, %v13677_v46  ;;  %v7018_v32 = vpop.eup %7017  ;;  %v2223_v53 = vadd.f32 0.00028619796, %v2222_v9  ;;  %v2234_v40 = vadd.f32 0.001143296, %v2233_v12  ;;  %vm925_vm14 = vweird.f32 %v8579_v7  ;;  %4007 = vmatpush.msrb.mxu3 %v3886_v3 }
 0x283   :  { %v9291_v39 = vmul.f32 0.5, %v980_v15  ;;  %v684_v11 = vsub.f32 %v634_v2, %v659_v58  ;;  %3516 = vmatmul.f32.gmra.mxu2 %v3370_v49  ;;  %v2164_v19 = vmul.f32 %v7018_v32, %v9245_v20  ;;  %3700 = vmatmul.f32.gmra.mxu0 %v3370_v49  ;;  %v9295_v50 = vmul.f32 0.70710677, %v9276_v30  ;;  %v9297_v45 = vpop.eup %7019  ;;  %vm926_vm3 = vmor %vm924_vm13, %vm925_vm14 }
 0x284   :  { %v9299_v44 = vadd.f32 1.0, %v2201_v31  ;;  %v2224_v29 = vmul.f32 %v2223_v53, %v9270_v10  ;;  %v2235_v34 = vmul.f32 %v2234_v40, %v9270_v10  ;;  %v1119_v57 = vmul.f32 %v7800_v28, %v1063_v27 }
 0x285   :  { %v2151_v15 = vadd.f32 1.1283791, %v2150_v59  ;;  %v2165_v9 = vsub.f32 1.0, %v2164_v19  ;;  %v2172_v2 = vand.u32 2147483647, %v9245_v20  ;;  %v2260_v58 = vmul.f32 %v9295_v50, %v9295_v50 }
 0x286   :  { %vm2169_vm15 = vweird.f32 %v7018_v32  ;;  %v2174_v12 = vand.u32 2147483648, %v9245_v20  ;;  %v2189_v46 = vadd.f32 0.18741608, %v2188_v5  ;;  %7021 = vrcp.f32 %v9299_v44 }
 0x287   :  { %v2166_v49 = vmul.f32 %v7018_v32, %v2165_v9  ;;  %v2225_v31 = vadd.f32 0.0036580483, %v2224_v29  ;;  %v2236_v53 = vadd.f32 0.014752088, %v2235_v34  ;;  %v9309_v26 = vmin.f32 %v2260_v58, 16.0 }
 0x288   :  { %v989_v59 = vmul.f32 %v9297_v45, %v9238_v60  ;;  %vm2168_vm0 = vweird.f32 %v9245_v20  ;;  %v9316_v40 = vadd.f32 %v7831_v18, %v1119_v57  ;;  %v709_v34 = vmax.f32 %v684_v11, 0.0 }
 0x289   :  { %v2167_v19 = vadd.f32 %v7018_v32, %v2166_v49  ;;  %v2226_v5 = vmul.f32 %v2225_v31, %v9270_v10  ;;  %v2237_v22 = vmul.f32 %v2236_v53, %v9270_v10  ;;  %v2262_v29 = vmul.f32 2.1237322e-06, %v9309_v26  ;;  %vm2170_vm1 = vmor %vm2168_vm0, %vm2169_vm15 }
 0x28a   :  { %v2175_v9 = vor.u32 1.1754944e-38, %v2174_v12  ;;  %v2190_v58 = vmul.f32 %v2189_v46, %v9202_v13  ;;  %v2273_v27 = vmul.f32 3.8918573e-05, %v9309_v26  ;;  %v2152_v20 = vmul.f32 %v2151_v15, %v9140_v33  ;;  %v3857_v46 = vld [vmem:[#allocation5 + $0x98] sm:$0xff] }
 0x28b   :  { %v2171_v63 = vsel %vm2170_vm1, %v7018_v32, %v2167_v19  ;;  %vm2173_vm2 = vcmp.eq.f32.partialorder %v2172_v2, 8.507059e+37  ;;  %v2238_v57 = vadd.f32 0.112945676, %v2237_v22  ;;  %v2263_v31 = vadd.f32 0.00028619796, %v2262_v29  ;;  %4098 = vmatpush.msra.mxu0 %v3857_v46 }
 0x28c   :  { %v7022_v49 = vpop.eup %7021  ;;  %v2176_v60 = vsel %vm2173_vm2, %v2175_v9, %v2171_v63  ;;  %v2274_v56 = vadd.f32 0.001143296, %v2273_v27  ;;  %v9326_v53 = vmul.f32 0.70710677, %v9316_v40  ;;  %v1221_v11 = vmul.f32 0.5, %v9122_v52 }
 0x28d   :  { %v2177_v42 = vmul.f32 %v2176_v60, %v2152_v20  ;;  %v2204_v12 = vmul.f32 %v7022_v49, %v9299_v44  ;;  %v2227_v13 = vadd.f32 0.05243302, %v2226_v5  ;;  %v9334_v33 = vadd.f32 1e-05, %v709_v34  ;;  %v3854_v60 = vld [vmem:[#allocation5 + $0x80] sm:$0xff]  ;;  %v3889_v5 = vld [vmem:[#allocation5 + $0x198] sm:$0xff] }
 0x28e   :  { %v2191_v22 = vadd.f32 1.1283791, %v2190_v58  ;;  %v2212_v63 = vand.u32 2147483647, %v9299_v44  ;;  %v2239_v32 = vmul.f32 %v2238_v57, %v9270_v10  ;;  %v2214_v52 = vand.u32 2147483648, %v9299_v44  ;;  %3915 = vmatpush.msrb.mxu2 %v3854_v60  ;;  %4190 = vmatpush.msra.mxu1 %v3889_v5  ;;  %v13680_v57 = vld [vmem:[#allocation27_spill] sm:$0xff] }
 0x28f   :  { %13679 = vst [vmem:[#allocation19_spill] sm:$0xff] %v9334_v33  ;;  %v6812_v15 = vclamps-f32 %v2177_v42, 1.0  ;;  %v2205_v2 = vsub.f32 1.0, %v2204_v12  ;;  %v9341_v27 = vsel %vm926_vm3, %v8579_v7, %v8888_v61  ;;  %v2264_v29 = vmul.f32 %v2263_v31, %v9309_v26  ;;  %v13681_v31 = vld [vmem:[#allocation64_spill] sm:$0xff] }
 0x290   :  { %v2240_v19 = vadd.f32 0.4994258, %v2239_v32  ;;  %v2275_v34 = vmul.f32 %v2274_v56, %v9309_v26  ;;  %v2300_v42 = vmul.f32 %v9326_v53, %v9326_v53  ;;  %vm2209_vm4 = vweird.f32 %v7022_v49 }
 0x291   :  { %v3321_v9 = vadd.f32 1.0, %v6812_v15  ;;  %v2206_v58 = vmul.f32 %v7022_v49, %v2205_v2  ;;  %v2228_v20 = vmul.f32 %v2227_v13, %v9270_v10  ;;  %v990_v7 = vmul.f32 %v9297_v45, %v989_v59 }
 0x292   :  { %7023 = vrsqrt.f32 %v9334_v33  ;;  %v2241_v61 = vmul.f32 %v2240_v19, %v9270_v10  ;;  %v13682_v12 = vsub.f32 %v13680_v57, %v13681_v31  ;;  %vm2208_vm5 = vweird.f32 %v9299_v44 }
 0x293   :  { %v3371_v32 = vmul.f32 %v3321_v9, %v1221_v11  ;;  %v2207_v60 = vadd.f32 %v7022_v49, %v2206_v58  ;;  %v2215_v15 = vor.u32 1.1754944e-38, %v2214_v52  ;;  %vm2210_vm6 = vmor %vm2208_vm5, %vm2209_vm4  ;;  %v2265_v2 = vadd.f32 0.0036580483, %v2264_v29  ;;  %v13683_v11 = vld [vmem:[#allocation38_spill] sm:$0xff]  ;;  %v13685_v29 = vld [vmem:[#allocation39_spill] sm:$0xff] }
 0x294   :  { %v1064_v56 = vmul.f32 %v9341_v27, %v13682_v12  ;;  %v9356_v13 = vadd.f32 1.0, %v2241_v61  ;;  %v2276_v46 = vadd.f32 0.014752088, %v2275_v34  ;;  %v9358_v59 = vmin.f32 %v2300_v42, 16.0  ;;  %v13690_v9 = vld [vmem:[#allocation55_spill] sm:$0xff]  ;;  %v606_v42 = vpop.xlane.xlu0 %605 }
 0x295   :  { %3608 = vmatmul.f32.gmra.mxu3 %v3371_v32  ;;  %3792 = vmatmul.f32.gmra.mxu1 %v3371_v32  ;;  %v2192_v19 = vmul.f32 %v2191_v22, %v9178_v14  ;;  %v2211_v3 = vsel %vm2210_vm6, %v7022_v49, %v2207_v60  ;;  %vm2213_vm7 = vcmp.eq.f32.partialorder %v2212_v63, 8.507059e+37  ;;  %v2229_v5 = vadd.f32 0.18741608, %v2228_v20 }
 0x296   :  { %v13684_v44 = vsub.f32 1.5, %v9262_v16  ;;  %v2216_v58 = vsel %vm2213_vm7, %v2215_v15, %v2211_v3  ;;  %7025 = vrcp.f32 %v9356_v13  ;;  %v1120_v22 = vmul.f32 %v7782_v0, %v1064_v56 }
 0x297   :  { %v2217_v49 = vmul.f32 %v2216_v58, %v2192_v19  ;;  %v2266_v20 = vmul.f32 %v2265_v2, %v9309_v26  ;;  %v2277_v16 = vmul.f32 %v2276_v46, %v9309_v26  ;;  %v2302_v61 = vmul.f32 2.1237322e-06, %v9358_v59 }
 0x298   :  { %v9366_v52 = vmul.f32 %v9132_v4, %v13684_v44  ;;  %v9374_v63 = vpop.eup %7023  ;;  %v2313_v57 = vmul.f32 3.8918573e-05, %v9358_v59  ;;  %v13687_v12 = vsub.f32 1.5, %v9291_v39  ;;  %v9385_v60 = vmul.f32 0.5, %v990_v7 }
 0x299   :  { %v6813_v15 = vclamps-f32 %v2217_v49, 1.0  ;;  %v2230_v56 = vmul.f32 %v2229_v5, %v9270_v10  ;;  %v2278_v2 = vadd.f32 0.112945676, %v2277_v16  ;;  %v2303_v44 = vadd.f32 0.00028619796, %v2302_v61 }
 0x29a   :  { %v9383_v32 = vmul.f32 %v9193_v54, %v13687_v12  ;;  %v2314_v46 = vadd.f32 0.001143296, %v2313_v57  ;;  %v1222_v34 = vmul.f32 0.5, %v9166_v38  ;;  %v9394_v12 = vadd.f32 %v7794_v36, %v1120_v22 }
 0x29b   :  { %v3322_v39 = vadd.f32 1.0, %v6813_v15  ;;  %vm934_vm8 = vweird.f32 %v13690_v9  ;;  %vm935_vm9 = vweird.f32 %v8722_v21  ;;  %v2267_v10 = vadd.f32 0.05243302, %v2266_v20  ;;  %v3887_v9 = vld [vmem:[#allocation5 + $0x188] sm:$0xff] }
 0x29c   :  { %v7026_v7 = vpop.eup %7025  ;;  %v2279_v5 = vmul.f32 %v2278_v2, %v9309_v26  ;;  %v2304_v49 = vmul.f32 %v2303_v44, %v9358_v59  ;;  %v2315_v16 = vmul.f32 %v2314_v46, %v9358_v59  ;;  %v992_v61 = vsub.f32 1.5, %v9385_v60  ;;  %vm936_vm14 = vmor %vm934_vm8, %vm935_vm9  ;;  %4191 = vmatpush.msra.mxu1 %v3887_v9 }
 0x29d   :  { %v3372_v57 = vmul.f32 %v3322_v39, %v1222_v34  ;;  %v2231_v38 = vadd.f32 1.1283791, %v2230_v56  ;;  %v2244_v15 = vmul.f32 %v7026_v7, %v9356_v13  ;;  %v999_v22 = vmul.f32 %v9374_v63, %v9334_v33 }
 0x29e   :  { %v2280_v14 = vadd.f32 0.4994258, %v2279_v5  ;;  %v2305_v3 = vadd.f32 0.0036580483, %v2304_v49  ;;  %v2316_v58 = vadd.f32 0.014752088, %v2315_v16  ;;  %v2268_v34 = vmul.f32 %v2267_v10, %v9309_v26 }
 0x29f   :  { %3519 = vmatmul.f32.gmra.mxu2 %v3372_v57  ;;  %v2245_v20 = vsub.f32 1.0, %v2244_v15  ;;  %v2252_v2 = vand.u32 2147483647, %v9356_v13  ;;  %v2254_v44 = vand.u32 2147483648, %v9356_v13  ;;  %3703 = vmatmul.f32.gmra.mxu0 %v3372_v57  ;;  %v9408_v60 = vmul.f32 0.70710677, %v9394_v12 }
 0x2a0   :  { %v2281_v56 = vmul.f32 %v2280_v14, %v9309_v26  ;;  %v2306_v46 = vmul.f32 %v2305_v3, %v9358_v59  ;;  %v2317_v39 = vmul.f32 %v2316_v58, %v9358_v59  ;;  %vm2249_vm10 = vweird.f32 %v7026_v7  ;;  %v13691_v16 = vld [vmem:[#allocation28_spill] sm:$0xff] }
 0x2a1   :  { %v2246_v5 = vmul.f32 %v7026_v7, %v2245_v20  ;;  %v2340_v49 = vmul.f32 %v9408_v60, %v9408_v60  ;;  %v13692_v15 = vsub.f32 %v13691_v16, %v13681_v31  ;;  %v1000_v33 = vmul.f32 %v9374_v63, %v999_v22 }
 0x2a2   :  { %v9422_v10 = vmul.f32 %v7698_v35, %v449_v23  ;;  %v9424_v14 = vadd.f32 1.0, %v2281_v56  ;;  %v2307_v3 = vadd.f32 0.05243302, %v2306_v46  ;;  %vm2248_vm11 = vweird.f32 %v9356_v13 }
 0x2a3   :  { %v1065_v57 = vmul.f32 %v9341_v27, %v13692_v15  ;;  %v2247_v19 = vadd.f32 %v7026_v7, %v2246_v5  ;;  %v2318_v58 = vadd.f32 0.112945676, %v2317_v39  ;;  %v9427_v20 = vmin.f32 %v2340_v49, 16.0  ;;  %vm2250_vm12 = vmor %vm2248_vm11, %vm2249_vm10  ;;  %v3884_v49 = vld [vmem:[#allocation5 + $0x170] sm:$0xff] }
 0x2a4   :  { %v2232_v8 = vmul.f32 %v2231_v38, %v9233_v25  ;;  %v2255_v31 = vor.u32 1.1754944e-38, %v2254_v44  ;;  %v2269_v27 = vadd.f32 0.18741608, %v2268_v34  ;;  %7027 = vrcp.f32 %v9424_v14  ;;  %v3852_v38 = vld [vmem:[#allocation5 + $0x70] sm:$0xff]  ;;  %v3855_v34 = vld [vmem:[#allocation5 + $0x88] sm:$0xff]  ;;  %4008 = vmatpush.msrb.mxu3 %v3884_v49 }
 0x2a5   :  { %v2251_v22 = vsel %vm2250_vm12, %v7026_v7, %v2247_v19  ;;  %vm2253_vm13 = vcmp.eq.f32.partialorder %v2252_v2, 8.507059e+37  ;;  %v2319_v23 = vmul.f32 %v2318_v58, %v9358_v59  ;;  %v1121_v56 = vmul.f32 %v7800_v28, %v1065_v57  ;;  %3916 = vmatpush.msrb.mxu2 %v3852_v38  ;;  %4099 = vmatpush.msra.mxu0 %v3855_v34  ;;  %v13695_v38 = vld [vmem:[#allocation29_spill] sm:$0xff] }
 0x2a6   :  { %v9433_v46 = vmul.f32 0.5, %v1000_v33  ;;  %v2256_v13 = vsel %vm2253_vm13, %v2255_v31, %v2251_v22  ;;  %v2308_v39 = vmul.f32 %v2307_v3, %v9358_v59  ;;  %v2342_v5 = vmul.f32 2.1237322e-06, %v9427_v20  ;;  %v13696_v34 = vld [vmem:[#allocation45_spill] sm:$0xff] }
 0x2a7   :  { %v9443_v25 = vmul.f32 %v9422_v10, %v9422_v10  ;;  %v9446_v19 = vmul.f32 %v606_v42, %v7698_v35  ;;  %v2257_v7 = vmul.f32 %v2256_v13, %v2232_v8  ;;  %v2320_v33 = vadd.f32 0.4994258, %v2319_v23  ;;  %v452_v23 = vpop.xlane.xlu1 %451 }
 0x2a8   :  { %v9449_v2 = vmul.f32 %v9297_v45, %v992_v61  ;;  %v2270_v44 = vmul.f32 %v2269_v27, %v9309_v26  ;;  %v2343_v16 = vadd.f32 0.00028619796, %v2342_v5  ;;  %v937_v15 = vsel %vm936_vm14, %v8722_v21, %v8898_v48 }
 0x2a9   :  { %v6814_v57 = vclamps-f32 %v2257_v7, 1.0  ;;  %v2321_v42 = vmul.f32 %v2320_v33, %v9358_v59  ;;  %v2353_v8 = vmul.f32 3.8918573e-05, %v9427_v20  ;;  %v9457_v61 = vadd.f32 %v7831_v18, %v1121_v56 }
 0x2aa   :  { %v7028_v3 = vpop.eup %7027  ;;  %v1223_v22 = vmul.f32 0.5, %v9222_v55  ;;  %v2309_v21 = vadd.f32 0.18741608, %v2308_v39  ;;  %v2344_v7 = vmul.f32 %v2343_v16, %v9427_v20  ;;  %v13697_v49 = vsub.f32 %v13695_v38, %v13696_v34  ;;  %v13698_v38 = vld [vmem:[#allocation30_spill] sm:$0xff] }
 0x2ab   :  { %v3323_v13 = vadd.f32 1.0, %v6814_v57  ;;  %v2284_v56 = vmul.f32 %v7028_v3, %v9424_v14  ;;  %v9468_v5 = vadd.f32 1.0, %v2321_v42  ;;  %v2354_v33 = vadd.f32 0.001143296, %v2353_v8 }
 0x2ac   :  { %v1066_v27 = vmul.f32 %v937_v15, %v13697_v49  ;;  %v2271_v39 = vadd.f32 1.1283791, %v2270_v44  ;;  %v9475_v58 = vmul.f32 0.70710677, %v9457_v61  ;;  %v2292_v48 = vand.u32 2147483647, %v9424_v14 }
 0x2ad   :  { %v3373_v55 = vmul.f32 %v3323_v13, %v1223_v22  ;;  %v2285_v9 = vsub.f32 1.0, %v2284_v56  ;;  %v2294_v57 = vand.u32 2147483648, %v9424_v14  ;;  %v2310_v42 = vmul.f32 %v2309_v21, %v9358_v59 }
 0x2ae   :  { %7029 = vrcp.f32 %v9468_v5  ;;  %vm2289_vm15 = vweird.f32 %v7028_v3  ;;  %v2345_v8 = vadd.f32 0.0036580483, %v2344_v7  ;;  %v2355_v22 = vmul.f32 %v2354_v33, %v9427_v20 }
 0x2af   :  { %3611 = vmatmul.f32.gmra.mxu3 %v3373_v55  ;;  %3795 = vmatmul.f32.gmra.mxu1 %v3373_v55  ;;  %v2286_v16 = vmul.f32 %v7028_v3, %v2285_v9  ;;  %v1224_v44 = vmul.f32 0.5, %v9276_v30  ;;  %v2380_v13 = vmul.f32 %v9475_v58, %v9475_v58  ;;  %v1122_v56 = vmul.f32 %v7782_v0, %v1066_v27 }
 0x2b0   :  { %v13699_v49 = vsub.f32 %v13698_v38, %v13696_v34  ;;  %vm2288_vm0 = vweird.f32 %v9424_v14  ;;  %v2346_v55 = vmul.f32 %v2345_v8, %v9427_v20  ;;  %v2356_v9 = vadd.f32 0.014752088, %v2355_v22 }
 0x2b1   :  { %v2287_v21 = vadd.f32 %v7028_v3, %v2286_v16  ;;  %v2272_v7 = vmul.f32 %v2271_v39, %v9295_v50  ;;  %vm2290_vm1 = vmor %vm2288_vm0, %vm2289_vm15  ;;  %vm2293_vm2 = vcmp.eq.f32.partialorder %v2292_v48, 8.507059e+37  ;;  %v2295_v30 = vor.u32 1.1754944e-38, %v2294_v57 }
 0x2b2   :  { %v1067_v59 = vmul.f32 %v937_v15, %v13699_v49  ;;  %v9492_v33 = vmin.f32 %v2380_v13, 16.0  ;;  %v2311_v27 = vadd.f32 1.1283791, %v2310_v42  ;;  %v2332_v24 = vand.u32 2147483647, %v9468_v5  ;;  %v13700_v42 = vld [vmem:[#allocation14_spill] sm:$0xff] }
 0x2b3   :  { %v2291_v31 = vsel %vm2290_vm1, %v7028_v3, %v2287_v21  ;;  %v9496_v15 = vadd.f32 %v7794_v36, %v1122_v56  ;;  %v2357_v16 = vmul.f32 %v2356_v9, %v9427_v20  ;;  %v2347_v57 = vadd.f32 0.05243302, %v2346_v55 }
 0x2b4   :  { %v7030_v34 = vpop.eup %7029  ;;  %v2296_v14 = vsel %vm2293_vm2, %v2295_v30, %v2291_v31  ;;  %v2382_v8 = vmul.f32 2.1237322e-06, %v9492_v33  ;;  %v2393_v50 = vmul.f32 3.8918573e-05, %v9492_v33  ;;  %v1123_v3 = vmul.f32 %v7800_v28, %v1067_v59 }
 0x2b5   :  { %v2297_v48 = vmul.f32 %v2296_v14, %v2272_v7  ;;  %v2324_v39 = vmul.f32 %v7030_v34, %v9468_v5  ;;  %vm944_vm3 = vweird.f32 %v13700_v42  ;;  %vm945_vm4 = vweird.f32 %v8820_v62 }
 0x2b6   :  { %v9506_v22 = vmul.f32 %v7698_v35, %v452_v23  ;;  %v2358_v31 = vadd.f32 0.112945676, %v2357_v16  ;;  %v2383_v13 = vadd.f32 0.00028619796, %v2382_v8  ;;  %v2394_v56 = vadd.f32 0.001143296, %v2393_v50  ;;  %vm946_vm9 = vmor %vm944_vm3, %vm945_vm4 }
 0x2b7   :  { %v6815_v38 = vclamps-f32 %v2297_v48, 1.0  ;;  %v2325_v49 = vsub.f32 1.0, %v2324_v39  ;;  %vm2329_vm5 = vweird.f32 %v7030_v34  ;;  %v2334_v21 = vand.u32 2147483648, %v9468_v5 }
 0x2b8   :  { %13701 = vst [vmem:[#allocation58_spill] sm:$0xff] %v9506_v22  ;;  %v2359_v9 = vmul.f32 %v2358_v31, %v9427_v20  ;;  %v2384_v55 = vmul.f32 %v2383_v13, %v9492_v33  ;;  %v2395_v59 = vmul.f32 %v2394_v56, %v9492_v33  ;;  %v9513_v7 = vmul.f32 0.70710677, %v9496_v15 }
 0x2b9   :  { %v3324_v30 = vadd.f32 1.0, %v6815_v38  ;;  %v2326_v23 = vmul.f32 %v7030_v34, %v2325_v49  ;;  %v2348_v14 = vmul.f32 %v2347_v57, %v9427_v20  ;;  %v9517_v16 = vadd.f32 %v7831_v18, %v1123_v3  ;;  %v609_v49 = vpop.xlane.xlu2 %608 }
 0x2ba   :  { %v2312_v8 = vmul.f32 %v2311_v27, %v9326_v53  ;;  %vm2328_vm6 = vweird.f32 %v9468_v5  ;;  %v2360_v50 = vadd.f32 0.4994258, %v2359_v9  ;;  %v2385_v48 = vadd.f32 0.0036580483, %v2384_v55 }
 0x2bb   :  { %v3374_v39 = vmul.f32 %v3324_v30, %v1224_v44  ;;  %v2327_v31 = vadd.f32 %v7030_v34, %v2326_v23  ;;  %vm2333_vm7 = vcmp.eq.f32.partialorder %v2332_v24, 8.507059e+37  ;;  %v2396_v13 = vadd.f32 0.014752088, %v2395_v59  ;;  %vm2330_vm8 = vmor %vm2328_vm6, %vm2329_vm5 }
 0x2bc   :  { %v2335_v56 = vor.u32 1.1754944e-38, %v2334_v21  ;;  %v2361_v38 = vmul.f32 %v2360_v50, %v9427_v20  ;;  %v2386_v57 = vmul.f32 %v2385_v48, %v9492_v33  ;;  %v2420_v3 = vmul.f32 %v9513_v7, %v9513_v7 }
 0x2bd   :  { %3522 = vmatmul.f32.gmra.mxu2 %v3374_v39  ;;  %v2331_v53 = vsel %vm2330_vm8, %v7030_v34, %v2327_v31  ;;  %3706 = vmatmul.f32.gmra.mxu0 %v3374_v39  ;;  %v2349_v5 = vadd.f32 0.18741608, %v2348_v14  ;;  %v2397_v44 = vmul.f32 %v2396_v13, %v9492_v33  ;;  %v9528_v24 = vmul.f32 0.70710677, %v9517_v16 }
 0x2be   :  { %v13702_v27 = vsub.f32 %v9446_v19, %v9443_v25  ;;  %v2336_v9 = vsel %vm2333_vm7, %v2335_v56, %v2331_v53  ;;  %v9533_v55 = vadd.f32 1.0, %v2361_v38  ;;  %v2387_v59 = vadd.f32 0.05243302, %v2386_v57 }
 0x2bf   :  { %v13703_v30 = vsub.f32 1.5, %v9433_v46  ;;  %v2337_v34 = vmul.f32 %v2336_v9, %v2312_v8  ;;  %v2398_v14 = vadd.f32 0.112945676, %v2397_v44  ;;  %v9540_v50 = vmin.f32 %v2420_v3, 16.0 }
 0x2c0   :  { %v710_v21 = vmax.f32 %v13702_v27, 0.0  ;;  %v9543_v48 = vmul.f32 %v609_v49, %v7698_v35  ;;  %v9547_v25 = vmul.f32 %v9506_v22, %v9506_v22  ;;  %7031 = vrcp.f32 %v9533_v55 }
 0x2c1   :  { %v9538_v23 = vmul.f32 %v9374_v63, %v13703_v30  ;;  %v2460_v19 = vmul.f32 %v9528_v24, %v9528_v24  ;;  %v6816_v46 = vclamps-f32 %v2337_v34, 1.0  ;;  %v2350_v8 = vmul.f32 %v2349_v5, %v9427_v20  ;;  %v13705_v30 = vld [vmem:[#allocation31_spill] sm:$0xff]  ;;  %v13706_v34 = vld [vmem:[#allocation13_spill] sm:$0xff] }
 0x2c2   :  { %v2388_v39 = vmul.f32 %v2387_v59, %v9492_v33  ;;  %v2399_v31 = vmul.f32 %v2398_v14, %v9492_v33  ;;  %v9559_v13 = vadd.f32 1e-05, %v710_v21  ;;  %v2422_v56 = vmul.f32 2.1237322e-06, %v9540_v50 }
 0x2c3   :  { %13704 = vst [vmem:[#allocation51_spill] sm:$0xff] %v9538_v23  ;;  %v2433_v38 = vmul.f32 3.8918573e-05, %v9540_v50  ;;  %v947_v57 = vsel %vm946_vm9, %v8820_v62, %v9101_v1  ;;  %v1225_v3 = vmul.f32 0.5, %v9316_v40  ;;  %v3325_v42 = vadd.f32 1.0, %v6816_v46 }
 0x2c4   :  { %v2389_v49 = vadd.f32 0.18741608, %v2388_v39  ;;  %v2400_v53 = vadd.f32 0.4994258, %v2399_v31  ;;  %v2423_v5 = vadd.f32 0.00028619796, %v2422_v56  ;;  %v13707_v14 = vsub.f32 %v13705_v30, %v13706_v34 }
 0x2c5   :  { %v2434_v44 = vadd.f32 0.001143296, %v2433_v38  ;;  %v9568_v27 = vmin.f32 %v2460_v19, 16.0  ;;  %v3375_v21 = vmul.f32 %v3325_v42, %v1225_v3  ;;  %v2351_v9 = vadd.f32 1.1283791, %v2350_v8 }
 0x2c6   :  { %v2401_v59 = vmul.f32 %v2400_v53, %v9492_v33  ;;  %v1068_v62 = vmul.f32 %v947_v57, %v13707_v14  ;;  %v7032_v1 = vpop.eup %7031  ;;  %v9575_v40 = vmul.f32 0.5, %v9394_v12  ;;  %v2424_v46 = vmul.f32 %v2423_v5, %v9540_v50 }
 0x2c7   :  { %v2435_v39 = vmul.f32 %v2434_v44, %v9540_v50  ;;  %v2462_v31 = vmul.f32 2.1237322e-06, %v9568_v27  ;;  %3614 = vmatmul.f32.gmra.mxu3 %v3375_v21  ;;  %3798 = vmatmul.f32.gmra.mxu1 %v3375_v21  ;;  %v2364_v19 = vmul.f32 %v7032_v1, %v9533_v55  ;;  %v2390_v8 = vmul.f32 %v2389_v49, %v9492_v33 }
 0x2c8   :  { %v9582_v56 = vadd.f32 1.0, %v2401_v59  ;;  %v2473_v38 = vmul.f32 3.8918573e-05, %v9568_v27  ;;  %v2425_v3 = vadd.f32 0.0036580483, %v2424_v46  ;;  %v1124_v53 = vmul.f32 %v7782_v0, %v1068_v62 }
 0x2c9   :  { %v2436_v42 = vadd.f32 0.014752088, %v2435_v39  ;;  %v2463_v12 = vadd.f32 0.00028619796, %v2462_v31  ;;  %v2352_v5 = vmul.f32 %v2351_v9, %v9408_v60  ;;  %v2365_v44 = vsub.f32 1.0, %v2364_v19 }
 0x2ca   :  { %v2372_v30 = vand.u32 2147483647, %v9533_v55  ;;  %7033 = vrcp.f32 %v9582_v56  ;;  %vm2369_vm10 = vweird.f32 %v7032_v1  ;;  %v2374_v21 = vand.u32 2147483648, %v9533_v55 }
 0x2cb   :  { %v2426_v33 = vmul.f32 %v2425_v3, %v9540_v50  ;;  %v2437_v49 = vmul.f32 %v2436_v42, %v9540_v50  ;;  %v2366_v59 = vmul.f32 %v7032_v1, %v2365_v44  ;;  %v2464_v14 = vmul.f32 %v2463_v12, %v9568_v27  ;;  %v13708_v3 = vld [vmem:[#allocation57_spill] sm:$0xff] }
 0x2cc   :  { %v2474_v46 = vadd.f32 0.001143296, %v2473_v38  ;;  %v9594_v62 = vadd.f32 %v7794_v36, %v1124_v53  ;;  %vm2368_vm11 = vweird.f32 %v9533_v55  ;;  %v2391_v60 = vadd.f32 1.1283791, %v2390_v8 }
 0x2cd   :  { %v2427_v9 = vadd.f32 0.05243302, %v2426_v33  ;;  %v2438_v39 = vadd.f32 0.112945676, %v2437_v49  ;;  %v2367_v31 = vadd.f32 %v7032_v1, %v2366_v59  ;;  %vm2373_vm12 = vcmp.eq.f32.partialorder %v2372_v30, 8.507059e+37  ;;  %vm2370_vm15 = vmor %vm2368_vm11, %vm2369_vm10  ;;  %v13709_v33 = vld [vmem:[#allocation32_spill] sm:$0xff] }
 0x2ce   :  { %v2465_v19 = vadd.f32 0.0036580483, %v2464_v14  ;;  %v2475_v20 = vmul.f32 %v2474_v46, %v9568_v27  ;;  %vm954_vm13 = vweird.f32 %v13708_v3  ;;  %vm955_vm14 = vweird.f32 %v8958_v41 }
 0x2cf   :  { %v2375_v38 = vor.u32 1.1754944e-38, %v2374_v21  ;;  %v2428_v42 = vmul.f32 %v2427_v9, %v9540_v50  ;;  %v2439_v12 = vmul.f32 %v2438_v39, %v9540_v50  ;;  %v9604_v55 = vmul.f32 0.70710677, %v9594_v62  ;;  %vm956_vm4 = vmor %vm954_vm13, %vm955_vm14 }
 0x2d0   :  { %v7034_v8 = vpop.eup %7033  ;;  %v2371_v53 = vsel %vm2370_vm15, %v7032_v1, %v2367_v31  ;;  %v2466_v44 = vmul.f32 %v2465_v19, %v9568_v27  ;;  %v2476_v30 = vadd.f32 0.014752088, %v2475_v20  ;;  %v13710_v49 = vsub.f32 %v13709_v33, %v13706_v34 }
 0x2d1   :  { %v2376_v14 = vsel %vm2373_vm12, %v2375_v38, %v2371_v53  ;;  %v2392_v46 = vmul.f32 %v2391_v60, %v9475_v58  ;;  %v2404_v21 = vmul.f32 %v7034_v8, %v9582_v56  ;;  %v2414_v9 = vand.u32 2147483648, %v9582_v56 }
 0x2d2   :  { %v1069_v59 = vmul.f32 %v947_v57, %v13710_v49  ;;  %v2377_v39 = vmul.f32 %v2376_v14, %v2352_v5  ;;  %v2440_v22 = vadd.f32 0.4994258, %v2439_v12  ;;  %v2467_v26 = vadd.f32 0.05243302, %v2466_v44  ;;  %v3853_v14 = vld [vmem:[#allocation5 + $0x78] sm:$0xff] }
 0x2d3   :  { %v2477_v23 = vmul.f32 %v2476_v30, %v9568_v27  ;;  %v2405_v1 = vsub.f32 1.0, %v2404_v21  ;;  %vm2409_vm0 = vweird.f32 %v7034_v8  ;;  %v2429_v31 = vadd.f32 0.18741608, %v2428_v42  ;;  %v3882_v21 = vld [vmem:[#allocation5 + $0x160] sm:$0xff]  ;;  %4100 = vmatpush.msra.mxu0 %v3853_v14 }
 0x2d4   :  { %v2500_v20 = vmul.f32 %v9604_v55, %v9604_v55  ;;  %v6817_v34 = vclamps-f32 %v2377_v39, 1.0  ;;  %v2441_v57 = vmul.f32 %v2440_v22, %v9540_v50  ;;  %v1125_v58 = vmul.f32 %v7800_v28, %v1069_v59  ;;  %4009 = vmatpush.msrb.mxu3 %v3882_v21 }
 0x2d5   :  { %v2478_v19 = vadd.f32 0.112945676, %v2477_v23  ;;  %v2406_v60 = vmul.f32 %v7034_v8, %v2405_v1  ;;  %v2412_v38 = vand.u32 2147483647, %v9582_v56  ;;  %v2468_v5 = vmul.f32 %v2467_v26, %v9568_v27 }
 0x2d6   :  { %v9620_v12 = vmin.f32 %v2500_v20, 16.0  ;;  %v3326_v53 = vadd.f32 1.0, %v6817_v34  ;;  %vm2408_vm1 = vweird.f32 %v9582_v56  ;;  %v9623_v42 = vadd.f32 1.0, %v2441_v57  ;;  %v3850_v56 = vld [vmem:[#allocation5 + $0x60] sm:$0xff]  ;;  %v3885_v20 = vld [vmem:[#allocation5 + $0x178] sm:$0xff] }
 0x2d7   :  { %v2479_v44 = vmul.f32 %v2478_v19, %v9568_v27  ;;  %v2407_v30 = vadd.f32 %v7034_v8, %v2406_v60  ;;  %vm9627_vm2 = vmor %vm2408_vm1, %vm2409_vm0  ;;  %v2430_v23 = vmul.f32 %v2429_v31, %v9540_v50  ;;  %v2415_v59 = vor.u32 1.1754944e-38, %v2414_v9  ;;  %3917 = vmatpush.msrb.mxu2 %v3850_v56  ;;  %4192 = vmatpush.msra.mxu1 %v3885_v20 }
 0x2d8   :  { %v2502_v33 = vmul.f32 2.1237322e-06, %v9620_v12  ;;  %v2513_v26 = vmul.f32 3.8918573e-05, %v9620_v12  ;;  %v3376_v49 = vmul.f32 %v3326_v53, %v9575_v40  ;;  %7035 = vrcp.f32 %v9623_v42 }
 0x2d9   :  { %v9637_v39 = vadd.f32 %v7831_v18, %v1125_v58  ;;  %v2411_v1 = vsel %vm9627_vm2, %v7034_v8, %v2407_v30  ;;  %vm2413_vm3 = vcmp.eq.f32.partialorder %v2412_v38, 8.507059e+37  ;;  %v2469_v50 = vadd.f32 0.18741608, %v2468_v5 }
 0x2da   :  { %v2480_v31 = vadd.f32 0.4994258, %v2479_v44  ;;  %v13713_v40 = vsub.f32 %v9543_v48, %v9547_v25  ;;  %3525 = vmatmul.f32.gmra.mxu2 %v3376_v49  ;;  %v2416_v34 = vsel %vm2413_vm3, %v2415_v59, %v2411_v1  ;;  %3709 = vmatmul.f32.gmra.mxu0 %v3376_v49  ;;  %v2503_v8 = vadd.f32 0.00028619796, %v2502_v33  ;;  %v13715_v33 = vld [vmem:[#allocation50_spill] sm:$0xff] }
 0x2db   :  { %v2514_v57 = vadd.f32 0.001143296, %v2513_v26  ;;  %v2417_v19 = vmul.f32 %v2416_v34, %v2392_v46  ;;  %v2431_v58 = vadd.f32 1.1283791, %v2430_v23  ;;  %v957_v3 = vsel %vm956_vm4, %v8958_v41, %v9111_v51 }
 0x2dc   :  { %v9648_v9 = vmax.f32 %v13713_v40, 0.0  ;;  %v2481_v60 = vmul.f32 %v2480_v31, %v9568_v27  ;;  %v1227_v38 = vmul.f32 0.5, %v9457_v61  ;;  %v2504_v48 = vmul.f32 %v2503_v8, %v9620_v12  ;;  %v13714_v61 = vld [vmem:[#allocation33_spill] sm:$0xff] }
 0x2dd   :  { %v2515_v25 = vmul.f32 %v2514_v57, %v9620_v12  ;;  %v9657_v5 = vmul.f32 0.70710677, %v9637_v39  ;;  %v6818_v53 = vclamps-f32 %v2417_v19, 1.0  ;;  %v9660_v46 = vmul.f32 0.5, %v9496_v15 }
 0x2de   :  { %v2470_v44 = vmul.f32 %v2469_v50, %v9568_v27  ;;  %v9663_v30 = vadd.f32 1.0, %v2481_v60  ;;  %v7036_v22 = vpop.eup %7035  ;;  %v2505_v23 = vadd.f32 0.0036580483, %v2504_v48  ;;  %v13716_v26 = vsub.f32 %v13714_v61, %v13715_v33  ;;  %v13717_v60 = vld [vmem:[#allocation15_spill] sm:$0xff] }
 0x2df   :  { %v2516_v41 = vadd.f32 0.014752088, %v2515_v25  ;;  %v2540_v51 = vmul.f32 %v9657_v5, %v9657_v5  ;;  %v3327_v59 = vadd.f32 1.0, %v6818_v53  ;;  %v2432_v56 = vmul.f32 %v2431_v58, %v9513_v7  ;;  %v13720_v53 = vld [vmem:[#allocation34_spill] sm:$0xff] }
 0x2e0   :  { %v1070_v49 = vmul.f32 %v957_v3, %v13716_v26  ;;  %v2444_v15 = vmul.f32 %v7036_v22, %v9623_v42  ;;  %7037 = vrcp.f32 %v9663_v30  ;;  %vm2448_vm5 = vweird.f32 %v9623_v42 }
 0x2e1   :  { %v2452_v27 = vand.u32 2147483647, %v9623_v42  ;;  %v2454_v14 = vand.u32 2147483648, %v9623_v42  ;;  %v2506_v21 = vmul.f32 %v2505_v23, %v9620_v12  ;;  %v3377_v1 = vmul.f32 %v3327_v59, %v1227_v38 }
 0x2e2   :  { %v2445_v50 = vsub.f32 1.0, %v2444_v15  ;;  %v2517_v31 = vmul.f32 %v2516_v41, %v9620_v12  ;;  %v9678_v20 = vmin.f32 %v2540_v51, 16.0  ;;  %vm2449_vm6 = vweird.f32 %v7036_v22 }
 0x2e3   :  { %v2471_v7 = vadd.f32 1.1283791, %v2470_v44  ;;  %v2507_v40 = vadd.f32 0.05243302, %v2506_v21  ;;  %v1126_v34 = vmul.f32 %v7782_v0, %v1070_v49  ;;  %3617 = vmatmul.f32.gmra.mxu3 %v3377_v1  ;;  %3801 = vmatmul.f32.gmra.mxu1 %v3377_v1  ;;  %vm964_vm7 = vweird.f32 %v13717_v60  ;;  %vm2450_vm10 = vmor %vm2448_vm5, %vm2449_vm6 }
 0x2e4   :  { %v2446_v8 = vmul.f32 %v7036_v22, %v2445_v50  ;;  %v2518_v57 = vadd.f32 0.112945676, %v2517_v31  ;;  %v2542_v19 = vmul.f32 2.1237322e-06, %v9678_v20  ;;  %v2553_v58 = vmul.f32 3.8918573e-05, %v9678_v20 }
 0x2e5   :  { %vm965_vm8 = vweird.f32 %v9019_v37  ;;  %vm9685_vm9 = vcmp.eq.f32.partialorder %v2452_v27, 8.507059e+37  ;;  %v2455_v48 = vor.u32 1.1754944e-38, %v2454_v14  ;;  %v9690_v25 = vadd.f32 %v7794_v36, %v1126_v34 }
 0x2e6   :  { %v13721_v44 = vsub.f32 %v13720_v53, %v13715_v33  ;;  %v7038_v41 = vpop.eup %7037  ;;  %v2447_v51 = vadd.f32 %v7036_v22, %v2446_v8  ;;  %v2519_v61 = vmul.f32 %v2518_v57, %v9620_v12  ;;  %v2543_v26 = vadd.f32 0.00028619796, %v2542_v19  ;;  %vm966_vm15 = vmor %vm964_vm7, %vm965_vm8 }
 0x2e7   :  { %v2554_v49 = vadd.f32 0.001143296, %v2553_v58  ;;  %v2472_v59 = vmul.f32 %v2471_v7, %v9528_v24  ;;  %v2484_v15 = vmul.f32 %v7038_v41, %v9663_v30  ;;  %v2494_v27 = vand.u32 2147483648, %v9663_v30 }
 0x2e8   :  { %v1071_v23 = vmul.f32 %v957_v3, %v13721_v44  ;;  %v2508_v14 = vmul.f32 %v2507_v40, %v9620_v12  ;;  %v2451_v33 = vsel %vm2450_vm10, %v7036_v22, %v2447_v51  ;;  %v2520_v3 = vadd.f32 0.4994258, %v2519_v61 }
 0x2e9   :  { %v2544_v21 = vmul.f32 %v2543_v26, %v9678_v20  ;;  %v2555_v1 = vmul.f32 %v2554_v49, %v9678_v20  ;;  %v2456_v50 = vsel %vm9685_vm9, %v2455_v48, %v2451_v33  ;;  %v2485_v31 = vsub.f32 1.0, %v2484_v15 }
 0x2ea   :  { %v9708_v42 = vmul.f32 0.70710677, %v9690_v25  ;;  %v1127_v24 = vmul.f32 %v7800_v28, %v1071_v23  ;;  %v2457_v7 = vmul.f32 %v2456_v50, %v2432_v56  ;;  %v2521_v34 = vmul.f32 %v2520_v3, %v9620_v12 }
 0x2eb   :  { %v2545_v8 = vadd.f32 0.0036580483, %v2544_v21  ;;  %v2556_v40 = vadd.f32 0.014752088, %v2555_v1  ;;  %v2486_v22 = vmul.f32 %v7038_v41, %v2485_v31  ;;  %vm2489_vm11 = vweird.f32 %v7038_v41 }
 0x2ec   :  { %v2492_v57 = vand.u32 2147483647, %v9663_v30  ;;  %v2580_v19 = vmul.f32 %v9708_v42, %v9708_v42  ;;  %v6819_v58 = vclamps-f32 %v2457_v7, 1.0  ;;  %v9715_v38 = vadd.f32 1.0, %v2521_v34  ;;  %v3848_v7 = vld [vmem:[#allocation5 + $0x50] sm:$0xff] }
 0x2ed   :  { %v2546_v48 = vmul.f32 %v2545_v8, %v9678_v20  ;;  %v2557_v53 = vmul.f32 %v2556_v40, %v9678_v20  ;;  %v2487_v44 = vadd.f32 %v7038_v41, %v2486_v22  ;;  %vm2488_vm12 = vweird.f32 %v9663_v30  ;;  %3918 = vmatpush.msrb.mxu2 %v3848_v7 }
 0x2ee   :  { %v2509_v56 = vadd.f32 0.18741608, %v2508_v14  ;;  %v9720_v23 = vmin.f32 %v2580_v19, 16.0  ;;  %v3328_v51 = vadd.f32 1.0, %v6819_v58  ;;  %vm2490_vm13 = vmor %vm2488_vm12, %vm2489_vm11  ;;  %v2495_v61 = vor.u32 1.1754944e-38, %v2494_v27 }
 0x2ef   :  { %7039 = vrcp.f32 %v9715_v38  ;;  %v9724_v26 = vadd.f32 %v7831_v18, %v1127_v24  ;;  %v2491_v49 = vsel %vm2490_vm13, %v7038_v41, %v2487_v44  ;;  %vm2493_vm14 = vcmp.eq.f32.partialorder %v2492_v57, 8.507059e+37  ;;  %v13722_v57 = vld [vmem:[#allocation35_spill] sm:$0xff] }
 0x2f0   :  { %v2547_v15 = vadd.f32 0.05243302, %v2546_v48  ;;  %v2558_v33 = vadd.f32 0.112945676, %v2557_v53  ;;  %v9731_v30 = vadd.f32 1e-05, %v9648_v9  ;;  %v3378_v14 = vmul.f32 %v3328_v51, %v9660_v46 }
 0x2f1   :  { %v2496_v27 = vsel %vm2493_vm14, %v2495_v61, %v2491_v49  ;;  %v2582_v3 = vmul.f32 2.1237322e-06, %v9720_v23  ;;  %v2510_v1 = vmul.f32 %v2509_v56, %v9620_v12  ;;  %v967_v50 = vsel %vm966_vm15, %v9019_v37, %v9259_v6  ;;  %v3851_v37 = vld [vmem:[#allocation5 + $0x68] sm:$0xff]  ;;  %v3880_v6 = vld [vmem:[#allocation5 + $0x150] sm:$0xff] }
 0x2f2   :  { %v2497_v21 = vmul.f32 %v2496_v27, %v2472_v59  ;;  %v2559_v41 = vmul.f32 %v2558_v33, %v9678_v20  ;;  %7041 = vrsqrt.f32 %v9559_v13  ;;  %3528 = vmatmul.f32.gmra.mxu2 %v3378_v14  ;;  %3712 = vmatmul.f32.gmra.mxu0 %v3378_v14  ;;  %v2593_v9 = vmul.f32 3.8918573e-05, %v9720_v23 }
 0x2f3   :  { %v2583_v60 = vadd.f32 0.00028619796, %v2582_v3  ;;  %v9742_v46 = vmul.f32 0.70710677, %v9724_v26  ;;  %v1229_v31 = vmul.f32 0.5, %v9517_v16  ;;  %v2548_v12 = vmul.f32 %v2547_v15, %v9678_v20  ;;  %4101 = vmatpush.msra.mxu0 %v3851_v37  ;;  %4010 = vmatpush.msrb.mxu3 %v3880_v6 }
 0x2f4   :  { %v6820_v59 = vclamps-f32 %v2497_v21, 1.0  ;;  %v2560_v24 = vadd.f32 0.4994258, %v2559_v41  ;;  %v2594_v40 = vadd.f32 0.001143296, %v2593_v9  ;;  %v13723_v19 = vsub.f32 %v13722_v57, %v8862_v43 }
 0x2f5   :  { %v7040_v34 = vpop.eup %7039  ;;  %v2584_v8 = vmul.f32 %v2583_v60, %v9720_v23  ;;  %v2620_v22 = vmul.f32 %v9742_v46, %v9742_v46  ;;  %v2511_v48 = vadd.f32 1.1283791, %v2510_v1  ;;  %v2532_v44 = vand.u32 2147483647, %v9715_v38 }
 0x2f6   :  { %v1072_v58 = vmul.f32 %v967_v50, %v13723_v19  ;;  %v3329_v16 = vadd.f32 1.0, %v6820_v59  ;;  %v2524_v53 = vmul.f32 %v7040_v34, %v9715_v38  ;;  %v2534_v56 = vand.u32 2147483648, %v9715_v38 }
 0x2f7   :  { %v2561_v51 = vmul.f32 %v2560_v24, %v9678_v20  ;;  %v2585_v61 = vadd.f32 0.0036580483, %v2584_v8  ;;  %v2595_v49 = vmul.f32 %v2594_v40, %v9720_v23  ;;  %v2549_v14 = vadd.f32 0.18741608, %v2548_v12 }
 0x2f8   :  { %v3379_v15 = vmul.f32 %v3329_v16, %v1229_v31  ;;  %v2525_v33 = vsub.f32 1.0, %v2524_v53  ;;  %v9757_v27 = vmin.f32 %v2620_v22, 16.0  ;;  %v9759_v3 = vpop.eup %7041  ;;  %v1128_v60 = vmul.f32 %v7782_v0, %v1072_v58 }
 0x2f9   :  { %v9761_v21 = vadd.f32 1.0, %v2561_v51  ;;  %v2586_v1 = vmul.f32 %v2585_v61, %v9720_v23  ;;  %v2596_v41 = vadd.f32 0.014752088, %v2595_v49  ;;  %vm2529_vm0 = vweird.f32 %v7040_v34 }
 0x2fa   :  { %3620 = vmatmul.f32.gmra.mxu3 %v3379_v15  ;;  %3804 = vmatmul.f32.gmra.mxu1 %v3379_v15  ;;  %v2526_v9 = vmul.f32 %v7040_v34, %v2525_v33  ;;  %v2622_v59 = vmul.f32 2.1237322e-06, %v9757_v27  ;;  %v2633_v31 = vmul.f32 3.8918573e-05, %v9757_v27  ;;  %v1230_v12 = vmul.f32 0.5, %v9594_v62 }
 0x2fb   :  { %vm2528_vm1 = vweird.f32 %v9715_v38  ;;  %7043 = vrcp.f32 %v9761_v21  ;;  %v13724_v24 = vsub.f32 %v13674_v47, %v8862_v43  ;;  %v2550_v6 = vmul.f32 %v2549_v14, %v9678_v20 }
 0x2fc   :  { %v2527_v37 = vadd.f32 %v7040_v34, %v2526_v9  ;;  %v2587_v8 = vadd.f32 0.05243302, %v2586_v1  ;;  %v2597_v40 = vmul.f32 %v2596_v41, %v9720_v23  ;;  %v2512_v22 = vmul.f32 %v2511_v48, %v9604_v55  ;;  %vm2530_vm2 = vmor %vm2528_vm1, %vm2529_vm0 }
 0x2fd   :  { %v1073_v7 = vmul.f32 %v967_v50, %v13724_v24  ;;  %v2535_v57 = vor.u32 1.1754944e-38, %v2534_v56  ;;  %v2623_v19 = vadd.f32 0.00028619796, %v2622_v59  ;;  %v2634_v62 = vadd.f32 0.001143296, %v2633_v31  ;;  %v13725_v59 = vld [vmem:[#allocation16_spill] sm:$0xff] }
 0x2fe   :  { %v2531_v58 = vsel %vm2530_vm2, %v7040_v34, %v2527_v37  ;;  %vm2533_vm3 = vcmp.eq.f32.partialorder %v2532_v44, 8.507059e+37  ;;  %v2598_v38 = vadd.f32 0.112945676, %v2597_v40  ;;  %v9777_v16 = vadd.f32 %v7794_v36, %v1128_v60 }
 0x2ff   :  { %v2536_v43 = vsel %vm2533_vm3, %v2535_v57, %v2531_v58  ;;  %v2624_v47 = vmul.f32 %v2623_v19, %v9757_v27  ;;  %v2635_v20 = vmul.f32 %v2634_v62, %v9757_v27  ;;  %v1129_v50 = vmul.f32 %v7800_v28, %v1073_v7 }
 0x300   :  { %v2537_v53 = vmul.f32 %v2536_v43, %v2512_v22  ;;  %v2551_v51 = vadd.f32 1.1283791, %v2550_v6  ;;  %v2588_v55 = vmul.f32 %v2587_v8, %v9720_v23  ;;  %v2599_v48 = vmul.f32 %v2598_v38, %v9720_v23 }
 0x301   :  { %v7044_v56 = vpop.eup %7043  ;;  %7045 = vrsqrt.f32 %v9731_v30  ;;  %v2625_v34 = vadd.f32 0.0036580483, %v2624_v47  ;;  %v2636_v44 = vadd.f32 0.014752088, %v2635_v20  ;;  %v9786_v61 = vmul.f32 0.70710677, %v9777_v16 }
 0x302   :  { %v6821_v49 = vclamps-f32 %v2537_v53, 1.0  ;;  %v2564_v15 = vmul.f32 %v7044_v56, %v9761_v21  ;;  %v2572_v33 = vand.u32 2147483647, %v9761_v21  ;;  %v9791_v14 = vadd.f32 %v7831_v18, %v1129_v50 }
 0x303   :  { %v2600_v1 = vadd.f32 0.4994258, %v2599_v48  ;;  %v2626_v41 = vmul.f32 %v2625_v34, %v9757_v27  ;;  %v2637_v60 = vmul.f32 %v2636_v44, %v9757_v27  ;;  %v2660_v9 = vmul.f32 %v9786_v61, %v9786_v61 }
 0x304   :  { %vm974_vm4 = vweird.f32 %v13725_v59  ;;  %vm975_vm5 = vweird.f32 %v9132_v4  ;;  %v3330_v31 = vadd.f32 1.0, %v6821_v49  ;;  %v2565_v24 = vsub.f32 1.0, %v2564_v15 }
 0x305   :  { %v2574_v7 = vand.u32 2147483648, %v9761_v21  ;;  %v2589_v37 = vadd.f32 0.18741608, %v2588_v55  ;;  %v2601_v6 = vmul.f32 %v2600_v1, %v9720_v23  ;;  %v2627_v8 = vadd.f32 0.05243302, %v2626_v41  ;;  %v455_v55 = vpop.xlane.xlu0 %454  ;;  %v3883_v1 = vld [vmem:[#allocation5 + $0x168] sm:$0xff]  ;;  %vm976_vm12 = vmor %vm974_vm4, %vm975_vm5 }
 0x306   :  { %v2638_v40 = vadd.f32 0.112945676, %v2637_v60  ;;  %v9801_v22 = vmin.f32 %v2660_v9, 16.0  ;;  %v3380_v57 = vmul.f32 %v3330_v31, %v1230_v12  ;;  %v2566_v19 = vmul.f32 %v7044_v56, %v2565_v24  ;;  %v13726_v41 = vld [vmem:[#allocation17_spill] sm:$0xff]  ;;  %4193 = vmatpush.msra.mxu1 %v3883_v1 }
 0x307   :  { %vm2569_vm6 = vweird.f32 %v7044_v56  ;;  %v9804_v62 = vmul.f32 0.70710677, %v9791_v14  ;;  %v9806_v58 = vpop.eup %7045  ;;  %v1009_v38 = vmul.f32 %v9759_v3, %v9559_v13  ;;  %v9810_v43 = vadd.f32 1.0, %v2601_v6 }
 0x308   :  { %v2639_v47 = vmul.f32 %v2638_v40, %v9757_v27  ;;  %v2662_v20 = vmul.f32 2.1237322e-06, %v9801_v22  ;;  %3531 = vmatmul.f32.gmra.mxu2 %v3380_v57  ;;  %v2567_v50 = vadd.f32 %v7044_v56, %v2566_v19  ;;  %vm2568_vm7 = vweird.f32 %v9761_v21  ;;  %3715 = vmatmul.f32.gmra.mxu0 %v3380_v57 }
 0x309   :  { %v2575_v12 = vor.u32 1.1754944e-38, %v2574_v7  ;;  %v2590_v53 = vmul.f32 %v2589_v37, %v9720_v23  ;;  %vm2570_vm8 = vmor %vm2568_vm7, %vm2569_vm6  ;;  %7047 = vrcp.f32 %v9810_v43  ;;  %v2628_v48 = vmul.f32 %v2627_v8, %v9757_v27 }
 0x30a   :  { %v2673_v34 = vmul.f32 3.8918573e-05, %v9801_v22  ;;  %v2700_v44 = vmul.f32 %v9804_v62, %v9804_v62  ;;  %v2552_v49 = vmul.f32 %v2551_v51, %v9657_v5  ;;  %v2571_v15 = vsel %vm2570_vm8, %v7044_v56, %v2567_v50 }
 0x30b   :  { %vm2573_vm9 = vcmp.eq.f32.partialorder %v2572_v33, 8.507059e+37  ;;  %v2640_v21 = vadd.f32 0.4994258, %v2639_v47  ;;  %vm984_vm10 = vweird.f32 %v13726_v41  ;;  %vm985_vm11 = vweird.f32 %v9193_v54 }
 0x30c   :  { %v9825_v23 = vmul.f32 %v9759_v3, %v1009_v38  ;;  %v9829_v60 = vmul.f32 %v9806_v58, %v9731_v30  ;;  %v2576_v9 = vsel %vm2573_vm9, %v2575_v12, %v2571_v15  ;;  %v2663_v31 = vadd.f32 0.00028619796, %v2662_v20  ;;  %vm986_vm0 = vmor %vm984_vm10, %vm985_vm11 }
 0x30d   :  { %v9832_v5 = vmul.f32 %v7698_v35, %v455_v55  ;;  %v2577_v51 = vmul.f32 %v2576_v9, %v2552_v49  ;;  %v2591_v56 = vadd.f32 1.1283791, %v2590_v53  ;;  %v2641_v33 = vmul.f32 %v2640_v21, %v9757_v27  ;;  %v13729_v9 = vld [vmem:[#allocation37_spill] sm:$0xff] }
 0x30e   :  { %v2629_v24 = vadd.f32 0.18741608, %v2628_v48  ;;  %v2664_v7 = vmul.f32 %v2663_v31, %v9801_v22  ;;  %v2674_v37 = vadd.f32 0.001143296, %v2673_v34  ;;  %v9836_v6 = vmin.f32 %v2700_v44, 16.0 }
 0x30f   :  { %v1231_v8 = vmul.f32 0.5, %v9637_v39  ;;  %v6822_v40 = vclamps-f32 %v2577_v51, 1.0  ;;  %v9840_v57 = vmul.f32 0.5, %v9690_v25  ;;  %v9842_v19 = vadd.f32 1.0, %v2641_v33  ;;  %v7048_v38 = vpop.eup %7047 }
 0x310   :  { %v2612_v47 = vand.u32 2147483647, %v9810_v43  ;;  %v2665_v20 = vadd.f32 0.0036580483, %v2664_v7  ;;  %v2675_v50 = vmul.f32 %v2674_v37, %v9801_v22  ;;  %v2702_v12 = vmul.f32 2.1237322e-06, %v9836_v6 }
 0x311   :  { %v3331_v39 = vadd.f32 1.0, %v6822_v40  ;;  %v2592_v53 = vmul.f32 %v2591_v56, %v9708_v42  ;;  %v2604_v25 = vmul.f32 %v7048_v38, %v9810_v43  ;;  %v977_v55 = vsel %vm976_vm12, %v9132_v4, %v9366_v52 }
 0x312   :  { %vm2608_vm13 = vweird.f32 %v9810_v43  ;;  %v2614_v59 = vand.u32 2147483648, %v9810_v43  ;;  %v2630_v48 = vmul.f32 %v2629_v24, %v9757_v27  ;;  %7049 = vrcp.f32 %v9842_v19 }
 0x313   :  { %v3381_v34 = vmul.f32 %v3331_v39, %v1231_v8  ;;  %v2605_v44 = vsub.f32 1.0, %v2604_v25  ;;  %v2666_v49 = vmul.f32 %v2665_v20, %v9801_v22  ;;  %v2676_v15 = vadd.f32 0.014752088, %v2675_v50 }
 0x314   :  { %vm2609_vm14 = vweird.f32 %v7048_v38  ;;  %vm9860_vm15 = vcmp.eq.f32.partialorder %v2612_v47, 8.507059e+37  ;;  %v2703_v21 = vadd.f32 0.00028619796, %v2702_v12  ;;  %v2713_v4 = vmul.f32 3.8918573e-05, %v9836_v6 }
 0x315   :  { %3623 = vmatmul.f32.gmra.mxu3 %v3381_v34  ;;  %3807 = vmatmul.f32.gmra.mxu1 %v3381_v34  ;;  %v2606_v52 = vmul.f32 %v7048_v38, %v2605_v44  ;;  %v2667_v1 = vadd.f32 0.05243302, %v2666_v49  ;;  %v2677_v27 = vmul.f32 %v2676_v15, %v9801_v22  ;;  %v13730_v31 = vsub.f32 %v13729_v9, %v8978_v17  ;;  %vm2610_vm2 = vmor %vm2608_vm13, %vm2609_vm14 }
 0x316   :  { %v2615_v56 = vor.u32 1.1754944e-38, %v2614_v59  ;;  %v2631_v33 = vadd.f32 1.1283791, %v2630_v48  ;;  %v2704_v24 = vmul.f32 %v2703_v21, %v9836_v6  ;;  %v2714_v7 = vadd.f32 0.001143296, %v2713_v4 }
 0x317   :  { %v1074_v51 = vmul.f32 %v977_v55, %v13730_v31  ;;  %v2607_v37 = vadd.f32 %v7048_v38, %v2606_v52  ;;  %vm2648_vm1 = vweird.f32 %v9842_v19  ;;  %v2678_v8 = vadd.f32 0.112945676, %v2677_v27 }
 0x318   :  { %v13731_v47 = vsub.f32 %v13683_v11, %v8978_v17  ;;  %v7050_v50 = vpop.eup %7049  ;;  %v2652_v12 = vand.u32 2147483647, %v9842_v19  ;;  %v2668_v41 = vmul.f32 %v2667_v1, %v9801_v22  ;;  %v2705_v39 = vadd.f32 0.0036580483, %v2704_v24 }
 0x319   :  { %v1130_v40 = vmul.f32 %v7782_v0, %v1074_v51  ;;  %v2715_v25 = vmul.f32 %v2714_v7, %v9836_v6  ;;  %v2611_v59 = vsel %vm2610_vm2, %v7048_v38, %v2607_v37  ;;  %v2644_v48 = vmul.f32 %v7050_v50, %v9842_v19  ;;  %v13732_v37 = vld [vmem:[#allocation59_spill] sm:$0xff] }
 0x31a   :  { %v1075_v20 = vmul.f32 %v977_v55, %v13731_v47  ;;  %v2654_v34 = vand.u32 2147483648, %v9842_v19  ;;  %v9889_v17 = vsel %vm986_vm0, %v9193_v54, %v9383_v32  ;;  %v2616_v11 = vsel %vm9860_vm15, %v2615_v56, %v2611_v59  ;;  %v612_v47 = vpop.xlane.xlu1 %611 }
 0x31b   :  { %v2679_v43 = vmul.f32 %v2678_v8, %v9801_v22  ;;  %v2706_v55 = vmul.f32 %v2705_v39, %v9836_v6  ;;  %v2716_v44 = vadd.f32 0.014752088, %v2715_v25  ;;  %v2617_v49 = vmul.f32 %v2616_v11, %v2592_v53  ;;  %v3846_v11 = vld [vmem:[#allocation5 + $0x40] sm:$0xff] }
 0x31c   :  { %v2645_v15 = vsub.f32 1.0, %v2644_v48  ;;  %v9896_v38 = vadd.f32 %v7794_v36, %v1130_v40  ;;  %v1131_v21 = vmul.f32 %v7800_v28, %v1075_v20  ;;  %v2669_v4 = vadd.f32 0.18741608, %v2668_v41  ;;  %3919 = vmatpush.msrb.mxu2 %v3846_v11 }
 0x31d   :  { %v2680_v52 = vadd.f32 0.4994258, %v2679_v43  ;;  %v2707_v1 = vadd.f32 0.05243302, %v2706_v55  ;;  %v2717_v54 = vmul.f32 %v2716_v44, %v9836_v6  ;;  %v6823_v32 = vclamps-f32 %v2617_v49, 1.0  ;;  %v3849_v43 = vld [vmem:[#allocation5 + $0x58] sm:$0xff] }
 0x31e   :  { %v2646_v42 = vmul.f32 %v7050_v50, %v2645_v15  ;;  %vm2649_vm3 = vweird.f32 %v7050_v50  ;;  %v2655_v27 = vor.u32 1.1754944e-38, %v2654_v34  ;;  %v9903_v51 = vmul.f32 0.70710677, %v9896_v38  ;;  %v3878_v55 = vld [vmem:[#allocation5 + $0x140] sm:$0xff]  ;;  %4102 = vmatpush.msra.mxu0 %v3849_v43 }
 0x31f   :  { %v2681_v9 = vmul.f32 %v2680_v52, %v9801_v22  ;;  %v2708_v31 = vmul.f32 %v2707_v1, %v9836_v6  ;;  %v2718_v53 = vadd.f32 0.112945676, %v2717_v54  ;;  %v3332_v56 = vadd.f32 1.0, %v6823_v32  ;;  %vm2650_vm4 = vmor %vm2648_vm1, %vm2649_vm3  ;;  %4011 = vmatpush.msrb.mxu3 %v3878_v55 }
 0x320   :  { %v2647_v24 = vadd.f32 %v7050_v50, %v2646_v42  ;;  %v9906_v7 = vadd.f32 %v7831_v18, %v1131_v21  ;;  %v13733_v8 = vsub.f32 %v13685_v29, %v13732_v37  ;;  %v2670_v20 = vmul.f32 %v2669_v4, %v9801_v22 }
 0x321   :  { %v9915_v41 = vadd.f32 1.0, %v2681_v9  ;;  %v2719_v39 = vmul.f32 %v2718_v53, %v9836_v6  ;;  %v2740_v25 = vmul.f32 %v9903_v51, %v9903_v51  ;;  %v3382_v59 = vmul.f32 %v3332_v56, %v9840_v57 }
 0x322   :  { %v1076_v40 = vmul.f32 %v9889_v17, %v13733_v8  ;;  %v2632_v48 = vmul.f32 %v2631_v33, %v9742_v46  ;;  %v2651_v29 = vsel %vm2650_vm4, %v7050_v50, %v2647_v24  ;;  %vm2653_vm5 = vcmp.eq.f32.partialorder %v2652_v12, 8.507059e+37  ;;  %v3881_v33 = vld [vmem:[#allocation5 + $0x158] sm:$0xff] }
 0x323   :  { %v9924_v34 = vmul.f32 %v9806_v58, %v9829_v60  ;;  %v2656_v19 = vsel %vm2653_vm5, %v2655_v27, %v2651_v29  ;;  %7051 = vrcp.f32 %v9915_v41  ;;  %v2709_v22 = vadd.f32 0.18741608, %v2708_v31  ;;  %3534 = vmatmul.f32.gmra.mxu2 %v3382_v59  ;;  %3718 = vmatmul.f32.gmra.mxu0 %v3382_v59  ;;  %v13736_v29 = vld [vmem:[#allocation40_spill] sm:$0xff] }
 0x324   :  { %v9928_v44 = vmul.f32 %v612_v47, %v7698_v35  ;;  %v2657_v57 = vmul.f32 %v2656_v19, %v2632_v48  ;;  %v2720_v46 = vadd.f32 0.4994258, %v2719_v39  ;;  %v9931_v50 = vmul.f32 0.70710677, %v9906_v7  ;;  %4194 = vmatpush.msra.mxu1 %v3881_v33 }
 0x325   :  { %v9935_v60 = vmul.f32 %v9832_v5, %v9832_v5  ;;  %v2671_v12 = vadd.f32 1.1283791, %v2670_v20  ;;  %v9937_v49 = vmin.f32 %v2740_v25, 16.0  ;;  %v1132_v35 = vmul.f32 %v7782_v0, %v1076_v40 }
 0x326   :  { %v1233_v15 = vmul.f32 0.5, %v9724_v26  ;;  %v6824_v21 = vclamps-f32 %v2657_v57, 1.0  ;;  %v2692_v4 = vand.u32 2147483647, %v9915_v41  ;;  %v2721_v52 = vmul.f32 %v2720_v46, %v9836_v6 }
 0x327   :  { %v2694_v1 = vand.u32 2147483648, %v9915_v41  ;;  %v2710_v54 = vmul.f32 %v2709_v22, %v9836_v6  ;;  %v2742_v32 = vmul.f32 2.1237322e-06, %v9937_v49  ;;  %v2753_v42 = vmul.f32 3.8918573e-05, %v9937_v49 }
 0x328   :  { %v3333_v27 = vadd.f32 1.0, %v6824_v21  ;;  %v9948_v9 = vmul.f32 0.5, %v9777_v16  ;;  %v9950_v26 = vadd.f32 1.0, %v2721_v52  ;;  %v2780_v31 = vmul.f32 %v9931_v50, %v9931_v50 }
 0x329   :  { %v7052_v53 = vpop.eup %7051  ;;  %v2672_v56 = vmul.f32 %v2671_v12, %v9786_v61  ;;  %v2743_v24 = vadd.f32 0.00028619796, %v2742_v32  ;;  %v2754_v8 = vadd.f32 0.001143296, %v2753_v42  ;;  %v9956_v6 = vadd.f32 %v7794_v36, %v1132_v35 }
 0x32a   :  { %v3383_v40 = vmul.f32 %v3333_v27, %v1233_v15  ;;  %v2684_v47 = vmul.f32 %v7052_v53, %v9915_v41  ;;  %vm2688_vm6 = vweird.f32 %v9915_v41  ;;  %7053 = vrcp.f32 %v9950_v26 }
 0x32b   :  { %vm9961_vm7 = vcmp.eq.f32.partialorder %v2692_v4, 8.507059e+37  ;;  %v2695_v20 = vor.u32 1.1754944e-38, %v2694_v1  ;;  %v2711_v39 = vadd.f32 1.1283791, %v2710_v54  ;;  %v2744_v61 = vmul.f32 %v2743_v24, %v9937_v49 }
 0x32c   :  { %3626 = vmatmul.f32.gmra.mxu3 %v3383_v40  ;;  %3810 = vmatmul.f32.gmra.mxu1 %v3383_v40  ;;  %v2685_v25 = vsub.f32 1.0, %v2684_v47  ;;  %v2755_v59 = vmul.f32 %v2754_v8, %v9937_v49  ;;  %v9967_v48 = vmin.f32 %v2780_v31, 16.0  ;;  %v13737_v19 = vsub.f32 %v13736_v29, %v13732_v37  ;;  %v13738_v31 = vld [vmem:[#allocation18_spill] sm:$0xff] }
 0x32d   :  { %vm2689_vm8 = vweird.f32 %v7052_v53  ;;  %v2734_v11 = vand.u32 2147483648, %v9950_v26  ;;  %v2745_v43 = vadd.f32 0.0036580483, %v2744_v61  ;;  %v9977_v55 = vmul.f32 0.70710677, %v9956_v6 }
 0x32e   :  { %v9973_v22 = vmul.f32 %v9889_v17, %v13737_v19  ;;  %v2686_v57 = vmul.f32 %v7052_v53, %v2685_v25  ;;  %v2756_v46 = vadd.f32 0.014752088, %v2755_v59  ;;  %v2782_v33 = vmul.f32 2.1237322e-06, %v9967_v48  ;;  %vm2690_vm10 = vmor %vm2688_vm6, %vm2689_vm8 }
 0x32f   :  { %v2793_v12 = vmul.f32 3.8918573e-05, %v9967_v48  ;;  %vm2728_vm9 = vweird.f32 %v9950_v26  ;;  %v2732_v37 = vand.u32 2147483647, %v9950_v26  ;;  %v2746_v17 = vmul.f32 %v2745_v43, %v9937_v49 }
 0x330   :  { %v2820_v35 = vmul.f32 %v9977_v55, %v9977_v55  ;;  %v7054_v15 = vpop.eup %7053  ;;  %v2687_v21 = vadd.f32 %v7052_v53, %v2686_v57  ;;  %v2757_v4 = vmul.f32 %v2756_v46, %v9937_v49  ;;  %v2783_v52 = vadd.f32 0.00028619796, %v2782_v33 }
 0x331   :  { %v2794_v1 = vadd.f32 0.001143296, %v2793_v12  ;;  %v2724_v54 = vmul.f32 %v7054_v15, %v9950_v26  ;;  %v2735_v32 = vor.u32 1.1754944e-38, %v2734_v11  ;;  %v2747_v42 = vadd.f32 0.05243302, %v2746_v17 }
 0x332   :  { %v9991_v27 = vmin.f32 %v2820_v35, 16.0  ;;  %vm994_vm11 = vweird.f32 %v13738_v31  ;;  %vm995_vm12 = vweird.f32 %v9297_v45  ;;  %v2691_v24 = vsel %vm2690_vm10, %v7052_v53, %v2687_v21 }
 0x333   :  { %v2758_v8 = vadd.f32 0.112945676, %v2757_v4  ;;  %v2784_v40 = vmul.f32 %v2783_v52, %v9967_v48  ;;  %v2795_v47 = vmul.f32 %v2794_v1, %v9967_v48  ;;  %v2696_v41 = vsel %vm9961_vm7, %v2695_v20, %v2691_v24  ;;  %vm996_vm0 = vmor %vm994_vm11, %vm995_vm12 }
 0x334   :  { %v2725_v61 = vsub.f32 1.0, %v2724_v54  ;;  %v2748_v25 = vmul.f32 %v2747_v42, %v9937_v49  ;;  %v2822_v59 = vmul.f32 2.1237322e-06, %v9991_v27  ;;  %v2697_v29 = vmul.f32 %v2696_v41, %v2672_v56 }
 0x335   :  { %v2759_v19 = vmul.f32 %v2758_v8, %v9937_v49  ;;  %v2785_v11 = vadd.f32 0.0036580483, %v2784_v40  ;;  %v2796_v43 = vadd.f32 0.014752088, %v2795_v47  ;;  %vm2729_vm13 = vweird.f32 %v7054_v15 }
 0x336   :  { %v2726_v57 = vmul.f32 %v7054_v15, %v2725_v61  ;;  %v2823_v53 = vadd.f32 0.00028619796, %v2822_v59  ;;  %v2833_v46 = vmul.f32 3.8918573e-05, %v9991_v27  ;;  %v6825_v33 = vclamps-f32 %v2697_v29, 1.0  ;;  %vm2730_vm14 = vmor %vm2728_vm9, %vm2729_vm13 }
 0x337   :  { %v2760_v12 = vadd.f32 0.4994258, %v2759_v19  ;;  %v2786_v16 = vmul.f32 %v2785_v11, %v9967_v48  ;;  %v2797_v20 = vmul.f32 %v2796_v43, %v9967_v48  ;;  %v2749_v35 = vadd.f32 0.18741608, %v2748_v25  ;;  %v13740_v19 = vld [vmem:[#allocation47_spill] sm:$0xff] }
 0x338   :  { %v2727_v17 = vadd.f32 %v7054_v15, %v2726_v57  ;;  %v2824_v21 = vmul.f32 %v2823_v53, %v9991_v27  ;;  %v2834_v56 = vadd.f32 0.001143296, %v2833_v46  ;;  %v3334_v4 = vadd.f32 1.0, %v6825_v33 }
 0x339   :  { %v2761_v52 = vmul.f32 %v2760_v12, %v9937_v49  ;;  %v2787_v1 = vadd.f32 0.05243302, %v2786_v16  ;;  %v2798_v54 = vadd.f32 0.112945676, %v2797_v20  ;;  %v2712_v42 = vmul.f32 %v2711_v39, %v9804_v62  ;;  %v3847_v39 = vld [vmem:[#allocation5 + $0x48] sm:$0xff] }
 0x33a   :  { %v2731_v24 = vsel %vm2730_vm14, %v7054_v15, %v2727_v17  ;;  %vm2733_vm15 = vcmp.eq.f32.partialorder %v2732_v37, 8.507059e+37  ;;  %v2825_v8 = vadd.f32 0.0036580483, %v2824_v21  ;;  %v3384_v40 = vmul.f32 %v3334_v4, %v9948_v9  ;;  %v3844_v9 = vld [vmem:[#allocation5 + $0x30] sm:$0xff]  ;;  %4103 = vmatpush.msra.mxu0 %v3847_v39  ;;  %v13742_v4 = vld [vmem:[#allocation56_spill] sm:$0xff] }
 0x33b   :  { %v2736_v47 = vsel %vm2733_vm15, %v2735_v32, %v2731_v24  ;;  %v10011_v41 = vadd.f32 1.0, %v2761_v52  ;;  %v2788_v61 = vmul.f32 %v2787_v1, %v9967_v48  ;;  %v687_v26 = vsub.f32 %v9928_v44, %v9935_v60  ;;  %v13739_v44 = vld [vmem:[#allocation46_spill] sm:$0xff]  ;;  %3920 = vmatpush.msrb.mxu2 %v3844_v9 }
 0x33c   :  { %v2737_v25 = vmul.f32 %v2736_v47, %v2712_v42  ;;  %v2799_v59 = vmul.f32 %v2798_v54, %v9967_v48  ;;  %v1133_v29 = vmul.f32 %v7800_v28, %v9973_v22  ;;  %3537 = vmatmul.f32.gmra.mxu2 %v3384_v40  ;;  %3721 = vmatmul.f32.gmra.mxu0 %v3384_v40  ;;  %v10030_v22 = vmul.f32 0.5, %v9825_v23  ;;  %v13744_v9 = vld [vmem:[#allocation42_spill] sm:$0xff] }
 0x33d   :  { %v2750_v62 = vmul.f32 %v2749_v35, %v9937_v49  ;;  %7055 = vrcp.f32 %v10011_v41  ;;  %v2826_v37 = vmul.f32 %v2825_v8, %v9991_v27  ;;  %v2835_v15 = vmul.f32 %v2834_v56, %v9991_v27  ;;  %v13741_v56 = vld [vmem:[#allocation41_spill] sm:$0xff] }
 0x33e   :  { %v757_v60 = vsub.f32 %v13739_v44, %v9422_v10  ;;  %v6826_v49 = vclamps-f32 %v2737_v25, 1.0  ;;  %v2800_v32 = vadd.f32 0.4994258, %v2799_v59  ;;  %v758_v11 = vsub.f32 %v13740_v19, %v9422_v10 }
 0x33f   :  { %v10035_v43 = vmul.f32 0.5, %v9924_v34  ;;  %v2789_v57 = vadd.f32 0.18741608, %v2788_v61  ;;  %v997_v31 = vsel %vm996_vm0, %v9297_v45, %v9449_v2  ;;  %v712_v53 = vmax.f32 %v687_v26, 0.0 }
 0x340   :  { %v1235_v46 = vmul.f32 0.5, %v9791_v14  ;;  %v3335_v33 = vadd.f32 1.0, %v6826_v49  ;;  %v2801_v23 = vmul.f32 %v2800_v32, %v9967_v48  ;;  %v2751_v12 = vadd.f32 1.1283791, %v2750_v62 }
 0x341   :  { %v2827_v16 = vadd.f32 0.05243302, %v2826_v37  ;;  %v2836_v20 = vadd.f32 0.014752088, %v2835_v15  ;;  %v10042_v17 = vadd.f32 %v7831_v18, %v1133_v29  ;;  %v1012_v35 = vsub.f32 1.5, %v10030_v22 }
 0x342   :  { %v3385_v34 = vmul.f32 %v3335_v33, %v1235_v46  ;;  %v10045_v21 = vadd.f32 1.0, %v2801_v23  ;;  %v13743_v45 = vsub.f32 %v13741_v56, %v13742_v4  ;;  %v1022_v14 = vsub.f32 1.5, %v10035_v43  ;;  %v13756_v43 = vld [vmem:[#allocation44_spill] sm:$0xff] }
 0x343   :  { %v7056_v52 = vpop.eup %7055  ;;  %v2790_v1 = vmul.f32 %v2789_v57, %v9967_v48  ;;  %v2837_v54 = vmul.f32 %v2836_v20, %v9991_v27  ;;  %v10054_v42 = vmul.f32 0.70710677, %v10042_v17  ;;  %v10056_v24 = vadd.f32 1e-05, %v712_v53  ;;  %v13746_v57 = vld [vmem:[#allocation19_spill] sm:$0xff] }
 0x344   :  { %v1078_v2 = vmul.f32 %v997_v31, %v13743_v45  ;;  %3629 = vmatmul.f32.gmra.mxu3 %v3385_v34  ;;  %3813 = vmatmul.f32.gmra.mxu1 %v3385_v34  ;;  %v10059_v8 = vmul.f32 0.5, %v9896_v38  ;;  %v2764_v40 = vmul.f32 %v7056_v52, %v10011_v41  ;;  %7057 = vrcp.f32 %v10045_v21 }
 0x345   :  { %v2752_v47 = vmul.f32 %v2751_v12, %v9903_v51  ;;  %v2772_v48 = vand.u32 2147483647, %v10011_v41  ;;  %v2774_v61 = vand.u32 2147483648, %v10011_v41  ;;  %v2828_v26 = vmul.f32 %v2827_v16, %v9991_v27 }
 0x346   :  { %v2765_v25 = vsub.f32 1.0, %v2764_v40  ;;  %v2838_v59 = vadd.f32 0.112945676, %v2837_v54  ;;  %v2860_v29 = vmul.f32 %v10054_v42, %v10054_v42  ;;  %v1134_v38 = vmul.f32 %v7782_v0, %v1078_v2 }
 0x347   :  { %vm2768_vm1 = vweird.f32 %v10011_v41  ;;  %vm2769_vm2 = vweird.f32 %v7056_v52  ;;  %v2791_v62 = vadd.f32 1.1283791, %v2790_v1  ;;  %v13745_v51 = vsub.f32 %v13744_v9, %v13742_v4 }
 0x348   :  { %v2766_v37 = vmul.f32 %v7056_v52, %v2765_v25  ;;  %v2839_v15 = vmul.f32 %v2838_v59, %v9991_v27  ;;  %v10075_v49 = vmin.f32 %v2860_v29, 16.0  ;;  %v10078_v32 = vadd.f32 %v7794_v36, %v1134_v38  ;;  %vm2770_vm6 = vmor %vm2768_vm1, %vm2769_vm2 }
 0x349   :  { %v1079_v39 = vmul.f32 %v997_v31, %v13745_v51  ;;  %vm1004_vm3 = vweird.f32 %v13746_v57  ;;  %vm1005_vm4 = vweird.f32 %v9374_v63  ;;  %vm10082_vm5 = vcmp.eq.f32.partialorder %v2772_v48, 8.507059e+37 }
 0x34a   :  { %v2775_v46 = vor.u32 1.1754944e-38, %v2774_v61  ;;  %v2829_v33 = vadd.f32 0.18741608, %v2828_v26  ;;  %v7058_v23 = vpop.eup %7057  ;;  %v2767_v12 = vadd.f32 %v7056_v52, %v2766_v37  ;;  %v2840_v16 = vadd.f32 0.4994258, %v2839_v15  ;;  %vm1006_vm11 = vmor %vm1004_vm3, %vm1005_vm4 }
 0x34b   :  { %v1135_v31 = vmul.f32 %v7800_v28, %v1079_v39  ;;  %v2862_v20 = vmul.f32 2.1237322e-06, %v10075_v49  ;;  %v2873_v34 = vmul.f32 3.8918573e-05, %v10075_v49  ;;  %v2792_v56 = vmul.f32 %v2791_v62, %v9931_v50 }
 0x34c   :  { %v2804_v4 = vmul.f32 %v7058_v23, %v10045_v21  ;;  %v2814_v45 = vand.u32 2147483648, %v10045_v21  ;;  %v10096_v2 = vmul.f32 0.70710677, %v10078_v32  ;;  %v2771_v1 = vsel %vm2770_vm6, %v7056_v52, %v2767_v12 }
 0x34d   :  { %v2841_v54 = vmul.f32 %v2840_v16, %v9991_v27  ;;  %v2863_v40 = vadd.f32 0.00028619796, %v2862_v20  ;;  %v2874_v48 = vadd.f32 0.001143296, %v2873_v34  ;;  %v2776_v61 = vsel %vm10082_vm5, %v2775_v46, %v2771_v1 }
 0x34e   :  { %v2805_v26 = vsub.f32 1.0, %v2804_v4  ;;  %v2900_v41 = vmul.f32 %v10096_v2, %v10096_v2  ;;  %v10104_v50 = vadd.f32 %v7831_v18, %v1135_v31  ;;  %v2777_v25 = vmul.f32 %v2776_v61, %v2752_v47 }
 0x34f   :  { %v10106_v59 = vadd.f32 1.0, %v2841_v54  ;;  %v2864_v29 = vmul.f32 %v2863_v40, %v10075_v49  ;;  %v2875_v52 = vmul.f32 %v2874_v48, %v10075_v49  ;;  %vm2809_vm7 = vweird.f32 %v7058_v23  ;;  %v13749_v40 = vld [vmem:[#allocation51_spill] sm:$0xff] }
 0x350   :  { %v2806_v38 = vmul.f32 %v7058_v23, %v2805_v26  ;;  %v2812_v62 = vand.u32 2147483647, %v10045_v21  ;;  %v10111_v9 = vmin.f32 %v2900_v41, 16.0  ;;  %v6827_v51 = vclamps-f32 %v2777_v25, 1.0 }
 0x351   :  { %vm2808_vm8 = vweird.f32 %v10045_v21  ;;  %v2830_v39 = vmul.f32 %v2829_v33, %v9991_v27  ;;  %7059 = vrcp.f32 %v10106_v59  ;;  %v2865_v37 = vadd.f32 0.0036580483, %v2864_v29 }
 0x352   :  { %v2807_v47 = vadd.f32 %v7058_v23, %v2806_v38  ;;  %v2876_v15 = vadd.f32 0.014752088, %v2875_v52  ;;  %v10117_v53 = vmul.f32 0.70710677, %v10104_v50  ;;  %v3336_v46 = vadd.f32 1.0, %v6827_v51  ;;  %vm2810_vm9 = vmor %vm2808_vm8, %vm2809_vm7  ;;  %v13751_v51 = vld [vmem:[#allocation12_spill] sm:$0xff] }
 0x353   :  { %v2815_v31 = vor.u32 1.1754944e-38, %v2814_v45  ;;  %v2902_v12 = vmul.f32 2.1237322e-06, %v10111_v9  ;;  %v2913_v16 = vmul.f32 3.8918573e-05, %v10111_v9  ;;  %vm2813_vm10 = vcmp.eq.f32.partialorder %v2812_v62, 8.507059e+37 }
 0x354   :  { %v2811_v20 = vsel %vm2810_vm9, %v7058_v23, %v2807_v47  ;;  %v2866_v21 = vmul.f32 %v2865_v37, %v10075_v49  ;;  %v2877_v27 = vmul.f32 %v2876_v15, %v10075_v49  ;;  %v3386_v33 = vmul.f32 %v3336_v46, %v10059_v8  ;;  %v13750_v62 = vld [vmem:[#allocation43_spill] sm:$0xff] }
 0x355   :  { %v2816_v34 = vsel %vm2813_vm10, %v2815_v31, %v2811_v20  ;;  %v2903_v4 = vadd.f32 0.00028619796, %v2902_v12  ;;  %v2914_v45 = vadd.f32 0.001143296, %v2913_v16  ;;  %v2940_v23 = vmul.f32 %v10117_v53, %v10117_v53  ;;  %v3876_v31 = vld [vmem:[#allocation5 + $0x130] sm:$0xff]  ;;  %v3879_v12 = vld [vmem:[#allocation5 + $0x148] sm:$0xff] }
 0x356   :  { %v2817_v1 = vmul.f32 %v2816_v34, %v2792_v56  ;;  %v2878_v54 = vadd.f32 0.112945676, %v2877_v27  ;;  %v10132_v48 = vsel %vm1006_vm11, %v9374_v63, %v13749_v40  ;;  %7061 = vrsqrt.f32 %v10056_v24  ;;  %3540 = vmatmul.f32.gmra.mxu2 %v3386_v33  ;;  %3724 = vmatmul.f32.gmra.mxu0 %v3386_v33 }
 0x357   :  { %v7060_v61 = vpop.eup %7059  ;;  %v2831_v57 = vadd.f32 1.1283791, %v2830_v39  ;;  %v2904_v8 = vmul.f32 %v2903_v4, %v10111_v9  ;;  %v2915_v26 = vmul.f32 %v2914_v45, %v10111_v9  ;;  %v2852_v25 = vand.u32 2147483647, %v10106_v59  ;;  %4012 = vmatpush.msrb.mxu3 %v3876_v31  ;;  %4195 = vmatpush.msra.mxu1 %v3879_v12 }
 0x358   :  { %v6828_v41 = vclamps-f32 %v2817_v1, 1.0  ;;  %v2844_v56 = vmul.f32 %v7060_v61, %v10106_v59  ;;  %v2867_v29 = vadd.f32 0.05243302, %v2866_v21  ;;  %v2879_v52 = vmul.f32 %v2878_v54, %v10075_v49 }
 0x359   :  { %v2905_v63 = vadd.f32 0.0036580483, %v2904_v8  ;;  %v2916_v38 = vadd.f32 0.014752088, %v2915_v26  ;;  %v13752_v47 = vsub.f32 %v13750_v62, %v13751_v51  ;;  %v1237_v39 = vmul.f32 0.5, %v9906_v7 }
 0x35a   :  { %v3337_v15 = vadd.f32 1.0, %v6828_v41  ;;  %v2845_v46 = vsub.f32 1.0, %v2844_v56  ;;  %v10145_v16 = vmin.f32 %v2940_v23, 16.0  ;;  %v2854_v20 = vand.u32 2147483648, %v10106_v59 }
 0x35b   :  { %v1080_v37 = vmul.f32 %v10132_v48, %v13752_v47  ;;  %v2880_v21 = vadd.f32 0.4994258, %v2879_v52  ;;  %v2906_v27 = vmul.f32 %v2905_v63, %v10111_v9  ;;  %v2917_v33 = vmul.f32 %v2916_v38, %v10111_v9 }
 0x35c   :  { %vm1014_vm12 = vweird.f32 %v9559_v13  ;;  %vm1015_vm13 = vweird.f32 %v9759_v3  ;;  %v3387_v7 = vmul.f32 %v3337_v15, %v1237_v39  ;;  %v2846_v34 = vmul.f32 %v7060_v61, %v2845_v46  ;;  %v10153_v45 = vpop.eup %7061  ;;  %v13754_v39 = vld [vmem:[#allocation48_spill] sm:$0xff] }
 0x35d   :  { %vm2849_vm14 = vweird.f32 %v7060_v61  ;;  %v2868_v4 = vmul.f32 %v2867_v29, %v10075_v49  ;;  %v2832_v1 = vmul.f32 %v2831_v57, %v9977_v55  ;;  %v2881_v54 = vmul.f32 %v2880_v21, %v10075_v49  ;;  %vm1016_vm2 = vmor %vm1014_vm12, %vm1015_vm13 }
 0x35e   :  { %v2918_v23 = vadd.f32 0.112945676, %v2917_v33  ;;  %v1136_v40 = vmul.f32 %v7782_v0, %v1080_v37  ;;  %3632 = vmatmul.f32.gmra.mxu3 %v3387_v7  ;;  %3816 = vmatmul.f32.gmra.mxu1 %v3387_v7  ;;  %v2847_v8 = vadd.f32 %v7060_v61, %v2846_v34  ;;  %vm2848_vm15 = vweird.f32 %v10106_v59  ;;  %v13753_v37 = vld [vmem:[#allocation58_spill] sm:$0xff] }
 0x35f   :  { %v2907_v26 = vadd.f32 0.05243302, %v2906_v27  ;;  %v2942_v41 = vmul.f32 2.1237322e-06, %v10145_v16  ;;  %vm2850_vm0 = vmor %vm2848_vm15, %vm2849_vm14  ;;  %v2855_v56 = vor.u32 1.1754944e-38, %v2854_v20  ;;  %v10160_v29 = vadd.f32 1.0, %v2881_v54 }
 0x360   :  { %v2919_v52 = vmul.f32 %v2918_v23, %v10111_v9  ;;  %v2953_v55 = vmul.f32 3.8918573e-05, %v10145_v16  ;;  %v2851_v57 = vsel %vm2850_vm0, %v7060_v61, %v2847_v8  ;;  %vm2853_vm1 = vcmp.eq.f32.partialorder %v2852_v25, 8.507059e+37  ;;  %v13755_v25 = vld [vmem:[#allocation49_spill] sm:$0xff] }
 0x361   :  { %v2869_v63 = vadd.f32 0.18741608, %v2868_v4  ;;  %v2943_v38 = vadd.f32 0.00028619796, %v2942_v41  ;;  %v1013_v62 = vmul.f32 %v9759_v3, %v1012_v35  ;;  %v2856_v59 = vsel %vm2853_vm1, %v2855_v56, %v2851_v57 }
 0x362   :  { %7063 = vrcp.f32 %v10160_v29  ;;  %v10169_v47 = vadd.f32 %v7794_v36, %v1136_v40  ;;  %v759_v15 = vsub.f32 %v13754_v39, %v13753_v37  ;;  %v2857_v46 = vmul.f32 %v2856_v59, %v2832_v1 }
 0x363   :  { %v2908_v31 = vmul.f32 %v2907_v26, %v10111_v9  ;;  %v2920_v61 = vadd.f32 0.4994258, %v2919_v52  ;;  %v760_v12 = vsub.f32 %v13755_v25, %v13753_v37  ;;  %v10179_v22 = vmul.f32 %v9806_v58, %v1022_v14 }
 0x364   :  { %v2944_v35 = vmul.f32 %v2943_v38, %v10145_v16  ;;  %v2954_v20 = vadd.f32 0.001143296, %v2953_v55  ;;  %v1029_v21 = vmul.f32 %v10153_v45, %v10056_v24  ;;  %v6829_v27 = vclamps-f32 %v2857_v46, 1.0 }
 0x365   :  { %v2870_v33 = vmul.f32 %v2869_v63, %v10075_v49  ;;  %v2921_v7 = vmul.f32 %v2920_v61, %v10111_v9  ;;  %v10188_v1 = vmul.f32 0.70710677, %v10169_v47  ;;  %v13757_v14 = vsub.f32 %v13756_v43, %v13751_v51 }
 0x366   :  { %v2945_v34 = vadd.f32 0.0036580483, %v2944_v35  ;;  %v2955_v4 = vmul.f32 %v2954_v20, %v10145_v16  ;;  %v1238_v23 = vmul.f32 0.5, %v9956_v6  ;;  %v3338_v40 = vadd.f32 1.0, %v6829_v27 }
 0x367   :  { %v1081_v54 = vmul.f32 %v10132_v48, %v13757_v14  ;;  %v2909_v8 = vadd.f32 0.18741608, %v2908_v31  ;;  %v10195_v26 = vadd.f32 1.0, %v2921_v7  ;;  %v2980_v51 = vmul.f32 %v10188_v1, %v10188_v1 }
 0x368   :  { %v7064_v49 = vpop.eup %7063  ;;  %v2946_v41 = vmul.f32 %v2945_v34, %v10145_v16  ;;  %v2956_v56 = vadd.f32 0.014752088, %v2955_v4  ;;  %v10206_v6 = vmul.f32 %v10153_v45, %v1029_v21  ;;  %v3388_v52 = vmul.f32 %v3338_v40, %v1238_v23 }
 0x369   :  { %v1137_v48 = vmul.f32 %v7800_v28, %v1081_v54  ;;  %v2884_v55 = vmul.f32 %v7064_v49, %v10160_v29  ;;  %v10210_v57 = vsel %vm1016_vm2, %v9759_v3, %v1013_v62  ;;  %v2871_v63 = vadd.f32 1.1283791, %v2870_v33 }
 0x36a   :  { %v2892_v13 = vand.u32 2147483647, %v10160_v29  ;;  %v2894_v38 = vand.u32 2147483648, %v10160_v29  ;;  %7065 = vrcp.f32 %v10195_v26  ;;  %3543 = vmatmul.f32.gmra.mxu2 %v3388_v52  ;;  %3727 = vmatmul.f32.gmra.mxu0 %v3388_v52  ;;  %v2947_v46 = vadd.f32 0.05243302, %v2946_v41 }
 0x36b   :  { %v2885_v59 = vsub.f32 1.0, %v2884_v55  ;;  %v2957_v31 = vmul.f32 %v2956_v56, %v10145_v16  ;;  %v10216_v61 = vmin.f32 %v2980_v51, 16.0  ;;  %vm2889_vm3 = vweird.f32 %v7064_v49  ;;  %v3842_v56 = vld [vmem:[#allocation5 + $0x20] sm:$0xff]  ;;  %v3845_v51 = vld [vmem:[#allocation5 + $0x38] sm:$0xff] }
 0x36c   :  { %v2910_v35 = vmul.f32 %v2909_v8, %v10111_v9  ;;  %v10220_v3 = vadd.f32 %v7831_v18, %v1137_v48  ;;  %v1082_v62 = vmul.f32 %v10210_v57, %v757_v60  ;;  %v2948_v21 = vmul.f32 %v2947_v46, %v10145_v16  ;;  %v3874_v48 = vld [vmem:[#allocation5 + $0x120] sm:$0xff]  ;;  %3921 = vmatpush.msrb.mxu2 %v3842_v56  ;;  %v3877_v55 = vld [vmem:[#allocation5 + $0x138] sm:$0xff] }
 0x36d   :  { %v2886_v20 = vmul.f32 %v7064_v49, %v2885_v59  ;;  %v2958_v27 = vadd.f32 0.112945676, %v2957_v31  ;;  %v2982_v33 = vmul.f32 2.1237322e-06, %v10216_v61  ;;  %v1239_v7 = vmul.f32 0.5, %v10042_v17  ;;  %4104 = vmatpush.msra.mxu0 %v3845_v51  ;;  %4013 = vmatpush.msrb.mxu3 %v3874_v48 }
 0x36e   :  { %v2872_v34 = vmul.f32 %v2871_v63, %v10054_v42  ;;  %v2993_v9 = vmul.f32 3.8918573e-05, %v10216_v61  ;;  %v10232_v4 = vmul.f32 0.70710677, %v10220_v3  ;;  %vm2888_vm4 = vweird.f32 %v10160_v29  ;;  %4196 = vmatpush.msra.mxu1 %v3877_v55 }
 0x36f   :  { %v2887_v43 = vadd.f32 %v7064_v49, %v2886_v20  ;;  %v2959_v44 = vmul.f32 %v2958_v27, %v10145_v16  ;;  %v2983_v60 = vadd.f32 0.00028619796, %v2982_v33  ;;  %vm2890_vm5 = vmor %vm2888_vm4, %vm2889_vm3  ;;  %v2895_v54 = vor.u32 1.1754944e-38, %v2894_v38 }
 0x370   :  { %v7066_v14 = vpop.eup %7065  ;;  %v2911_v23 = vadd.f32 1.1283791, %v2910_v35  ;;  %v2994_v40 = vadd.f32 0.001143296, %v2993_v9  ;;  %v1138_v17 = vmul.f32 %v7782_v0, %v1082_v62  ;;  %vm2893_vm6 = vcmp.eq.f32.partialorder %v2892_v13, 8.507059e+37 }
 0x371   :  { %v2891_v42 = vsel %vm2890_vm5, %v7064_v49, %v2887_v43  ;;  %v2924_v8 = vmul.f32 %v7066_v14, %v10195_v26  ;;  %v2949_v41 = vadd.f32 0.18741608, %v2948_v21  ;;  %v2960_v52 = vadd.f32 0.4994258, %v2959_v44 }
 0x372   :  { %v2896_v29 = vsel %vm2893_vm6, %v2895_v54, %v2891_v42  ;;  %v2984_v63 = vmul.f32 %v2983_v60, %v10216_v61  ;;  %v3020_v38 = vmul.f32 %v10232_v4, %v10232_v4  ;;  %vm1024_vm7 = vweird.f32 %v9731_v30  ;;  %v10257_v60 = vpop.f32.mrf.mxu0 }
 0x373   :  { %vm1025_vm8 = vweird.f32 %v9806_v58  ;;  %v2897_v49 = vmul.f32 %v2896_v29, %v2872_v34  ;;  %v2925_v13 = vsub.f32 1.0, %v2924_v8  ;;  %v2932_v59 = vand.u32 2147483647, %v10195_v26 }
 0x374   :  { %v2934_v46 = vand.u32 2147483648, %v10195_v26  ;;  %v2961_v31 = vmul.f32 %v2960_v52, %v10145_v16  ;;  %v2985_v35 = vadd.f32 0.0036580483, %v2984_v63  ;;  %v2995_v62 = vmul.f32 %v2994_v40, %v10216_v61  ;;  %vm1026_vm13 = vmor %vm1024_vm7, %vm1025_vm8 }
 0x375   :  { %v10249_v20 = vadd.f32 %v7794_v36, %v1138_v17  ;;  %v6830_v21 = vclamps-f32 %v2897_v49, 1.0  ;;  %v2912_v27 = vmul.f32 %v2911_v23, %v10096_v2  ;;  %v2926_v33 = vmul.f32 %v7066_v14, %v2925_v13 }
 0x376   :  { %vm2929_vm9 = vweird.f32 %v7066_v14  ;;  %v2950_v34 = vmul.f32 %v2949_v41, %v10145_v16  ;;  %v10253_v9 = vadd.f32 1.0, %v2961_v31  ;;  %v2996_v43 = vadd.f32 0.014752088, %v2995_v62 }
 0x377   :  { %v10255_v44 = vmin.f32 %v3020_v38, 16.0  ;;  %v3339_v54 = vadd.f32 1.0, %v6830_v21  ;;  %v2927_v42 = vadd.f32 %v7066_v14, %v2926_v33  ;;  %vm2928_vm10 = vweird.f32 %v10195_v26  ;;  %v13758_v26 = vld [vmem:[#allocation53_spill] sm:$0xff] }
 0x378   :  { %v2986_v40 = vmul.f32 %v2985_v35, %v10216_v61  ;;  %vm2930_vm11 = vmor %vm2928_vm10, %vm2929_vm9  ;;  %vm2933_vm12 = vcmp.eq.f32.partialorder %v2932_v59, 8.507059e+37  ;;  %v2935_v2 = vor.u32 1.1754944e-38, %v2934_v46  ;;  %7067 = vrcp.f32 %v10253_v9 }
 0x379   :  { %v10263_v16 = vmul.f32 0.70710677, %v10249_v20  ;;  %v3389_v23 = vmul.f32 %v3339_v54, %v1239_v7  ;;  %v2931_v17 = vsel %vm2930_vm11, %v7066_v14, %v2927_v42  ;;  %v2997_v8 = vmul.f32 %v2996_v43, %v10216_v61 }
 0x37a   :  { %v1083_v41 = vmul.f32 %v10210_v57, %v758_v11  ;;  %v761_v56 = vsub.f32 %v13758_v26, %v9832_v5  ;;  %v2936_v51 = vsel %vm2933_vm12, %v2935_v2, %v2931_v17  ;;  %v2951_v48 = vadd.f32 1.1283791, %v2950_v34  ;;  %v10280_v57 = vpop.f32.mrf.mxu1  ;;  %v10299_v34 = vpop.f32.mrf.mxu2 }
 0x37b   :  { %v3022_v29 = vmul.f32 2.1237322e-06, %v10255_v44  ;;  %3635 = vmatmul.f32.gmra.mxu3 %v3389_v23  ;;  %3819 = vmatmul.f32.gmra.mxu1 %v3389_v23  ;;  %v2937_v52 = vmul.f32 %v2936_v51, %v2912_v27  ;;  %v2987_v55 = vadd.f32 0.05243302, %v2986_v40  ;;  %v2998_v7 = vadd.f32 0.112945676, %v2997_v8  ;;  %v10303_v42 = vpop.f32.mrf.mxu0  ;;  %v10311_v51 = vpop.f32.mrf.mxu3 }
 0x37c   :  { %v3033_v14 = vmul.f32 3.8918573e-05, %v10255_v44  ;;  %v10275_v63 = vmul.f32 0.5, %v10206_v6  ;;  %v1240_v10 = vmul.f32 0.5, %v10078_v32  ;;  %v3060_v11 = vmul.f32 %v10263_v16, %v10263_v16 }
 0x37d   :  { %v3023_v19 = vadd.f32 0.00028619796, %v3022_v29  ;;  %v6831_v38 = vclamps-f32 %v2937_v52, 1.0  ;;  %v2999_v49 = vmul.f32 %v2998_v7, %v10216_v61  ;;  %v1139_v59 = vmul.f32 %v7800_v28, %v1083_v41 }
 0x37e   :  { %v3034_v13 = vadd.f32 0.001143296, %v3033_v14  ;;  %v7068_v46 = vpop.eup %7067  ;;  %v2952_v32 = vmul.f32 %v2951_v48, %v10117_v53  ;;  %v2974_v6 = vand.u32 2147483648, %v10253_v9  ;;  %v10291_v35 = vmin.f32 %v3060_v11, 16.0 }
 0x37f   :  { %v3024_v31 = vmul.f32 %v3023_v19, %v10255_v44  ;;  %v3340_v62 = vadd.f32 1.0, %v6831_v38  ;;  %v2964_v21 = vmul.f32 %v7068_v46, %v10253_v9  ;;  %v2988_v27 = vmul.f32 %v2987_v55, %v10216_v61 }
 0x380   :  { %v10297_v33 = vsel %vm1026_vm13, %v9806_v58, %v10179_v22  ;;  %v3000_v30 = vadd.f32 0.4994258, %v2999_v49  ;;  %v3035_v53 = vmul.f32 %v3034_v13, %v10255_v44  ;;  %v3062_v54 = vmul.f32 2.1237322e-06, %v10291_v35 }
 0x381   :  { %v3025_v43 = vadd.f32 0.0036580483, %v3024_v31  ;;  %v3390_v40 = vmul.f32 %v3340_v62, %v1240_v10  ;;  %v2965_v2 = vsub.f32 1.0, %v2964_v21  ;;  %v3073_v23 = vmul.f32 3.8918573e-05, %v10291_v35 }
 0x382   :  { %v10307_v17 = vadd.f32 %v7831_v18, %v1139_v59  ;;  %v3001_v58 = vmul.f32 %v3000_v30, %v10216_v61  ;;  %v3036_v8 = vadd.f32 0.014752088, %v3035_v53  ;;  %v3063_v41 = vadd.f32 0.00028619796, %v3062_v54  ;;  %v10328_v31 = vpop.f32.mrf.mxu1 }
 0x383   :  { %v3026_v22 = vmul.f32 %v3025_v43, %v10255_v44  ;;  %3546 = vmatmul.f32.gmra.mxu2 %v3390_v40  ;;  %v2966_v48 = vmul.f32 %v7068_v46, %v2965_v2  ;;  %vm2969_vm14 = vweird.f32 %v7068_v46  ;;  %v2972_v29 = vand.u32 2147483647, %v10253_v9  ;;  %3730 = vmatmul.f32.gmra.mxu0 %v3390_v40  ;;  %v10336_v2 = vpop.f32.mrf.mxu2 }
 0x384   :  { %v3074_v52 = vadd.f32 0.001143296, %v3073_v23  ;;  %v10314_v55 = vadd.f32 1.0, %v3001_v58  ;;  %v3037_v14 = vmul.f32 %v3036_v8, %v10255_v44  ;;  %v3064_v10 = vmul.f32 %v3063_v41, %v10291_v35  ;;  %v3840_v41 = vld [vmem:[#allocation5 + $0x10] sm:$0xff] }
 0x385   :  { %v3027_v7 = vadd.f32 0.05243302, %v3026_v22  ;;  %v2967_v19 = vadd.f32 %v7068_v46, %v2966_v48  ;;  %vm2968_vm15 = vweird.f32 %v10253_v9  ;;  %v1084_v38 = vmul.f32 %v10297_v33, %v759_v15  ;;  %3922 = vmatpush.msrb.mxu2 %v3840_v41 }
 0x386   :  { %v3075_v11 = vmul.f32 %v3074_v52, %v10291_v35  ;;  %vm2970_vm0 = vmor %vm2968_vm15, %vm2969_vm14  ;;  %v2975_v49 = vor.u32 1.1754944e-38, %v2974_v6  ;;  %v2989_v13 = vadd.f32 0.18741608, %v2988_v27  ;;  %7069 = vrcp.f32 %v10314_v55  ;;  %v13759_v6 = vld [vmem:[#allocation54_spill] sm:$0xff] }
 0x387   :  { %v10326_v59 = vmul.f32 0.70710677, %v10307_v17  ;;  %v2971_v62 = vsel %vm2970_vm0, %v7068_v46, %v2967_v19  ;;  %vm2973_vm1 = vcmp.eq.f32.partialorder %v2972_v29, 8.507059e+37  ;;  %v3038_v9 = vadd.f32 0.112945676, %v3037_v14  ;;  %v10350_v14 = vpop.f32.mrf.mxu3 }
 0x388   :  { %v3065_v21 = vadd.f32 0.0036580483, %v3064_v10  ;;  %v1032_v30 = vsub.f32 1.5, %v10275_v63  ;;  %v2976_v43 = vsel %vm2973_vm1, %v2975_v49, %v2971_v62  ;;  %v3028_v39 = vmul.f32 %v3027_v7, %v10255_v44 }
 0x389   :  { %v3076_v15 = vadd.f32 0.014752088, %v3075_v11  ;;  %v762_v27 = vsub.f32 %v13759_v6, %v9832_v5  ;;  %v2977_v53 = vmul.f32 %v2976_v43, %v2952_v32  ;;  %v3039_v54 = vmul.f32 %v3038_v9, %v10255_v44  ;;  %v10345_v32 = vpop.f32.mrf.mxu0 }
 0x38a   :  { %v1140_v40 = vmul.f32 %v7782_v0, %v1084_v38  ;;  %v2990_v46 = vmul.f32 %v2989_v13, %v10216_v61  ;;  %v3066_v23 = vmul.f32 %v3065_v21, %v10291_v35  ;;  %v3100_v58 = vmul.f32 %v10326_v59, %v10326_v59 }
 0x38b   :  { %v3077_v63 = vmul.f32 %v3076_v15, %v10291_v35  ;;  %vm1034_vm2 = vweird.f32 %v10056_v24  ;;  %vm1035_vm3 = vweird.f32 %v10153_v45  ;;  %v6832_v22 = vclamps-f32 %v2977_v53, 1.0 }
 0x38c   :  { %v3040_v8 = vadd.f32 0.4994258, %v3039_v54  ;;  %v7070_v48 = vpop.eup %7069  ;;  %v1033_v29 = vmul.f32 %v10153_v45, %v1032_v30  ;;  %v3029_v61 = vadd.f32 0.18741608, %v3028_v39  ;;  %v10348_v7 = vmin.f32 %v3100_v58, 16.0  ;;  %v10365_v54 = vpop.f32.mrf.mxu1  ;;  %vm1036_vm8 = vmor %vm1034_vm2, %vm1035_vm3 }
 0x38d   :  { %v3078_v52 = vadd.f32 0.112945676, %v3077_v63  ;;  %v1241_v10 = vmul.f32 0.5, %v10104_v50  ;;  %v3341_v19 = vadd.f32 1.0, %v6832_v22  ;;  %v3004_v11 = vmul.f32 %v7070_v48, %v10314_v55 }
 0x38e   :  { %v10355_v38 = vadd.f32 %v7794_v36, %v1140_v40  ;;  %v2991_v49 = vadd.f32 1.1283791, %v2990_v46  ;;  %v3012_v13 = vand.u32 2147483647, %v10314_v55  ;;  %v3041_v62 = vmul.f32 %v3040_v8, %v10255_v44 }
 0x38f   :  { %v3067_v9 = vadd.f32 0.05243302, %v3066_v23  ;;  %v3391_v21 = vmul.f32 %v3341_v19, %v1241_v10  ;;  %v3005_v30 = vsub.f32 1.0, %v3004_v11  ;;  %v3014_v43 = vand.u32 2147483648, %v10314_v55 }
 0x390   :  { %v3079_v39 = vmul.f32 %v3078_v52, %v10291_v35  ;;  %vm3009_vm4 = vweird.f32 %v7070_v48  ;;  %v3030_v50 = vmul.f32 %v3029_v61, %v10255_v44  ;;  %v10362_v15 = vadd.f32 1.0, %v3041_v62  ;;  %v10376_v52 = vpop.f32.mrf.mxu2 }
 0x391   :  { %v3102_v53 = vmul.f32 2.1237322e-06, %v10348_v7  ;;  %3638 = vmatmul.f32.gmra.mxu3 %v3391_v21  ;;  %3822 = vmatmul.f32.gmra.mxu1 %v3391_v21  ;;  %v3006_v40 = vmul.f32 %v7070_v48, %v3005_v30  ;;  %v3113_v23 = vmul.f32 3.8918573e-05, %v10348_v7  ;;  %v10369_v63 = vmul.f32 0.70710677, %v10355_v38  ;;  %v10385_v11 = vpop.f32.mrf.mxu0 }
 0x392   :  { %v3080_v46 = vadd.f32 0.4994258, %v3079_v39  ;;  %v2992_v58 = vmul.f32 %v2991_v49, %v10188_v1  ;;  %vm3008_vm5 = vweird.f32 %v10314_v55  ;;  %7071 = vrcp.f32 %v10362_v15 }
 0x393   :  { %v3068_v44 = vmul.f32 %v3067_v9, %v10291_v35  ;;  %v3007_v22 = vadd.f32 %v7070_v48, %v3006_v40  ;;  %v3015_v8 = vor.u32 1.1754944e-38, %v3014_v43  ;;  %v3103_v61 = vadd.f32 0.00028619796, %v3102_v53  ;;  %vm3010_vm6 = vmor %vm3008_vm5, %vm3009_vm4 }
 0x394   :  { %v3081_v41 = vmul.f32 %v3080_v46, %v10291_v35  ;;  %v3031_v10 = vadd.f32 1.1283791, %v3030_v50  ;;  %v3114_v19 = vadd.f32 0.001143296, %v3113_v23  ;;  %v3140_v1 = vmul.f32 %v10369_v63, %v10369_v63 }
 0x395   :  { %v1085_v55 = vmul.f32 %v10297_v33, %v760_v12  ;;  %v3011_v49 = vsel %vm3010_vm6, %v7070_v48, %v3007_v22  ;;  %vm3013_vm7 = vcmp.eq.f32.partialorder %v3012_v13, 8.507059e+37  ;;  %v3104_v9 = vmul.f32 %v3103_v61, %v10348_v7  ;;  %v10400_v12 = vpop.f32.mrf.mxu3 }
 0x396   :  { %v10387_v62 = vadd.f32 1.0, %v3081_v41  ;;  %v3016_v21 = vsel %vm3013_vm7, %v3015_v8, %v3011_v49  ;;  %v3069_v30 = vadd.f32 0.18741608, %v3068_v44  ;;  %v3115_v43 = vmul.f32 %v3114_v19, %v10348_v7  ;;  %v10415_v44 = vpop.f32.mrf.mxu1 }
 0x397   :  { %v10395_v37 = vmin.f32 %v3140_v1, 16.0  ;;  %v10398_v25 = vsel %vm1036_vm8, %v10153_v45, %v1033_v29  ;;  %v1242_v33 = vmul.f32 0.5, %v10169_v47  ;;  %v3017_v48 = vmul.f32 %v3016_v21, %v2992_v58 }
 0x398   :  { %7073 = vrcp.f32 %v10387_v62  ;;  %v7072_v13 = vpop.eup %7071  ;;  %v10405_v24 = vmul.f32 0.5, %v10220_v3  ;;  %v3032_v39 = vmul.f32 %v3031_v10, %v10232_v4  ;;  %v3105_v50 = vadd.f32 0.0036580483, %v3104_v9  ;;  %v10423_v9 = vpop.f32.mrf.mxu2 }
 0x399   :  { %v1141_v53 = vmul.f32 %v7800_v28, %v1085_v55  ;;  %v6833_v40 = vclamps-f32 %v3017_v48, 1.0  ;;  %v3044_v45 = vmul.f32 %v7072_v13, %v10362_v15  ;;  %v3052_v29 = vand.u32 2147483647, %v10362_v15 }
 0x39a   :  { %v3116_v46 = vadd.f32 0.014752088, %v3115_v43  ;;  %v3054_v47 = vand.u32 2147483648, %v10362_v15  ;;  %v3070_v23 = vmul.f32 %v3069_v30, %v10291_v35  ;;  %v3106_v58 = vmul.f32 %v3105_v50, %v10348_v7  ;;  %v10430_v50 = vpop.f32.mrf.mxu0 }
 0x39b   :  { %v3142_v3 = vmul.f32 2.1237322e-06, %v10395_v37  ;;  %v3342_v4 = vadd.f32 1.0, %v6833_v40  ;;  %v3045_v22 = vsub.f32 1.0, %v3044_v45  ;;  %v3153_v41 = vmul.f32 3.8918573e-05, %v10395_v37 }
 0x39c   :  { %v3117_v8 = vmul.f32 %v3116_v46, %v10348_v7  ;;  %vm3048_vm9 = vweird.f32 %v10362_v15  ;;  %vm3049_vm10 = vweird.f32 %v7072_v13  ;;  %v10421_v10 = vadd.f32 %v7831_v18, %v1141_v53 }
 0x39d   :  { %v3143_v61 = vadd.f32 0.00028619796, %v3142_v3  ;;  %v3392_v19 = vmul.f32 %v3342_v4, %v1242_v33  ;;  %v3046_v1 = vmul.f32 %v7072_v13, %v3045_v22  ;;  %v3154_v49 = vadd.f32 0.001143296, %v3153_v41  ;;  %vm10435_vm12 = vmor %vm3048_vm9, %vm3049_vm10  ;;  %v3872_v3 = vld [vmem:[#allocation5 + $0x110] sm:$0xff]  ;;  %v3875_v4 = vld [vmem:[#allocation5 + $0x128] sm:$0xff] }
 0x39e   :  { %v7074_v35 = vpop.eup %7073  ;;  %v3118_v55 = vadd.f32 0.112945676, %v3117_v8  ;;  %vm10425_vm11 = vcmp.eq.f32.partialorder %v3052_v29, 8.507059e+37  ;;  %v3055_v30 = vor.u32 1.1754944e-38, %v3054_v47  ;;  %v3107_v48 = vadd.f32 0.05243302, %v3106_v58  ;;  %v10447_v8 = vpop.f32.mrf.mxu3  ;;  %4014 = vmatpush.msrb.mxu3 %v3872_v3  ;;  %4197 = vmatpush.msra.mxu1 %v3875_v4 }
 0x39f   :  { %v3084_v43 = vmul.f32 %v7074_v35, %v10387_v62  ;;  %3549 = vmatmul.f32.gmra.mxu2 %v3392_v19  ;;  %v3047_v53 = vadd.f32 %v7072_v13, %v3046_v1  ;;  %3733 = vmatmul.f32.gmra.mxu0 %v3392_v19  ;;  %v3071_v40 = vadd.f32 1.1283791, %v3070_v23  ;;  %v1086_v29 = vmul.f32 %v10398_v25, %v761_v56  ;;  %v3843_v58 = vld [vmem:[#allocation5 + $0x28] sm:$0xff] }
 0x3a0   :  { %v3119_v45 = vmul.f32 %v3118_v55, %v10348_v7  ;;  %v3092_v47 = vand.u32 2147483647, %v10387_v62  ;;  %v3144_v15 = vmul.f32 %v3143_v61, %v10395_v37  ;;  %v3155_v22 = vmul.f32 %v3154_v49, %v10395_v37  ;;  %4105 = vmatpush.msra.mxu0 %v3843_v58  ;;  %v10462_v58 = vpop.f32.mrf.mxu1  ;;  %v10473_v3 = vpop.f32.mrf.mxu2 }
 0x3a1   :  { %v3085_v46 = vsub.f32 1.0, %v3084_v43  ;;  %v3051_v23 = vsel %vm10435_vm12, %v7072_v13, %v3047_v53  ;;  %v3094_v41 = vand.u32 2147483648, %v10387_v62  ;;  %v10453_v56 = vmul.f32 0.70710677, %v10421_v10 }
 0x3a2   :  { %v3120_v26 = vadd.f32 0.4994258, %v3119_v45  ;;  %v3056_v19 = vsel %vm10425_vm11, %v3055_v30, %v3051_v23  ;;  %vm3089_vm13 = vweird.f32 %v7074_v35  ;;  %v3108_v61 = vmul.f32 %v3107_v48, %v10348_v7 }
 0x3a3   :  { %v3086_v1 = vmul.f32 %v7074_v35, %v3085_v46  ;;  %v3057_v55 = vmul.f32 %v3056_v19, %v3032_v39  ;;  %v3072_v49 = vmul.f32 %v3071_v40, %v10263_v16  ;;  %v1142_v43 = vmul.f32 %v7782_v0, %v1086_v29 }
 0x3a4   :  { %v3121_v13 = vmul.f32 %v3120_v26, %v10348_v7  ;;  %vm3088_vm14 = vweird.f32 %v10387_v62  ;;  %v3145_v33 = vadd.f32 0.0036580483, %v3144_v15  ;;  %v3156_v45 = vadd.f32 0.014752088, %v3155_v22 }
 0x3a5   :  { %v3087_v53 = vadd.f32 %v7074_v35, %v3086_v1  ;;  %v6834_v21 = vclamps-f32 %v3057_v55, 1.0  ;;  %vm3090_vm15 = vmor %vm3088_vm14, %vm3089_vm13  ;;  %v3095_v30 = vor.u32 1.1754944e-38, %v3094_v41  ;;  %v3180_v39 = vmul.f32 %v10453_v56, %v10453_v56 }
 0x3a6   :  { %v10464_v46 = vadd.f32 1.0, %v3121_v13  ;;  %vm3093_vm0 = vcmp.eq.f32.partialorder %v3092_v47, 8.507059e+37  ;;  %v3109_v48 = vadd.f32 0.18741608, %v3108_v61  ;;  %v3157_v0 = vmul.f32 %v3156_v45, %v10395_v37  ;;  %v10480_v47 = vpop.f32.mrf.mxu0  ;;  %v10486_v19 = vpop.f32.mrf.mxu3 }
 0x3a7   :  { %v3091_v16 = vsel %vm3090_vm15, %v7074_v35, %v3087_v53  ;;  %v3343_v40 = vadd.f32 1.0, %v6834_v21  ;;  %v10471_v62 = vadd.f32 %v7794_v36, %v1142_v43  ;;  %v3146_v15 = vmul.f32 %v3145_v33, %v10395_v37 }
 0x3a8   :  { %v3096_v29 = vsel %vm3093_vm0, %v3095_v30, %v3091_v16  ;;  %7075 = vrcp.f32 %v10464_v46  ;;  %v1087_v35 = vmul.f32 %v10398_v25, %v762_v27  ;;  %v3158_v23 = vadd.f32 0.112945676, %v3157_v0  ;;  %v10499_v30 = vpop.f32.mrf.mxu1 }
 0x3a9   :  { %v3097_v4 = vmul.f32 %v3096_v29, %v3072_v49  ;;  %v3393_v22 = vmul.f32 %v3343_v40, %v10405_v24  ;;  %v10483_v41 = vmin.f32 %v3180_v39, 16.0  ;;  %v3110_v36 = vmul.f32 %v3109_v48, %v10348_v7 }
 0x3aa   :  { %v3159_v1 = vmul.f32 %v3158_v23, %v10395_v37  ;;  %v10492_v27 = vmul.f32 0.70710677, %v10471_v62  ;;  %v1244_v25 = vmul.f32 0.5, %v10249_v20  ;;  %v3147_v61 = vadd.f32 0.05243302, %v3146_v15 }
 0x3ab   :  { %v6835_v26 = vclamps-f32 %v3097_v4, 1.0  ;;  %3641 = vmatmul.f32.gmra.mxu3 %v3393_v22  ;;  %3825 = vmatmul.f32.gmra.mxu1 %v3393_v22  ;;  %v3182_v5 = vmul.f32 2.1237322e-06, %v10483_v41  ;;  %v3193_v6 = vmul.f32 3.8918573e-05, %v10483_v41  ;;  %v1143_v55 = vmul.f32 %v7800_v28, %v1087_v35  ;;  %v10514_v22 = vpop.f32.mrf.mxu2 }
 0x3ac   :  { %v3160_v49 = vadd.f32 0.4994258, %v3159_v1  ;;  %v3220_v53 = vmul.f32 %v10492_v27, %v10492_v27  ;;  %v3111_v45 = vadd.f32 1.1283791, %v3110_v36  ;;  %v3132_v0 = vand.u32 2147483647, %v10464_v46 }
 0x3ad   :  { %v3344_v24 = vadd.f32 1.0, %v6835_v26  ;;  %v3183_v13 = vadd.f32 0.00028619796, %v3182_v5  ;;  %v3194_v43 = vadd.f32 0.001143296, %v3193_v6  ;;  %v3134_v40 = vand.u32 2147483648, %v10464_v46 }
 0x3ae   :  { %v7076_v7 = vpop.eup %7075  ;;  %v3161_v39 = vmul.f32 %v3160_v49, %v10395_v37  ;;  %v10504_v28 = vmin.f32 %v3220_v53, 16.0  ;;  %v3148_v29 = vmul.f32 %v3147_v61, %v10395_v37  ;;  %v10512_v35 = vadd.f32 %v7831_v18, %v1143_v55  ;;  %v10518_v5 = vpop.f32.mrf.mxu0 }
 0x3af   :  { %v3394_v33 = vmul.f32 %v3344_v24, %v1244_v25  ;;  %v3124_v21 = vmul.f32 %v7076_v7, %v10464_v46  ;;  %v3184_v20 = vmul.f32 %v3183_v13, %v10483_v41  ;;  %v3195_v16 = vmul.f32 %v3194_v43, %v10483_v41  ;;  %v10523_v61 = vpop.f32.mrf.mxu3 }
 0x3b0   :  { %vm3129_vm1 = vweird.f32 %v7076_v7  ;;  %v10509_v4 = vadd.f32 1.0, %v3161_v39  ;;  %v3222_v36 = vmul.f32 2.1237322e-06, %v10504_v28  ;;  %v3233_v1 = vmul.f32 3.8918573e-05, %v10504_v28 }
 0x3b1   :  { %3552 = vmatmul.f32.gmra.mxu2 %v3394_v33  ;;  %v3125_v48 = vsub.f32 1.0, %v3124_v21  ;;  %3736 = vmatmul.f32.gmra.mxu0 %v3394_v33  ;;  %v3196_v15 = vadd.f32 0.014752088, %v3195_v16  ;;  %v3185_v26 = vadd.f32 0.0036580483, %v3184_v20  ;;  %vm3128_vm2 = vweird.f32 %v10464_v46 }
 0x3b2   :  { %7077 = vrcp.f32 %v10509_v4  ;;  %v3149_v25 = vadd.f32 0.18741608, %v3148_v29  ;;  %v3223_v18 = vadd.f32 0.00028619796, %v3222_v36  ;;  %v3112_v55 = vmul.f32 %v3111_v45, %v10326_v59  ;;  %vm3130_vm3 = vmor %vm3128_vm2, %vm3129_vm1  ;;  %v10537_v29 = vpop.f32.mrf.mxu1  ;;  %v3841_v36 = vld [vmem:[#allocation5 + $0x18] sm:$0xff] }
 0x3b3   :  { %v3126_v23 = vmul.f32 %v7076_v7, %v3125_v48  ;;  %v3197_v24 = vmul.f32 %v3196_v15, %v10483_v41  ;;  %v3135_v49 = vor.u32 1.1754944e-38, %v3134_v40  ;;  %v3234_v13 = vadd.f32 0.001143296, %v3233_v1  ;;  %v3870_v1 = vld [vmem:[#allocation5 + $0x100] sm:$0xff]  ;;  %4106 = vmatpush.msra.mxu0 %v3841_v36 }
 0x3b4   :  { %v10528_v43 = vmul.f32 0.70710677, %v10512_v35  ;;  %vm3133_vm4 = vcmp.eq.f32.partialorder %v3132_v0, 8.507059e+37  ;;  %v3186_v46 = vmul.f32 %v3185_v26, %v10483_v41  ;;  %v3224_v39 = vmul.f32 %v3223_v18, %v10504_v28  ;;  %v3838_v26 = vld [vmem:[#allocation5] sm:$0xff]  ;;  %4015 = vmatpush.msrb.mxu3 %v3870_v1 }
 0x3b5   :  { %v3127_v6 = vadd.f32 %v7076_v7, %v3126_v23  ;;  %v3198_v33 = vadd.f32 0.112945676, %v3197_v24  ;;  %v3235_v20 = vmul.f32 %v3234_v13, %v10504_v28  ;;  %v3150_v16 = vmul.f32 %v3149_v25, %v10395_v37  ;;  %3923 = vmatpush.msrb.mxu2 %v3838_v26  ;;  %v3873_v24 = vld [vmem:[#allocation5 + $0x118] sm:$0xff]  ;;  %v10544_v13 = vpop.f32.mrf.mxu2 }
 0x3b6   :  { %v3260_v59 = vmul.f32 %v10528_v43, %v10528_v43  ;;  %v3187_v23 = vadd.f32 0.05243302, %v3186_v46  ;;  %v3225_v18 = vadd.f32 0.0036580483, %v3224_v39  ;;  %4198 = vmatpush.msra.mxu1 %v3873_v24  ;;  %v10546_v46 = vpop.f32.mrf.mxu0  ;;  %vm3168_vm6 = vweird.f32 %v10509_v4 }
 0x3b7   :  { %v3131_v53 = vsel %vm3130_vm3, %v7076_v7, %v3127_v6  ;;  %v3199_v48 = vmul.f32 %v3198_v33, %v10483_v41  ;;  %v3236_v7 = vadd.f32 0.014752088, %v3235_v20  ;;  %v3174_v20 = vand.u32 2147483648, %v10509_v4 }
 0x3b8   :  { %v3136_v21 = vsel %vm3133_vm4, %v3135_v49, %v3131_v53  ;;  %v7078_v40 = vpop.eup %7077  ;;  %v10541_v25 = vmin.f32 %v3260_v59, 16.0  ;;  %v3151_v53 = vadd.f32 1.1283791, %v3150_v16 }
 0x3b9   :  { %v3137_v45 = vmul.f32 %v3136_v21, %v3112_v55  ;;  %v3164_v15 = vmul.f32 %v7078_v40, %v10509_v4  ;;  %v3200_v6 = vadd.f32 0.4994258, %v3199_v48  ;;  %v3237_v37 = vmul.f32 %v3236_v7, %v10504_v28  ;;  %v10552_v7 = vpop.f32.mrf.mxu3 }
 0x3ba   :  { %v1245_v55 = vmul.f32 0.5, %v10307_v17  ;;  %v3172_v21 = vand.u32 2147483647, %v10509_v4  ;;  %vm3169_vm5 = vweird.f32 %v7078_v40  ;;  %v3188_v17 = vmul.f32 %v3187_v23, %v10483_v41 }
 0x3bb   :  { %v6836_v0 = vclamps-f32 %v3137_v45, 1.0  ;;  %v3165_v33 = vsub.f32 1.0, %v3164_v15  ;;  %v3201_v39 = vmul.f32 %v3200_v6, %v10483_v41  ;;  %v3238_v45 = vadd.f32 0.112945676, %v3237_v37  ;;  %vm3170_vm7 = vmor %vm3168_vm6, %vm3169_vm5 }
 0x3bc   :  { %v3262_v26 = vmul.f32 2.1237322e-06, %v10541_v25  ;;  %v3273_v1 = vmul.f32 3.8918573e-05, %v10541_v25  ;;  %v3152_v6 = vmul.f32 %v3151_v53, %v10369_v63  ;;  %v3175_v23 = vor.u32 1.1754944e-38, %v3174_v20 }
 0x3bd   :  { %v3345_v49 = vadd.f32 1.0, %v6836_v0  ;;  %v3166_v48 = vmul.f32 %v7078_v40, %v3165_v33  ;;  %v10554_v16 = vadd.f32 1.0, %v3201_v39  ;;  %v3226_v0 = vmul.f32 %v3225_v18, %v10504_v28  ;;  %v10567_v53 = vpop.f32.mrf.mxu2 }
 0x3be   :  { %v3239_v15 = vmul.f32 %v3238_v45, %v10504_v28  ;;  %vm3173_vm8 = vcmp.eq.f32.partialorder %v3172_v21, 8.507059e+37  ;;  %v3263_v37 = vadd.f32 0.00028619796, %v3262_v26  ;;  %v3189_v33 = vadd.f32 0.18741608, %v3188_v17  ;;  %v10573_v26 = vpop.f32.mrf.mxu0 }
 0x3bf   :  { %v3395_v59 = vmul.f32 %v3345_v49, %v1245_v55  ;;  %v3167_v36 = vadd.f32 %v7078_v40, %v3166_v48  ;;  %7079 = vrcp.f32 %v10554_v16  ;;  %v10563_v55 = vpop.f32.mrf.mxu1  ;;  %v3227_v39 = vadd.f32 0.05243302, %v3226_v0 }
 0x3c0   :  { %v3240_v18 = vadd.f32 0.4994258, %v3239_v15  ;;  %v3274_v45 = vadd.f32 0.001143296, %v3273_v1  ;;  %v3190_v15 = vmul.f32 %v3189_v33, %v10483_v41  ;;  %v3214_v33 = vand.u32 2147483648, %v10554_v16 }
 0x3c1   :  { %3644 = vmatmul.f32.gmra.mxu3 %v3395_v59  ;;  %3828 = vmatmul.f32.gmra.mxu1 %v3395_v59  ;;  %v3171_v24 = vsel %vm3170_vm7, %v7078_v40, %v3167_v36  ;;  %v3264_v40 = vmul.f32 %v3263_v37, %v10541_v25  ;;  %v3228_v17 = vmul.f32 %v3227_v39, %v10504_v28  ;;  %v1246_v36 = vmul.f32 0.5, %v10355_v38 }
 0x3c2   :  { %v3176_v49 = vsel %vm3173_vm8, %v3175_v23, %v3171_v24  ;;  %v3241_v4 = vmul.f32 %v3240_v18, %v10504_v28  ;;  %v3275_v48 = vmul.f32 %v3274_v45, %v10541_v25  ;;  %v10578_v23 = vpop.f32.mrf.mxu3  ;;  %v3191_v41 = vadd.f32 1.1283791, %v3190_v15 }
 0x3c3   :  { %v3177_v59 = vmul.f32 %v3176_v49, %v3152_v6  ;;  %v3265_v37 = vadd.f32 0.0036580483, %v3264_v40  ;;  %v3229_v45 = vadd.f32 0.18741608, %v3228_v17  ;;  %v3212_v38 = vand.u32 2147483647, %v10554_v16 }
 0x3c4   :  { %v10569_v20 = vadd.f32 1.0, %v3241_v4  ;;  %v3276_v0 = vadd.f32 0.014752088, %v3275_v48  ;;  %vm3208_vm10 = vweird.f32 %v10554_v16 }
 0x3c5   :  { %v6837_v63 = vclamps-f32 %v3177_v59, 1.0  ;;  %v7080_v21 = vpop.eup %7079  ;;  %v3230_v17 = vmul.f32 %v3229_v45, %v10504_v28  ;;  %vm3213_vm12 = vcmp.eq.f32.partialorder %v3212_v38, 8.507059e+37 }
 0x3c6   :  { %v3204_v6 = vmul.f32 %v7080_v21, %v10554_v16  ;;  %7081 = vrcp.f32 %v10569_v20  ;;  %v3277_v49 = vmul.f32 %v3276_v0, %v10541_v25  ;;  %vm3209_vm9 = vweird.f32 %v7080_v21 }
 0x3c7   :  { %v3346_v1 = vadd.f32 1.0, %v6837_v63  ;;  %v10584_v4 = vpop.f32.mrf.mxu1  ;;  %v3266_v63 = vmul.f32 %v3265_v37, %v10541_v25  ;;  %vm3210_vm11 = vmor %vm3208_vm10, %vm3209_vm9  ;;  %v3215_v0 = vor.u32 1.1754944e-38, %v3214_v33  ;;  %v10594_v37 = vpop.f32.mrf.mxu0  ;;  %v3231_v28 = vadd.f32 1.1283791, %v3230_v17 }
 0x3c8   :  { %v3205_v18 = vsub.f32 1.0, %v3204_v6  ;;  %v3278_v59 = vadd.f32 0.112945676, %v3277_v49  ;;  %13764 = vst [vmem:[#allocation20_spill] sm:$0xff] %v10584_v4  ;;  %v3871_v49 = vld [vmem:[#allocation5 + $0x108] sm:$0xff]  ;;  %vm3248_vm14 = vweird.f32 %v10569_v20 }
 0x3c9   :  { %v3396_v24 = vmul.f32 %v3346_v1, %v1246_v36  ;;  %v3192_v36 = vmul.f32 %v3191_v41, %v10453_v56  ;;  %4199 = vmatpush.msra.mxu1 %v3871_v49  ;;  %v3267_v4 = vadd.f32 0.05243302, %v3266_v63  ;;  %v3254_v56 = vand.u32 2147483648, %v10569_v20 }
 0x3ca   :  { %v3206_v39 = vmul.f32 %v7080_v21, %v3205_v18  ;;  %v3279_v40 = vmul.f32 %v3278_v59, %v10541_v25  ;;  %v3839_v18 = vld [vmem:[#allocation5 + $0x8] sm:$0xff]  ;;  %v10598_v41 = vpop.f32.mrf.mxu3  ;;  %v3232_v49 = vmul.f32 %v3231_v28, %v10492_v27 }
 0x3cb   :  { %3555 = vmatmul.f32.gmra.mxu2 %v3396_v24  ;;  %3739 = vmatmul.f32.gmra.mxu0 %v3396_v24  ;;  %v10592_v24 = vpop.f32.mrf.mxu2  ;;  %v3268_v63 = vmul.f32 %v3267_v4, %v10541_v25  ;;  %v3255_v17 = vor.u32 1.1754944e-38, %v3254_v56 }
 0x3cc   :  { %v3207_v48 = vadd.f32 %v7080_v21, %v3206_v39  ;;  %v7082_v15 = vpop.eup %7081  ;;  %v3280_v39 = vadd.f32 0.4994258, %v3279_v40  ;;  %4107 = vmatpush.msra.mxu0 %v3839_v18  ;;  %v1247_v40 = vmul.f32 0.5, %v10421_v10 }
 0x3cd   :  { %v3244_v6 = vmul.f32 %v7082_v15, %v10569_v20  ;;  %vm3249_vm13 = vweird.f32 %v7082_v15  ;;  %v3269_v56 = vadd.f32 0.18741608, %v3268_v63 }
 0x3ce   :  { %v3211_v1 = vsel %vm3210_vm11, %v7080_v21, %v3207_v48  ;;  %v3281_v21 = vmul.f32 %v3280_v39, %v10541_v25  ;;  %v3252_v48 = vand.u32 2147483647, %v10569_v20  ;;  %vm3250_vm15 = vmor %vm3248_vm14, %vm3249_vm13  ;;  %v6491_v39 = vld [vmem:[#allocation7 + $0x78] sm:$0xff] }
 0x3cf   :  { %v3216_v16 = vsel %vm3213_vm12, %v3215_v0, %v3211_v1  ;;  %v3245_v33 = vsub.f32 1.0, %v3244_v6  ;;  %6891 = vmatpush.msra.mxu2 %v6491_v39  ;;  %v10609_v20 = vpop.f32.mrf.mxu0  ;;  %6512 = vmatpush.msrb.mxu0 %v6491_v39 }
 0x3d0   :  { %v3217_v59 = vmul.f32 %v3216_v16, %v3192_v36  ;;  %v3282_v0 = vadd.f32 1.0, %v3281_v21  ;;  %v10604_v36 = vpop.f32.mrf.mxu1  ;;  %vm3253_vm0 = vcmp.eq.f32.partialorder %v3252_v48, 8.507059e+37 }
 0x3d1   :  { %v3246_v38 = vmul.f32 %v7082_v15, %v3245_v33 }
 0x3d2   :  { %v6838_v45 = vclamps-f32 %v3217_v59, 1.0  ;;  %7083 = vrcp.f32 %v3282_v0  ;;  %v6507_v59 = vld [vmem:[#allocation7 + $0xf8] sm:$0xff]  ;;  %v10611_v27 = vpop.f32.mrf.mxu3  ;;  %vm3288_vm2 = vweird.f32 %v3282_v0 }
 0x3d3   :  { %v3247_v18 = vadd.f32 %v7082_v15, %v3246_v38  ;;  %v10607_v10 = vpop.f32.mrf.mxu2  ;;  %6907 = vmatpush.msra.mxu3 %v6507_v59  ;;  %6604 = vmatpush.msrb.mxu1 %v6507_v59  ;;  %v3270_v38 = vmul.f32 %v3269_v56, %v10541_v25 }
 0x3d4   :  { %v3347_v1 = vadd.f32 1.0, %v6838_v45 }
 0x3d5   :  { %v3251_v16 = vsel %vm3250_vm15, %v7082_v15, %v3247_v18  ;;  %v1248_v15 = vmul.f32 0.5, %v10471_v62  ;;  %v3271_v25 = vadd.f32 1.1283791, %v3270_v38 }
 0x3d6   :  { %v3397_v6 = vmul.f32 %v3347_v1, %v1247_v40  ;;  %v3256_v33 = vsel %vm3253_vm0, %v3255_v17, %v3251_v16  ;;  %v3464_v40 = vld [vmem:[%s13377_s6] sm:$0x3]  ;;  %v3294_v16 = vand.u32 2147483648, %v3282_v0 }
 0x3d7   :  { %v3257_v4 = vmul.f32 %v3256_v33, %v3232_v49  ;;  %v10618_v1 = vperm.slane %v3464_v40, 0  ;;  %v6506_v49 = vld [vmem:[#allocation7 + $0xf0] sm:$0xff]  ;;  %v10624_v62 = vpop.f32.mrf.mxu0  ;;  %v3292_v33 = vand.u32 2147483647, %v3282_v0 }
 0x3d8   :  { %3647 = vmatmul.f32.gmra.mxu3 %v3397_v6  ;;  %3831 = vmatmul.f32.gmra.mxu1 %v3397_v6  ;;  %v7084_v45 = vpop.eup %7083  ;;  %v6490_v6 = vld [vmem:[#allocation7 + $0x70] sm:$0xff]  ;;  %v10622_v39 = vpop.f32.mrf.mxu1  ;;  %13765 = vst [vmem:[#allocation21_spill] sm:$0xff] %v10624_v62 }
 0x3d9   :  { %v6839_v21 = vclamps-f32 %v3257_v4, 1.0  ;;  %v3284_v48 = vmul.f32 %v7084_v45, %v3282_v0  ;;  %6892 = vmatpush.msra.mxu2 %v6490_v6  ;;  %6908 = vmatpush.msra.mxu3 %v6506_v49  ;;  %vm3289_vm1 = vweird.f32 %v7084_v45  ;;  %v3488_v4 = vadd.f32 %v10299_v34, %v10618_v1 }
 0x3da   :  { %6513 = vmatpush.msrb.mxu0 %v6490_v6  ;;  %6605 = vmatpush.msrb.mxu1 %v6506_v49  ;;  %vm3290_vm3 = vmor %vm3288_vm2, %vm3289_vm1  ;;  %vm3293_vm4 = vcmp.eq.f32.partialorder %v3292_v33, 8.507059e+37  ;;  %v10629_v62 = vpop.f32.mrf.mxu3  ;;  %v6505_v33 = vld [vmem:[#allocation7 + $0xe8] sm:$0xff] }
 0x3db   :  { %v3348_v28 = vadd.f32 1.0, %v6839_v21  ;;  %v3285_v63 = vsub.f32 1.0, %v3284_v48  ;;  %v10620_v17 = vpop.f32.mrf.mxu2  ;;  %v3295_v21 = vor.u32 1.1754944e-38, %v3294_v16  ;;  %v3580_v38 = vadd.f32 %v10311_v51, %v3488_v4  ;;  %6909 = vmatpush.msra.mxu3 %v6505_v33 }
 0x3dc   :  { %v10641_v16 = vperm.slane %v3464_v40, 1  ;;  %6606 = vmatpush.msrb.mxu1 %v6505_v33 }
 0x3dd   :  { %v3398_v18 = vmul.f32 %v3348_v28, %v1248_v15  ;;  %v3286_v59 = vmul.f32 %v7084_v45, %v3285_v63  ;;  %v3272_v15 = vmul.f32 %v3271_v25, %v10528_v43  ;;  %v3491_v43 = vadd.f32 %v10336_v2, %v10618_v1 }
 0x3de   :  { %v3672_v2 = vadd.f32 %v10257_v60, %v10641_v16  ;;  %v3675_v60 = vadd.f32 %v10303_v42, %v10641_v16  ;;  %v6504_v42 = vld [vmem:[#allocation7 + $0xe0] sm:$0xff] }
 0x3df   :  { %3558 = vmatmul.f32.gmra.mxu2 %v3398_v18  ;;  %3742 = vmatmul.f32.gmra.mxu0 %v3398_v18  ;;  %v3287_v56 = vadd.f32 %v7084_v45, %v3286_v59  ;;  %v10636_v0 = vpop.f32.mrf.mxu0  ;;  %v3583_v51 = vadd.f32 %v10350_v14, %v3491_v43  ;;  %v6489_v59 = vld [vmem:[#allocation7 + $0x68] sm:$0xff]  ;;  %v3494_v14 = vadd.f32 %v10376_v52, %v10618_v1 }
 0x3e0   :  { %v10634_v34 = vpop.f32.mrf.mxu1  ;;  %6893 = vmatpush.msra.mxu2 %v6489_v59  ;;  %6514 = vmatpush.msrb.mxu0 %v6489_v59  ;;  %v3678_v43 = vadd.f32 %v10345_v32, %v10641_v16 }
 0x3e1   :  { %v3291_v28 = vsel %vm3290_vm3, %v7084_v45, %v3287_v56  ;;  %v1249_v45 = vmul.f32 0.5, %v10512_v35  ;;  %6910 = vmatpush.msra.mxu3 %v6504_v42  ;;  %6607 = vmatpush.msrb.mxu1 %v6504_v42 }
 0x3e2   :  { %v3296_v48 = vsel %vm3293_vm4, %v3295_v21, %v3291_v28  ;;  %v10644_v4 = vpop.f32.mrf.mxu3  ;;  %v3764_v21 = vadd.f32 %v10280_v57, %v3672_v2  ;;  %v6488_v28 = vld [vmem:[#allocation7 + $0x60] sm:$0xff]  ;;  %v3767_v57 = vadd.f32 %v10328_v31, %v3675_v60  ;;  %v6502_v60 = vld [vmem:[#allocation7 + $0xd0] sm:$0xff] }
 0x3e3   :  { %v3297_v63 = vmul.f32 %v3296_v48, %v3272_v15  ;;  %v10632_v18 = vpop.f32.mrf.mxu2  ;;  %v3586_v15 = vadd.f32 %v10400_v12, %v3494_v14  ;;  %6894 = vmatpush.msra.mxu2 %v6488_v28  ;;  %6515 = vmatpush.msrb.mxu0 %v6488_v28 }
 0x3e5   :  { %v6840_v6 = vclamps-f32 %v3297_v63, 1.0 }
 0x3e7   :  { %3924 = vmatmul.f32.vlgmr.msrb.gmra.mxu2 %v3580_v38  ;;  %4108 = vmatmul.f32.vlgmr.msra.gmra.mxu0 %v3580_v38  ;;  %v3349_v49 = vadd.f32 1.0, %v6840_v6  ;;  %v10654_v40 = vpop.f32.mrf.mxu0  ;;  %v3497_v38 = vadd.f32 %v10423_v9, %v10618_v1  ;;  %v3500_v9 = vadd.f32 %v10473_v3, %v10618_v1  ;;  %v3681_v3 = vadd.f32 %v10385_v11, %v10641_v16 }
 0x3e8   :  { %v10652_v35 = vpop.f32.mrf.mxu1  ;;  %v3684_v11 = vadd.f32 %v10430_v50, %v10641_v16  ;;  %v3687_v50 = vadd.f32 %v10480_v47, %v10641_v16  ;;  %v3690_v47 = vadd.f32 %v10518_v5, %v10641_v16  ;;  %v3693_v5 = vadd.f32 %v10546_v46, %v10641_v16 }
 0x3e9   :  { %v3399_v25 = vmul.f32 %v3349_v49, %v1249_v45  ;;  %v3589_v6 = vadd.f32 %v10447_v8, %v3497_v38  ;;  %v3770_v49 = vadd.f32 %v10365_v54, %v3678_v43  ;;  %v3592_v8 = vadd.f32 %v10486_v19, %v3500_v9  ;;  %v6485_v43 = vld [vmem:[#allocation7 + $0x48] sm:$0xff] }
 0x3ea   :  { %v10660_v48 = vpop.f32.mrf.mxu3  ;;  %v3503_v54 = vadd.f32 %v10514_v22, %v10618_v1  ;;  %v3773_v19 = vadd.f32 %v10415_v44, %v3681_v3  ;;  %v3506_v44 = vadd.f32 %v10544_v13, %v10618_v1  ;;  %v3776_v28 = vadd.f32 %v10462_v58, %v3684_v11  ;;  %v6501_v9 = vld [vmem:[#allocation7 + $0xc8] sm:$0xff] }
 0x3eb   :  { %3650 = vmatmul.f32.gmra.mxu3 %v3399_v25  ;;  %3834 = vmatmul.f32.gmra.mxu1 %v3399_v25  ;;  %v10646_v56 = vpop.f32.mrf.mxu2  ;;  %v6487_v25 = vld [vmem:[#allocation7 + $0x58] sm:$0xff]  ;;  %v3509_v13 = vadd.f32 %v10567_v53, %v10618_v1  ;;  %v3515_v3 = vadd.f32 %v10607_v10, %v10618_v1  ;;  %v3696_v10 = vadd.f32 %v10573_v26, %v10641_v16 }
 0x3ec   :  { %6895 = vmatpush.msra.mxu2 %v6487_v25  ;;  %6516 = vmatpush.msrb.mxu0 %v6487_v25  ;;  %v3595_v14 = vadd.f32 %v10523_v61, %v3503_v54  ;;  %v3598_v61 = vadd.f32 %v10552_v7, %v3506_v44  ;;  %v3699_v26 = vadd.f32 %v10594_v37, %v10641_v16 }
 0x3ed   :  { %v3601_v42 = vadd.f32 %v10578_v23, %v3509_v13  ;;  %v3782_v23 = vadd.f32 %v10537_v29, %v3690_v47  ;;  %v3785_v29 = vadd.f32 %v10563_v55, %v3693_v5  ;;  %v3518_v55 = vadd.f32 %v10620_v17, %v10618_v1 }
 0x3ee   :  { %v3524_v47 = vadd.f32 %v10646_v56, %v10618_v1 }
 0x3ef   :  { %3927 = vmatmul.f32.gmra.mxu2 %v3583_v51  ;;  %4111 = vmatmul.f32.gmra.mxu0 %v3583_v51  ;;  %v10669_v63 = vpop.f32.mrf.mxu0  ;;  %v6503_v51 = vld [vmem:[#allocation7 + $0xd8] sm:$0xff] }
 0x3f0   :  { %v10667_v12 = vpop.f32.mrf.mxu1  ;;  %6911 = vmatpush.msra.mxu3 %v6503_v51  ;;  %6608 = vmatpush.msrb.mxu1 %v6503_v51 }
 0x3f2   :  { %v10676_v31 = vpop.f32.mrf.mxu3  ;;  %6912 = vmatpush.msra.mxu3 %v6502_v60  ;;  %6609 = vmatpush.msrb.mxu1 %v6502_v60  ;;  %v6483_v60 = vld [vmem:[#allocation7 + $0x38] sm:$0xff] }
 0x3f3   :  { %4016 = vmatmul.f32.vlgmr.msrb.gmra.mxu3 %v3764_v21  ;;  %4200 = vmatmul.f32.vlgmr.msra.gmra.mxu1 %v3764_v21  ;;  %v10662_v52 = vpop.f32.mrf.mxu2  ;;  %v6486_v21 = vld [vmem:[#allocation7 + $0x50] sm:$0xff] }
 0x3f4   :  { %6896 = vmatpush.msra.mxu2 %v6486_v21  ;;  %6517 = vmatpush.msrb.mxu0 %v6486_v21 }
 0x3f5   :  { %6913 = vmatpush.msra.mxu3 %v6501_v9  ;;  %6610 = vmatpush.msrb.mxu1 %v6501_v9  ;;  %v3702_v9 = vadd.f32 %v10609_v20, %v10641_v16  ;;  %v13767_v20 = vld [vmem:[#allocation21_spill] sm:$0xff] }
 0x3f6   :  { %6897 = vmatpush.msra.mxu2 %v6485_v43  ;;  %6518 = vmatpush.msrb.mxu0 %v6485_v43  ;;  %v3705_v5 = vadd.f32 %v13767_v20, %v10641_v16 }
 0x3f7   :  { %3930 = vmatmul.f32.gmra.mxu2 %v3586_v15  ;;  %4114 = vmatmul.f32.gmra.mxu0 %v3586_v15  ;;  %v10684_v32 = vpop.f32.mrf.mxu0 }
 0x3f8   :  { %v10682_v59 = vpop.f32.mrf.mxu1 }
 0x3fa   :  { %v10691_v33 = vpop.f32.mrf.mxu3 }
 0x3fb   :  { %4019 = vmatmul.f32.gmra.mxu3 %v3767_v57  ;;  %4203 = vmatmul.f32.gmra.mxu1 %v3767_v57  ;;  %v10678_v45 = vpop.f32.mrf.mxu2 }
 0x3ff   :  { %3933 = vmatmul.f32.gmra.mxu2 %v3589_v6  ;;  %4117 = vmatmul.f32.gmra.mxu0 %v3589_v6  ;;  %v10700_v22 = vpop.f32.mrf.mxu0  ;;  %v3779_v6 = vadd.f32 %v10499_v30, %v3687_v50  ;;  %v3512_v30 = vadd.f32 %v10592_v24, %v10618_v1  ;;  %v6499_v50 = vld [vmem:[#allocation7 + $0xb8] sm:$0xff] }
 0x400   :  { %v10698_v15 = vpop.f32.mrf.mxu1 }
 0x401   :  { %v3604_v51 = vadd.f32 %v10598_v41, %v3512_v30  ;;  %v6484_v41 = vld [vmem:[#allocation7 + $0x40] sm:$0xff] }
 0x402   :  { %v10706_v38 = vpop.f32.mrf.mxu3  ;;  %6898 = vmatpush.msra.mxu2 %v6484_v41  ;;  %6519 = vmatpush.msrb.mxu0 %v6484_v41 }
 0x403   :  { %4022 = vmatmul.f32.gmra.mxu3 %v3770_v49  ;;  %4206 = vmatmul.f32.gmra.mxu1 %v3770_v49  ;;  %v10693_v2 = vpop.f32.mrf.mxu2 }
 0x404   :  { %6899 = vmatpush.msra.mxu2 %v6483_v60  ;;  %6520 = vmatpush.msrb.mxu0 %v6483_v60 }
 0x407   :  { %3936 = vmatmul.f32.gmra.mxu2 %v3592_v8  ;;  %4120 = vmatmul.f32.gmra.mxu0 %v3592_v8  ;;  %v10716_v7 = vpop.f32.mrf.mxu0 }
 0x408   :  { %v10714_v58 = vpop.f32.mrf.mxu1 }
 0x40a   :  { %v10722_v53 = vpop.f32.mrf.mxu3 }
 0x40b   :  { %4025 = vmatmul.f32.gmra.mxu3 %v3773_v19  ;;  %4209 = vmatmul.f32.gmra.mxu1 %v3773_v19  ;;  %v10708_v57 = vpop.f32.mrf.mxu2  ;;  %v3607_v19 = vadd.f32 %v10611_v27, %v3515_v3  ;;  %v13766_v27 = vld [vmem:[#allocation20_spill] sm:$0xff] }
 0x40c   :  { %v3788_v11 = vadd.f32 %v13766_v27, %v3696_v10  ;;  %v3530_v10 = vadd.f32 %v10678_v45, %v10618_v1  ;;  %v3533_v45 = vadd.f32 %v10693_v2, %v10618_v1 }
 0x40e   :  { %v3622_v27 = vadd.f32 %v10691_v33, %v3530_v10  ;;  %v3625_v33 = vadd.f32 %v10706_v38, %v3533_v45 }
 0x40f   :  { %3939 = vmatmul.f32.gmra.mxu2 %v3595_v14  ;;  %4123 = vmatmul.f32.gmra.mxu0 %v3595_v14  ;;  %v10731_v25 = vpop.f32.mrf.mxu0  ;;  %v6500_v14 = vld [vmem:[#allocation7 + $0xc0] sm:$0xff] }
 0x410   :  { %v10729_v8 = vpop.f32.mrf.mxu1  ;;  %6914 = vmatpush.msra.mxu3 %v6500_v14  ;;  %6611 = vmatpush.msrb.mxu1 %v6500_v14  ;;  %v3708_v14 = vadd.f32 %v10636_v0, %v10641_v16  ;;  %v3711_v0 = vadd.f32 %v10654_v40, %v10641_v16 }
 0x412   :  { %v10738_v54 = vpop.f32.mrf.mxu3  ;;  %6915 = vmatpush.msra.mxu3 %v6499_v50  ;;  %6612 = vmatpush.msrb.mxu1 %v6499_v50  ;;  %v3714_v50 = vadd.f32 %v10669_v63, %v10641_v16  ;;  %v3717_v63 = vadd.f32 %v10684_v32, %v10641_v16  ;;  %v3720_v32 = vadd.f32 %v10700_v22, %v10641_v16 }
 0x413   :  { %4028 = vmatmul.f32.gmra.mxu3 %v3776_v28  ;;  %4212 = vmatmul.f32.gmra.mxu1 %v3776_v28  ;;  %v10724_v49 = vpop.f32.mrf.mxu2 }
 0x414   :  { %v3806_v2 = vadd.f32 %v10682_v59, %v3714_v50  ;;  %v3539_v59 = vadd.f32 %v10724_v49, %v10618_v1 }
 0x417   :  { %3942 = vmatmul.f32.gmra.mxu2 %v3598_v61  ;;  %4126 = vmatmul.f32.gmra.mxu0 %v3598_v61  ;;  %v10746_v46 = vpop.f32.mrf.mxu0  ;;  %v3610_v61 = vadd.f32 %v10629_v62, %v3518_v55  ;;  %v3521_v62 = vadd.f32 %v10632_v18, %v10618_v1 }
 0x418   :  { %v10744_v21 = vpop.f32.mrf.mxu1 }
 0x41a   :  { %v10753_v44 = vpop.f32.mrf.mxu3 }
 0x41b   :  { %4031 = vmatmul.f32.gmra.mxu3 %v3779_v6  ;;  %4215 = vmatmul.f32.gmra.mxu1 %v3779_v6  ;;  %v10740_v24 = vpop.f32.mrf.mxu2  ;;  %v3791_v6 = vadd.f32 %v10604_v36, %v3699_v26  ;;  %v3794_v36 = vadd.f32 %v10622_v39, %v3702_v9  ;;  %v3527_v39 = vadd.f32 %v10662_v52, %v10618_v1 }
 0x41c   :  { %v3809_v9 = vadd.f32 %v10698_v15, %v3717_v63 }
 0x41d   :  { %v3619_v41 = vadd.f32 %v10676_v31, %v3527_v39 }
 0x41f   :  { %3945 = vmatmul.f32.gmra.mxu2 %v3601_v42  ;;  %4129 = vmatmul.f32.gmra.mxu0 %v3601_v42  ;;  %v10762_v13 = vpop.f32.mrf.mxu0  ;;  %v3613_v42 = vadd.f32 %v10644_v4, %v3521_v62  ;;  %v3616_v4 = vadd.f32 %v10660_v48, %v3524_v47  ;;  %v3797_v48 = vadd.f32 %v10634_v34, %v3705_v5 }
 0x420   :  { %v10760_v17 = vpop.f32.mrf.mxu1  ;;  %v3800_v34 = vadd.f32 %v10652_v35, %v3708_v14 }
 0x422   :  { %v10768_v43 = vpop.f32.mrf.mxu3 }
 0x423   :  { %4034 = vmatmul.f32.gmra.mxu3 %v3782_v23  ;;  %4218 = vmatmul.f32.gmra.mxu1 %v3782_v23  ;;  %v10755_v28 = vpop.f32.mrf.mxu2  ;;  %v6482_v23 = vld [vmem:[#allocation7 + $0x30] sm:$0xff] }
 0x424   :  { %6900 = vmatpush.msra.mxu2 %v6482_v23  ;;  %6521 = vmatpush.msrb.mxu0 %v6482_v23 }
 0x427   :  { %3948 = vmatmul.f32.gmra.mxu2 %v3604_v51  ;;  %4132 = vmatmul.f32.gmra.mxu0 %v3604_v51  ;;  %v10778_v18 = vpop.f32.mrf.mxu0  ;;  %v6498_v51 = vld [vmem:[#allocation7 + $0xb0] sm:$0xff] }
 0x428   :  { %v10776_v30 = vpop.f32.mrf.mxu1  ;;  %6916 = vmatpush.msra.mxu3 %v6498_v51  ;;  %6613 = vmatpush.msrb.mxu1 %v6498_v51  ;;  %v3542_v51 = vadd.f32 %v10740_v24, %v10618_v1  ;;  %v3723_v24 = vadd.f32 %v10716_v7, %v10641_v16 }
 0x42a   :  { %v10784_v56 = vpop.f32.mrf.mxu3  ;;  %v3634_v22 = vadd.f32 %v10753_v44, %v3542_v51  ;;  %v3545_v44 = vadd.f32 %v10755_v28, %v10618_v1 }
 0x42b   :  { %4037 = vmatmul.f32.gmra.mxu3 %v3785_v29  ;;  %4221 = vmatmul.f32.gmra.mxu1 %v3785_v29  ;;  %v10770_v37 = vpop.f32.mrf.mxu2 }
 0x42f   :  { %3951 = vmatmul.f32.gmra.mxu2 %v3607_v19  ;;  %4135 = vmatmul.f32.gmra.mxu0 %v3607_v19  ;;  %v10793_v19 = vpop.f32.mrf.mxu0 }
 0x430   :  { %v10791_v29 = vpop.f32.mrf.mxu1 }
 0x432   :  { %v10800_v55 = vpop.f32.mrf.mxu3 }
 0x433   :  { %4040 = vmatmul.f32.gmra.mxu3 %v3788_v11  ;;  %4224 = vmatmul.f32.gmra.mxu1 %v3788_v11  ;;  %v10786_v3 = vpop.f32.mrf.mxu2 }
 0x437   :  { %3954 = vmatmul.f32.gmra.mxu2 %v3610_v61  ;;  %4138 = vmatmul.f32.gmra.mxu0 %v3610_v61  ;;  %v3803_v61 = vadd.f32 %v10667_v12, %v3711_v0  ;;  %v3536_v12 = vadd.f32 %v10708_v57, %v10618_v1 }
 0x439   :  { %v3628_v62 = vadd.f32 %v10722_v53, %v3536_v12  ;;  %v3637_v12 = vadd.f32 %v10768_v43, %v3545_v44  ;;  %v3729_v44 = vadd.f32 %v10746_v46, %v10641_v16 }
 0x43b   :  { %4043 = vmatmul.f32.gmra.mxu3 %v3791_v6  ;;  %4227 = vmatmul.f32.gmra.mxu1 %v3791_v6  ;;  %v10802_v52 = vpop.f32.mrf.mxu2 }
 0x43e   :  { %v10806_v31 = vpop.f32.mrf.mxu1 }
 0x43f   :  { %3957 = vmatmul.f32.gmra.mxu2 %v3613_v42  ;;  %4141 = vmatmul.f32.gmra.mxu0 %v3613_v42  ;;  %v3902_v42 = vld [vmem:[%s13379_s8] sm:$0x3] }
 0x440   :  { %v10844_v47 = vperm.slane %v3902_v42, 1  ;;  %v10854_v15 = vperm.slane %v3902_v42, 0 }
 0x443   :  { %4046 = vmatmul.f32.gmra.mxu3 %v3794_v36  ;;  %4230 = vmatmul.f32.gmra.mxu1 %v3794_v36  ;;  %v3631_v36 = vadd.f32 %v10738_v54, %v3539_v59  ;;  %v3812_v54 = vadd.f32 %v10714_v58, %v3720_v32  ;;  %v3548_v32 = vadd.f32 %v10770_v37, %v10618_v1 }
 0x444   :  { %v10815_v60 = vpop.f32.mrf.mxu3 }
 0x447   :  { %3960 = vmatmul.f32.gmra.mxu2 %v3616_v4  ;;  %4144 = vmatmul.f32.gmra.mxu0 %v3616_v4 }
 0x448   :  { %v10808_v11 = vpop.f32.mrf.mxu0 }
 0x44b   :  { %4049 = vmatmul.f32.gmra.mxu3 %v3797_v48  ;;  %4233 = vmatmul.f32.gmra.mxu1 %v3797_v48 }
 0x44e   :  { %v10817_v35 = vpop.f32.mrf.mxu2 }
 0x44f   :  { %3963 = vmatmul.f32.gmra.mxu2 %v3619_v41  ;;  %4147 = vmatmul.f32.gmra.mxu0 %v3619_v41 }
 0x453   :  { %4052 = vmatmul.f32.gmra.mxu3 %v3800_v34  ;;  %4236 = vmatmul.f32.gmra.mxu1 %v3800_v34 }
 0x455   :  { %v10822_v40 = vpop.f32.mrf.mxu1 }
 0x457   :  { %3966 = vmatmul.f32.gmra.mxu2 %v3622_v27  ;;  %4150 = vmatmul.f32.gmra.mxu0 %v3622_v27 }
 0x45b   :  { %4055 = vmatmul.f32.gmra.mxu3 %v3803_v61  ;;  %4239 = vmatmul.f32.gmra.mxu1 %v3803_v61  ;;  %v10830_v38 = vpop.f32.mrf.mxu3  ;;  %v3815_v61 = vadd.f32 %v10729_v8, %v3723_v24  ;;  %v3726_v8 = vadd.f32 %v10731_v25, %v10641_v16  ;;  %v3640_v24 = vadd.f32 %v10784_v56, %v3548_v32 }
 0x45c   :  { %v10824_v26 = vpop.f32.mrf.mxu0 }
 0x45d   :  { %v3818_v25 = vadd.f32 %v10744_v21, %v3726_v8  ;;  %v6481_v21 = vld [vmem:[#allocation7 + $0x28] sm:$0xff]  ;;  %v3821_v8 = vadd.f32 %v10760_v17, %v3729_v44  ;;  %v3732_v17 = vadd.f32 %v10762_v13, %v10641_v16  ;;  %v6480_v44 = vld [vmem:[#allocation7 + $0x20] sm:$0xff] }
 0x45e   :  { %6901 = vmatpush.msra.mxu2 %v6481_v21  ;;  %6522 = vmatpush.msrb.mxu0 %v6481_v21 }
 0x45f   :  { %3969 = vmatmul.f32.gmra.mxu2 %v3625_v33  ;;  %4153 = vmatmul.f32.gmra.mxu0 %v3625_v33  ;;  %v3824_v13 = vadd.f32 %v10776_v30, %v3732_v17 }
 0x460   :  { %6902 = vmatpush.msra.mxu2 %v6480_v44  ;;  %6523 = vmatpush.msrb.mxu0 %v6480_v44 }
 0x462   :  { %v10832_v6 = vpop.f32.mrf.mxu2 }
 0x463   :  { %4058 = vmatmul.f32.gmra.mxu3 %v3806_v2  ;;  %4242 = vmatmul.f32.gmra.mxu1 %v3806_v2 }
 0x464   :  { %v4109_v53 = vpop.f32.mrf.mxu0 }
 0x465   :  { %v4110_v4 = vadd.f32 %v4109_v53, %v10844_v47 }
 0x467   :  { %3972 = vmatmul.f32.gmra.mxu2 %v3628_v62  ;;  %4156 = vmatmul.f32.gmra.mxu0 %v3628_v62 }
 0x468   :  { %v10841_v57 = vpop.f32.mrf.mxu1 }
 0x46a   :  { %v3925_v49 = vpop.f32.mrf.mxu2 }
 0x46b   :  { %4061 = vmatmul.f32.gmra.mxu3 %v3809_v9  ;;  %4245 = vmatmul.f32.gmra.mxu1 %v3809_v9  ;;  %v3926_v41 = vadd.f32 %v3925_v49, %v10854_v15 }
 0x46c   :  { %v4112_v39 = vpop.f32.mrf.mxu0 }
 0x46d   :  { %v4113_v58 = vadd.f32 %v4112_v39, %v10844_v47 }
 0x46e   :  { %v10850_v23 = vpop.f32.mrf.mxu3 }
 0x46f   :  { %3975 = vmatmul.f32.gmra.mxu2 %v3631_v36  ;;  %4159 = vmatmul.f32.gmra.mxu0 %v3631_v36 }
 0x470   :  { %v4201_v20 = vpop.f32.mrf.mxu1 }
 0x471   :  { %v10857_v5 = vadd.f32 %v4201_v20, %v4110_v4 }
 0x472   :  { %v3928_v45 = vpop.f32.mrf.mxu2 }
 0x473   :  { %v10861_v48 = vmul.f32 0.70710677, %v10857_v5  ;;  %4064 = vmatmul.f32.gmra.mxu3 %v3812_v54  ;;  %4248 = vmatmul.f32.gmra.mxu1 %v3812_v54  ;;  %v3929_v28 = vadd.f32 %v3928_v45, %v10854_v15 }
 0x474   :  { %v4115_v37 = vpop.f32.mrf.mxu0 }
 0x475   :  { %v4416_v14 = vmul.f32 %v10861_v48, %v10861_v48 }
 0x476   :  { %v4017_v10 = vpop.f32.mrf.mxu3 }
 0x477   :  { %3978 = vmatmul.f32.gmra.mxu2 %v3634_v22  ;;  %4162 = vmatmul.f32.gmra.mxu0 %v3634_v22  ;;  %v10871_v34 = vmin.f32 %v4416_v14, 16.0  ;;  %v10873_v27 = vadd.f32 %v4017_v10, %v3926_v41 }
 0x478   :  { %v4204_v0 = vpop.f32.mrf.mxu1 }
 0x479   :  { %v4429_v7 = vmul.f32 3.8918573e-05, %v10871_v34  ;;  %v10877_v33 = vadd.f32 %v4204_v0, %v4113_v58  ;;  %v10880_v50 = vmul.f32 0.70710677, %v10873_v27  ;;  %v4418_v51 = vmul.f32 2.1237322e-06, %v10871_v34 }
 0x47a   :  { %v6497_v58 = vld [vmem:[#allocation7 + $0xa8] sm:$0xff] }
 0x47b   :  { %v4430_v2 = vadd.f32 0.001143296, %v4429_v7  ;;  %4067 = vmatmul.f32.gmra.mxu3 %v3815_v61  ;;  %4251 = vmatmul.f32.gmra.mxu1 %v3815_v61  ;;  %v4376_v62 = vmul.f32 %v10880_v50, %v10880_v50  ;;  %v10887_v63 = vmul.f32 0.70710677, %v10877_v33  ;;  %v4419_v0 = vadd.f32 0.00028619796, %v4418_v51 }
 0x47c   :  { %6917 = vmatpush.msra.mxu3 %v6497_v58  ;;  %6614 = vmatpush.msrb.mxu1 %v6497_v58 }
 0x47d   :  { %v4431_v42 = vmul.f32 %v4430_v2, %v10871_v34  ;;  %v10892_v59 = vmin.f32 %v4376_v62, 16.0  ;;  %v4496_v43 = vmul.f32 %v10887_v63, %v10887_v63  ;;  %v3551_v2 = vadd.f32 %v10786_v3, %v10618_v1 }
 0x47e   :  { %v4020_v53 = vpop.f32.mrf.mxu3 }
 0x47f   :  { %3981 = vmatmul.f32.gmra.mxu2 %v3637_v12  ;;  %4165 = vmatmul.f32.gmra.mxu0 %v3637_v12  ;;  %v4432_v9 = vadd.f32 0.014752088, %v4431_v42  ;;  %v10896_v36 = vadd.f32 %v4020_v53, %v3929_v28  ;;  %v4389_v4 = vmul.f32 3.8918573e-05, %v10892_v59  ;;  %v10901_v49 = vmin.f32 %v4496_v43, 16.0 }
 0x480   :  { %v4116_v12 = vadd.f32 %v4115_v37, %v10844_v47  ;;  %v4378_v28 = vmul.f32 2.1237322e-06, %v10892_v59  ;;  %v4420_v42 = vmul.f32 %v4419_v0, %v10871_v34  ;;  %v4207_v43 = vpop.f32.mrf.mxu1  ;;  %v3643_v3 = vadd.f32 %v10800_v55, %v3551_v2 }
 0x481   :  { %v4433_v20 = vmul.f32 %v4432_v9, %v10871_v34  ;;  %v10907_v54 = vmul.f32 0.70710677, %v10896_v36  ;;  %v4390_v39 = vadd.f32 0.001143296, %v4389_v4  ;;  %v4509_v22 = vmul.f32 3.8918573e-05, %v10901_v49 }
 0x482   :  { %v10928_v32 = vadd.f32 %v4207_v43, %v4116_v12  ;;  %v4379_v51 = vadd.f32 0.00028619796, %v4378_v28  ;;  %v3554_v55 = vadd.f32 %v10802_v52, %v10618_v1  ;;  %v3735_v28 = vadd.f32 %v10778_v18, %v10641_v16 }
 0x483   :  { %v4456_v41 = vmul.f32 %v10907_v54, %v10907_v54  ;;  %4070 = vmatmul.f32.gmra.mxu3 %v3818_v25  ;;  %4254 = vmatmul.f32.gmra.mxu1 %v3818_v25  ;;  %v4434_v14 = vadd.f32 0.112945676, %v4433_v20  ;;  %v4391_v10 = vmul.f32 %v4390_v39, %v10892_v59  ;;  %v4510_v45 = vadd.f32 0.001143296, %v4509_v22 }
 0x484   :  { %v4498_v20 = vmul.f32 2.1237322e-06, %v10901_v49  ;;  %v4421_v39 = vadd.f32 0.0036580483, %v4420_v42  ;;  %v10936_v37 = vmul.f32 0.70710677, %v10928_v32  ;;  %v4380_v21 = vmul.f32 %v4379_v51, %v10892_v59 }
 0x485   :  { %v10916_v61 = vmin.f32 %v4456_v41, 16.0  ;;  %v4392_v7 = vadd.f32 0.014752088, %v4391_v10  ;;  %v4511_v56 = vmul.f32 %v4510_v45, %v10901_v49  ;;  %v4435_v46 = vmul.f32 %v4434_v14, %v10871_v34 }
 0x486   :  { %v4499_v58 = vadd.f32 0.00028619796, %v4498_v20  ;;  %v4422_v10 = vmul.f32 %v4421_v39, %v10871_v34  ;;  %v4381_v30 = vadd.f32 0.0036580483, %v4380_v21 }
 0x487   :  { %3984 = vmatmul.f32.gmra.mxu2 %v3640_v24  ;;  %4168 = vmatmul.f32.gmra.mxu0 %v3640_v24  ;;  %v4469_v62 = vmul.f32 3.8918573e-05, %v10916_v61  ;;  %v4393_v53 = vmul.f32 %v4392_v7, %v10892_v59  ;;  %v4512_v4 = vadd.f32 0.014752088, %v4511_v56  ;;  %v4436_v25 = vadd.f32 0.4994258, %v4435_v46 }
 0x488   :  { %v4576_v7 = vmul.f32 %v10936_v37, %v10936_v37  ;;  %v3646_v56 = vadd.f32 %v10815_v60, %v3554_v55  ;;  %v4500_v46 = vmul.f32 %v4499_v58, %v10901_v49  ;;  %v6496_v60 = vld [vmem:[#allocation7 + $0xa0] sm:$0xff]  ;;  %v4118_v55 = vpop.f32.mrf.mxu0 }
 0x489   :  { %v4470_v9 = vadd.f32 0.001143296, %v4469_v62  ;;  %v4394_v41 = vadd.f32 0.112945676, %v4393_v53  ;;  %v4513_v24 = vmul.f32 %v4512_v4, %v10901_v49  ;;  %v4437_v14 = vmul.f32 %v4436_v25, %v10871_v34  ;;  %6918 = vmatpush.msra.mxu3 %v6496_v60  ;;  %6615 = vmatpush.msrb.mxu1 %v6496_v60 }
 0x48a   :  { %v4423_v62 = vadd.f32 0.05243302, %v4422_v10  ;;  %v10955_v43 = vmin.f32 %v4576_v7, 16.0  ;;  %v3557_v4 = vadd.f32 %v10817_v35, %v10618_v1  ;;  %v4501_v18 = vadd.f32 0.0036580483, %v4500_v46 }
 0x48b   :  { %4073 = vmatmul.f32.gmra.mxu3 %v3821_v8  ;;  %4257 = vmatmul.f32.gmra.mxu1 %v3821_v8  ;;  %v4471_v22 = vmul.f32 %v4470_v9, %v10916_v61  ;;  %v4395_v45 = vmul.f32 %v4394_v41, %v10892_v59  ;;  %v4514_v12 = vadd.f32 0.112945676, %v4513_v24  ;;  %v10950_v2 = vadd.f32 1.0, %v4437_v14 }
 0x48c   :  { %v4458_v9 = vmul.f32 2.1237322e-06, %v10916_v61  ;;  %v3827_v25 = vadd.f32 %v10791_v29, %v3735_v28  ;;  %v4424_v20 = vmul.f32 %v4423_v62, %v10871_v34  ;;  %v4589_v39 = vmul.f32 3.8918573e-05, %v10955_v43  ;;  %v4023_v28 = vpop.f32.mrf.mxu3 }
 0x48d   :  { %v4472_v0 = vadd.f32 0.014752088, %v4471_v22  ;;  %v4396_v8 = vadd.f32 0.4994258, %v4395_v45  ;;  %v4515_v53 = vmul.f32 %v4514_v12, %v10901_v49  ;;  %7085 = vrcp.f32 %v10950_v2  ;;  %v3931_v22 = vpop.f32.mrf.mxu2 }
 0x48e   :  { %v3738_v35 = vadd.f32 %v10793_v19, %v10641_v16  ;;  %v4459_v24 = vadd.f32 0.00028619796, %v4458_v9  ;;  %v3649_v14 = vadd.f32 %v10830_v38, %v3557_v4  ;;  %v4502_v21 = vmul.f32 %v4501_v18, %v10901_v49 }
 0x48f   :  { %3987 = vmatmul.f32.gmra.mxu2 %v3643_v3  ;;  %4171 = vmatmul.f32.gmra.mxu0 %v3643_v3  ;;  %v4473_v52 = vmul.f32 %v4472_v0, %v10916_v61  ;;  %v4382_v3 = vmul.f32 %v4381_v30, %v10892_v59  ;;  %v4397_v17 = vmul.f32 %v4396_v8, %v10892_v59  ;;  %v4516_v41 = vadd.f32 0.4994258, %v4515_v53  ;;  %v4210_v53 = vpop.f32.mrf.mxu1 }
 0x490   :  { %v4425_v44 = vadd.f32 0.18741608, %v4424_v20  ;;  %v4590_v45 = vadd.f32 0.001143296, %v4589_v39  ;;  %v4119_v19 = vadd.f32 %v4118_v55, %v10844_v47  ;;  %v3830_v7 = vadd.f32 %v10806_v31, %v3738_v35 }
 0x491   :  { %v4474_v42 = vadd.f32 0.112945676, %v4473_v52  ;;  %v4383_v29 = vadd.f32 0.05243302, %v4382_v3  ;;  %v10975_v0 = vadd.f32 1.0, %v4397_v17  ;;  %v4517_v38 = vmul.f32 %v4516_v41, %v10901_v49 }
 0x492   :  { %v4460_v12 = vmul.f32 %v4459_v24, %v10916_v61  ;;  %v3741_v52 = vadd.f32 %v10808_v11, %v10641_v16  ;;  %v4503_v46 = vadd.f32 0.05243302, %v4502_v21  ;;  %v4591_v31 = vmul.f32 %v4590_v45, %v10955_v43 }
 0x493   :  { %4076 = vmatmul.f32.gmra.mxu3 %v3824_v13  ;;  %4260 = vmatmul.f32.gmra.mxu1 %v3824_v13  ;;  %v4475_v51 = vmul.f32 %v4474_v42, %v10916_v61  ;;  %v3932_v13 = vadd.f32 %v3931_v22, %v10854_v15  ;;  %v10973_v10 = vpop.eup %7085  ;;  %v4384_v30 = vmul.f32 %v4383_v29, %v10892_v59  ;;  %7087 = vrcp.f32 %v10975_v0 }
 0x494   :  { %v4440_v62 = vmul.f32 %v10973_v10, %v10950_v2  ;;  %v3744_v11 = vadd.f32 %v10824_v26, %v10641_v16  ;;  %v4426_v9 = vmul.f32 %v4425_v44, %v10871_v34  ;;  %v4461_v60 = vadd.f32 0.0036580483, %v4460_v12 }
 0x495   :  { %v4476_v58 = vadd.f32 0.4994258, %v4475_v51  ;;  %v10990_v42 = vadd.f32 %v4023_v28, %v3932_v13  ;;  %v4578_v4 = vmul.f32 2.1237322e-06, %v10955_v43  ;;  %v3833_v3 = vadd.f32 %v10822_v40, %v3741_v52  ;;  %v3934_v28 = vpop.f32.mrf.mxu2 }
 0x496   :  { %v4504_v16 = vmul.f32 %v4503_v46, %v10901_v49  ;;  %v4441_v26 = vsub.f32 1.0, %v4440_v62  ;;  %v4592_v51 = vadd.f32 0.014752088, %v4591_v31  ;;  %v11010_v17 = vadd.f32 %v10841_v57, %v3744_v11 }
 0x497   :  { %3990 = vmatmul.f32.gmra.mxu2 %v3646_v56  ;;  %4174 = vmatmul.f32.gmra.mxu0 %v3646_v56  ;;  %v3560_v56 = vadd.f32 %v10832_v6, %v10618_v1  ;;  %v4477_v8 = vmul.f32 %v4476_v58, %v10916_v61  ;;  %v10996_v1 = vadd.f32 %v4210_v53, %v4119_v19  ;;  %v10998_v6 = vadd.f32 1.0, %v4517_v38  ;;  %v4121_v38 = vpop.f32.mrf.mxu0 }
 0x498   :  { %v11007_v20 = vmul.f32 0.70710677, %v10990_v42  ;;  %v11013_v39 = vmul.f32 0.5, %v10857_v5  ;;  %v4427_v22 = vadd.f32 1.1283791, %v4426_v9  ;;  %v4462_v35 = vmul.f32 %v4461_v60, %v10916_v61 }
 0x499   :  { %v3652_v18 = vadd.f32 %v10850_v23, %v3560_v56  ;;  %v11004_v34 = vadd.f32 1.0, %v4477_v8  ;;  %v11016_v40 = vmul.f32 0.70710677, %v10996_v1  ;;  %v11019_v23 = vmul.f32 0.5, %v10873_v27  ;;  %v11023_v24 = vpop.eup %7087 }
 0x49a   :  { %7089 = vrcp.f32 %v10998_v6  ;;  %v4579_v41 = vadd.f32 0.00028619796, %v4578_v4  ;;  %v11027_v5 = vmul.f32 0.5, %v10877_v33  ;;  %v4505_v55 = vadd.f32 0.18741608, %v4504_v16  ;;  %v6479_v4 = vld [vmem:[#allocation7 + $0x18] sm:$0xff] }
 0x49b   :  { %4079 = vmatmul.f32.gmra.mxu3 %v3827_v25  ;;  %4263 = vmatmul.f32.gmra.mxu1 %v3827_v25  ;;  %v4385_v25 = vadd.f32 0.18741608, %v4384_v30  ;;  %v4442_v29 = vmul.f32 %v10973_v10, %v4441_v26  ;;  %7091 = vrcp.f32 %v11004_v34  ;;  %v4593_v27 = vmul.f32 %v4592_v51, %v10955_v43  ;;  %v6495_v16 = vld [vmem:[#allocation7 + $0x98] sm:$0xff] }
 0x49c   :  { %v4536_v21 = vmul.f32 %v11007_v20, %v11007_v20  ;;  %v11037_v58 = vmul.f32 %v4427_v22, %v10861_v48  ;;  %v11041_v33 = vmul.f32 0.5, %v10896_v36  ;;  %v11044_v13 = vmul.f32 0.5, %v10928_v32  ;;  %6903 = vmatpush.msra.mxu2 %v6479_v4  ;;  %6524 = vmatpush.msrb.mxu0 %v6479_v4 }
 0x49d   :  { %v4386_v57 = vmul.f32 %v4385_v25, %v10892_v59  ;;  %v4448_v59 = vand.u32 2147483647, %v10950_v2  ;;  %v4400_v44 = vmul.f32 %v11023_v24, %v10975_v0  ;;  %v4463_v45 = vadd.f32 0.05243302, %v4462_v35  ;;  %6919 = vmatpush.msra.mxu3 %v6495_v16  ;;  %6616 = vmatpush.msrb.mxu1 %v6495_v16 }
 0x49e   :  { %v4580_v19 = vmul.f32 %v4579_v41, %v10955_v43  ;;  %vm4445_vm5 = vweird.f32 %v10973_v10  ;;  %v4450_v48 = vand.u32 2147483648, %v10950_v2  ;;  %v4506_v12 = vmul.f32 %v4505_v55, %v10901_v49 }
 0x49f   :  { %3993 = vmatmul.f32.gmra.mxu2 %v3649_v14  ;;  %4177 = vmatmul.f32.gmra.mxu0 %v3649_v14  ;;  %v4656_v14 = vmul.f32 %v11016_v40, %v11016_v40  ;;  %v4387_v36 = vadd.f32 1.1283791, %v4386_v57  ;;  %v4443_v52 = vadd.f32 %v10973_v10, %v4442_v29  ;;  %v4594_v56 = vadd.f32 0.112945676, %v4593_v27 }
 0x4a0   :  { %v11054_v32 = vpop.eup %7089  ;;  %v11057_v30 = vmin.f32 %v4536_v21, 16.0  ;;  %vm4444_vm6 = vweird.f32 %v10950_v2  ;;  %vm11061_vm7 = vcmp.eq.f32.partialorder %v4448_v59, 8.507059e+37  ;;  %v4410_v8 = vand.u32 2147483648, %v10975_v0 }
 0x4a1   :  { %v4122_v49 = vadd.f32 %v4121_v38, %v10844_v47  ;;  %v11067_v31 = vpop.eup %7091  ;;  %v4401_v53 = vsub.f32 1.0, %v4400_v44  ;;  %v4464_v11 = vmul.f32 %v4463_v45, %v10916_v61  ;;  %v4581_v9 = vadd.f32 0.0036580483, %v4580_v19  ;;  %vm11072_vm8 = vmor %vm4444_vm6, %vm4445_vm5  ;;  %v4026_v44 = vpop.f32.mrf.mxu3 }
 0x4a2   :  { %v4520_v25 = vmul.f32 %v11054_v32, %v10998_v6  ;;  %v3935_v26 = vadd.f32 %v3934_v28, %v10854_v15  ;;  %v4447_v51 = vsel %vm11072_vm8, %v10973_v10, %v4443_v52  ;;  %v4507_v22 = vadd.f32 1.1283791, %v4506_v12 }
 0x4a3   :  { %4082 = vmatmul.f32.gmra.mxu3 %v3830_v7  ;;  %4266 = vmatmul.f32.gmra.mxu1 %v3830_v7  ;;  %v11049_v7 = vmin.f32 %v4656_v14, 16.0  ;;  %v4595_v35 = vmul.f32 %v4594_v56, %v10955_v43  ;;  %v4538_v41 = vmul.f32 2.1237322e-06, %v11057_v30  ;;  %vm4404_vm9 = vweird.f32 %v10975_v0 }
 0x4a4   :  { %v4408_v57 = vand.u32 2147483647, %v10975_v0  ;;  %v4480_v55 = vmul.f32 %v11067_v31, %v11004_v34  ;;  %v4402_v10 = vmul.f32 %v11023_v24, %v4401_v53  ;;  %v11095_v27 = vor.u32 1.1754944e-38, %v4410_v8 }
 0x4a5   :  { %v4669_v46 = vmul.f32 3.8918573e-05, %v11049_v7  ;;  %v4465_v21 = vadd.f32 0.18741608, %v4464_v11  ;;  %v4582_v59 = vmul.f32 %v4581_v9, %v10955_v43  ;;  %v4521_v19 = vsub.f32 1.0, %v4520_v25  ;;  %v6478_v25 = vld [vmem:[#allocation7 + $0x10] sm:$0xff] }
 0x4a6   :  { %v4658_v38 = vmul.f32 2.1237322e-06, %v11049_v7  ;;  %v4528_v12 = vand.u32 2147483647, %v10998_v6  ;;  %v4596_v52 = vadd.f32 0.4994258, %v4595_v35  ;;  %vm4405_vm10 = vweird.f32 %v11023_v24  ;;  %6904 = vmatpush.msra.mxu2 %v6478_v25  ;;  %v4124_v35 = vpop.f32.mrf.mxu0  ;;  %6525 = vmatpush.msrb.mxu0 %v6478_v25 }
 0x4a7   :  { %3996 = vmatmul.f32.gmra.mxu2 %v3652_v18  ;;  %4180 = vmatmul.f32.gmra.mxu0 %v3652_v18  ;;  %v4670_v60 = vadd.f32 0.001143296, %v4669_v46  ;;  %v11077_v18 = vmul.f32 %v4387_v36, %v10880_v50  ;;  %v4213_v50 = vpop.f32.mrf.mxu1  ;;  %v11106_v36 = vmul.f32 %v4507_v22, %v10887_v63  ;;  %v4539_v56 = vadd.f32 0.00028619796, %v4538_v41  ;;  %vm11141_vm13 = vmor %vm4404_vm9, %vm4405_vm10 }
 0x4a8   :  { %v11092_v29 = vadd.f32 %v4213_v50, %v4122_v49  ;;  %v4530_v46 = vand.u32 2147483648, %v10998_v6  ;;  %v4481_v28 = vsub.f32 1.0, %v4480_v55  ;;  %v4403_v49 = vadd.f32 %v11023_v24, %v4402_v10 }
 0x4a9   :  { %v4671_v14 = vmul.f32 %v4670_v60, %v11049_v7  ;;  %vm11118_vm11 = vcmp.eq.f32.partialorder %v4408_v57, 8.507059e+37  ;;  %v4583_v53 = vadd.f32 0.05243302, %v4582_v59  ;;  %v4522_v11 = vmul.f32 %v11054_v32, %v4521_v19 }
 0x4aa   :  { %v4659_v9 = vadd.f32 0.00028619796, %v4658_v38  ;;  %vm4524_vm12 = vweird.f32 %v10998_v6  ;;  %v4597_v2 = vmul.f32 %v4596_v52, %v10955_v43  ;;  %v4531_v16 = vor.u32 1.1754944e-38, %v4530_v46 }
 0x4ab   :  { %4085 = vmatmul.f32.gmra.mxu3 %v3833_v3  ;;  %4269 = vmatmul.f32.gmra.mxu1 %v3833_v3  ;;  %v4451_v3 = vor.u32 1.1754944e-38, %v4450_v48  ;;  %v11103_v48 = vadd.f32 %v4026_v44, %v3935_v26  ;;  %v4672_v8 = vadd.f32 0.014752088, %v4671_v14  ;;  %v4482_v26 = vmul.f32 %v11067_v31, %v4481_v28  ;;  %v3937_v14 = vpop.f32.mrf.mxu2 }
 0x4ac   :  { %vm4525_vm14 = vweird.f32 %v11054_v32  ;;  %vm11146_vm15 = vcmp.eq.f32.partialorder %v4528_v12, 8.507059e+37  ;;  %v4488_v57 = vand.u32 2147483647, %v11004_v34  ;;  %v4584_v55 = vmul.f32 %v4583_v53, %v10955_v43 }
 0x4ad   :  { %v4452_v45 = vsel %vm11061_vm7, %v4451_v3, %v4447_v51  ;;  %v11124_v60 = vmul.f32 0.70710677, %v11103_v48  ;;  %v4540_v3 = vmul.f32 %v4539_v56, %v11057_v30  ;;  %v4673_v51 = vmul.f32 %v4672_v8, %v11049_v7  ;;  %vm11170_vm1 = vmor %vm4524_vm12, %vm4525_vm14 }
 0x4ae   :  { %v11114_v62 = vmul.f32 %v4452_v45, %v11037_v58  ;;  %v4466_v58 = vmul.f32 %v4465_v21, %v10916_v61  ;;  %v4407_v10 = vsel %vm11141_vm13, %v11023_v24, %v4403_v49  ;;  %v4523_v0 = vadd.f32 %v11054_v32, %v4522_v11 }
 0x4af   :  { %v4660_v21 = vmul.f32 %v4659_v9, %v11049_v7  ;;  %v4616_v59 = vmul.f32 %v11124_v60, %v11124_v60  ;;  %v11159_v44 = vadd.f32 1.0, %v4597_v2  ;;  %v4541_v45 = vadd.f32 0.0036580483, %v4540_v3  ;;  %v4216_v9 = vpop.f32.mrf.mxu1 }
 0x4b0   :  { %v6842_v41 = vclamps-f32 %v11114_v62, 1.0  ;;  %v4125_v38 = vadd.f32 %v4124_v35, %v10844_v47  ;;  %v4483_v12 = vadd.f32 %v11067_v31, %v4482_v26  ;;  %vm4485_vm0 = vweird.f32 %v11067_v31  ;;  %v6494_v62 = vld [vmem:[#allocation7 + $0x90] sm:$0xff] }
 0x4b1   :  { %v4674_v52 = vadd.f32 0.112945676, %v4673_v51  ;;  %v3938_v24 = vadd.f32 %v3937_v14, %v10854_v15  ;;  %vm4484_vm2 = vweird.f32 %v11004_v34  ;;  %v4490_v46 = vand.u32 2147483648, %v11004_v34  ;;  %6920 = vmatpush.msra.mxu3 %v6494_v62  ;;  %6617 = vmatpush.msrb.mxu1 %v6494_v62  ;;  %v6477_v62 = vld [vmem:[#allocation7 + $0x8] sm:$0xff] }
 0x4b2   :  { %v4585_v28 = vadd.f32 0.18741608, %v4584_v55  ;;  %v4412_v49 = vsel %vm11118_vm11, %v11095_v27, %v4407_v10  ;;  %v4527_v53 = vsel %vm11170_vm1, %v11054_v32, %v4523_v0  ;;  %v4661_v6 = vadd.f32 0.0036580483, %v4660_v21  ;;  %vm11186_vm3 = vmor %vm4484_vm2, %vm4485_vm0  ;;  %6905 = vmatpush.msra.mxu2 %v6477_v62  ;;  %6526 = vmatpush.msrb.mxu0 %v6477_v62 }
 0x4b3   :  { %4088 = vmatmul.f32.gmra.mxu3 %v11010_v17  ;;  %4272 = vmatmul.f32.gmra.mxu1 %v11010_v17  ;;  %v11111_v17 = vmul.f32 0.70710677, %v11092_v29  ;;  %v11182_v11 = vmin.f32 %v4616_v59, 16.0  ;;  %7093 = vrcp.f32 %v11159_v44  ;;  %v4542_v27 = vmul.f32 %v4541_v45, %v11057_v30 }
 0x4b4   :  { %v11193_v32 = vadd.f32 %v4216_v9, %v4125_v38  ;;  %v4467_v2 = vadd.f32 1.1283791, %v4466_v58  ;;  %v4487_v3 = vsel %vm11186_vm3, %v11067_v31, %v4483_v12  ;;  %v4675_v25 = vmul.f32 %v4674_v52, %v11049_v7  ;;  %v3940_v12 = vpop.f32.mrf.mxu2 }
 0x4b5   :  { %v4736_v4 = vmul.f32 %v11111_v17, %v11111_v17  ;;  %v4413_v51 = vmul.f32 %v4412_v49, %v11077_v18  ;;  %vm4489_vm4 = vcmp.eq.f32.partialorder %v4488_v57, 8.507059e+37  ;;  %v4491_v35 = vor.u32 1.1754944e-38, %v4490_v46  ;;  %v6493_v49 = vld [vmem:[#allocation7 + $0x88] sm:$0xff] }
 0x4b6   :  { %v4586_v61 = vmul.f32 %v4585_v28, %v10955_v43  ;;  %v4532_v55 = vsel %vm11146_vm15, %v4531_v16, %v4527_v53  ;;  %v4662_v14 = vmul.f32 %v4661_v6, %v11049_v7  ;;  %v4618_v58 = vmul.f32 2.1237322e-06, %v11182_v11  ;;  %6921 = vmatpush.msra.mxu3 %v6493_v49  ;;  %6618 = vmatpush.msrb.mxu1 %v6493_v49 }
 0x4b7   :  { %v11134_v22 = vmin.f32 %v4736_v4, 16.0  ;;  %v4029_v4 = vpop.f32.mrf.mxu3  ;;  %v6377_v0 = vadd.f32 1.0, %v6842_v41  ;;  %v4492_v31 = vsel %vm4489_vm4, %v4491_v35, %v4487_v3  ;;  %v4543_v21 = vadd.f32 0.05243302, %v4542_v27 }
 0x4b8   :  { %v11199_v26 = vadd.f32 %v4029_v4, %v3938_v24  ;;  %v11208_v59 = vmul.f32 0.70710677, %v11193_v32  ;;  %v4468_v18 = vmul.f32 %v4467_v2, %v10907_v54  ;;  %v11212_v57 = vmul.f32 0.5, %v10990_v42 }
 0x4b9   :  { %v4749_v19 = vmul.f32 3.8918573e-05, %v11134_v22  ;;  %v4676_v43 = vadd.f32 0.4994258, %v4675_v25  ;;  %v11217_v16 = vpop.eup %7093  ;;  %v6841_v45 = vclamps-f32 %v4413_v51, 1.0  ;;  %v11224_v56 = vmul.f32 %v6377_v0, %v11013_v39 }
 0x4ba   :  { %v11215_v50 = vmul.f32 0.70710677, %v11199_v26  ;;  %v4816_v38 = vmul.f32 %v11208_v59, %v11208_v59  ;;  %v4493_v52 = vmul.f32 %v4492_v31, %v4468_v18  ;;  %v4587_v54 = vadd.f32 1.1283791, %v4586_v61 }
 0x4bb   :  { %v4750_v8 = vadd.f32 0.001143296, %v4749_v19  ;;  %v4533_v19 = vmul.f32 %v4532_v55, %v11106_v36  ;;  %v4663_v24 = vadd.f32 0.05243302, %v4662_v14  ;;  %v4619_v42 = vadd.f32 0.00028619796, %v4618_v58  ;;  %v4127_v36 = vpop.f32.mrf.mxu0 }
 0x4bc   :  { %v4544_v46 = vmul.f32 %v4543_v21, %v11057_v30  ;;  %v4738_v28 = vmul.f32 2.1237322e-06, %v11134_v22  ;;  %v4600_v53 = vmul.f32 %v11217_v16, %v11159_v44  ;;  %v4677_v6 = vmul.f32 %v4676_v43, %v11049_v7 }
 0x4bd   :  { %v4751_v63 = vmul.f32 %v4750_v8, %v11134_v22  ;;  %v11228_v8 = vmin.f32 %v4816_v38, 16.0  ;;  %v4696_v9 = vmul.f32 %v11215_v50, %v11215_v50  ;;  %v3941_v39 = vadd.f32 %v3940_v12, %v10854_v15 }
 0x4be   :  { %v6376_v34 = vadd.f32 1.0, %v6841_v45  ;;  %v6844_v27 = vclamps-f32 %v4533_v19, 1.0  ;;  %v6843_v2 = vclamps-f32 %v4493_v52, 1.0  ;;  %v11238_v3 = vmul.f32 0.5, %v10996_v1  ;;  %v4219_v19 = vpop.f32.mrf.mxu1 }
 0x4bf   :  { %v4752_v10 = vadd.f32 0.014752088, %v4751_v63  ;;  %v4829_v4 = vmul.f32 3.8918573e-05, %v11228_v8  ;;  %v4620_v25 = vmul.f32 %v4619_v42, %v11182_v11  ;;  %v4128_v51 = vadd.f32 %v4127_v36, %v10844_v47  ;;  %v4032_v58 = vpop.f32.mrf.mxu3 }
 0x4c0   :  { %v4545_v35 = vadd.f32 0.18741608, %v4544_v46  ;;  %v4664_v61 = vmul.f32 %v4663_v24, %v11049_v7  ;;  %v4739_v55 = vadd.f32 0.00028619796, %v4738_v28  ;;  %v11243_v0 = vadd.f32 1.0, %v4677_v6  ;;  %v6476_v6 = vld [vmem:[#allocation7] sm:$0xff] }
 0x4c1   :  { %v4753_v41 = vmul.f32 %v4752_v10, %v11134_v22  ;;  %v4830_v14 = vadd.f32 0.001143296, %v4829_v4  ;;  %v4601_v10 = vsub.f32 1.0, %v4600_v53  ;;  %v11245_v31 = vmin.f32 %v4696_v9, 16.0  ;;  %6906 = vmatpush.msra.mxu2 %v6476_v6  ;;  %6527 = vmatpush.msrb.mxu0 %v6476_v6 }
 0x4c2   :  { %v11247_v21 = vadd.f32 %v4032_v58, %v3941_v39  ;;  %v6426_v1 = vmul.f32 %v6376_v34, %v11019_v23  ;;  %v6379_v18 = vadd.f32 1.0, %v6844_v27  ;;  %v11251_v43 = vmul.f32 %v4587_v54, %v10936_v37 }
 0x4c3   :  { %v4754_v63 = vadd.f32 0.112945676, %v4753_v41  ;;  %v6378_v41 = vadd.f32 1.0, %v6843_v2  ;;  %v4621_v38 = vadd.f32 0.0036580483, %v4620_v25  ;;  %v4831_v12 = vmul.f32 %v4830_v14, %v11228_v8 }
 0x4c4   :  { %v11255_v52 = vadd.f32 %v4219_v19, %v4128_v51  ;;  %v4608_v24 = vand.u32 2147483647, %v11159_v44  ;;  %v4546_v42 = vmul.f32 %v4545_v35, %v11057_v30  ;;  %v4665_v46 = vadd.f32 0.18741608, %v4664_v61  ;;  %v3943_v35 = vpop.f32.mrf.mxu2  ;;  %6528 = vmatmul.f32.vlgmr.msrb.gmra.mxu0 %v6426_v1 }
 0x4c5   :  { %v4755_v45 = vmul.f32 %v4754_v63, %v11134_v22  ;;  %v4740_v23 = vmul.f32 %v4739_v55, %v11134_v22  ;;  %v4602_v28 = vmul.f32 %v11217_v16, %v4601_v10  ;;  %7095 = vrcp.f32 %v11243_v0  ;;  %v6492_v63 = vld [vmem:[#allocation7 + $0x80] sm:$0xff] }
 0x4c6   :  { %v4698_v37 = vmul.f32 2.1237322e-06, %v11245_v31  ;;  %v11264_v54 = vmul.f32 0.70710677, %v11247_v21  ;;  %v6429_v36 = vmul.f32 %v6379_v18, %v11027_v5  ;;  %v11268_v62 = vmul.f32 0.5, %v11103_v48  ;;  %6922 = vmatpush.msra.mxu3 %v6492_v63  ;;  %6619 = vmatpush.msrb.mxu1 %v6492_v63  ;;  %v4222_v6 = vpop.f32.mrf.mxu1 }
 0x4c7   :  { %v4756_v49 = vadd.f32 0.4994258, %v4755_v45  ;;  %v4818_v53 = vmul.f32 2.1237322e-06, %v11228_v8  ;;  %v6428_v9 = vmul.f32 %v6378_v41, %v11041_v33  ;;  %v4622_v39 = vmul.f32 %v4621_v38, %v11182_v11  ;;  %6620 = vmatmul.f32.vlgmr.msrb.gmra.mxu1 %v11224_v56 }
 0x4c8   :  { %13782 = vst [vmem:[#allocation60_spill] sm:$0xff] %v11268_v62  ;;  %v4832_v34 = vadd.f32 0.014752088, %v4831_v12  ;;  %v11274_v27 = vmul.f32 0.70710677, %v11255_v52  ;;  %vm4605_vm5 = vweird.f32 %v11217_v16  ;;  %v4610_v5 = vand.u32 2147483648, %v11159_v44  ;;  %6623 = vmatmul.f32.vlgmr.msra.gmra.mxu3 %v6429_v36 }
 0x4c9   :  { %v4547_v48 = vadd.f32 1.1283791, %v4546_v42  ;;  %v4741_v4 = vadd.f32 0.0036580483, %v4740_v23  ;;  %v4603_v2 = vadd.f32 %v11217_v16, %v4602_v28  ;;  %v4699_v33 = vadd.f32 0.00028619796, %v4698_v37  ;;  %6531 = vmatmul.f32.vlgmr.msra.gmra.mxu2 %v6428_v9 }
 0x4ca   :  { %v4776_v25 = vmul.f32 %v11264_v54, %v11264_v54  ;;  %v4896_v51 = vmul.f32 %v11274_v27, %v11274_v27  ;;  %vm4604_vm6 = vweird.f32 %v11159_v44  ;;  %vm11284_vm7 = vcmp.eq.f32.partialorder %v4608_v24, 8.507059e+37  ;;  %v4130_v44 = vpop.f32.mrf.mxu0 }
 0x4cb   :  { %v4757_v55 = vmul.f32 %v4756_v49, %v11134_v22  ;;  %v4819_v14 = vadd.f32 0.00028619796, %v4818_v53  ;;  %v11290_v58 = vpop.eup %7095  ;;  %v4666_v10 = vmul.f32 %v4665_v46, %v11049_v7  ;;  %v4623_v18 = vadd.f32 0.05243302, %v4622_v39  ;;  %vm11298_vm8 = vmor %vm4604_vm6, %vm4605_vm5  ;;  %v4035_v53 = vpop.f32.mrf.mxu3 }
 0x4cc   :  { %v4833_v1 = vmul.f32 %v4832_v34, %v11228_v8  ;;  %v11294_v45 = vmin.f32 %v4896_v51, 16.0  ;;  %v4611_v41 = vor.u32 1.1754944e-38, %v4610_v5  ;;  %v11303_v56 = vmul.f32 0.5, %v11092_v29 }
 0x4cd   :  { %v4742_v38 = vmul.f32 %v4741_v4, %v11134_v22  ;;  %v3944_v7 = vadd.f32 %v3943_v35, %v10854_v15  ;;  %v4607_v12 = vsel %vm11298_vm8, %v11217_v16, %v4603_v2  ;;  %v11311_v24 = vmul.f32 %v4547_v48, %v11007_v20 }
 0x4ce   :  { %v4700_v42 = vmul.f32 %v4699_v33, %v11245_v31  ;;  %v11314_v46 = vmin.f32 %v4776_v25, 16.0  ;;  %v4680_v23 = vmul.f32 %v11290_v58, %v11243_v0  ;;  %v11318_v29 = vadd.f32 1.0, %v4757_v55 }
 0x4cf   :  { %v4820_v28 = vmul.f32 %v4819_v14, %v11228_v8  ;;  %v4909_v37 = vmul.f32 3.8918573e-05, %v11294_v45  ;;  %v4667_v36 = vadd.f32 1.1283791, %v4666_v10  ;;  %v4624_v49 = vmul.f32 %v4623_v18, %v11182_v11  ;;  %v3946_v14 = vpop.f32.mrf.mxu2 }
 0x4d0   :  { %v4834_v16 = vadd.f32 0.112945676, %v4833_v1  ;;  %v4131_v20 = vadd.f32 %v4130_v44, %v10844_v47  ;;  %v4743_v9 = vadd.f32 0.05243302, %v4742_v38  ;;  %v11325_v39 = vmul.f32 0.5, %v11199_v26 }
 0x4d1   :  { %v4910_v34 = vadd.f32 0.001143296, %v4909_v37  ;;  %v11327_v63 = vadd.f32 %v4035_v53, %v3944_v7  ;;  %v4612_v5 = vsel %vm11284_vm7, %v4611_v41, %v4607_v12  ;;  %v4701_v48 = vadd.f32 0.0036580483, %v4700_v42 }
 0x4d2   :  { %13787 = vst [vmem:[#allocation52_spill] sm:$0xff] %v11325_v39  ;;  %v11332_v4 = vmul.f32 0.5, %v11193_v32  ;;  %v4778_v2 = vmul.f32 2.1237322e-06, %v11314_v46  ;;  %v4681_v33 = vsub.f32 1.0, %v4680_v23  ;;  %7097 = vrcp.f32 %v11318_v29  ;;  %v4133_v41 = vpop.f32.mrf.mxu0 }
 0x4d3   :  { %v4821_v25 = vadd.f32 0.0036580483, %v4820_v28  ;;  %v4911_v51 = vmul.f32 %v4910_v34, %v11294_v45  ;;  %v11338_v26 = vmul.f32 %v4667_v36, %v11016_v40  ;;  %v4625_v35 = vadd.f32 0.18741608, %v4624_v49 }
 0x4d4   :  { %13788 = vst [vmem:[#allocation22_spill] sm:$0xff] %v11332_v4  ;;  %v4835_v55 = vmul.f32 %v4834_v16, %v11228_v8  ;;  %v11341_v61 = vadd.f32 %v4222_v6, %v4131_v20  ;;  %v11344_v32 = vmul.f32 %v4612_v5, %v11251_v43  ;;  %vm4684_vm9 = vweird.f32 %v11243_v0 }
 0x4d5   :  { %v4744_v10 = vmul.f32 %v4743_v9, %v11134_v22  ;;  %v11349_v18 = vmul.f32 0.70710677, %v11327_v63  ;;  %v4688_v1 = vand.u32 2147483647, %v11243_v0  ;;  %v4702_v40 = vmul.f32 %v4701_v48, %v11245_v31  ;;  %v4038_v48 = vpop.f32.mrf.mxu3 }
 0x4d6   :  { %v4779_v44 = vadd.f32 0.00028619796, %v4778_v2  ;;  %v4912_v19 = vadd.f32 0.014752088, %v4911_v51  ;;  %v4682_v38 = vmul.f32 %v11290_v58, %v4681_v33  ;;  %v4690_v7 = vand.u32 2147483648, %v11243_v0  ;;  %v4225_v2 = vpop.f32.mrf.mxu1 }
 0x4d7   :  { %v4822_v43 = vmul.f32 %v4821_v25, %v11228_v8  ;;  %v3947_v12 = vadd.f32 %v3946_v14, %v10854_v15  ;;  %vm4685_vm10 = vweird.f32 %v11290_v58  ;;  %v4626_v42 = vmul.f32 %v4625_v35, %v11182_v11 }
 0x4d8   :  { %v4836_v23 = vadd.f32 0.4994258, %v4835_v55  ;;  %v11360_v28 = vmul.f32 0.70710677, %v11341_v61  ;;  %v11362_v37 = vpop.eup %7097  ;;  %v4745_v36 = vadd.f32 0.18741608, %v4744_v10  ;;  %v4856_v16 = vmul.f32 %v11349_v18, %v11349_v18  ;;  %vm11396_vm12 = vmor %vm4684_vm9, %vm4685_vm10 }
 0x4d9   :  { %v4898_v49 = vmul.f32 2.1237322e-06, %v11294_v45  ;;  %v4134_v53 = vadd.f32 %v4133_v41, %v10844_v47  ;;  %vm11368_vm11 = vcmp.eq.f32.partialorder %v4688_v1, 8.507059e+37  ;;  %v4703_v6 = vadd.f32 0.05243302, %v4702_v40 }
 0x4da   :  { %v4780_v9 = vmul.f32 %v4779_v44, %v11314_v46  ;;  %v4913_v34 = vmul.f32 %v4912_v19, %v11294_v45  ;;  %v4976_v5 = vmul.f32 %v11360_v28, %v11360_v28  ;;  %v4683_v33 = vadd.f32 %v11290_v58, %v4682_v38 }
 0x4db   :  { %v4823_v25 = vadd.f32 0.05243302, %v4822_v43  ;;  %v11377_v51 = vadd.f32 %v4038_v48, %v3947_v12  ;;  %v11379_v35 = vadd.f32 %v4225_v2, %v4134_v53  ;;  %v4627_v55 = vadd.f32 1.1283791, %v4626_v42 }
 0x4dc   :  { %v4760_v14 = vmul.f32 %v11362_v37, %v11318_v29  ;;  %v4837_v10 = vmul.f32 %v4836_v23, %v11228_v8  ;;  %v11384_v1 = vmin.f32 %v4976_v5, 16.0  ;;  %v4746_v40 = vmul.f32 %v4745_v36, %v11134_v22 }
 0x4dd   :  { %v4899_v44 = vadd.f32 0.00028619796, %v4898_v49  ;;  %v11387_v19 = vmin.f32 %v4856_v16, 16.0  ;;  %v11390_v41 = vmul.f32 0.70710677, %v11379_v35  ;;  %v4704_v43 = vmul.f32 %v4703_v6, %v11245_v31 }
 0x4de   :  { %v4781_v12 = vadd.f32 0.0036580483, %v4780_v9  ;;  %v4914_v42 = vadd.f32 0.112945676, %v4913_v34  ;;  %v4989_v22 = vmul.f32 3.8918573e-05, %v11384_v1  ;;  %v4687_v23 = vsel %vm11396_vm12, %v11290_v58, %v4683_v33 }
 0x4df   :  { %v4691_v36 = vor.u32 1.1754944e-38, %v4690_v7  ;;  %v4824_v49 = vmul.f32 %v4823_v25, %v11228_v8  ;;  %v11407_v16 = vmul.f32 0.70710677, %v11377_v51  ;;  %v4761_v0 = vsub.f32 1.0, %v4760_v14 }
 0x4e0   :  { %v11409_v53 = vadd.f32 1.0, %v4837_v10  ;;  %v4990_v5 = vadd.f32 0.001143296, %v4989_v22  ;;  %v5056_v6 = vmul.f32 %v11390_v41, %v11390_v41  ;;  %v11414_v9 = vmul.f32 %v4627_v55, %v11124_v60 }
 0x4e1   :  { %v11417_v34 = vmul.f32 0.5, %v11247_v21  ;;  %v4900_v58 = vmul.f32 %v4899_v44, %v11294_v45  ;;  %v4858_v7 = vmul.f32 2.1237322e-06, %v11387_v19  ;;  %v4747_v48 = vadd.f32 1.1283791, %v4746_v40 }
 0x4e2   :  { %v4705_v2 = vadd.f32 0.18741608, %v4704_v43  ;;  %v4782_v33 = vmul.f32 %v4781_v12, %v11314_v46  ;;  %v4915_v25 = vmul.f32 %v4914_v42, %v11294_v45  ;;  %v4692_v14 = vsel %vm11368_vm11, %v4691_v36, %v4687_v23  ;;  %v3949_v42 = vpop.f32.mrf.mxu2 }
 0x4e3   :  { %13793 = vst [vmem:[#allocation23_spill] sm:$0xff] %v11417_v34  ;;  %v4768_v10 = vand.u32 2147483647, %v11318_v29  ;;  %v4825_v60 = vadd.f32 0.18741608, %v4824_v49  ;;  %v4936_v21 = vmul.f32 %v11407_v16, %v11407_v16  ;;  %v4762_v55 = vmul.f32 %v11362_v37, %v4761_v0 }
 0x4e4   :  { %7099 = vrcp.f32 %v11409_v53  ;;  %v4991_v40 = vmul.f32 %v4990_v5, %v11384_v1  ;;  %v11431_v44 = vmin.f32 %v5056_v6, 16.0  ;;  %v4770_v38 = vand.u32 2147483648, %v11318_v29 }
 0x4e5   :  { %v11435_v43 = vmul.f32 0.5, %v11255_v52  ;;  %v4901_v20 = vadd.f32 0.0036580483, %v4900_v58  ;;  %v4859_v12 = vadd.f32 0.00028619796, %v4858_v7  ;;  %v11438_v22 = vmul.f32 %v4747_v48, %v11111_v17 }
 0x4e6   :  { %v4706_v23 = vmul.f32 %v4705_v2, %v11245_v31  ;;  %v4783_v36 = vadd.f32 0.05243302, %v4782_v33  ;;  %v4916_v49 = vadd.f32 0.4994258, %v4915_v25  ;;  %v11442_v0 = vmul.f32 %v4692_v14, %v11338_v26 }
 0x4e7   :  { %13794 = vst [vmem:[#allocation61_spill] sm:$0xff] %v11435_v43  ;;  %vm4764_vm13 = vweird.f32 %v11318_v29  ;;  %vm4765_vm14 = vweird.f32 %v11362_v37  ;;  %v11446_v5 = vmin.f32 %v4936_v21, 16.0  ;;  %v4763_v52 = vadd.f32 %v11362_v37, %v4762_v55 }
 0x4e8   :  { %v4826_v6 = vmul.f32 %v4825_v60, %v11228_v8  ;;  %v4992_v58 = vadd.f32 0.014752088, %v4991_v40  ;;  %v5069_v17 = vmul.f32 3.8918573e-05, %v11431_v44  ;;  %vm11451_vm15 = vcmp.eq.f32.partialorder %v4768_v10, 8.507059e+37  ;;  %vm11465_vm0 = vmor %vm4764_vm13, %vm4765_vm14 }
 0x4e9   :  { %v4771_v48 = vor.u32 1.1754944e-38, %v4770_v38  ;;  %v4902_v26 = vmul.f32 %v4901_v20, %v11294_v45  ;;  %v4860_v2 = vmul.f32 %v4859_v12, %v11387_v19  ;;  %v4707_v25 = vadd.f32 1.1283791, %v4706_v23  ;;  %v4041_v20 = vpop.f32.mrf.mxu3  ;;  %v4136_v12 = vpop.f32.mrf.mxu0 }
 0x4ea   :  { %v11457_v33 = vpop.eup %7099  ;;  %v4784_v14 = vmul.f32 %v4783_v36, %v11314_v46  ;;  %v4917_v21 = vmul.f32 %v4916_v49, %v11294_v45  ;;  %v5070_v8 = vadd.f32 0.001143296, %v5069_v17  ;;  %v11470_v60 = vmul.f32 0.5, %v11327_v63 }
 0x4eb   :  { %v11473_v55 = vmul.f32 0.5, %v11341_v61  ;;  %v4978_v40 = vmul.f32 2.1237322e-06, %v11384_v1  ;;  %v4938_v38 = vmul.f32 2.1237322e-06, %v11446_v5  ;;  %v4767_v29 = vsel %vm11465_vm0, %v11362_v37, %v4763_v52 }
 0x4ec   :  { %13799 = vst [vmem:[#allocation63_spill] sm:$0xff] %v11470_v60  ;;  %v4827_v23 = vadd.f32 1.1283791, %v4826_v6  ;;  %v4993_v36 = vmul.f32 %v4992_v58, %v11384_v1  ;;  %v5071_v49 = vmul.f32 %v5070_v8, %v11431_v44  ;;  %v4840_v63 = vmul.f32 %v11457_v33, %v11409_v53  ;;  %v3952_v8 = vpop.f32.mrf.mxu2 }
 0x4ed   :  { %13800 = vst [vmem:[#allocation24_spill] sm:$0xff] %v11473_v55  ;;  %v4903_v61 = vadd.f32 0.05243302, %v4902_v26  ;;  %v4861_v17 = vadd.f32 0.0036580483, %v4860_v2  ;;  %v3950_v60 = vadd.f32 %v3949_v42, %v10854_v15  ;;  %v11485_v34 = vadd.f32 1.0, %v4917_v21 }
 0x4ee   :  { %v4785_v55 = vadd.f32 0.18741608, %v4784_v14  ;;  %v5072_v43 = vadd.f32 0.014752088, %v5071_v49  ;;  %v4137_v39 = vadd.f32 %v4136_v12, %v10844_v47  ;;  %v11489_v37 = vmul.f32 %v4707_v25, %v11215_v50 }
 0x4ef   :  { %v4979_v52 = vadd.f32 0.00028619796, %v4978_v40  ;;  %v4939_v6 = vadd.f32 0.00028619796, %v4938_v38  ;;  %v5058_v58 = vmul.f32 2.1237322e-06, %v11431_v44  ;;  %v4772_v26 = vsel %vm11451_vm15, %v4771_v48, %v4767_v29  ;;  %v4228_v40 = vpop.f32.mrf.mxu1 }
 0x4f0   :  { %13801 = vst [vmem:[#allocation25_spill] sm:$0xff] %v11489_v37  ;;  %v11495_v2 = vmul.f32 %v4827_v23, %v11208_v59  ;;  %v4994_v42 = vadd.f32 0.112945676, %v4993_v36  ;;  %v11498_v14 = vmul.f32 0.5, %v11377_v51  ;;  %v4841_v21 = vsub.f32 1.0, %v4840_v63 }
 0x4f1   :  { %v4904_v10 = vmul.f32 %v4903_v61, %v11294_v45  ;;  %v4862_v50 = vmul.f32 %v4861_v17, %v11387_v19  ;;  %v11502_v25 = vadd.f32 %v4041_v20, %v3950_v60  ;;  %7101 = vrcp.f32 %v11485_v34  ;;  %v4044_v49 = vpop.f32.mrf.mxu3  ;;  %v4139_v63 = vpop.f32.mrf.mxu0 }
 0x4f2   :  { %13802 = vst [vmem:[#allocation62_spill] sm:$0xff] %v11498_v14  ;;  %v5073_v7 = vmul.f32 %v5072_v43, %v11431_v44  ;;  %v11506_v48 = vadd.f32 %v4228_v40, %v4137_v39  ;;  %v3953_v59 = vadd.f32 %v3952_v8, %v10854_v15  ;;  %v4786_v38 = vmul.f32 %v4785_v55, %v11314_v46 }
 0x4f3   :  { %v4980_v51 = vmul.f32 %v4979_v52, %v11384_v1  ;;  %v4940_v12 = vmul.f32 %v4939_v6, %v11446_v5  ;;  %v5059_v29 = vadd.f32 0.00028619796, %v5058_v58  ;;  %vm4844_vm1 = vweird.f32 %v11409_v53 }
 0x4f4   :  { %v4848_v60 = vand.u32 2147483647, %v11409_v53  ;;  %v4850_v20 = vand.u32 2147483648, %v11409_v53  ;;  %v4995_v23 = vmul.f32 %v4994_v42, %v11384_v1  ;;  %v11517_v39 = vmul.f32 %v4772_v26, %v11438_v22 }
 0x4f5   :  { %v4905_v43 = vadd.f32 0.18741608, %v4904_v10  ;;  %v4863_v36 = vadd.f32 0.05243302, %v4862_v50  ;;  %v11520_v55 = vmul.f32 0.70710677, %v11502_v25  ;;  %v4842_v61 = vmul.f32 %v11457_v33, %v4841_v21 }
 0x4f6   :  { %v5074_v17 = vadd.f32 0.112945676, %v5073_v7  ;;  %v11524_v52 = vmul.f32 0.70710677, %v11506_v48  ;;  %v11526_v6 = vadd.f32 %v4044_v49, %v3953_v59  ;;  %v4787_v58 = vadd.f32 1.1283791, %v4786_v38 }
 0x4f7   :  { %v4981_v8 = vadd.f32 0.0036580483, %v4980_v51  ;;  %v4941_v42 = vadd.f32 0.0036580483, %v4940_v12  ;;  %v5060_v22 = vmul.f32 %v5059_v29, %v11431_v44  ;;  %v11529_v26 = vpop.eup %7101  ;;  %vm11531_vm2 = vcmp.eq.f32.partialorder %v4848_v60, 8.507059e+37 }
 0x4f8   :  { %v4996_v50 = vadd.f32 0.4994258, %v4995_v23  ;;  %v5136_v21 = vmul.f32 %v11524_v52, %v11524_v52  ;;  %v4140_v40 = vadd.f32 %v4139_v63, %v10844_v47  ;;  %v4549_v7 = vmul.f32 3.8918573e-05, %v11057_v30 }
 0x4f9   :  { %vm4845_vm3 = vweird.f32 %v11457_v33  ;;  %v4906_v59 = vmul.f32 %v4905_v43, %v11294_v45  ;;  %v4864_v38 = vmul.f32 %v4863_v36, %v11387_v19  ;;  %v5016_v51 = vmul.f32 %v11520_v55, %v11520_v55  ;;  %v4231_v36 = vpop.f32.mrf.mxu1 }
 0x4fa   :  { %v4843_v12 = vadd.f32 %v11457_v33, %v4842_v61  ;;  %v5075_v29 = vmul.f32 %v5074_v17, %v11431_v44  ;;  %v11547_v60 = vmul.f32 0.70710677, %v11526_v6  ;;  %v4550_v23 = vadd.f32 0.001143296, %v4549_v7  ;;  %vm11562_vm4 = vmor %vm4844_vm1, %vm4845_vm3 }
 0x4fb   :  { %v4920_v49 = vmul.f32 %v11529_v26, %v11485_v34  ;;  %v4982_v63 = vmul.f32 %v4981_v8, %v11384_v1  ;;  %v4942_v45 = vmul.f32 %v4941_v42, %v11446_v5  ;;  %v5061_v43 = vadd.f32 0.0036580483, %v5060_v22 }
 0x4fc   :  { %v4851_v14 = vor.u32 1.1754944e-38, %v4850_v20  ;;  %v4997_v4 = vmul.f32 %v4996_v50, %v11384_v1  ;;  %v11554_v37 = vmin.f32 %v5136_v21, 16.0  ;;  %v11556_v61 = vadd.f32 %v4231_v36, %v4140_v40 }
 0x4fd   :  { %v11567_v8 = vmul.f32 %v4787_v58, %v11264_v54  ;;  %v4907_v42 = vadd.f32 1.1283791, %v4906_v59  ;;  %v4865_v22 = vadd.f32 0.18741608, %v4864_v38  ;;  %v11569_v20 = vmin.f32 %v5016_v51, 16.0 }
 0x4fe   :  { %v4847_v50 = vsel %vm11562_vm4, %v11457_v33, %v4843_v12  ;;  %v5076_v21 = vadd.f32 0.4994258, %v5075_v29  ;;  %v5096_v40 = vmul.f32 %v11547_v60, %v11547_v60  ;;  %v4551_v53 = vmul.f32 %v4550_v23, %v11057_v30 }
 0x4ff   :  { %13807 = vst [vmem:[#allocation36_spill] sm:$0xff] %v11567_v8  ;;  %v4921_v7 = vsub.f32 1.0, %v4920_v49  ;;  %v4983_v36 = vadd.f32 0.05243302, %v4982_v63  ;;  %v4943_v62 = vadd.f32 0.05243302, %v4942_v45  ;;  %v5062_v54 = vmul.f32 %v5061_v43, %v11431_v44 }
 0x500   :  { %v11578_v58 = vadd.f32 1.0, %v4997_v4  ;;  %v11581_v59 = vmul.f32 0.5, %v11379_v35  ;;  %v5149_v38 = vmul.f32 3.8918573e-05, %v11554_v37  ;;  %v11585_v33 = vmul.f32 0.70710677, %v11556_v61 }
 0x501   :  { %v4852_v51 = vsel %vm11531_vm2, %v4851_v14, %v4847_v50  ;;  %v11590_v12 = vmul.f32 %v4907_v42, %v11274_v27  ;;  %v4866_v29 = vmul.f32 %v4865_v22, %v11387_v19  ;;  %v5018_v23 = vmul.f32 2.1237322e-06, %v11569_v20 }
 0x502   :  { %13808 = vst [vmem:[#allocation26_spill] sm:$0xff] %v11581_v59  ;;  %vm4924_vm5 = vweird.f32 %v11485_v34  ;;  %v5077_v4 = vmul.f32 %v5076_v21, %v11431_v44  ;;  %v11596_v35 = vmin.f32 %v5096_v40, 16.0  ;;  %v5216_v49 = vmul.f32 %v11585_v33, %v11585_v33 }
 0x503   :  { %13809 = vst [vmem:[#allocation27_spill] sm:$0xff] %v11585_v33  ;;  %v4552_v63 = vadd.f32 0.014752088, %v4551_v53  ;;  %v4922_v10 = vmul.f32 %v11529_v26, %v4921_v7  ;;  %v4984_v14 = vmul.f32 %v4983_v36, %v11384_v1  ;;  %v4944_v27 = vmul.f32 %v4943_v62, %v11446_v5 }
 0x504   :  { %v5063_v45 = vadd.f32 0.05243302, %v5062_v54  ;;  %7103 = vrcp.f32 %v11578_v58  ;;  %v5150_v43 = vadd.f32 0.001143296, %v5149_v38  ;;  %v11604_v17 = vmin.f32 %v5216_v49, 16.0 }
 0x505   :  { %v4553_v42 = vmul.f32 %v4552_v63, %v11057_v30  ;;  %v11608_v22 = vmul.f32 %v4852_v51, %v11495_v2  ;;  %v4928_v50 = vand.u32 2147483647, %v11485_v34  ;;  %v5019_v21 = vadd.f32 0.00028619796, %v5018_v23 }
 0x506   :  { %v5138_v40 = vmul.f32 2.1237322e-06, %v11554_v37  ;;  %v4930_v53 = vand.u32 2147483648, %v11485_v34  ;;  %v11613_v7 = vadd.f32 1.0, %v5077_v4  ;;  %v5098_v62 = vmul.f32 2.1237322e-06, %v11596_v35 }
 0x507   :  { %13810 = vst [vmem:[#allocation64_spill] sm:$0xff] %v11608_v22  ;;  %v6846_v36 = vclamps-f32 %v11344_v32, 1.0  ;;  %v4985_v54 = vadd.f32 0.18741608, %v4984_v14  ;;  %v5064_v38 = vmul.f32 %v5063_v45, %v11431_v44  ;;  %v5229_v49 = vmul.f32 3.8918573e-05, %v11604_v17 }
 0x508   :  { %v4554_v2 = vadd.f32 0.112945676, %v4553_v42  ;;  %v4923_v51 = vadd.f32 %v11529_v26, %v4922_v10  ;;  %vm4925_vm6 = vweird.f32 %v11529_v26  ;;  %v4945_v23 = vadd.f32 0.18741608, %v4944_v27  ;;  %v4142_v27 = vpop.f32.mrf.mxu0 }
 0x509   :  { %v5151_v63 = vmul.f32 %v5150_v43, %v11554_v37  ;;  %v4867_v59 = vadd.f32 1.1283791, %v4866_v29  ;;  %v5020_v4 = vmul.f32 %v5019_v21, %v11569_v20  ;;  %v5139_v8 = vadd.f32 0.00028619796, %v5138_v40  ;;  %vm11633_vm8 = vmor %vm4924_vm5, %vm4925_vm6 }
 0x50a   :  { %v4555_v33 = vmul.f32 %v4554_v2, %v11057_v30  ;;  %v11624_v32 = vpop.eup %7103  ;;  %vm11626_vm7 = vcmp.eq.f32.partialorder %v4928_v50, 8.507059e+37  ;;  %7105 = vrcp.f32 %v11613_v7  ;;  %v5099_v10 = vadd.f32 0.00028619796, %v5098_v62 }
 0x50b   :  { %v6381_v45 = vadd.f32 1.0, %v6846_v36  ;;  %v4986_v29 = vmul.f32 %v4985_v54, %v11384_v1  ;;  %v5065_v43 = vadd.f32 0.18741608, %v5064_v38  ;;  %v5230_v42 = vadd.f32 0.001143296, %v5229_v49 }
 0x50c   :  { %v4556_v21 = vadd.f32 0.4994258, %v4555_v33  ;;  %v4927_v50 = vsel %vm11633_vm8, %v11529_v26, %v4923_v51  ;;  %v4946_v40 = vmul.f32 %v4945_v23, %v11446_v5  ;;  %v5152_v2 = vadd.f32 0.014752088, %v5151_v63 }
 0x50d   :  { %v6431_v62 = vmul.f32 %v6381_v45, %v11044_v13  ;;  %v5000_v34 = vmul.f32 %v11624_v32, %v11578_v58  ;;  %v5021_v36 = vadd.f32 0.0036580483, %v5020_v4  ;;  %v5140_v22 = vmul.f32 %v5139_v8, %v11554_v37 }
 0x50e   :  { %v4557_v1 = vmul.f32 %v4556_v21, %v11057_v30  ;;  %v4931_v54 = vor.u32 1.1754944e-38, %v4930_v53  ;;  %v11648_v33 = vmul.f32 %v4867_v59, %v11349_v18  ;;  %v11651_v38 = vmul.f32 0.5, %v11502_v25 }
 0x50f   :  { %v5100_v26 = vmul.f32 %v5099_v10, %v11596_v35  ;;  %6626 = vmatmul.f32.gmra.mxu3 %v6431_v62  ;;  %v4987_v49 = vadd.f32 1.1283791, %v4986_v29  ;;  %v5066_v13 = vmul.f32 %v5065_v43, %v11431_v44  ;;  %v5231_v51 = vmul.f32 %v5230_v42, %v11604_v17 }
 0x510   :  { %13815 = vst [vmem:[#allocation38_spill] sm:$0xff] %v11651_v38  ;;  %v11656_v23 = vadd.f32 1.0, %v4557_v1  ;;  %v11658_v8 = vpop.eup %7105  ;;  %v4932_v30 = vsel %vm11626_vm7, %v4931_v54, %v4927_v50  ;;  %v4947_v18 = vadd.f32 1.1283791, %v4946_v40  ;;  %v11663_v59 = vmul.f32 0.5, %v11506_v48  ;;  %v4234_v54 = vpop.f32.mrf.mxu1 }
 0x511   :  { %v5153_v25 = vmul.f32 %v5152_v2, %v11554_v37  ;;  %v5001_v53 = vsub.f32 1.0, %v5000_v34  ;;  %v5022_v63 = vmul.f32 %v5021_v36, %v11569_v20  ;;  %v5141_v4 = vadd.f32 0.0036580483, %v5140_v22 }
 0x512   :  { %13816 = vst [vmem:[#allocation39_spill] sm:$0xff] %v11663_v59  ;;  %7107 = vrcp.f32 %v11656_v23  ;;  %v5010_v44 = vand.u32 2147483648, %v11578_v58  ;;  %v11670_v10 = vmul.f32 0.5, %v11526_v6  ;;  %v5101_v45 = vadd.f32 0.0036580483, %v5100_v26 }
 0x513   :  { %v5218_v14 = vmul.f32 2.1237322e-06, %v11604_v17  ;;  %v11674_v48 = vmul.f32 %v4987_v49, %v11360_v28  ;;  %v5067_v29 = vadd.f32 1.1283791, %v5066_v13  ;;  %v5080_v43 = vmul.f32 %v11658_v8, %v11613_v7 }
 0x514   :  { %13817 = vst [vmem:[#allocation55_spill] sm:$0xff] %v11670_v10  ;;  %v5232_v42 = vadd.f32 0.014752088, %v5231_v51  ;;  %v11679_v22 = vmul.f32 %v4932_v30, %v11590_v12  ;;  %v5008_v21 = vand.u32 2147483647, %v11578_v58  ;;  %v5002_v40 = vmul.f32 %v11624_v32, %v5001_v53 }
 0x515   :  { %v5154_v50 = vadd.f32 0.112945676, %v5153_v25  ;;  %v4629_v6 = vmul.f32 3.8918573e-05, %v11182_v11  ;;  %v5023_v2 = vadd.f32 0.05243302, %v5022_v63  ;;  %v5142_v62 = vmul.f32 %v5141_v4, %v11554_v37  ;;  %v3955_v63 = vpop.f32.mrf.mxu2 }
 0x516   :  { %v4143_v28 = vadd.f32 %v4142_v27, %v10844_v47  ;;  %v11686_v34 = vor.u32 1.1754944e-38, %v5010_v44  ;;  %v11689_v36 = vmul.f32 %v4947_v18, %v11407_v16  ;;  %v5102_v12 = vmul.f32 %v5101_v45, %v11596_v35 }
 0x517   :  { %v5219_v1 = vadd.f32 0.00028619796, %v5218_v14  ;;  %v11693_v49 = vmul.f32 %v5067_v29, %v11390_v41  ;;  %v5081_v13 = vsub.f32 1.0, %v5080_v43  ;;  %v5233_v51 = vmul.f32 %v5232_v42, %v11604_v17 }
 0x518   :  { %v7108_v26 = vpop.eup %7107  ;;  %v11696_v30 = vadd.f32 %v4234_v54, %v4143_v28  ;;  %v5155_v16 = vmul.f32 %v5154_v50, %v11554_v37  ;;  %v11703_v4 = vadd.f32 %v11624_v32, %v5002_v40  ;;  %v5024_v41 = vmul.f32 %v5023_v2, %v11569_v20 }
 0x519   :  { %v4560_v18 = vmul.f32 %v7108_v26, %v11656_v23  ;;  %v5143_v44 = vadd.f32 0.05243302, %v5142_v62  ;;  %v4630_v45 = vadd.f32 0.001143296, %v4629_v6  ;;  %vm5005_vm9 = vweird.f32 %v11624_v32 }
 0x51a   :  { %v5103_v14 = vadd.f32 0.05243302, %v5102_v12  ;;  %v5220_v27 = vmul.f32 %v5219_v1, %v11604_v17  ;;  %v11709_v43 = vmul.f32 0.70710677, %v11696_v30  ;;  %v5082_v42 = vmul.f32 %v11658_v8, %v5081_v13 }
 0x51b   :  { %v4561_v29 = vsub.f32 1.0, %v4560_v18  ;;  %v5234_v50 = vadd.f32 0.112945676, %v5233_v51  ;;  %v4570_v28 = vand.u32 2147483648, %v11656_v23  ;;  %v3956_v40 = vadd.f32 %v3955_v63, %v10854_v15 }
 0x51c   :  { %vm5004_vm10 = vweird.f32 %v11578_v58  ;;  %v5156_v2 = vadd.f32 0.4994258, %v5155_v16  ;;  %vm4565_vm11 = vweird.f32 %v7108_v26  ;;  %v4568_v62 = vand.u32 2147483647, %v11656_v23  ;;  %v4047_v16 = vpop.f32.mrf.mxu3 }
 0x51d   :  { %v4562_v6 = vmul.f32 %v7108_v26, %v4561_v29  ;;  %v5296_v12 = vmul.f32 %v11709_v43, %v11709_v43  ;;  %v4631_v1 = vmul.f32 %v4630_v45, %v11182_v11  ;;  %v6848_v54 = vclamps-f32 %v11442_v0, 1.0  ;;  %vm11748_vm2 = vmor %vm5004_vm10, %vm5005_vm9 }
 0x51e   :  { %v4709_v13 = vmul.f32 3.8918573e-05, %v11245_v31  ;;  %v5144_v51 = vmul.f32 %v5143_v44, %v11554_v37  ;;  %v5221_v18 = vadd.f32 0.0036580483, %v5220_v27  ;;  %vm4564_vm12 = vweird.f32 %v11656_v23 }
 0x51f   :  { %v4563_v63 = vadd.f32 %v7108_v26, %v4562_v6  ;;  %vm5084_vm13 = vweird.f32 %v11613_v7  ;;  %v5235_v29 = vmul.f32 %v5234_v50, %v11604_v17  ;;  %vm4566_vm14 = vmor %vm4564_vm12, %vm4565_vm11  ;;  %v4571_v53 = vor.u32 1.1754944e-38, %v4570_v28 }
 0x520   :  { %v11725_v25 = vadd.f32 %v4047_v16, %v3956_v40  ;;  %v11727_v45 = vmin.f32 %v5296_v12, 16.0  ;;  %vm4569_vm15 = vcmp.eq.f32.partialorder %v4568_v62, 8.507059e+37  ;;  %v4632_v10 = vadd.f32 0.014752088, %v4631_v1 }
 0x521   :  { %v4567_v0 = vsel %vm4566_vm14, %v7108_v26, %v4563_v63  ;;  %v6383_v38 = vadd.f32 1.0, %v6848_v54  ;;  %v5157_v44 = vmul.f32 %v5156_v2, %v11554_v37  ;;  %v4710_v6 = vadd.f32 0.001143296, %v4709_v13 }
 0x522   :  { %v4572_v27 = vsel %vm4569_vm15, %v4571_v53, %v4567_v0  ;;  %v5309_v23 = vmul.f32 3.8918573e-05, %v11727_v45  ;;  %vm11731_vm0 = vcmp.eq.f32.partialorder %v5008_v21, 8.507059e+37  ;;  %vm5085_vm1 = vweird.f32 %v11658_v8 }
 0x523   :  { %v5025_v50 = vadd.f32 0.18741608, %v5024_v41  ;;  %v5104_v28 = vmul.f32 %v5103_v14, %v11596_v35  ;;  %v4573_v26 = vmul.f32 %v4572_v27, %v11311_v24  ;;  %v5083_v40 = vadd.f32 %v11658_v8, %v5082_v42  ;;  %vm11773_vm4 = vmor %vm5084_vm13, %vm5085_vm1 }
 0x524   :  { %v5145_v62 = vadd.f32 0.18741608, %v5144_v51  ;;  %v5236_v12 = vadd.f32 0.4994258, %v5235_v29  ;;  %v5310_v2 = vadd.f32 0.001143296, %v5309_v23  ;;  %v4633_v21 = vmul.f32 %v4632_v10, %v11182_v11 }
 0x525   :  { %v6845_v53 = vclamps-f32 %v4573_v26, 1.0  ;;  %v11740_v1 = vmul.f32 0.70710677, %v11725_v25  ;;  %v6433_v54 = vmul.f32 %v6383_v38, %v11238_v3  ;;  %v11752_v24 = vadd.f32 1.0, %v5157_v44 }
 0x526   :  { %v5222_v14 = vmul.f32 %v5221_v18, %v11604_v17  ;;  %v5311_v42 = vmul.f32 %v5310_v2, %v11727_v45  ;;  %v4711_v13 = vmul.f32 %v4710_v6, %v11245_v31  ;;  %v5007_v3 = vsel %vm11748_vm2, %v11624_v32, %v11703_v4  ;;  %v4145_v2 = vpop.f32.mrf.mxu0 }
 0x527   :  { %v13822_v38 = vand.u32 2147483647, %v11613_v7  ;;  %v6380_v10 = vadd.f32 1.0, %v6845_v53  ;;  %v4634_v51 = vadd.f32 0.112945676, %v4633_v21  ;;  %6629 = vmatmul.f32.gmra.mxu3 %v6433_v54  ;;  %v5026_v18 = vmul.f32 %v5025_v50, %v11569_v20  ;;  %v4050_v54 = vpop.f32.mrf.mxu3 }
 0x528   :  { %v5105_v63 = vadd.f32 0.18741608, %v5104_v28  ;;  %v5237_v16 = vmul.f32 %v5236_v12, %v11604_v17  ;;  %v5312_v29 = vadd.f32 0.014752088, %v5311_v42  ;;  %v5176_v0 = vmul.f32 %v11740_v1, %v11740_v1  ;;  %v3958_v28 = vpop.f32.mrf.mxu2 }
 0x529   :  { %vm11763_vm3 = vcmp.eq.f32.partialorder %v13822_v38, 8.507059e+37  ;;  %v6430_v4 = vmul.f32 %v6380_v10, %v11212_v57  ;;  %v4635_v44 = vmul.f32 %v4634_v51, %v11182_v11  ;;  %v4712_v27 = vadd.f32 0.014752088, %v4711_v13 }
 0x52a   :  { %v5087_v23 = vsel %vm11773_vm4, %v11658_v8, %v5083_v40  ;;  %v5146_v6 = vmul.f32 %v5145_v62, %v11554_v37  ;;  %7109 = vrcp.f32 %v11752_v24  ;;  %v5223_v50 = vadd.f32 0.05243302, %v5222_v14 }
 0x52b   :  { %6534 = vmatmul.f32.gmra.mxu2 %v6430_v4  ;;  %v5313_v26 = vmul.f32 %v5312_v29, %v11727_v45  ;;  %v4636_v57 = vadd.f32 0.4994258, %v4635_v44  ;;  %v3959_v12 = vadd.f32 %v3958_v28, %v10854_v15  ;;  %v4713_v53 = vmul.f32 %v4712_v27, %v11245_v31 }
 0x52c   :  { %v5012_v21 = vsel %vm11731_vm0, %v11686_v34, %v5007_v3  ;;  %v13827_v8 = vand.u32 2147483648, %v11613_v7  ;;  %v5027_v40 = vadd.f32 1.1283791, %v5026_v18  ;;  %v11794_v62 = vadd.f32 1.0, %v5237_v16  ;;  %v4237_v7 = vpop.f32.mrf.mxu1 }
 0x52d   :  { %v11796_v41 = vmin.f32 %v5176_v0, 16.0  ;;  %v4637_v14 = vmul.f32 %v4636_v57, %v11182_v11  ;;  %v11799_v42 = vadd.f32 %v4050_v54, %v3959_v12  ;;  %v4146_v13 = vadd.f32 %v4145_v2, %v10844_v47 }
 0x52e   :  { %v5091_v37 = vor.u32 1.1754944e-38, %v13827_v8  ;;  %v5147_v59 = vadd.f32 1.1283791, %v5146_v6  ;;  %v5106_v34 = vmul.f32 %v5105_v63, %v11596_v35  ;;  %v4714_v3 = vadd.f32 0.112945676, %v4713_v53 }
 0x52f   :  { %v5224_v10 = vmul.f32 %v5223_v50, %v11604_v17  ;;  %v5314_v51 = vadd.f32 0.112945676, %v5313_v26  ;;  %v11806_v18 = vadd.f32 1.0, %v4637_v14  ;;  %v11808_v16 = vadd.f32 %v4237_v7, %v4146_v13 }
 0x530   :  { %v5092_v38 = vsel %vm11763_vm3, %v5091_v37, %v5087_v23  ;;  %v11810_v11 = vpop.eup %7109  ;;  %v11813_v29 = vmul.f32 0.5, %v11556_v61  ;;  %7111 = vrcp.f32 %v11794_v62  ;;  %v11817_v58 = vmul.f32 0.70710677, %v11799_v42 }
 0x531   :  { %v4715_v63 = vmul.f32 %v4714_v3, %v11245_v31  ;;  %v11821_v32 = vmul.f32 %v5012_v21, %v11674_v48  ;;  %v5178_v4 = vmul.f32 2.1237322e-06, %v11796_v41  ;;  %7113 = vrcp.f32 %v11806_v18 }
 0x532   :  { %13828 = vst [vmem:[#allocation28_spill] sm:$0xff] %v11813_v29  ;;  %v6850_v0 = vclamps-f32 %v11517_v39, 1.0  ;;  %v11827_v44 = vmul.f32 %v5092_v38, %v11693_v49  ;;  %v11830_v61 = vmul.f32 %v5027_v40, %v11520_v55  ;;  %v5170_v27 = vand.u32 2147483648, %v11752_v24 }
 0x533   :  { %v5107_v23 = vadd.f32 1.1283791, %v5106_v34  ;;  %v11834_v6 = vmul.f32 %v5147_v59, %v11524_v52  ;;  %v5225_v48 = vadd.f32 0.18741608, %v5224_v10  ;;  %v5315_v50 = vmul.f32 %v5314_v51, %v11727_v45 }
 0x534   :  { %13829 = vst [vmem:[#allocation29_spill] sm:$0xff] %v11830_v61  ;;  %v11838_v28 = vmul.f32 0.70710677, %v11808_v16  ;;  %v5160_v39 = vmul.f32 %v11810_v11, %v11752_v24  ;;  %v5256_v55 = vmul.f32 %v11817_v58, %v11817_v58  ;;  %v4716_v26 = vadd.f32 0.4994258, %v4715_v63 }
 0x535   :  { %v5179_v57 = vadd.f32 0.00028619796, %v5178_v4  ;;  %v6385_v12 = vadd.f32 1.0, %v6850_v0  ;;  %v4789_v2 = vmul.f32 3.8918573e-05, %v11314_v46  ;;  %v11850_v21 = vor.u32 1.1754944e-38, %v5170_v27 }
 0x536   :  { %v5376_v52 = vmul.f32 %v11838_v28, %v11838_v28  ;;  %v11848_v53 = vpop.eup %7111  ;;  %v11853_v8 = vmul.f32 %v5107_v23, %v11547_v60  ;;  %v11856_v37 = vmul.f32 0.5, %v11725_v25  ;;  %v5298_v40 = vmul.f32 2.1237322e-06, %v11727_v45 }
 0x537   :  { %v7114_v54 = vpop.eup %7113  ;;  %v5226_v14 = vmul.f32 %v5225_v48, %v11604_v17  ;;  %v5316_v13 = vadd.f32 0.4994258, %v5315_v50  ;;  %v4717_v59 = vmul.f32 %v4716_v26, %v11245_v31  ;;  %v5161_v34 = vsub.f32 1.0, %v5160_v39 }
 0x538   :  { %13830 = vst [vmem:[#allocation45_spill] sm:$0xff] %v11853_v8  ;;  %v11860_v38 = vmin.f32 %v5376_v52, 16.0  ;;  %v4640_v7 = vmul.f32 %v7114_v54, %v11806_v18  ;;  %v11864_v3 = vmin.f32 %v5256_v55, 16.0  ;;  %v6435_v60 = vmul.f32 %v6385_v12, %v11303_v56 }
 0x539   :  { %13831 = vst [vmem:[#allocation30_spill] sm:$0xff] %v11856_v37  ;;  %v5250_v25 = vand.u32 2147483648, %v11794_v62  ;;  %v5180_v10 = vmul.f32 %v5179_v57, %v11796_v41  ;;  %v11869_v51 = vadd.f32 1.0, %v4717_v59  ;;  %v4790_v63 = vadd.f32 0.001143296, %v4789_v2 }
 0x53a   :  { %v5240_v17 = vmul.f32 %v11848_v53, %v11794_v62  ;;  %v5299_v4 = vadd.f32 0.00028619796, %v5298_v40  ;;  %v4641_v0 = vsub.f32 1.0, %v4640_v7  ;;  %v5389_v31 = vmul.f32 3.8918573e-05, %v11860_v38  ;;  %6632 = vmatmul.f32.gmra.mxu3 %v6435_v60  ;;  %v3961_v60 = vpop.f32.mrf.mxu2 }
 0x53b   :  { %v5317_v27 = vmul.f32 %v5316_v13, %v11727_v45  ;;  %v4648_v23 = vand.u32 2147483647, %v11806_v18  ;;  %v4650_v56 = vand.u32 2147483648, %v11806_v18  ;;  %7115 = vrcp.f32 %v11869_v51 }
 0x53c   :  { %v4642_v48 = vmul.f32 %v7114_v54, %v4641_v0  ;;  %vm4645_vm5 = vweird.f32 %v7114_v54  ;;  %v5258_v50 = vmul.f32 2.1237322e-06, %v11864_v3  ;;  %v5390_v39 = vadd.f32 0.001143296, %v5389_v31 }
 0x53d   :  { %v11880_v55 = vmul.f32 %v11810_v11, %v5161_v34  ;;  %v11882_v26 = vadd.f32 1.1283791, %v5226_v14  ;;  %v4791_v52 = vmul.f32 %v4790_v63, %v11314_v46  ;;  %v5181_v12 = vadd.f32 0.0036580483, %v5180_v10  ;;  %v4148_v14 = vpop.f32.mrf.mxu0 }
 0x53e   :  { %v4643_v2 = vadd.f32 %v7114_v54, %v4642_v48  ;;  %vm4644_vm6 = vweird.f32 %v11806_v18  ;;  %v5391_v40 = vmul.f32 %v5390_v39, %v11860_v38  ;;  %v5241_v13 = vsub.f32 1.0, %v5240_v17 }
 0x53f   :  { %v5300_v59 = vmul.f32 %v5299_v4, %v11727_v45  ;;  %v11889_v7 = vadd.f32 1.0, %v5317_v27  ;;  %vm4646_vm7 = vmor %vm4644_vm6, %vm4645_vm5  ;;  %v4651_v34 = vor.u32 1.1754944e-38, %v4650_v56  ;;  %v11891_v0 = vor.u32 1.1754944e-38, %v5250_v25 }
 0x540   :  { %v4647_v31 = vsel %vm4646_vm7, %v7114_v54, %v4643_v2  ;;  %vm4649_vm8 = vcmp.eq.f32.partialorder %v4648_v23, 8.507059e+37  ;;  %v5259_v63 = vadd.f32 0.00028619796, %v5258_v50  ;;  %v5392_v57 = vadd.f32 0.014752088, %v5391_v40 }
 0x541   :  { %v7116_v10 = vpop.eup %7115  ;;  %v4652_v48 = vsel %vm4649_vm8, %v4651_v34, %v4647_v31  ;;  %v4149_v18 = vadd.f32 %v4148_v14, %v10844_v47  ;;  %v4792_v39 = vadd.f32 0.014752088, %v4791_v52  ;;  %v5182_v17 = vmul.f32 %v5181_v12, %v11796_v41  ;;  %v4053_v34 = vpop.f32.mrf.mxu3 }
 0x542   :  { %v4653_v4 = vmul.f32 %v4652_v48, %v11414_v9  ;;  %v4720_v27 = vmul.f32 %v7116_v10, %v11869_v51  ;;  %v3962_v56 = vadd.f32 %v3961_v60, %v10854_v15  ;;  %v5242_v25 = vmul.f32 %v11848_v53, %v5241_v13  ;;  %v4240_v9 = vpop.f32.mrf.mxu1 }
 0x543   :  { %v5301_v49 = vadd.f32 0.0036580483, %v5300_v59  ;;  %7117 = vrcp.f32 %v11889_v7  ;;  %v5378_v54 = vmul.f32 2.1237322e-06, %v11860_v38  ;;  %vm5165_vm9 = vweird.f32 %v11810_v11 }
 0x544   :  { %v6847_v23 = vclamps-f32 %v4653_v4, 1.0  ;;  %v5260_v50 = vmul.f32 %v5259_v63, %v11864_v3  ;;  %v4721_v52 = vsub.f32 1.0, %v4720_v27  ;;  %v4728_v12 = vand.u32 2147483647, %v11869_v51  ;;  %v13832_v27 = vld [vmem:[#allocation60_spill] sm:$0xff] }
 0x545   :  { %v5393_v2 = vmul.f32 %v5392_v57, %v11860_v38  ;;  %v4730_v40 = vand.u32 2147483648, %v11869_v51  ;;  %v11906_v13 = vadd.f32 %v4240_v9, %v4149_v18  ;;  %v4793_v59 = vmul.f32 %v4792_v39, %v11314_v46 }
 0x546   :  { %vm5164_vm10 = vweird.f32 %v11752_v24  ;;  %v6382_v60 = vadd.f32 1.0, %v6847_v23  ;;  %v4722_v14 = vmul.f32 %v7116_v10, %v4721_v52  ;;  %vm4725_vm11 = vweird.f32 %v7116_v10 }
 0x547   :  { %v11910_v31 = vadd.f32 %v4053_v34, %v3962_v56  ;;  %vm5244_vm12 = vweird.f32 %v11794_v62  ;;  %v5183_v63 = vadd.f32 0.05243302, %v5182_v17  ;;  %v5302_v48 = vmul.f32 %v5301_v49, %v11727_v45  ;;  %v13833_v34 = vld [vmem:[#allocation64_spill] sm:$0xff]  ;;  %vm11952_vm2 = vmor %vm5164_vm10, %vm5165_vm9 }
 0x548   :  { %v5379_v57 = vadd.f32 0.00028619796, %v5378_v54  ;;  %v4869_v4 = vmul.f32 3.8918573e-05, %v11387_v19  ;;  %v6432_v18 = vmul.f32 %v6382_v60, %v13832_v27  ;;  %v5261_v9 = vadd.f32 0.0036580483, %v5260_v50 }
 0x549   :  { %v4723_v37 = vadd.f32 %v7116_v10, %v4722_v14  ;;  %vm4724_vm13 = vweird.f32 %v11869_v51  ;;  %v11917_v39 = vpop.eup %7117  ;;  %v5394_v23 = vadd.f32 0.112945676, %v5393_v2  ;;  %vm4729_vm15 = vcmp.eq.f32.partialorder %v4728_v12, 8.507059e+37 }
 0x54a   :  { %vm4726_vm14 = vmor %vm4724_vm13, %vm4725_vm11  ;;  %v4731_v56 = vor.u32 1.1754944e-38, %v4730_v40  ;;  %v11920_v52 = vmul.f32 0.70710677, %v11906_v13  ;;  %6537 = vmatmul.f32.gmra.mxu2 %v6432_v18  ;;  %v11923_v17 = vmul.f32 0.70710677, %v11910_v31  ;;  %v6852_v50 = vclamps-f32 %v13833_v34, 1.0 }
 0x54b   :  { %v4727_v49 = vsel %vm4726_vm14, %v7116_v10, %v4723_v37  ;;  %v4794_v54 = vadd.f32 0.112945676, %v4793_v59  ;;  %v5163_v51 = vadd.f32 %v11810_v11, %v11880_v55  ;;  %vm5245_vm0 = vweird.f32 %v11848_v53  ;;  %v13837_v10 = vld [vmem:[#allocation25_spill] sm:$0xff] }
 0x54c   :  { %v5380_v2 = vmul.f32 %v5379_v57, %v11860_v38  ;;  %v4732_v12 = vsel %vm4729_vm15, %v4731_v56, %v4727_v49  ;;  %v13834_v40 = vand.u32 2147483647, %v11752_v24  ;;  %v5303_v37 = vadd.f32 0.05243302, %v5302_v48  ;;  %vm11965_vm3 = vmor %vm5244_vm12, %vm5245_vm0 }
 0x54d   :  { %v4733_v14 = vmul.f32 %v4732_v12, %v13837_v10  ;;  %v5456_v59 = vmul.f32 %v11920_v52, %v11920_v52  ;;  %v4795_v27 = vmul.f32 %v4794_v54, %v11314_v46  ;;  %v5243_v55 = vadd.f32 %v11848_v53, %v5242_v25 }
 0x54e   :  { %vm11932_vm1 = vcmp.eq.f32.partialorder %v13834_v40, 8.507059e+37  ;;  %v5320_v57 = vmul.f32 %v11917_v39, %v11889_v7  ;;  %v6387_v18 = vadd.f32 1.0, %v6852_v50  ;;  %v4870_v56 = vadd.f32 0.001143296, %v4869_v4  ;;  %v13842_v40 = vld [vmem:[#allocation22_spill] sm:$0xff] }
 0x54f   :  { %v5184_v49 = vmul.f32 %v5183_v63, %v11796_v41  ;;  %v5262_v34 = vmul.f32 %v5261_v9, %v11864_v3  ;;  %v5395_v48 = vmul.f32 %v5394_v23, %v11860_v38  ;;  %v5336_v12 = vmul.f32 %v11923_v17, %v11923_v17 }
 0x550   :  { %v5381_v54 = vadd.f32 0.0036580483, %v5380_v2  ;;  %v6849_v50 = vclamps-f32 %v4733_v14, 1.0  ;;  %v11956_v4 = vmin.f32 %v5456_v59, 16.0  ;;  %v4796_v63 = vadd.f32 0.4994258, %v4795_v27 }
 0x551   :  { %v5167_v9 = vsel %vm11952_vm2, %v11810_v11, %v5163_v51  ;;  %v5304_v24 = vmul.f32 %v5303_v37, %v11727_v45  ;;  %v6437_v2 = vmul.f32 %v6387_v18, %v13842_v40  ;;  %v4871_v10 = vmul.f32 %v4870_v56, %v11387_v19  ;;  %v13843_v56 = vld [vmem:[#allocation52_spill] sm:$0xff] }
 0x552   :  { %v5247_v14 = vsel %vm11965_vm3, %v11848_v53, %v5243_v55  ;;  %v5321_v59 = vsub.f32 1.0, %v5320_v57  ;;  %v6384_v11 = vadd.f32 1.0, %v6849_v50  ;;  %v5469_v51 = vmul.f32 3.8918573e-05, %v11956_v4 }
 0x553   :  { %v5396_v27 = vadd.f32 0.4994258, %v5395_v48  ;;  %v11976_v25 = vmin.f32 %v5336_v12, 16.0  ;;  %v4797_v29 = vmul.f32 %v4796_v63, %v11314_v46  ;;  %6635 = vmatmul.f32.gmra.mxu3 %v6437_v2  ;;  %v4872_v8 = vadd.f32 0.014752088, %v4871_v10  ;;  %v13845_v46 = vld [vmem:[#allocation27_spill] sm:$0xff] }
 0x554   :  { %v5185_v37 = vadd.f32 0.18741608, %v5184_v49  ;;  %v5263_v61 = vadd.f32 0.05243302, %v5262_v34  ;;  %v5382_v18 = vmul.f32 %v5381_v54, %v11860_v38  ;;  %v6434_v40 = vmul.f32 %v6384_v11, %v13843_v56 }
 0x555   :  { %v13844_v23 = vand.u32 2147483647, %v11794_v62  ;;  %v5305_v53 = vadd.f32 0.18741608, %v5304_v24  ;;  %v5470_v55 = vadd.f32 0.001143296, %v5469_v51  ;;  %v5172_v48 = vsel %vm11932_vm1, %v11850_v21, %v5167_v9  ;;  %v4151_v24 = vpop.f32.mrf.mxu0 }
 0x556   :  { %v11983_v57 = vadd.f32 1.0, %v4797_v29  ;;  %v5228_v12 = vmul.f32 %v11882_v26, %v13845_v46  ;;  %6540 = vmatmul.f32.gmra.mxu2 %v6434_v40  ;;  %v4873_v34 = vmul.f32 %v4872_v8, %v11387_v19  ;;  %v5322_v54 = vmul.f32 %v11917_v39, %v5321_v59  ;;  %v3964_v59 = vpop.f32.mrf.mxu2 }
 0x557   :  { %vm5249_vm4 = vcmp.eq.f32.partialorder %v13844_v23, 8.507059e+37  ;;  %v5397_v62 = vmul.f32 %v5396_v27, %v11860_v38  ;;  %v5338_v50 = vmul.f32 2.1237322e-06, %v11976_v25  ;;  %v5186_v29 = vmul.f32 %v5185_v37, %v11796_v41 }
 0x558   :  { %v5252_v49 = vsel %vm5249_vm4, %v11891_v0, %v5247_v14  ;;  %7119 = vrcp.f32 %v11983_v57  ;;  %v11998_v21 = vmul.f32 0.5, %v11696_v30  ;;  %v5264_v26 = vmul.f32 %v5263_v61, %v11864_v3 }
 0x559   :  { %v5383_v60 = vadd.f32 0.05243302, %v5382_v18  ;;  %v12002_v0 = vmul.f32 %v5172_v48, %v11834_v6  ;;  %v12004_v8 = vmul.f32 %v5252_v49, %v5228_v12  ;;  %v5306_v63 = vmul.f32 %v5305_v53, %v11727_v45  ;;  %v4243_v18 = vpop.f32.mrf.mxu1 }
 0x55a   :  { %v5471_v9 = vmul.f32 %v5470_v55, %v11956_v4  ;;  %vm5325_vm5 = vweird.f32 %v11917_v39  ;;  %v5328_v2 = vand.u32 2147483647, %v11889_v7  ;;  %v5330_v30 = vand.u32 2147483648, %v11889_v7 }
 0x55b   :  { %v4874_v10 = vadd.f32 0.112945676, %v4873_v34  ;;  %v5323_v61 = vadd.f32 %v11917_v39, %v5322_v54  ;;  %v12012_v14 = vadd.f32 1.0, %v5397_v62  ;;  %v5339_v6 = vadd.f32 0.00028619796, %v5338_v50 }
 0x55c   :  { %v4152_v11 = vadd.f32 %v4151_v24, %v10844_v47  ;;  %v5187_v51 = vadd.f32 1.1283791, %v5186_v29  ;;  %v12016_v45 = vmul.f32 0.5, %v11799_v42  ;;  %v5265_v27 = vadd.f32 0.18741608, %v5264_v26 }
 0x55d   :  { %v5384_v37 = vmul.f32 %v5383_v60, %v11860_v38  ;;  %v5307_v40 = vadd.f32 1.1283791, %v5306_v63  ;;  %vm5324_vm6 = vweird.f32 %v11889_v7  ;;  %v5472_v23 = vadd.f32 0.014752088, %v5471_v9  ;;  %v4056_v9 = vpop.f32.mrf.mxu3 }
 0x55e   :  { %v7120_v56 = vpop.eup %7119  ;;  %v12020_v53 = vadd.f32 %v4243_v18, %v4152_v11  ;;  %vm12024_vm7 = vmor %vm5324_vm6, %vm5325_vm5  ;;  %vm12028_vm8 = vcmp.eq.f32.partialorder %v5328_v2, 8.507059e+37  ;;  %v5331_v48 = vor.u32 1.1754944e-38, %v5330_v30  ;;  %v3965_v12 = vadd.f32 %v3964_v59, %v10854_v15 }
 0x55f   :  { %v4800_v46 = vmul.f32 %v7120_v56, %v11983_v57  ;;  %v4875_v7 = vmul.f32 %v4874_v10, %v11387_v19  ;;  %v5327_v49 = vsel %vm12024_vm7, %v11917_v39, %v5323_v61  ;;  %7121 = vrcp.f32 %v12012_v14 }
 0x560   :  { %v5340_v34 = vmul.f32 %v5339_v6, %v11976_v25  ;;  %v6854_v54 = vclamps-f32 %v11679_v22, 1.0  ;;  %v5266_v62 = vmul.f32 %v5265_v27, %v11864_v3  ;;  %v5385_v50 = vadd.f32 0.18741608, %v5384_v37 }
 0x561   :  { %v5458_v29 = vmul.f32 2.1237322e-06, %v11956_v4  ;;  %v4801_v26 = vsub.f32 1.0, %v4800_v46  ;;  %v5473_v60 = vmul.f32 %v5472_v23, %v11956_v4  ;;  %v4810_v63 = vand.u32 2147483648, %v11983_v57 }
 0x562   :  { %v12046_v24 = vmul.f32 0.70710677, %v12020_v53  ;;  %v4949_v39 = vmul.f32 3.8918573e-05, %v11446_v5  ;;  %vm4805_vm9 = vweird.f32 %v7120_v56  ;;  %v12049_v30 = vadd.f32 %v4056_v9, %v3965_v12  ;;  %v13852_v12 = vld [vmem:[#allocation61_spill] sm:$0xff] }
 0x563   :  { %v4802_v2 = vmul.f32 %v7120_v56, %v4801_v26  ;;  %v4876_v22 = vadd.f32 0.4994258, %v4875_v7  ;;  %v5341_v10 = vadd.f32 0.0036580483, %v5340_v34  ;;  %v4808_v61 = vand.u32 2147483647, %v11983_v57 }
 0x564   :  { %v5536_v6 = vmul.f32 %v12046_v24, %v12046_v24  ;;  %v6389_v59 = vadd.f32 1.0, %v6854_v54  ;;  %v5459_v11 = vadd.f32 0.00028619796, %v5458_v29  ;;  %vm4804_vm10 = vweird.f32 %v11983_v57 }
 0x565   :  { %v4803_v27 = vadd.f32 %v7120_v56, %v4802_v2  ;;  %v4877_v37 = vmul.f32 %v4876_v22, %v11387_v19  ;;  %v12056_v18 = vpop.eup %7121  ;;  %v5474_v23 = vadd.f32 0.112945676, %v5473_v60  ;;  %vm12058_vm11 = vmor %vm4804_vm10, %vm4805_vm9  ;;  %v4950_v34 = vadd.f32 0.001143296, %v4949_v39 }
 0x566   :  { %v12062_v46 = vmin.f32 %v5536_v6, 16.0  ;;  %v6439_v7 = vmul.f32 %v6389_v59, %v13852_v12  ;;  %v4811_v29 = vor.u32 1.1754944e-38, %v4810_v63  ;;  %v12068_v57 = vmul.f32 0.70710677, %v12049_v30 }
 0x567   :  { %v4807_v54 = vsel %vm12058_vm11, %v7120_v56, %v4803_v27  ;;  %v12070_v19 = vadd.f32 1.0, %v4877_v37  ;;  %v12073_v26 = vmul.f32 %v5187_v51, %v11740_v1  ;;  %v5308_v60 = vmul.f32 %v5307_v40, %v11709_v43  ;;  %v13853_v51 = vld [vmem:[#allocation36_spill] sm:$0xff] }
 0x568   :  { %v5332_v9 = vsel %vm12028_vm8, %v5331_v48, %v5327_v49  ;;  %vm4809_vm12 = vcmp.eq.f32.partialorder %v4808_v61, 8.507059e+37  ;;  %6638 = vmatmul.f32.gmra.mxu3 %v6439_v7  ;;  %v5386_v39 = vmul.f32 %v5385_v50, %v11860_v38  ;;  %v5400_v56 = vmul.f32 %v12056_v18, %v12012_v14 }
 0x569   :  { %v4812_v63 = vsel %vm4809_vm12, %v4811_v29, %v4807_v54  ;;  %v5549_v2 = vmul.f32 3.8918573e-05, %v12062_v46  ;;  %v5460_v22 = vmul.f32 %v5459_v11, %v11956_v4  ;;  %v5475_v1 = vmul.f32 %v5474_v23, %v11956_v4  ;;  %v4154_v54 = vpop.f32.mrf.mxu0 }
 0x56a   :  { %v4813_v6 = vmul.f32 %v4812_v63, %v13853_v51  ;;  %7123 = vrcp.f32 %v12070_v19  ;;  %v5267_v43 = vadd.f32 1.1283791, %v5266_v62  ;;  %v5342_v40 = vmul.f32 %v5341_v10, %v11976_v25  ;;  %v3967_v10 = vpop.f32.mrf.mxu2 }
 0x56b   :  { %v5416_v38 = vmul.f32 %v12068_v57, %v12068_v57  ;;  %v4951_v42 = vmul.f32 %v4950_v34, %v11446_v5  ;;  %v12091_v48 = vmul.f32 0.5, %v11808_v16  ;;  %v12094_v49 = vmul.f32 0.5, %v11910_v31  ;;  %v4059_v34 = vpop.f32.mrf.mxu3 }
 0x56c   :  { %v6851_v50 = vclamps-f32 %v4813_v6, 1.0  ;;  %v5550_v61 = vadd.f32 0.001143296, %v5549_v2  ;;  %v12096_v59 = vmul.f32 %v5332_v9, %v5308_v60  ;;  %v5387_v11 = vadd.f32 1.1283791, %v5386_v39  ;;  %v13856_v9 = vld [vmem:[#allocation23_spill] sm:$0xff] }
 0x56d   :  { %13854 = vst [vmem:[#allocation14_spill] sm:$0xff] %v12094_v49  ;;  %v5401_v27 = vsub.f32 1.0, %v5400_v56  ;;  %v12099_v62 = vmul.f32 0.5, %v11906_v13  ;;  %v5461_v37 = vadd.f32 0.0036580483, %v5460_v22  ;;  %v3968_v12 = vadd.f32 %v3967_v10, %v10854_v15 }
 0x56e   :  { %v5476_v23 = vadd.f32 0.4994258, %v5475_v1  ;;  %v6386_v55 = vadd.f32 1.0, %v6851_v50  ;;  %v12103_v16 = vmul.f32 %v5267_v43, %v11817_v58  ;;  %v5343_v31 = vadd.f32 0.05243302, %v5342_v40 }
 0x56f   :  { %13855 = vst [vmem:[#allocation31_spill] sm:$0xff] %v12099_v62  ;;  %v12105_v7 = vmin.f32 %v5416_v38, 16.0  ;;  %v4952_v29 = vadd.f32 0.014752088, %v4951_v42  ;;  %v5551_v13 = vmul.f32 %v5550_v61, %v12062_v46  ;;  %v12109_v56 = vadd.f32 %v4059_v34, %v3968_v12  ;;  %v4246_v42 = vpop.f32.mrf.mxu1 }
 0x570   :  { %v7124_v60 = vpop.eup %7123  ;;  %v6436_v39 = vmul.f32 %v6386_v55, %v13856_v9  ;;  %v4155_v63 = vadd.f32 %v4154_v54, %v10844_v47  ;;  %v12113_v2 = vmul.f32 %v5387_v11, %v11838_v28  ;;  %v5408_v58 = vand.u32 2147483647, %v12012_v14 }
 0x571   :  { %v5410_v22 = vand.u32 2147483648, %v12012_v14  ;;  %v4880_v1 = vmul.f32 %v7124_v60, %v12070_v19  ;;  %v5402_v51 = vmul.f32 %v12056_v18, %v5401_v27  ;;  %v5462_v6 = vmul.f32 %v5461_v37, %v11956_v4 }
 0x572   :  { %v5477_v43 = vmul.f32 %v5476_v23, %v11956_v4  ;;  %6543 = vmatmul.f32.gmra.mxu2 %v6436_v39  ;;  %v12122_v40 = vmul.f32 0.70710677, %v12109_v56  ;;  %vm5405_vm13 = vweird.f32 %v12056_v18  ;;  %v5418_v28 = vmul.f32 2.1237322e-06, %v12105_v7 }
 0x573   :  { %v4881_v38 = vsub.f32 1.0, %v4880_v1  ;;  %v4953_v50 = vmul.f32 %v4952_v29, %v11446_v5  ;;  %v5344_v61 = vmul.f32 %v5343_v31, %v11976_v25  ;;  %v5552_v11 = vadd.f32 0.014752088, %v5551_v13 }
 0x574   :  { %v4890_v27 = vand.u32 2147483648, %v12070_v19  ;;  %v12129_v10 = vadd.f32 %v4246_v42, %v4155_v63  ;;  %vm4885_vm14 = vweird.f32 %v7124_v60  ;;  %v4888_v23 = vand.u32 2147483647, %v12070_v19 }
 0x575   :  { %v4882_v37 = vmul.f32 %v7124_v60, %v4881_v38  ;;  %v5496_v55 = vmul.f32 %v12122_v40, %v12122_v40  ;;  %v5403_v12 = vadd.f32 %v12056_v18, %v5402_v51  ;;  %v5463_v34 = vadd.f32 0.05243302, %v5462_v6 }
 0x576   :  { %v12135_v54 = vadd.f32 1.0, %v5477_v43  ;;  %v12138_v29 = vmul.f32 0.70710677, %v12129_v10  ;;  %v5419_v31 = vadd.f32 0.00028619796, %v5418_v28  ;;  %vm4884_vm15 = vweird.f32 %v12070_v19 }
 0x577   :  { %v4883_v9 = vadd.f32 %v7124_v60, %v4882_v37  ;;  %v4954_v39 = vadd.f32 0.112945676, %v4953_v50  ;;  %v5538_v13 = vmul.f32 2.1237322e-06, %v12062_v46  ;;  %v5553_v63 = vmul.f32 %v5552_v11, %v12062_v46  ;;  %vm4886_vm0 = vmor %vm4884_vm15, %vm4885_vm14 }
 0x578   :  { %v4891_v1 = vor.u32 1.1754944e-38, %v4890_v27  ;;  %v5616_v51 = vmul.f32 %v12138_v29, %v12138_v29  ;;  %v5345_v6 = vadd.f32 0.18741608, %v5344_v61  ;;  %vm4889_vm1 = vcmp.eq.f32.partialorder %v4888_v23, 8.507059e+37 }
 0x579   :  { %v4887_v43 = vsel %vm4886_vm0, %v7124_v60, %v4883_v9  ;;  %v12145_v38 = vmin.f32 %v5496_v55, 16.0  ;;  %v5464_v28 = vmul.f32 %v5463_v34, %v11956_v4  ;;  %7125 = vrcp.f32 %v12135_v54 }
 0x57a   :  { %v4892_v19 = vsel %vm4889_vm1, %v4891_v1, %v4887_v43  ;;  %v12149_v42 = vmin.f32 %v5616_v51, 16.0  ;;  %v5420_v50 = vmul.f32 %v5419_v31, %v12105_v7  ;;  %v4955_v27 = vmul.f32 %v4954_v39, %v11446_v5 }
 0x57b   :  { %v4893_v11 = vmul.f32 %v4892_v19, %v11648_v33  ;;  %v6856_v37 = vclamps-f32 %v11821_v32, 1.0  ;;  %vm5404_vm2 = vweird.f32 %v12012_v14  ;;  %v5539_v60 = vadd.f32 0.00028619796, %v5538_v13 }
 0x57c   :  { %v5554_v61 = vadd.f32 0.112945676, %v5553_v63  ;;  %v5629_v23 = vmul.f32 3.8918573e-05, %v12149_v42  ;;  %vm12159_vm3 = vmor %vm5404_vm2, %vm5405_vm13  ;;  %v5498_v31 = vmul.f32 2.1237322e-06, %v12145_v38  ;;  %v5346_v63 = vmul.f32 %v5345_v6, %v11976_v25 }
 0x57d   :  { %v6853_v34 = vclamps-f32 %v4893_v11, 1.0  ;;  %v4956_v33 = vadd.f32 0.4994258, %v4955_v27  ;;  %v6391_v9 = vadd.f32 1.0, %v6856_v37  ;;  %v5407_v32 = vsel %vm12159_vm3, %v12056_v18, %v5403_v12  ;;  %v13861_v18 = vld [vmem:[#allocation24_spill] sm:$0xff]  ;;  %v13862_v12 = vld [vmem:[#allocation63_spill] sm:$0xff] }
 0x57e   :  { %vm12167_vm4 = vcmp.eq.f32.partialorder %v5408_v58, 8.507059e+37  ;;  %v5411_v39 = vor.u32 1.1754944e-38, %v5410_v22  ;;  %v5465_v13 = vadd.f32 0.18741608, %v5464_v28  ;;  %v5421_v1 = vadd.f32 0.0036580483, %v5420_v50 }
 0x57f   :  { %v6388_v51 = vadd.f32 1.0, %v6853_v34  ;;  %v4957_v43 = vmul.f32 %v4956_v33, %v11446_v5  ;;  %v12173_v19 = vpop.eup %7125  ;;  %v5540_v11 = vmul.f32 %v5539_v60, %v12062_v46  ;;  %v5555_v27 = vmul.f32 %v5554_v61, %v12062_v46 }
 0x580   :  { %v5630_v37 = vadd.f32 0.001143296, %v5629_v23  ;;  %v6441_v58 = vmul.f32 %v6391_v9, %v13861_v18  ;;  %v5499_v49 = vadd.f32 0.00028619796, %v5498_v31  ;;  %v5029_v6 = vmul.f32 3.8918573e-05, %v11569_v20  ;;  %v3970_v31 = vpop.f32.mrf.mxu2 }
 0x581   :  { %v6438_v55 = vmul.f32 %v6388_v51, %v13862_v12  ;;  %v12179_v22 = vadd.f32 1.0, %v4957_v43  ;;  %v5412_v28 = vsel %vm12167_vm4, %v5411_v39, %v5407_v32  ;;  %v5466_v5 = vmul.f32 %v5465_v13, %v11956_v4 }
 0x582   :  { %v12186_v50 = vmul.f32 0.5, %v12049_v30  ;;  %v5631_v60 = vmul.f32 %v5630_v37, %v12149_v42  ;;  %6641 = vmatmul.f32.gmra.mxu3 %v6441_v58  ;;  %v5347_v61 = vadd.f32 1.1283791, %v5346_v63  ;;  %v5480_v23 = vmul.f32 %v12173_v19, %v12135_v54  ;;  %v4157_v30 = vpop.f32.mrf.mxu0  ;;  %v4062_v63 = vpop.f32.mrf.mxu3 }
 0x583   :  { %v5422_v34 = vmul.f32 %v5421_v1, %v12105_v7  ;;  %6546 = vmatmul.f32.gmra.mxu2 %v6438_v55  ;;  %7127 = vrcp.f32 %v12179_v22  ;;  %v5541_v33 = vadd.f32 0.0036580483, %v5540_v11  ;;  %v5556_v9 = vadd.f32 0.4994258, %v5555_v27 }
 0x584   :  { %13863 = vst [vmem:[#allocation13_spill] sm:$0xff] %v12186_v50  ;;  %v5632_v32 = vadd.f32 0.014752088, %v5631_v60  ;;  %v3971_v4 = vadd.f32 %v3970_v31, %v10854_v15  ;;  %v12195_v14 = vmul.f32 %v5412_v28, %v12113_v2  ;;  %v12198_v39 = vmul.f32 0.5, %v12020_v53 }
 0x585   :  { %v5500_v13 = vmul.f32 %v5499_v49, %v12145_v38  ;;  %v5030_v1 = vadd.f32 0.001143296, %v5029_v6  ;;  %v5467_v51 = vadd.f32 1.1283791, %v5466_v5  ;;  %v5490_v43 = vand.u32 2147483648, %v12135_v54  ;;  %v4249_v6 = vpop.f32.mrf.mxu1 }
 0x586   :  { %13864 = vst [vmem:[#allocation57_spill] sm:$0xff] %v12198_v39  ;;  %v5633_v11 = vmul.f32 %v5632_v32, %v12149_v42  ;;  %v12203_v27 = vadd.f32 %v4062_v63, %v3971_v4  ;;  %v12206_v37 = vmul.f32 %v5347_v61, %v11923_v17  ;;  %v5481_v18 = vsub.f32 1.0, %v5480_v23 }
 0x587   :  { %v5423_v2 = vadd.f32 0.05243302, %v5422_v34  ;;  %v4158_v58 = vadd.f32 %v4157_v30, %v10844_v47  ;;  %v5542_v53 = vmul.f32 %v5541_v33, %v12062_v46  ;;  %v5557_v49 = vmul.f32 %v5556_v9, %v12062_v46 }
 0x588   :  { %13865 = vst [vmem:[#allocation32_spill] sm:$0xff] %v12206_v37  ;;  %v5634_v12 = vadd.f32 0.112945676, %v5633_v11  ;;  %v12212_v55 = vmul.f32 0.70710677, %v12203_v27  ;;  %v5031_v17 = vmul.f32 %v5030_v1, %v11569_v20  ;;  %v12219_v61 = vmul.f32 %v5467_v51, %v11920_v52 }
 0x589   :  { %v7128_v28 = vpop.eup %7127  ;;  %v5501_v5 = vadd.f32 0.0036580483, %v5500_v13  ;;  %v5618_v60 = vmul.f32 2.1237322e-06, %v12149_v42  ;;  %v12215_v31 = vadd.f32 %v4249_v6, %v4158_v58  ;;  %v5488_v23 = vand.u32 2147483647, %v12135_v54 }
 0x58a   :  { %v12222_v34 = vor.u32 1.1754944e-38, %v5490_v43  ;;  %v4960_v33 = vmul.f32 %v7128_v28, %v12179_v22  ;;  %v5482_v9 = vmul.f32 %v12173_v19, %v5481_v18  ;;  %v5424_v32 = vmul.f32 %v5423_v2, %v12105_v7 }
 0x58b   :  { %v5635_v4 = vmul.f32 %v5634_v12, %v12149_v42  ;;  %v5576_v30 = vmul.f32 %v12212_v55, %v12212_v55  ;;  %v5543_v13 = vadd.f32 0.05243302, %v5542_v53  ;;  %v12230_v63 = vadd.f32 1.0, %v5557_v49 }
 0x58c   :  { %v4961_v52 = vsub.f32 1.0, %v4960_v33  ;;  %v12233_v1 = vmul.f32 0.70710677, %v12215_v31  ;;  %v5502_v51 = vmul.f32 %v5501_v5, %v12145_v38  ;;  %v5619_v43 = vadd.f32 0.00028619796, %v5618_v60 }
 0x58d   :  { %v5032_v11 = vadd.f32 0.014752088, %v5031_v17  ;;  %v5109_v18 = vmul.f32 3.8918573e-05, %v11596_v35  ;;  %vm4965_vm5 = vweird.f32 %v7128_v28  ;;  %v4968_v2 = vand.u32 2147483647, %v12179_v22 }
 0x58e   :  { %v4962_v58 = vmul.f32 %v7128_v28, %v4961_v52  ;;  %v4970_v12 = vand.u32 2147483648, %v12179_v22  ;;  %vm5484_vm6 = vweird.f32 %v12135_v54  ;;  %v5636_v53 = vadd.f32 0.4994258, %v5635_v4 }
 0x58f   :  { %v12240_v49 = vmin.f32 %v5576_v30, 16.0  ;;  %v5696_v6 = vmul.f32 %v12233_v1, %v12233_v1  ;;  %v5033_v5 = vmul.f32 %v5032_v11, %v11569_v20  ;;  %v5425_v60 = vadd.f32 0.18741608, %v5424_v32 }
 0x590   :  { %v5544_v17 = vmul.f32 %v5543_v13, %v12062_v46  ;;  %7129 = vrcp.f32 %v12230_v63  ;;  %v4963_v33 = vadd.f32 %v7128_v28, %v4962_v58  ;;  %v5620_v52 = vmul.f32 %v5619_v43, %v12149_v42 }
 0x591   :  { %vm4964_vm7 = vweird.f32 %v12179_v22  ;;  %v12249_v50 = vmin.f32 %v5696_v6, 16.0  ;;  %v5034_v4 = vadd.f32 0.112945676, %v5033_v5  ;;  %v5503_v30 = vadd.f32 0.05243302, %v5502_v51 }
 0x592   :  { %vm4966_vm8 = vmor %vm4964_vm7, %vm4965_vm5  ;;  %v4971_v39 = vor.u32 1.1754944e-38, %v4970_v12  ;;  %v6858_v37 = vclamps-f32 %v11827_v44, 1.0  ;;  %v5110_v11 = vadd.f32 0.001143296, %v5109_v18  ;;  %vm12253_vm9 = vcmp.eq.f32.partialorder %v5488_v23, 8.507059e+37 }
 0x593   :  { %v5637_v13 = vmul.f32 %v5636_v53, %v12149_v42  ;;  %v4967_v58 = vsel %vm4966_vm8, %v7128_v28, %v4963_v33  ;;  %vm4969_vm10 = vcmp.eq.f32.partialorder %v4968_v2, 8.507059e+37  ;;  %v5578_v22 = vmul.f32 2.1237322e-06, %v12240_v49 }
 0x594   :  { %vm5485_vm11 = vweird.f32 %v12173_v19  ;;  %v4972_v43 = vsel %vm4969_vm10, %v4971_v39, %v4967_v58  ;;  %v5709_v51 = vmul.f32 3.8918573e-05, %v12249_v50  ;;  %v5035_v12 = vmul.f32 %v5034_v4, %v11569_v20 }
 0x595   :  { %v5483_v44 = vadd.f32 %v12173_v19, %v5482_v9  ;;  %v5426_v23 = vmul.f32 %v5425_v60, %v12105_v7  ;;  %v5545_v18 = vadd.f32 0.18741608, %v5544_v17  ;;  %v4973_v6 = vmul.f32 %v4972_v43, %v11689_v36  ;;  %vm12275_vm12 = vmor %vm5484_vm6, %vm5485_vm11  ;;  %v13870_v17 = vld [vmem:[#allocation26_spill] sm:$0xff] }
 0x596   :  { %v12265_v5 = vpop.eup %7129  ;;  %v5621_v28 = vadd.f32 0.0036580483, %v5620_v52  ;;  %v5036_v2 = vadd.f32 0.4994258, %v5035_v12  ;;  %v6393_v53 = vadd.f32 1.0, %v6858_v37  ;;  %v5111_v33 = vmul.f32 %v5110_v11, %v11596_v35 }
 0x597   :  { %v5504_v39 = vmul.f32 %v5503_v30, %v12145_v38  ;;  %v12269_v58 = vadd.f32 1.0, %v5637_v13  ;;  %v6855_v62 = vclamps-f32 %v4973_v6, 1.0  ;;  %v5579_v4 = vadd.f32 0.00028619796, %v5578_v22 }
 0x598   :  { %v5698_v36 = vmul.f32 2.1237322e-06, %v12249_v50  ;;  %v5710_v60 = vadd.f32 0.001143296, %v5709_v51  ;;  %v5037_v37 = vmul.f32 %v5036_v2, %v11569_v20  ;;  %v6443_v52 = vmul.f32 %v6393_v53, %v13870_v17  ;;  %v13871_v51 = vld [vmem:[#allocation62_spill] sm:$0xff] }
 0x599   :  { %v5487_v30 = vsel %vm12275_vm12, %v12173_v19, %v5483_v44  ;;  %v5546_v11 = vmul.f32 %v5545_v18, %v12062_v46  ;;  %v6390_v13 = vadd.f32 1.0, %v6855_v62  ;;  %v5112_v22 = vadd.f32 0.014752088, %v5111_v33  ;;  %v4160_v44 = vpop.f32.mrf.mxu0  ;;  %v3973_v33 = vpop.f32.mrf.mxu2 }
 0x59a   :  { %v5427_v54 = vadd.f32 1.1283791, %v5426_v23  ;;  %v5560_v43 = vmul.f32 %v12265_v5, %v12230_v63  ;;  %v5622_v12 = vmul.f32 %v5621_v28, %v12149_v42  ;;  %v12289_v6 = vadd.f32 1.0, %v5037_v37  ;;  %6644 = vmatmul.f32.gmra.mxu3 %v6443_v52 }
 0x59b   :  { %v5505_v20 = vadd.f32 0.18741608, %v5504_v39  ;;  %7131 = vrcp.f32 %v12269_v58  ;;  %v6440_v2 = vmul.f32 %v6390_v13, %v13871_v51  ;;  %v5580_v19 = vmul.f32 %v5579_v4, %v12240_v49 }
 0x59c   :  { %v5492_v46 = vsel %vm12253_vm9, %v12222_v34, %v5487_v30  ;;  %v5699_v62 = vadd.f32 0.00028619796, %v5698_v36  ;;  %v5711_v23 = vmul.f32 %v5710_v60, %v12249_v50  ;;  %7133 = vrcp.f32 %v12289_v6 }
 0x59d   :  { %v5547_v18 = vadd.f32 1.1283791, %v5546_v11  ;;  %v12300_v28 = vmul.f32 0.5, %v12109_v56  ;;  %v12303_v53 = vmul.f32 0.5, %v12129_v10  ;;  %6549 = vmatmul.f32.gmra.mxu2 %v6440_v2  ;;  %v5113_v39 = vmul.f32 %v5112_v22, %v11596_v35  ;;  %v4252_v11 = vpop.f32.mrf.mxu1 }
 0x59e   :  { %v5561_v4 = vsub.f32 1.0, %v5560_v43  ;;  %v5570_v32 = vand.u32 2147483648, %v12230_v63  ;;  %v4161_v34 = vadd.f32 %v4160_v44, %v10844_v47  ;;  %v5189_v9 = vmul.f32 3.8918573e-05, %v11796_v41 }
 0x59f   :  { %13872 = vst [vmem:[#allocation33_spill] sm:$0xff] %v12300_v28  ;;  %v12310_v36 = vmul.f32 %v5492_v46, %v12219_v61  ;;  %v5506_v56 = vmul.f32 %v5505_v20, %v12145_v38  ;;  %v5623_v60 = vadd.f32 0.05243302, %v5622_v12  ;;  %v5581_v37 = vadd.f32 0.0036580483, %v5580_v19  ;;  %v4065_v46 = vpop.f32.mrf.mxu3 }
 0x5a0   :  { %13873 = vst [vmem:[#allocation50_spill] sm:$0xff] %v12303_v53  ;;  %v12314_v10 = vmul.f32 %v5427_v54, %v12068_v57  ;;  %v5700_v17 = vmul.f32 %v5699_v62, %v12249_v50  ;;  %v5712_v52 = vadd.f32 0.014752088, %v5711_v23  ;;  %v3974_v30 = vadd.f32 %v3973_v33, %v10854_v15 }
 0x5a1   :  { %v12318_v13 = vpop.eup %7131  ;;  %v12321_v22 = vmul.f32 %v5547_v18, %v12046_v24  ;;  %v5568_v61 = vand.u32 2147483647, %v12230_v63  ;;  %v12324_v43 = vadd.f32 %v4252_v11, %v4161_v34  ;;  %v5114_v12 = vadd.f32 0.112945676, %v5113_v39 }
 0x5a2   :  { %13874 = vst [vmem:[#allocation15_spill] sm:$0xff] %v12314_v10  ;;  %v7134_v20 = vpop.eup %7133  ;;  %v5562_v57 = vmul.f32 %v12265_v5, %v5561_v4  ;;  %vm5565_vm13 = vweird.f32 %v12265_v5  ;;  %v12328_v54 = vor.u32 1.1754944e-38, %v5570_v32  ;;  %v5190_v51 = vadd.f32 0.001143296, %v5189_v9 }
 0x5a3   :  { %v5507_v2 = vadd.f32 1.1283791, %v5506_v56  ;;  %v5624_v19 = vmul.f32 %v5623_v60, %v12149_v42  ;;  %v5582_v44 = vmul.f32 %v5581_v37, %v12240_v49  ;;  %v5040_v24 = vmul.f32 %v7134_v20, %v12289_v6 }
 0x5a4   :  { %vm5564_vm14 = vweird.f32 %v12230_v63  ;;  %v5640_v62 = vmul.f32 %v12318_v13, %v12269_v58  ;;  %v5701_v23 = vadd.f32 0.0036580483, %v5700_v17  ;;  %v5713_v18 = vmul.f32 %v5712_v52, %v12249_v50 }
 0x5a5   :  { %v12337_v33 = vadd.f32 %v4065_v46, %v3974_v30  ;;  %v5041_v39 = vsub.f32 1.0, %v5040_v24  ;;  %v12340_v4 = vmul.f32 0.70710677, %v12324_v43  ;;  %v5115_v32 = vmul.f32 %v5114_v12, %v11596_v35  ;;  %vm12372_vm4 = vmor %vm5564_vm14, %vm5565_vm13 }
 0x5a6   :  { %v6860_v34 = vclamps-f32 %v12002_v0, 1.0  ;;  %vm5045_vm15 = vweird.f32 %v7134_v20  ;;  %v5048_v9 = vand.u32 2147483647, %v12289_v6  ;;  %v5050_v56 = vand.u32 2147483648, %v12289_v6 }
 0x5a7   :  { %v5191_v60 = vmul.f32 %v5190_v51, %v11796_v41  ;;  %v5042_v37 = vmul.f32 %v7134_v20, %v5041_v39  ;;  %v5776_v17 = vmul.f32 %v12340_v4, %v12340_v4  ;;  %v5116_v52 = vadd.f32 0.4994258, %v5115_v32  ;;  %v4068_v24 = vpop.f32.mrf.mxu3 }
 0x5a8   :  { %v6395_v30 = vadd.f32 1.0, %v6860_v34  ;;  %v5563_v11 = vadd.f32 %v12265_v5, %v5562_v57  ;;  %vm12350_vm0 = vcmp.eq.f32.partialorder %v5568_v61, 8.507059e+37  ;;  %v5625_v0 = vadd.f32 0.18741608, %v5624_v19  ;;  %v13877_v34 = vld [vmem:[#allocation39_spill] sm:$0xff] }
 0x5a9   :  { %v5583_v12 = vadd.f32 0.05243302, %v5582_v44  ;;  %v5714_v46 = vadd.f32 0.112945676, %v5713_v18  ;;  %v5043_v28 = vadd.f32 %v7134_v20, %v5042_v37  ;;  %vm5044_vm1 = vweird.f32 %v12289_v6 }
 0x5aa   :  { %v12356_v51 = vmul.f32 0.70710677, %v12337_v33  ;;  %v12358_v39 = vmin.f32 %v5776_v17, 16.0  ;;  %v5702_v32 = vmul.f32 %v5701_v23, %v12249_v50  ;;  %vm5046_vm2 = vmor %vm5044_vm1, %vm5045_vm15  ;;  %v5051_v57 = vor.u32 1.1754944e-38, %v5050_v56 }
 0x5ab   :  { %v5117_v61 = vmul.f32 %v5116_v52, %v11596_v35  ;;  %v6445_v53 = vmul.f32 %v6395_v30, %v13877_v34  ;;  %v5641_v19 = vsub.f32 1.0, %v5640_v62  ;;  %v5047_v44 = vsel %vm5046_vm2, %v7134_v20, %v5043_v28  ;;  %v13882_v62 = vld [vmem:[#allocation29_spill] sm:$0xff] }
 0x5ac   :  { %vm5049_vm3 = vcmp.eq.f32.partialorder %v5048_v9, 8.507059e+37  ;;  %v5192_v18 = vadd.f32 0.014752088, %v5191_v60  ;;  %v5715_v6 = vmul.f32 %v5714_v46, %v12249_v50  ;;  %v5789_v10 = vmul.f32 3.8918573e-05, %v12358_v39 }
 0x5ad   :  { %v5052_v37 = vsel %vm5049_vm3, %v5051_v57, %v5047_v44  ;;  %v12366_v17 = vadd.f32 1.0, %v5117_v61  ;;  %6647 = vmatmul.f32.gmra.mxu3 %v6445_v53  ;;  %v12377_v28 = vmul.f32 0.5, %v12203_v27  ;;  %v12380_v20 = vmul.f32 0.5, %v12215_v31 }
 0x5ae   :  { %v5053_v23 = vmul.f32 %v5052_v37, %v13882_v62  ;;  %v5656_v9 = vmul.f32 %v12356_v51, %v12356_v51  ;;  %v5567_v53 = vsel %vm12372_vm4, %v12265_v5, %v5563_v11  ;;  %v5703_v63 = vadd.f32 0.05243302, %v5702_v32  ;;  %v3976_v11 = vpop.f32.mrf.mxu2  ;;  %v4163_v32 = vpop.f32.mrf.mxu0 }
 0x5af   :  { %13880 = vst [vmem:[#allocation34_spill] sm:$0xff] %v12377_v28  ;;  %v5790_v56 = vadd.f32 0.001143296, %v5789_v10  ;;  %7135 = vrcp.f32 %v12366_v17  ;;  %v12390_v60 = vmul.f32 %v5507_v2, %v12122_v40  ;;  %v5584_v27 = vmul.f32 %v5583_v12, %v12240_v49 }
 0x5b0   :  { %13881 = vst [vmem:[#allocation35_spill] sm:$0xff] %v12380_v20  ;;  %v6857_v31 = vclamps-f32 %v5053_v23, 1.0  ;;  %v5193_v52 = vmul.f32 %v5192_v18, %v11796_v41  ;;  %v5626_v30 = vmul.f32 %v5625_v0, %v12149_v42  ;;  %v5642_v46 = vmul.f32 %v12318_v13, %v5641_v19  ;;  %v13883_v19 = vld [vmem:[#allocation38_spill] sm:$0xff] }
 0x5b1   :  { %v5716_v57 = vadd.f32 0.4994258, %v5715_v6  ;;  %v5791_v61 = vmul.f32 %v5790_v56, %v12358_v39  ;;  %v12400_v5 = vsel %vm12350_vm0, %v12328_v54, %v5567_v53  ;;  %v5650_v40 = vand.u32 2147483648, %v12269_v58  ;;  %v4255_v56 = vpop.f32.mrf.mxu1 }
 0x5b2   :  { %v6392_v10 = vadd.f32 1.0, %v6857_v31  ;;  %v12403_v2 = vmin.f32 %v5656_v9, 16.0  ;;  %vm5645_vm5 = vweird.f32 %v12318_v13  ;;  %v5704_v42 = vmul.f32 %v5703_v63, %v12249_v50 }
 0x5b3   :  { %v5792_v0 = vadd.f32 0.014752088, %v5791_v61  ;;  %v3977_v12 = vadd.f32 %v3976_v11, %v10854_v15  ;;  %v5585_v34 = vadd.f32 0.18741608, %v5584_v27  ;;  %v4164_v54 = vadd.f32 %v4163_v32, %v10844_v47 }
 0x5b4   :  { %v6442_v44 = vmul.f32 %v6392_v10, %v13883_v19  ;;  %v5194_v18 = vadd.f32 0.112945676, %v5193_v52  ;;  %v5643_v37 = vadd.f32 %v12318_v13, %v5642_v46  ;;  %v5717_v35 = vmul.f32 %v5716_v57, %v12249_v50 }
 0x5b5   :  { %v7136_v6 = vpop.eup %7135  ;;  %v5793_v62 = vmul.f32 %v5792_v0, %v12358_v39  ;;  %v12413_v23 = vadd.f32 %v4068_v24, %v3977_v12  ;;  %v5627_v9 = vadd.f32 1.1283791, %v5626_v30  ;;  %vm5644_vm6 = vweird.f32 %v12269_v58 }
 0x5b6   :  { %6552 = vmatmul.f32.gmra.mxu2 %v6442_v44  ;;  %v5658_v53 = vmul.f32 2.1237322e-06, %v12403_v2  ;;  %v5120_v63 = vmul.f32 %v7136_v6, %v12366_v17  ;;  %v5648_v27 = vand.u32 2147483647, %v12269_v58  ;;  %v5705_v31 = vadd.f32 0.18741608, %v5704_v42  ;;  %vm12423_vm7 = vmor %vm5644_vm6, %vm5645_vm5 }
 0x5b7   :  { %v5794_v52 = vadd.f32 0.112945676, %v5793_v62  ;;  %v12419_v46 = vadd.f32 %v4255_v56, %v4164_v54  ;;  %v5651_v30 = vor.u32 1.1754944e-38, %v5650_v40  ;;  %v12428_v10 = vmul.f32 0.70710677, %v12413_v23 }
 0x5b8   :  { %v5121_v61 = vsub.f32 1.0, %v5120_v63  ;;  %v5195_v11 = vmul.f32 %v5194_v18, %v11796_v41  ;;  %v5647_v58 = vsel %vm12423_vm7, %v12318_v13, %v5643_v37  ;;  %v5586_v42 = vmul.f32 %v5585_v34, %v12240_v49 }
 0x5b9   :  { %v12435_v0 = vadd.f32 1.0, %v5717_v35  ;;  %v5130_v12 = vand.u32 2147483648, %v12366_v17  ;;  %v5659_v32 = vadd.f32 0.00028619796, %v5658_v53  ;;  %vm5125_vm8 = vweird.f32 %v7136_v6 }
 0x5ba   :  { %v5122_v19 = vmul.f32 %v7136_v6, %v5121_v61  ;;  %v5128_v40 = vand.u32 2147483647, %v12366_v17  ;;  %v5706_v44 = vmul.f32 %v5705_v31, %v12249_v50  ;;  %v5778_v24 = vmul.f32 2.1237322e-06, %v12358_v39  ;;  %v13886_v61 = vld [vmem:[#allocation45_spill] sm:$0xff] }
 0x5bb   :  { %v5795_v54 = vmul.f32 %v5794_v52, %v12358_v39  ;;  %v12443_v18 = vmul.f32 0.70710677, %v12419_v46  ;;  %vm5124_vm9 = vweird.f32 %v12366_v17  ;;  %v5736_v34 = vmul.f32 %v12428_v10, %v12428_v10 }
 0x5bc   :  { %v5123_v13 = vadd.f32 %v7136_v6, %v5122_v19  ;;  %v5196_v37 = vadd.f32 0.4994258, %v5195_v11  ;;  %7137 = vrcp.f32 %v12435_v0  ;;  %vm5126_vm10 = vmor %vm5124_vm9, %vm5125_vm8  ;;  %v5131_v35 = vor.u32 1.1754944e-38, %v5130_v12 }
 0x5bd   :  { %v5856_v50 = vmul.f32 %v12443_v18, %v12443_v18  ;;  %v6862_v62 = vclamps-f32 %v12004_v8, 1.0  ;;  %v5660_v53 = vmul.f32 %v5659_v32, %v12403_v2  ;;  %vm5129_vm11 = vcmp.eq.f32.partialorder %v5128_v40, 8.507059e+37 }
 0x5be   :  { %v5127_v63 = vsel %vm5126_vm10, %v7136_v6, %v5123_v13  ;;  %v5197_v56 = vmul.f32 %v5196_v37, %v11796_v41  ;;  %v5779_v17 = vadd.f32 0.00028619796, %v5778_v24  ;;  %v5796_v31 = vadd.f32 0.4994258, %v5795_v54 }
 0x5bf   :  { %v5132_v52 = vsel %vm5129_vm11, %v5131_v35, %v5127_v63  ;;  %v12454_v57 = vmin.f32 %v5856_v50, 16.0  ;;  %v12457_v19 = vmin.f32 %v5736_v34, 16.0  ;;  %v5269_v28 = vmul.f32 3.8918573e-05, %v11864_v3  ;;  %v13888_v50 = vld [vmem:[#allocation28_spill] sm:$0xff] }
 0x5c0   :  { %v5133_v11 = vmul.f32 %v5132_v52, %v13886_v61  ;;  %v12459_v12 = vadd.f32 1.0, %v5197_v56  ;;  %v5628_v8 = vmul.f32 %v5627_v9, %v12138_v29  ;;  %vm5649_vm12 = vcmp.eq.f32.partialorder %v5648_v27, 8.507059e+37 }
 0x5c1   :  { %v5587_v6 = vadd.f32 1.1283791, %v5586_v42  ;;  %v6397_v32 = vadd.f32 1.0, %v6862_v62  ;;  %v5652_v40 = vsel %vm5649_vm12, %v5651_v30, %v5647_v58  ;;  %v5707_v41 = vadd.f32 1.1283791, %v5706_v44 }
 0x5c2   :  { %v5661_v24 = vadd.f32 0.0036580483, %v5660_v53  ;;  %v6859_v54 = vclamps-f32 %v5133_v11, 1.0  ;;  %v12463_v13 = vpop.eup %7137  ;;  %v5780_v37 = vmul.f32 %v5779_v17, %v12358_v39  ;;  %v5797_v34 = vmul.f32 %v5796_v31, %v12358_v39  ;;  %v3979_v17 = vpop.f32.mrf.mxu2 }
 0x5c3   :  { %v5869_v35 = vmul.f32 3.8918573e-05, %v12454_v57  ;;  %7139 = vrcp.f32 %v12459_v12  ;;  %v12471_v29 = vmul.f32 %v12400_v5, %v12321_v22  ;;  %v5738_v27 = vmul.f32 2.1237322e-06, %v12457_v19  ;;  %v13890_v5 = vld [vmem:[#allocation55_spill] sm:$0xff] }
 0x5c4   :  { %v6394_v9 = vadd.f32 1.0, %v6859_v54  ;;  %v5270_v30 = vadd.f32 0.001143296, %v5269_v28  ;;  %v12474_v58 = vmul.f32 %v5652_v40, %v5628_v8  ;;  %v12477_v42 = vmul.f32 0.5, %v12337_v33  ;;  %v4071_v8 = vpop.f32.mrf.mxu3 }
 0x5c5   :  { %v5870_v44 = vadd.f32 0.001143296, %v5869_v35  ;;  %v6447_v62 = vmul.f32 %v6397_v32, %v13888_v50  ;;  %v12481_v53 = vmul.f32 %v5587_v6, %v12212_v55  ;;  %v5720_v63 = vmul.f32 %v12463_v13, %v12435_v0  ;;  %v4166_v6 = vpop.f32.mrf.mxu0 }
 0x5c6   :  { %13887 = vst [vmem:[#allocation16_spill] sm:$0xff] %v12477_v42  ;;  %v5662_v22 = vmul.f32 %v5661_v24, %v12403_v2  ;;  %v6444_v56 = vmul.f32 %v6394_v9, %v13890_v5  ;;  %v5781_v28 = vadd.f32 0.0036580483, %v5780_v37  ;;  %v12487_v31 = vadd.f32 1.0, %v5797_v34 }
 0x5c7   :  { %13889 = vst [vmem:[#allocation17_spill] sm:$0xff] %v12481_v53  ;;  %v5871_v33 = vmul.f32 %v5870_v44, %v12454_v57  ;;  %6650 = vmatmul.f32.gmra.mxu3 %v6447_v62  ;;  %v3980_v52 = vadd.f32 %v3979_v17, %v10854_v15  ;;  %v12492_v61 = vmul.f32 %v5707_v41, %v12233_v1  ;;  %v12495_v55 = vmul.f32 0.5, %v12324_v43 }
 0x5c8   :  { %6555 = vmatmul.f32.gmra.mxu2 %v6444_v56  ;;  %v5739_v11 = vadd.f32 0.00028619796, %v5738_v27  ;;  %v5271_v32 = vmul.f32 %v5270_v30, %v11864_v3  ;;  %v5728_v24 = vand.u32 2147483647, %v12435_v0  ;;  %v4167_v34 = vadd.f32 %v4166_v6, %v10844_v47 }
 0x5c9   :  { %13891 = vst [vmem:[#allocation37_spill] sm:$0xff] %v12495_v55  ;;  %v7140_v40 = vpop.eup %7139  ;;  %v5872_v54 = vadd.f32 0.014752088, %v5871_v33  ;;  %v12499_v37 = vadd.f32 %v4071_v8, %v3980_v52  ;;  %v5721_v35 = vsub.f32 1.0, %v5720_v63  ;;  %v5730_v1 = vand.u32 2147483648, %v12435_v0  ;;  %v4258_v63 = vpop.f32.mrf.mxu1 }
 0x5ca   :  { %v5663_v41 = vadd.f32 0.05243302, %v5662_v22  ;;  %v5200_v43 = vmul.f32 %v7140_v40, %v12459_v12  ;;  %v5782_v9 = vmul.f32 %v5781_v28, %v12358_v39  ;;  %7141 = vrcp.f32 %v12487_v31 }
 0x5cb   :  { %v5873_v27 = vmul.f32 %v5872_v54, %v12454_v57  ;;  %v12508_v30 = vmul.f32 0.70710677, %v12499_v37  ;;  %v5740_v44 = vmul.f32 %v5739_v11, %v12457_v19  ;;  %v5858_v50 = vmul.f32 2.1237322e-06, %v12454_v57 }
 0x5cc   :  { %v5201_v62 = vsub.f32 1.0, %v5200_v43  ;;  %v5272_v5 = vadd.f32 0.014752088, %v5271_v32  ;;  %vm5725_vm13 = vweird.f32 %v12463_v13  ;;  %v5210_v56 = vand.u32 2147483648, %v12459_v12 }
 0x5cd   :  { %v5874_v22 = vadd.f32 0.112945676, %v5873_v27  ;;  %v5816_v17 = vmul.f32 %v12508_v30, %v12508_v30  ;;  %v12516_v28 = vadd.f32 %v4258_v63, %v4167_v34  ;;  %v5722_v33 = vmul.f32 %v12463_v13, %v5721_v35 }
 0x5ce   :  { %v5202_v52 = vmul.f32 %v7140_v40, %v5201_v62  ;;  %vm5205_vm14 = vweird.f32 %v7140_v40  ;;  %v5208_v11 = vand.u32 2147483647, %v12459_v12  ;;  %vm5724_vm15 = vweird.f32 %v12435_v0 }
 0x5cf   :  { %v5664_v8 = vmul.f32 %v5663_v41, %v12403_v2  ;;  %v5875_v6 = vmul.f32 %v5874_v22, %v12454_v57  ;;  %v12523_v32 = vmin.f32 %v5816_v17, 16.0  ;;  %v12526_v54 = vmul.f32 0.70710677, %v12516_v28  ;;  %vm12559_vm4 = vmor %vm5724_vm15, %vm5725_vm13 }
 0x5d0   :  { %v5783_v43 = vadd.f32 0.05243302, %v5782_v9  ;;  %v5203_v34 = vadd.f32 %v7140_v40, %v5202_v52  ;;  %vm5204_vm0 = vweird.f32 %v12459_v12  ;;  %v5273_v35 = vmul.f32 %v5272_v5, %v11864_v3  ;;  %v12530_v27 = vpop.eup %7141 }
 0x5d1   :  { %v5741_v62 = vadd.f32 0.0036580483, %v5740_v44  ;;  %v5859_v63 = vadd.f32 0.00028619796, %v5858_v50  ;;  %vm5206_vm1 = vmor %vm5204_vm0, %vm5205_vm14  ;;  %v5211_v42 = vor.u32 1.1754944e-38, %v5210_v56  ;;  %v5936_v41 = vmul.f32 %v12526_v54, %v12526_v54 }
 0x5d2   :  { %v5723_v22 = vadd.f32 %v12463_v13, %v5722_v33  ;;  %v5876_v17 = vadd.f32 0.4994258, %v5875_v6  ;;  %v5207_v55 = vsel %vm5206_vm1, %v7140_v40, %v5203_v34  ;;  %vm5209_vm2 = vcmp.eq.f32.partialorder %v5208_v11, 8.507059e+37 }
 0x5d3   :  { %v5665_v9 = vadd.f32 0.18741608, %v5664_v8  ;;  %v5212_v52 = vsel %vm5209_vm2, %v5211_v42, %v5207_v55  ;;  %v5818_v12 = vmul.f32 2.1237322e-06, %v12523_v32  ;;  %v12536_v20 = vmin.f32 %v5936_v41, 16.0 }
 0x5d4   :  { %v5784_v5 = vmul.f32 %v5783_v43, %v12358_v39  ;;  %v5213_v44 = vmul.f32 %v5212_v52, %v12073_v26  ;;  %v5274_v50 = vadd.f32 0.112945676, %v5273_v35  ;;  %v6864_v56 = vclamps-f32 %v12096_v59, 1.0 }
 0x5d5   :  { %v5800_v53 = vmul.f32 %v12530_v27, %v12487_v31  ;;  %v5742_v33 = vmul.f32 %v5741_v62, %v12457_v19  ;;  %v5860_v40 = vmul.f32 %v5859_v63, %v12454_v57  ;;  %v5949_v42 = vmul.f32 3.8918573e-05, %v12536_v20 }
 0x5d6   :  { %v5877_v55 = vmul.f32 %v5876_v17, %v12454_v57  ;;  %v6861_v11 = vclamps-f32 %v5213_v44, 1.0  ;;  %v5275_v8 = vmul.f32 %v5274_v50, %v11864_v3  ;;  %v6399_v6 = vadd.f32 1.0, %v6864_v56  ;;  %v13897_v50 = vld [vmem:[#allocation30_spill] sm:$0xff] }
 0x5d7   :  { %vm12548_vm3 = vcmp.eq.f32.partialorder %v5728_v24, 8.507059e+37  ;;  %v5731_v59 = vor.u32 1.1754944e-38, %v5730_v1  ;;  %v12553_v43 = vmul.f32 0.5, %v12413_v23  ;;  %v5819_v34 = vadd.f32 0.00028619796, %v5818_v12 }
 0x5d8   :  { %v5666_v62 = vmul.f32 %v5665_v9, %v12403_v2  ;;  %v5785_v63 = vadd.f32 0.18741608, %v5784_v5  ;;  %v6396_v24 = vadd.f32 1.0, %v6861_v11  ;;  %v6449_v41 = vmul.f32 %v6399_v6, %v11998_v21 }
 0x5d9   :  { %13894 = vst [vmem:[#allocation59_spill] sm:$0xff] %v12553_v43  ;;  %v5727_v23 = vsel %vm12559_vm4, %v12463_v13, %v5723_v22  ;;  %v5743_v1 = vadd.f32 0.05243302, %v5742_v33  ;;  %v5950_v17 = vadd.f32 0.001143296, %v5949_v42  ;;  %v5801_v12 = vsub.f32 1.0, %v5800_v53 }
 0x5da   :  { %v5276_v52 = vadd.f32 0.4994258, %v5275_v8  ;;  %v5861_v44 = vadd.f32 0.0036580483, %v5860_v40  ;;  %v12568_v0 = vadd.f32 1.0, %v5877_v55  ;;  %v6446_v56 = vmul.f32 %v6396_v24, %v13897_v50  ;;  %6653 = vmatmul.f32.gmra.mxu3 %v6449_v41  ;;  %v3982_v40 = vpop.f32.mrf.mxu2 }
 0x5db   :  { %v5820_v9 = vmul.f32 %v5819_v34, %v12523_v32  ;;  %v5938_v5 = vmul.f32 2.1237322e-06, %v12536_v20  ;;  %v5951_v21 = vmul.f32 %v5950_v17, %v12536_v20  ;;  %v5732_v13 = vsel %vm12548_vm3, %v5731_v59, %v5727_v23  ;;  %v4074_v23 = vpop.f32.mrf.mxu3 }
 0x5dc   :  { %v5277_v11 = vmul.f32 %v5276_v52, %v11864_v3  ;;  %v5667_v22 = vadd.f32 1.1283791, %v5666_v62  ;;  %v5786_v53 = vmul.f32 %v5785_v63, %v12358_v39  ;;  %v12579_v33 = vmul.f32 0.5, %v12419_v46  ;;  %6558 = vmatmul.f32.gmra.mxu2 %v6446_v56  ;;  %v4169_v39 = vpop.f32.mrf.mxu0  ;;  %v4261_v56 = vpop.f32.mrf.mxu1 }
 0x5dd   :  { %v5952_v42 = vadd.f32 0.014752088, %v5951_v21  ;;  %v3983_v8 = vadd.f32 %v3982_v40, %v10854_v15  ;;  %v5349_v6 = vmul.f32 3.8918573e-05, %v11976_v25  ;;  %v5802_v3 = vmul.f32 %v12530_v27, %v5801_v12 }
 0x5de   :  { %13898 = vst [vmem:[#allocation40_spill] sm:$0xff] %v12579_v33  ;;  %v12581_v55 = vadd.f32 1.0, %v5277_v11  ;;  %v5744_v26 = vmul.f32 %v5743_v1, %v12457_v19  ;;  %v5862_v59 = vmul.f32 %v5861_v44, %v12454_v57  ;;  %7143 = vrcp.f32 %v12568_v0 }
 0x5df   :  { %v5821_v46 = vadd.f32 0.0036580483, %v5820_v9  ;;  %v5939_v34 = vadd.f32 0.00028619796, %v5938_v5  ;;  %v5953_v35 = vmul.f32 %v5952_v42, %v12536_v20  ;;  %v12592_v62 = vmul.f32 %v5732_v13, %v12492_v61 }
 0x5e0   :  { %7145 = vrcp.f32 %v12581_v55  ;;  %v12595_v63 = vmul.f32 %v5667_v22, %v12356_v51  ;;  %v5787_v24 = vadd.f32 1.1283791, %v5786_v53  ;;  %v5810_v41 = vand.u32 2147483648, %v12487_v31 }
 0x5e1   :  { %v5954_v1 = vadd.f32 0.112945676, %v5953_v35  ;;  %v12598_v17 = vadd.f32 %v4074_v23, %v3983_v8  ;;  %v4170_v52 = vadd.f32 %v4169_v39, %v10844_v47  ;;  %v5350_v12 = vadd.f32 0.001143296, %v5349_v6 }
 0x5e2   :  { %13899 = vst [vmem:[#allocation18_spill] sm:$0xff] %v12595_v63  ;;  %v12602_v44 = vadd.f32 %v12530_v27, %v5802_v3  ;;  %vm5805_vm5 = vweird.f32 %v12530_v27  ;;  %v5745_v61 = vadd.f32 0.18741608, %v5744_v26  ;;  %v5863_v50 = vadd.f32 0.05243302, %v5862_v59 }
 0x5e3   :  { %v5822_v51 = vmul.f32 %v5821_v46, %v12523_v32  ;;  %v5940_v9 = vmul.f32 %v5939_v34, %v12536_v20  ;;  %v12607_v5 = vadd.f32 %v4261_v56, %v4170_v52  ;;  %v5429_v21 = vmul.f32 3.8918573e-05, %v12105_v7 }
 0x5e4   :  { %v12610_v11 = vpop.eup %7143  ;;  %v12613_v13 = vmul.f32 %v5787_v24, %v12340_v4  ;;  %vm5804_vm6 = vweird.f32 %v12487_v31  ;;  %v5808_v22 = vand.u32 2147483647, %v12487_v31  ;;  %v12618_v53 = vmul.f32 0.70710677, %v12598_v17 }
 0x5e5   :  { %v12620_v42 = vor.u32 1.1754944e-38, %v5810_v41  ;;  %v5955_v8 = vmul.f32 %v5954_v1, %v12536_v20  ;;  %v12624_v6 = vmul.f32 0.70710677, %v12607_v5  ;;  %v5351_v3 = vmul.f32 %v5350_v12, %v11976_v25  ;;  %vm12629_vm7 = vmor %vm5804_vm6, %vm5805_vm5 }
 0x5e6   :  { %v7146_v40 = vpop.eup %7145  ;;  %v5746_v31 = vmul.f32 %v5745_v61, %v12457_v19  ;;  %v5864_v26 = vmul.f32 %v5863_v50, %v12454_v57  ;;  %v12636_v59 = vmul.f32 0.5, %v12499_v37  ;;  %v5823_v34 = vadd.f32 0.05243302, %v5822_v51 }
 0x5e7   :  { %v5280_v39 = vmul.f32 %v7146_v40, %v12581_v55  ;;  %v5941_v35 = vadd.f32 0.0036580483, %v5940_v9  ;;  %v5430_v24 = vadd.f32 0.001143296, %v5429_v21  ;;  %v5880_v41 = vmul.f32 %v12610_v11, %v12568_v0 }
 0x5e8   :  { %13902 = vst [vmem:[#allocation46_spill] sm:$0xff] %v12636_v59  ;;  %v5896_v1 = vmul.f32 %v12618_v53, %v12618_v53  ;;  %v6016_v37 = vmul.f32 %v12624_v6, %v12624_v6  ;;  %v5956_v52 = vadd.f32 0.4994258, %v5955_v8  ;;  %v5290_v12 = vand.u32 2147483648, %v12581_v55 }
 0x5e9   :  { %v5281_v23 = vsub.f32 1.0, %v5280_v39  ;;  %v5352_v61 = vadd.f32 0.014752088, %v5351_v3  ;;  %v6866_v50 = vclamps-f32 %v12195_v14, 1.0  ;;  %vm5285_vm8 = vweird.f32 %v7146_v40 }
 0x5ea   :  { %v5288_v51 = vand.u32 2147483647, %v12581_v55  ;;  %v12652_v9 = vmin.f32 %v6016_v37, 16.0  ;;  %v5865_v21 = vadd.f32 0.18741608, %v5864_v26  ;;  %v5824_v39 = vmul.f32 %v5823_v34, %v12523_v32 }
 0x5eb   :  { %v5282_v56 = vmul.f32 %v7146_v40, %v5281_v23  ;;  %v5942_v46 = vmul.f32 %v5941_v35, %v12536_v20  ;;  %vm5284_vm9 = vweird.f32 %v12581_v55  ;;  %v5881_v59 = vsub.f32 1.0, %v5880_v41  ;;  %v4264_v55 = vpop.f32.mrf.mxu1 }
 0x5ec   :  { %v12657_v43 = vmin.f32 %v5896_v1, 16.0  ;;  %v6029_v3 = vmul.f32 3.8918573e-05, %v12652_v9  ;;  %v5957_v14 = vmul.f32 %v5956_v52, %v12536_v20  ;;  %vm5286_vm10 = vmor %vm5284_vm9, %vm5285_vm8  ;;  %v5291_v23 = vor.u32 1.1754944e-38, %v5290_v12 }
 0x5ed   :  { %v5283_v8 = vadd.f32 %v7146_v40, %v5282_v56  ;;  %v5353_v37 = vmul.f32 %v5352_v61, %v11976_v25  ;;  %v6401_v33 = vadd.f32 1.0, %v6866_v50  ;;  %vm5289_vm11 = vcmp.eq.f32.partialorder %v5288_v51, 8.507059e+37 }
 0x5ee   :  { %v6030_v34 = vadd.f32 0.001143296, %v6029_v3  ;;  %v5431_v35 = vmul.f32 %v5430_v24, %v12105_v7  ;;  %vm12663_vm12 = vcmp.eq.f32.partialorder %v5808_v22, 8.507059e+37  ;;  %v5943_v41 = vadd.f32 0.05243302, %v5942_v46 }
 0x5ef   :  { %v5287_v26 = vsel %vm5286_vm10, %v7146_v40, %v5283_v8  ;;  %v5354_v56 = vadd.f32 0.112945676, %v5353_v37  ;;  %v6451_v63 = vmul.f32 %v6401_v33, %v12091_v48  ;;  %v5882_v52 = vmul.f32 %v12610_v11, %v5881_v59  ;;  %v3985_v33 = vpop.f32.mrf.mxu2 }
 0x5f0   :  { %v5292_v1 = vsel %vm5289_vm11, %v5291_v23, %v5287_v26  ;;  %v5898_v61 = vmul.f32 2.1237322e-06, %v12657_v43  ;;  %v6031_v40 = vmul.f32 %v6030_v34, %v12652_v9  ;;  %v5747_v50 = vadd.f32 1.1283791, %v5746_v31  ;;  %v4172_v23 = vpop.f32.mrf.mxu0 }
 0x5f1   :  { %v5293_v12 = vmul.f32 %v5292_v1, %v12103_v16  ;;  %v5866_v24 = vmul.f32 %v5865_v21, %v12454_v57  ;;  %v12673_v22 = vadd.f32 1.0, %v5957_v14  ;;  %v5355_v51 = vmul.f32 %v5354_v56, %v11976_v25  ;;  %6656 = vmatmul.f32.gmra.mxu3 %v6451_v63 }
 0x5f2   :  { %vm5884_vm13 = vweird.f32 %v12568_v0  ;;  %vm5885_vm14 = vweird.f32 %v12610_v11  ;;  %v5432_v59 = vadd.f32 0.014752088, %v5431_v35  ;;  %v5825_v16 = vadd.f32 0.18741608, %v5824_v39  ;;  %v4077_v39 = vpop.f32.mrf.mxu3 }
 0x5f3   :  { %v6863_v48 = vclamps-f32 %v5293_v12, 1.0  ;;  %v6032_v46 = vadd.f32 0.014752088, %v6031_v40  ;;  %v5356_v8 = vadd.f32 0.4994258, %v5355_v51  ;;  %v3986_v3 = vadd.f32 %v3985_v33, %v10854_v15  ;;  %vm12706_vm15 = vmor %vm5884_vm13, %vm5885_vm14 }
 0x5f4   :  { %v5883_v31 = vadd.f32 %v12610_v11, %v5882_v52  ;;  %v5944_v57 = vmul.f32 %v5943_v41, %v12536_v20  ;;  %v5899_v14 = vadd.f32 0.00028619796, %v5898_v61  ;;  %7147 = vrcp.f32 %v12673_v22 }
 0x5f5   :  { %v6398_v21 = vadd.f32 1.0, %v6863_v48  ;;  %v6018_v63 = vmul.f32 2.1237322e-06, %v12652_v9  ;;  %v6033_v37 = vmul.f32 %v6032_v46, %v12652_v9  ;;  %v5357_v26 = vmul.f32 %v5356_v8, %v11976_v25 }
 0x5f6   :  { %v12686_v35 = vadd.f32 %v4077_v39, %v3986_v3  ;;  %v4173_v1 = vadd.f32 %v4172_v23, %v10844_v47  ;;  %v5433_v41 = vmul.f32 %v5432_v59, %v12105_v7  ;;  %v5890_v56 = vand.u32 2147483648, %v12568_v0 }
 0x5f7   :  { %v6448_v34 = vmul.f32 %v6398_v21, %v12016_v45  ;;  %v5826_v52 = vmul.f32 %v5825_v16, %v12523_v32  ;;  %v6034_v12 = vadd.f32 0.112945676, %v6033_v37  ;;  %v12692_v61 = vadd.f32 1.0, %v5357_v26 }
 0x5f8   :  { %13905 = vst [vmem:[#allocation47_spill] sm:$0xff] %v12686_v35  ;;  %v13906_v25 = vsel %vm12629_vm7, %v12530_v27, %v12602_v44  ;;  %v5867_v40 = vadd.f32 1.1283791, %v5866_v24  ;;  %v5888_v48 = vand.u32 2147483647, %v12568_v0  ;;  %v5900_v4 = vmul.f32 %v5899_v14, %v12657_v43 }
 0x5f9   :  { %v5812_v45 = vsel %vm12663_vm12, %v12620_v42, %v13906_v25  ;;  %6561 = vmatmul.f32.gmra.mxu2 %v6448_v34  ;;  %v5887_v27 = vsel %vm12706_vm15, %v12610_v11, %v5883_v31  ;;  %v5945_v44 = vadd.f32 0.18741608, %v5944_v57  ;;  %v6019_v42 = vadd.f32 0.00028619796, %v6018_v63 }
 0x5fa   :  { %7149 = vrcp.f32 %v12692_v61  ;;  %v6035_v24 = vmul.f32 %v6034_v12, %v12652_v9  ;;  %v12718_v33 = vmul.f32 0.70710677, %v12686_v35  ;;  %v12720_v59 = vadd.f32 %v4264_v55, %v4173_v1  ;;  %v12722_v16 = vpop.eup %7147 }
 0x5fb   :  { %v5434_v0 = vadd.f32 0.112945676, %v5433_v41  ;;  %v12725_v46 = vmul.f32 %v5812_v45, %v12613_v13  ;;  %v5891_v8 = vor.u32 1.1754944e-38, %v5890_v56  ;;  %v5827_v11 = vadd.f32 1.1283791, %v5826_v52 }
 0x5fc   :  { %v12728_v3 = vmul.f32 0.5, %v12516_v28  ;;  %v12731_v31 = vmul.f32 %v5747_v50, %v12428_v10  ;;  %v5868_v57 = vmul.f32 %v5867_v40, %v12443_v18  ;;  %vm5889_vm0 = vcmp.eq.f32.partialorder %v5888_v48, 8.507059e+37 }
 0x5fd   :  { %v5901_v21 = vadd.f32 0.0036580483, %v5900_v4  ;;  %v5892_v14 = vsel %vm5889_vm0, %v5891_v8, %v5887_v27  ;;  %v5946_v23 = vmul.f32 %v5945_v44, %v12536_v20  ;;  %v12736_v63 = vmul.f32 0.5, %v12598_v17 }
 0x5fe   :  { %v6020_v13 = vmul.f32 %v6019_v42, %v12652_v9  ;;  %v6036_v37 = vadd.f32 0.4994258, %v6035_v24  ;;  %v5976_v28 = vmul.f32 %v12718_v33, %v12718_v33  ;;  %v12742_v26 = vmul.f32 0.70710677, %v12720_v59 }
 0x5ff   :  { %v5435_v10 = vmul.f32 %v5434_v0, %v12105_v7  ;;  %v12746_v50 = vmul.f32 %v5827_v11, %v12508_v30  ;;  %v5960_v20 = vmul.f32 %v12722_v16, %v12673_v22  ;;  %v12751_v17 = vmul.f32 0.5, %v12607_v5  ;;  %v13909_v11 = vld [vmem:[#allocation31_spill] sm:$0xff] }
 0x600   :  { %v7150_v18 = vpop.eup %7149  ;;  %v6868_v39 = vclamps-f32 %v12310_v36, 1.0  ;;  %v5902_v34 = vmul.f32 %v5901_v21, %v12657_v43  ;;  %v6096_v41 = vmul.f32 %v12742_v26, %v12742_v26  ;;  %v12758_v52 = vmul.f32 %v5892_v14, %v5868_v57 }
 0x601   :  { %v5360_v1 = vmul.f32 %v7150_v18, %v12692_v61  ;;  %v5436_v56 = vadd.f32 0.4994258, %v5435_v10  ;;  %v5947_v30 = vadd.f32 1.1283791, %v5946_v23  ;;  %v6021_v12 = vadd.f32 0.0036580483, %v6020_v13 }
 0x602   :  { %v5509_v25 = vmul.f32 3.8918573e-05, %v12145_v38  ;;  %v6037_v45 = vmul.f32 %v6036_v37, %v12652_v9  ;;  %v12762_v40 = vmin.f32 %v5976_v28, 16.0  ;;  %v12764_v36 = vmin.f32 %v6096_v41, 16.0  ;;  %v13910_v41 = vld [vmem:[#allocation32_spill] sm:$0xff] }
 0x603   :  { %v5361_v5 = vsub.f32 1.0, %v5360_v1  ;;  %v5961_v51 = vsub.f32 1.0, %v5960_v20  ;;  %v5370_v48 = vand.u32 2147483648, %v12692_v61  ;;  %v5437_v4 = vmul.f32 %v5436_v56, %v12105_v7 }
 0x604   :  { %v6403_v27 = vadd.f32 1.0, %v6868_v39  ;;  %v5903_v44 = vadd.f32 0.05243302, %v5902_v34  ;;  %vm5365_vm1 = vweird.f32 %v7150_v18  ;;  %v5368_v55 = vand.u32 2147483647, %v12692_v61 }
 0x605   :  { %v5362_v42 = vmul.f32 %v7150_v18, %v5361_v5  ;;  %v6022_v24 = vmul.f32 %v6021_v12, %v12652_v9  ;;  %v6109_v0 = vmul.f32 3.8918573e-05, %v12764_v36  ;;  %v12771_v8 = vadd.f32 1.0, %v5437_v4  ;;  %v4080_v4 = vpop.f32.mrf.mxu3 }
 0x606   :  { %v6453_v57 = vmul.f32 %v6403_v27, %v13909_v11  ;;  %v12774_v21 = vadd.f32 1.0, %v6037_v45  ;;  %vm5364_vm2 = vweird.f32 %v12692_v61  ;;  %v5978_v7 = vmul.f32 2.1237322e-06, %v12762_v40  ;;  %v4175_v27 = vpop.f32.mrf.mxu0 }
 0x607   :  { %v5363_v14 = vadd.f32 %v7150_v18, %v5362_v42  ;;  %vm5366_vm3 = vmor %vm5364_vm2, %vm5365_vm1  ;;  %v5371_v23 = vor.u32 1.1754944e-38, %v5370_v48  ;;  %v6110_v13 = vadd.f32 0.001143296, %v6109_v0  ;;  %7151 = vrcp.f32 %v12771_v8 }
 0x608   :  { %6659 = vmatmul.f32.gmra.mxu3 %v6453_v57  ;;  %v5510_v37 = vadd.f32 0.001143296, %v5509_v25  ;;  %v12780_v28 = vmul.f32 %v5947_v30, %v12526_v54  ;;  %v5962_v10 = vmul.f32 %v12722_v16, %v5961_v51  ;;  %vm5369_vm4 = vcmp.eq.f32.partialorder %v5368_v55, 8.507059e+37  ;;  %v3988_v54 = vpop.f32.mrf.mxu2 }
 0x609   :  { %v5367_v20 = vsel %vm5366_vm3, %v7150_v18, %v5363_v14  ;;  %vm5964_vm5 = vweird.f32 %v12673_v22  ;;  %v5970_v61 = vand.u32 2147483648, %v12673_v22  ;;  %v6111_v34 = vmul.f32 %v6110_v13, %v12764_v36 }
 0x60a   :  { %v5372_v39 = vsel %vm5369_vm4, %v5371_v23, %v5367_v20  ;;  %v5904_v1 = vmul.f32 %v5903_v44, %v12657_v43  ;;  %7153 = vrcp.f32 %v12774_v21  ;;  %v5979_v12 = vadd.f32 0.00028619796, %v5978_v7 }
 0x60b   :  { %v5373_v56 = vmul.f32 %v5372_v39, %v13910_v41  ;;  %v6023_v30 = vadd.f32 0.05243302, %v6022_v24  ;;  %v6112_v25 = vadd.f32 0.014752088, %v6111_v34  ;;  %v3989_v18 = vadd.f32 %v3988_v54, %v10854_v15  ;;  %v13914_v34 = vld [vmem:[#allocation14_spill] sm:$0xff] }
 0x60c   :  { %v5511_v45 = vmul.f32 %v5510_v37, %v12145_v38  ;;  %v12792_v5 = vadd.f32 %v12722_v16, %v5962_v10  ;;  %vm5965_vm6 = vweird.f32 %v12722_v16  ;;  %v6098_v48 = vmul.f32 2.1237322e-06, %v12764_v36 }
 0x60d   :  { %v6865_v51 = vclamps-f32 %v5373_v56, 1.0  ;;  %v7152_v44 = vpop.eup %7151  ;;  %v5968_v42 = vand.u32 2147483647, %v12673_v22  ;;  %v5971_v55 = vor.u32 1.1754944e-38, %v5970_v61  ;;  %v6113_v24 = vmul.f32 %v6112_v25, %v12764_v36  ;;  %vm12805_vm7 = vmor %vm5964_vm5, %vm5965_vm6  ;;  %v4267_v25 = vpop.f32.mrf.mxu1 }
 0x60e   :  { %v12798_v0 = vadd.f32 %v4080_v4, %v3989_v18  ;;  %v5980_v57 = vmul.f32 %v5979_v12, %v12762_v40  ;;  %v5440_v14 = vmul.f32 %v7152_v44, %v12771_v8  ;;  %v4176_v7 = vadd.f32 %v4175_v27, %v10844_v47 }
 0x60f   :  { %v6400_v11 = vadd.f32 1.0, %v6865_v51  ;;  %v5905_v13 = vadd.f32 0.18741608, %v5904_v1  ;;  %v6024_v37 = vmul.f32 %v6023_v30, %v12652_v9  ;;  %v6114_v10 = vadd.f32 0.112945676, %v6113_v24 }
 0x610   :  { %13911 = vst [vmem:[#allocation41_spill] sm:$0xff] %v12798_v0  ;;  %v5512_v20 = vadd.f32 0.014752088, %v5511_v45  ;;  %v12810_v61 = vpop.eup %7153  ;;  %v5967_v39 = vsel %vm12805_vm7, %v12722_v16, %v12792_v5  ;;  %v6099_v56 = vadd.f32 0.00028619796, %v6098_v48  ;;  %v5441_v22 = vsub.f32 1.0, %v5440_v14 }
 0x611   :  { %v6450_v41 = vmul.f32 %v6400_v11, %v13914_v34  ;;  %v6115_v12 = vmul.f32 %v6114_v10, %v12764_v36  ;;  %v5448_v54 = vand.u32 2147483647, %v12771_v8  ;;  %v5450_v1 = vand.u32 2147483648, %v12771_v8 }
 0x612   :  { %v12821_v30 = vmul.f32 0.70710677, %v12798_v0  ;;  %v5981_v18 = vadd.f32 0.0036580483, %v5980_v57  ;;  %v5442_v45 = vmul.f32 %v7152_v44, %v5441_v22  ;;  %vm5445_vm8 = vweird.f32 %v7152_v44 }
 0x613   :  { %6564 = vmatmul.f32.gmra.mxu2 %v6450_v41  ;;  %v12823_v51 = vadd.f32 %v4267_v25, %v4176_v7  ;;  %v6040_v16 = vmul.f32 %v12810_v61, %v12774_v21  ;;  %v6116_v5 = vadd.f32 0.4994258, %v6115_v12  ;;  %v5513_v4 = vmul.f32 %v5512_v20, %v12145_v38  ;;  %v13915_v25 = vld [vmem:[#allocation15_spill] sm:$0xff] }
 0x614   :  { %v6056_v48 = vmul.f32 %v12821_v30, %v12821_v30  ;;  %v5443_v27 = vadd.f32 %v7152_v44, %v5442_v45  ;;  %vm5444_vm9 = vweird.f32 %v12771_v8  ;;  %v5589_v11 = vmul.f32 3.8918573e-05, %v12240_v49 }
 0x615   :  { %v12832_v24 = vmul.f32 0.70710677, %v12823_v51  ;;  %v6100_v57 = vmul.f32 %v6099_v56, %v12764_v36  ;;  %vm5446_vm10 = vmor %vm5444_vm9, %vm5445_vm8  ;;  %vm5449_vm11 = vcmp.eq.f32.partialorder %v5448_v54, 8.507059e+37  ;;  %v5451_v14 = vor.u32 1.1754944e-38, %v5450_v1 }
 0x616   :  { %v5514_v7 = vadd.f32 0.112945676, %v5513_v4  ;;  %v5447_v23 = vsel %vm5446_vm10, %v7152_v44, %v5443_v27  ;;  %v12836_v10 = vmin.f32 %v6056_v48, 16.0  ;;  %v6870_v34 = vclamps-f32 %v12471_v29, 1.0 }
 0x617   :  { %v6176_v20 = vmul.f32 %v12832_v24, %v12832_v24  ;;  %v6041_v8 = vsub.f32 1.0, %v6040_v16  ;;  %v5982_v41 = vmul.f32 %v5981_v18, %v12762_v40  ;;  %v6117_v22 = vmul.f32 %v6116_v5, %v12764_v36 }
 0x618   :  { %v5452_v12 = vsel %vm5449_vm11, %v5451_v14, %v5447_v23  ;;  %v5515_v54 = vmul.f32 %v5514_v7, %v12145_v38  ;;  %v6405_v44 = vadd.f32 1.0, %v6870_v34  ;;  %vm5969_vm12 = vcmp.eq.f32.partialorder %v5968_v42, 8.507059e+37  ;;  %v13916_v23 = vld [vmem:[#allocation57_spill] sm:$0xff] }
 0x619   :  { %v5453_v56 = vmul.f32 %v5452_v12, %v13915_v25  ;;  %v12844_v45 = vmin.f32 %v6176_v20, 16.0  ;;  %v5906_v1 = vmul.f32 %v5905_v13, %v12657_v43  ;;  %v6025_v48 = vadd.f32 0.18741608, %v6024_v37 }
 0x61a   :  { %v6101_v4 = vadd.f32 0.0036580483, %v6100_v57  ;;  %v5972_v27 = vsel %vm5969_vm12, %v5971_v55, %v5967_v39  ;;  %v6058_v16 = vmul.f32 2.1237322e-06, %v12836_v10  ;;  %v5516_v14 = vadd.f32 0.4994258, %v5515_v54 }
 0x61b   :  { %v6867_v29 = vclamps-f32 %v5453_v56, 1.0  ;;  %v6178_v18 = vmul.f32 2.1237322e-06, %v12844_v45  ;;  %v6189_v5 = vmul.f32 3.8918573e-05, %v12844_v45  ;;  %v6455_v20 = vmul.f32 %v6405_v44, %v13916_v23  ;;  %v13917_v56 = vld [vmem:[#allocation13_spill] sm:$0xff] }
 0x61c   :  { %v5590_v12 = vadd.f32 0.001143296, %v5589_v11  ;;  %v6042_v7 = vmul.f32 %v12810_v61, %v6041_v8  ;;  %v5983_v34 = vadd.f32 0.05243302, %v5982_v41  ;;  %v12853_v42 = vadd.f32 1.0, %v6117_v22 }
 0x61d   :  { %v6402_v13 = vadd.f32 1.0, %v6867_v29  ;;  %v12856_v37 = vmul.f32 %v5972_v27, %v12780_v28  ;;  %v6102_v55 = vmul.f32 %v6101_v4, %v12764_v36  ;;  %v6190_v39 = vadd.f32 0.001143296, %v6189_v5  ;;  %6662 = vmatmul.f32.gmra.mxu3 %v6455_v20  ;;  %v4178_v5 = vpop.f32.mrf.mxu0 }
 0x61e   :  { %v5517_v57 = vmul.f32 %v5516_v14, %v12145_v38  ;;  %v12860_v25 = vadd.f32 1.1283791, %v5906_v1  ;;  %v6059_v11 = vadd.f32 0.00028619796, %v6058_v16  ;;  %v6179_v44 = vadd.f32 0.00028619796, %v6178_v18  ;;  %v3991_v1 = vpop.f32.mrf.mxu2 }
 0x61f   :  { %v6452_v54 = vmul.f32 %v6402_v13, %v13917_v56  ;;  %v6026_v8 = vmul.f32 %v6025_v48, %v12652_v9  ;;  %v6191_v41 = vmul.f32 %v6190_v39, %v12844_v45  ;;  %v5591_v28 = vmul.f32 %v5590_v12, %v12240_v49  ;;  %v4083_v39 = vpop.f32.mrf.mxu3 }
 0x620   :  { %v12865_v22 = vadd.f32 1.0, %v5517_v57  ;;  %v6043_v4 = vadd.f32 %v12810_v61, %v6042_v7  ;;  %vm6045_vm13 = vweird.f32 %v12810_v61  ;;  %v5984_v38 = vmul.f32 %v5983_v34, %v12762_v40 }
 0x621   :  { %7155 = vrcp.f32 %v12853_v42  ;;  %6567 = vmatmul.f32.gmra.mxu2 %v6452_v54  ;;  %vm6044_vm14 = vweird.f32 %v12774_v21  ;;  %v6103_v27 = vadd.f32 0.05243302, %v6102_v55  ;;  %v6192_v9 = vadd.f32 0.014752088, %v6191_v41 }
 0x622   :  { %7157 = vrcp.f32 %v12865_v22  ;;  %v6048_v48 = vand.u32 2147483647, %v12774_v21  ;;  %v6050_v29 = vand.u32 2147483648, %v12774_v21  ;;  %v6060_v16 = vmul.f32 %v6059_v11, %v12836_v10  ;;  %vm12878_vm15 = vmor %vm6044_vm14, %vm6045_vm13 }
 0x623   :  { %v6180_v18 = vmul.f32 %v6179_v44, %v12844_v45  ;;  %v6193_v23 = vmul.f32 %v6192_v9, %v12844_v45  ;;  %v3992_v20 = vadd.f32 %v3991_v1, %v10854_v15  ;;  %v4179_v12 = vadd.f32 %v4178_v5, %v10844_v47  ;;  %v4270_v1 = vpop.f32.mrf.mxu1 }
 0x624   :  { %v5592_v7 = vadd.f32 0.014752088, %v5591_v28  ;;  %v12885_v34 = vadd.f32 1.1283791, %v6026_v8  ;;  %v6047_v21 = vsel %vm12878_vm15, %v12810_v61, %v6043_v4  ;;  %v5985_v13 = vadd.f32 0.18741608, %v5984_v38 }
 0x625   :  { %v12891_v55 = vmul.f32 0.5, %v12720_v59  ;;  %v6104_v57 = vmul.f32 %v6103_v27, %v12764_v36  ;;  %v6194_v56 = vadd.f32 0.112945676, %v6193_v23  ;;  %v12894_v54 = vadd.f32 %v4083_v39, %v3992_v20 }
 0x626   :  { %v5669_v11 = vmul.f32 3.8918573e-05, %v12403_v2  ;;  %vm6049_vm0 = vcmp.eq.f32.partialorder %v6048_v48, 8.507059e+37  ;;  %v6051_v8 = vor.u32 1.1754944e-38, %v6050_v29  ;;  %v6061_v41 = vadd.f32 0.0036580483, %v6060_v16 }
 0x627   :  { %13920 = vst [vmem:[#allocation56_spill] sm:$0xff] %v12894_v54  ;;  %v12897_v44 = vpop.eup %7155  ;;  %v6181_v28 = vadd.f32 0.0036580483, %v6180_v18  ;;  %v6195_v4 = vmul.f32 %v6194_v56, %v12844_v45  ;;  %v12901_v59 = vmul.f32 0.70710677, %v12894_v54  ;;  %v12903_v38 = vadd.f32 %v4270_v1, %v4179_v12  ;;  %v13922_v54 = vld [vmem:[#allocation50_spill] sm:$0xff] }
 0x628   :  { %v7158_v61 = vpop.eup %7157  ;;  %v5593_v27 = vmul.f32 %v5592_v7, %v12240_v49  ;;  %v12906_v9 = vsel %vm6049_vm0, %v6051_v8, %v6047_v21  ;;  %v12909_v5 = vmul.f32 %v5985_v13, %v12762_v40  ;;  %v6872_v29 = vclamps-f32 %v12474_v58, 1.0 }
 0x629   :  { %13921 = vst [vmem:[#allocation42_spill] sm:$0xff] %v12901_v59  ;;  %v5520_v48 = vmul.f32 %v7158_v61, %v12865_v22  ;;  %v6105_v16 = vadd.f32 0.18741608, %v6104_v57  ;;  %v6120_v18 = vmul.f32 %v12897_v44, %v12853_v42  ;;  %v6136_v14 = vmul.f32 %v12901_v59, %v12901_v59 }
 0x62a   :  { %v5670_v23 = vadd.f32 0.001143296, %v5669_v11  ;;  %v6062_v20 = vmul.f32 %v6061_v41, %v12836_v10  ;;  %v6196_v12 = vadd.f32 0.4994258, %v6195_v4  ;;  %vm5524_vm1 = vweird.f32 %v12865_v22 }
 0x62b   :  { %v5521_v7 = vsub.f32 1.0, %v5520_v48  ;;  %v6182_v21 = vmul.f32 %v6181_v28, %v12844_v45  ;;  %v5530_v13 = vand.u32 2147483648, %v12865_v22  ;;  %v12922_v58 = vmul.f32 0.70710677, %v12903_v38 }
 0x62c   :  { %v5594_v39 = vadd.f32 0.112945676, %v5593_v27  ;;  %vm5525_vm2 = vweird.f32 %v7158_v61  ;;  %v5528_v56 = vand.u32 2147483647, %v12865_v22  ;;  %v6407_v8 = vadd.f32 1.0, %v6872_v29 }
 0x62d   :  { %v5522_v57 = vmul.f32 %v7158_v61, %v5521_v7  ;;  %v6121_v11 = vsub.f32 1.0, %v6120_v18  ;;  %v12925_v1 = vmin.f32 %v6136_v14, 16.0  ;;  %v6256_v41 = vmul.f32 %v12922_v58, %v12922_v58  ;;  %vm5526_vm3 = vmor %vm5524_vm1, %vm5525_vm2 }
 0x62e   :  { %v5595_v4 = vmul.f32 %v5594_v39, %v12240_v49  ;;  %v6197_v28 = vmul.f32 %v6196_v12, %v12844_v45  ;;  %v6457_v0 = vmul.f32 %v6407_v8, %v13922_v54  ;;  %v5671_v27 = vmul.f32 %v5670_v23, %v12403_v2 }
 0x62f   :  { %v5523_v48 = vadd.f32 %v7158_v61, %v5522_v57  ;;  %v6106_v7 = vmul.f32 %v6105_v16, %v12764_v36  ;;  %v6063_v59 = vadd.f32 0.05243302, %v6062_v20  ;;  %v6183_v35 = vadd.f32 0.05243302, %v6182_v21 }
 0x630   :  { %v5531_v29 = vor.u32 1.1754944e-38, %v5530_v13  ;;  %vm5529_vm4 = vcmp.eq.f32.partialorder %v5528_v56, 8.507059e+37  ;;  %v12936_v14 = vmin.f32 %v6256_v41, 16.0  ;;  %v5596_v39 = vadd.f32 0.4994258, %v5595_v4  ;;  %6665 = vmatmul.f32.gmra.mxu3 %v6457_v0 }
 0x631   :  { %v5527_v18 = vsel %vm5526_vm3, %v7158_v61, %v5523_v48  ;;  %v6122_v12 = vmul.f32 %v12897_v44, %v6121_v11  ;;  %v6138_v54 = vmul.f32 2.1237322e-06, %v12925_v1  ;;  %v5672_v23 = vadd.f32 0.014752088, %v5671_v27 }
 0x632   :  { %v5532_v57 = vsel %vm5529_vm4, %v5531_v29, %v5527_v18  ;;  %vm6124_vm5 = vweird.f32 %v12853_v42  ;;  %v12941_v36 = vadd.f32 1.0, %v6197_v28  ;;  %v6269_v16 = vmul.f32 3.8918573e-05, %v12936_v14 }
 0x633   :  { %v5533_v22 = vmul.f32 %v5532_v57, %v12390_v60  ;;  %v6064_v61 = vmul.f32 %v6063_v59, %v12836_v10  ;;  %v6184_v20 = vmul.f32 %v6183_v35, %v12844_v45  ;;  %v5597_v0 = vmul.f32 %v5596_v39, %v12240_v49  ;;  %v4086_v39 = vpop.f32.mrf.mxu3 }
 0x634   :  { %v5673_v21 = vmul.f32 %v5672_v23, %v12403_v2  ;;  %vm6125_vm6 = vweird.f32 %v12897_v44  ;;  %v6128_v13 = vand.u32 2147483647, %v12853_v42  ;;  %v6258_v8 = vmul.f32 2.1237322e-06, %v12936_v14 }
 0x635   :  { %v6869_v56 = vclamps-f32 %v5533_v22, 1.0  ;;  %v6123_v11 = vadd.f32 %v12897_v44, %v6122_v12  ;;  %v6139_v60 = vadd.f32 0.00028619796, %v6138_v54  ;;  %v6270_v41 = vadd.f32 0.001143296, %v6269_v16  ;;  %vm12965_vm7 = vmor %vm6124_vm5, %vm6125_vm6  ;;  %v13925_v12 = vld [vmem:[#allocation33_spill] sm:$0xff] }
 0x636   :  { %v12953_v4 = vadd.f32 1.0, %v5597_v0  ;;  %v6130_v59 = vand.u32 2147483648, %v12853_v42  ;;  %7159 = vrcp.f32 %v12941_v36  ;;  %v5674_v35 = vadd.f32 0.112945676, %v5673_v21 }
 0x637   :  { %v6404_v49 = vadd.f32 1.0, %v6869_v56  ;;  %v6065_v28 = vadd.f32 0.18741608, %v6064_v61  ;;  %v6185_v48 = vadd.f32 0.18741608, %v6184_v20  ;;  %v6271_v27 = vmul.f32 %v6270_v41, %v12936_v14  ;;  %v3994_v61 = vpop.f32.mrf.mxu2  ;;  %v4181_v20 = vpop.f32.mrf.mxu0 }
 0x638   :  { %7161 = vrcp.f32 %v12953_v4  ;;  %v6028_v29 = vmul.f32 %v12885_v34, %v12624_v6  ;;  %v6107_v18 = vadd.f32 1.1283791, %v6106_v7  ;;  %v6259_v54 = vadd.f32 0.00028619796, %v6258_v8 }
 0x639   :  { %v6454_v57 = vmul.f32 %v6404_v49, %v13925_v12  ;;  %v12972_v23 = vmul.f32 %v12860_v25, %v12618_v53  ;;  %v6127_v6 = vsel %vm12965_vm7, %v12897_v44, %v6123_v11  ;;  %v6140_v34 = vmul.f32 %v6139_v60, %v12925_v1 }
 0x63a   :  { %v6272_v7 = vadd.f32 0.014752088, %v6271_v27  ;;  %v12979_v42 = vmul.f32 %v12906_v9, %v6028_v29  ;;  %v5987_v22 = vadd.f32 1.1283791, %v12909_v5  ;;  %v6131_v16 = vor.u32 1.1754944e-38, %v6130_v59  ;;  %v4273_v29 = vpop.f32.mrf.mxu1 }
 0x63b   :  { %6570 = vmatmul.f32.gmra.mxu2 %v6454_v57  ;;  %v5675_v0 = vmul.f32 %v5674_v35, %v12403_v2  ;;  %vm6129_vm8 = vcmp.eq.f32.partialorder %v6128_v13, 8.507059e+37  ;;  %v6066_v53 = vmul.f32 %v6065_v28, %v12836_v10  ;;  %v6186_v25 = vmul.f32 %v6185_v48, %v12844_v45 }
 0x63c   :  { %v6273_v44 = vmul.f32 %v6272_v7, %v12936_v14  ;;  %v12986_v21 = vpop.eup %7159  ;;  %v6108_v9 = vmul.f32 %v6107_v18, %v12742_v26  ;;  %v6132_v56 = vsel %vm6129_vm8, %v6131_v16, %v6127_v6  ;;  %v6260_v5 = vmul.f32 %v6259_v54, %v12936_v14 }
 0x63d   :  { %v4182_v8 = vadd.f32 %v4181_v20, %v10844_v47  ;;  %v6141_v60 = vadd.f32 0.0036580483, %v6140_v34  ;;  %v3995_v13 = vadd.f32 %v3994_v61, %v10854_v15  ;;  %v5676_v59 = vadd.f32 0.4994258, %v5675_v0 }
 0x63e   :  { %v7162_v11 = vpop.eup %7161  ;;  %v6274_v41 = vadd.f32 0.112945676, %v6273_v44  ;;  %v12993_v49 = vmul.f32 %v5987_v22, %v12718_v33  ;;  %v12996_v45 = vmul.f32 0.5, %v12823_v51  ;;  %v12999_v35 = vmul.f32 0.5, %v12903_v38 }
 0x63f   :  { %v5600_v26 = vmul.f32 %v7162_v11, %v12953_v4  ;;  %v13002_v28 = vmul.f32 %v6132_v56, %v6108_v9  ;;  %v13004_v47 = vadd.f32 1.1283791, %v6066_v53  ;;  %v13006_v48 = vadd.f32 1.1283791, %v6186_v25 }
 0x640   :  { %v6275_v27 = vmul.f32 %v6274_v41, %v12936_v14  ;;  %v6200_v33 = vmul.f32 %v12986_v21, %v12941_v36  ;;  %v6261_v18 = vadd.f32 0.0036580483, %v6260_v5  ;;  %v13011_v12 = vadd.f32 %v4273_v29, %v4182_v8 }
 0x641   :  { %v5601_v51 = vsub.f32 1.0, %v5600_v26  ;;  %v6142_v38 = vmul.f32 %v6141_v60, %v12925_v1  ;;  %v13014_v54 = vadd.f32 %v4086_v39, %v3995_v13  ;;  %v5677_v6 = vmul.f32 %v5676_v59, %v12403_v2 }
 0x642   :  { %13926 = vst [vmem:[#allocation19_spill] sm:$0xff] %v13011_v12  ;;  %v6276_v57 = vadd.f32 0.4994258, %v6275_v27  ;;  %vm5605_vm9 = vweird.f32 %v7162_v11  ;;  %v5610_v7 = vand.u32 2147483648, %v12953_v4  ;;  %v13019_v22 = vmul.f32 0.70710677, %v13011_v12 }
 0x643   :  { %13927 = vst [vmem:[#allocation51_spill] sm:$0xff] %v13014_v54  ;;  %v5602_v34 = vmul.f32 %v7162_v11, %v5601_v51  ;;  %v5608_v61 = vand.u32 2147483647, %v12953_v4  ;;  %v13023_v20 = vadd.f32 1.0, %v5677_v6  ;;  %v6874_v0 = vclamps-f32 %v12592_v62, 1.0 }
 0x644   :  { %v6277_v16 = vmul.f32 %v6276_v57, %v12936_v14  ;;  %v6262_v53 = vmul.f32 %v6261_v18, %v12936_v14  ;;  %vm5604_vm10 = vweird.f32 %v12953_v4  ;;  %v6336_v2 = vmul.f32 %v13019_v22, %v13019_v22  ;;  %v13929_v18 = vld [vmem:[#allocation17_spill] sm:$0xff] }
 0x645   :  { %v5603_v25 = vadd.f32 %v7162_v11, %v5602_v34  ;;  %v6210_v44 = vand.u32 2147483648, %v12941_v36  ;;  %vm5606_vm11 = vmor %vm5604_vm10, %vm5605_vm9  ;;  %v13034_v56 = vmul.f32 0.70710677, %v13014_v54  ;;  %7163 = vrcp.f32 %v13023_v20 }
 0x646   :  { %v13031_v9 = vadd.f32 1.0, %v6277_v16  ;;  %v6201_v5 = vsub.f32 1.0, %v6200_v33  ;;  %v5611_v8 = vor.u32 1.1754944e-38, %v5610_v7  ;;  %v13037_v60 = vmin.f32 %v6336_v2, 16.0  ;;  %v13930_v16 = vld [vmem:[#allocation35_spill] sm:$0xff] }
 0x647   :  { %13928 = vst [vmem:[#allocation43_spill] sm:$0xff] %v13034_v56  ;;  %v5607_v62 = vsel %vm5606_vm11, %v7162_v11, %v5603_v25  ;;  %vm5609_vm12 = vcmp.eq.f32.partialorder %v5608_v61, 8.507059e+37  ;;  %v6409_v4 = vadd.f32 1.0, %v6874_v0  ;;  %v5749_v41 = vmul.f32 3.8918573e-05, %v12457_v19 }
 0x648   :  { %7165 = vrcp.f32 %v13031_v9  ;;  %v6143_v13 = vadd.f32 0.05243302, %v6142_v38  ;;  %v6263_v59 = vadd.f32 0.05243302, %v6262_v53  ;;  %v5612_v26 = vsel %vm5609_vm12, %v5611_v8, %v5607_v62  ;;  %v3997_v62 = vpop.f32.mrf.mxu2 }
 0x649   :  { %v6338_v27 = vmul.f32 2.1237322e-06, %v13037_v60  ;;  %v5613_v51 = vmul.f32 %v5612_v26, %v13929_v18  ;;  %v6216_v11 = vmul.f32 %v13034_v56, %v13034_v56  ;;  %v6349_v33 = vmul.f32 3.8918573e-05, %v13037_v60 }
 0x64a   :  { %v6202_v39 = vmul.f32 %v12986_v21, %v6201_v5  ;;  %vm6205_vm13 = vweird.f32 %v12986_v21  ;;  %v13049_v57 = vor.u32 1.1754944e-38, %v6210_v44  ;;  %v6459_v61 = vmul.f32 %v6409_v4, %v13930_v16  ;;  %v4089_v16 = vpop.f32.mrf.mxu3 }
 0x64b   :  { %v6339_v38 = vadd.f32 0.00028619796, %v6338_v27  ;;  %v7164_v6 = vpop.eup %7163  ;;  %v6871_v34 = vclamps-f32 %v5613_v51, 1.0  ;;  %v6350_v7 = vadd.f32 0.001143296, %v6349_v33  ;;  %vm6204_vm14 = vweird.f32 %v12941_v36  ;;  %v13931_v33 = vld [vmem:[#allocation34_spill] sm:$0xff] }
 0x64c   :  { %v5750_v0 = vadd.f32 0.001143296, %v5749_v41  ;;  %v6144_v53 = vmul.f32 %v6143_v13, %v12925_v1  ;;  %v6264_v25 = vmul.f32 %v6263_v59, %v12936_v14  ;;  %v5680_v5 = vmul.f32 %v7164_v6, %v13023_v20  ;;  %6668 = vmatmul.f32.gmra.mxu3 %v6459_v61  ;;  %v13066_v41 = vld [vmem:[%s13381_s10] ss:$0 sm:$0xff]  ;;  %vm13092_vm3 = vmor %vm6204_vm14, %vm6205_vm13  ;;  %s7295_s10 = smov [#allocation8]  }
 0x64d   :  { %v6340_v2 = vmul.f32 %v6339_v38, %v13037_v60  ;;  %v6406_v8 = vadd.f32 1.0, %v6871_v34  ;;  %v13059_v26 = vmin.f32 %v6216_v11, 16.0  ;;  %v6351_v27 = vmul.f32 %v6350_v7, %v13037_v60  ;;  %v6529_v11 = vpop.f32.mrf.mxu0  ;;  %s6725_s16 = sshll.u32 %s7295_s10, 4  ;;  %s6726_s16 = int_to_ptr.vmem [resolvable:$true] %s6725_s16 }
 0x64e   :  { %v13057_v44 = vpop.eup %7165  ;;  %v3998_v4 = vadd.f32 %v3997_v62, %v10854_v15  ;;  %v5688_v18 = vand.u32 2147483647, %v13023_v20  ;;  %v5690_v51 = vand.u32 2147483648, %v13023_v20  ;;  %v5681_v7 = vsub.f32 1.0, %v5680_v5 }
 0x64f   :  { %v6280_v13 = vmul.f32 %v13057_v44, %v13031_v9  ;;  %v6341_v59 = vadd.f32 0.0036580483, %v6340_v2  ;;  %v6456_v38 = vmul.f32 %v6406_v8, %v13931_v33  ;;  %v6352_v34 = vadd.f32 0.014752088, %v6351_v27  ;;  %v6621_v8 = vpop.f32.mrf.mxu1 }
 0x650   :  { %v5751_v15 = vmul.f32 %v5750_v0, %v12457_v19  ;;  %v13075_v29 = vadd.f32 %v4089_v16, %v3998_v4  ;;  %v6530_v54 = vadd.f32 %v13066_v41, %v6529_v11  ;;  %v13079_v2 = vadd.f32 %v12986_v21, %v6202_v39 }
 0x651   :  { %v6281_v61 = vsub.f32 1.0, %v6280_v13  ;;  %v6342_v62 = vmul.f32 %v6341_v59, %v13037_v60  ;;  %6573 = vmatmul.f32.gmra.mxu2 %v6456_v38  ;;  %v6353_v56 = vmul.f32 %v6352_v34, %v13037_v60  ;;  %v5682_v12 = vmul.f32 %v7164_v6, %v5681_v7 }
 0x652   :  { %vm5685_vm15 = vweird.f32 %v7164_v6  ;;  %v6265_v5 = vadd.f32 0.18741608, %v6264_v25  ;;  %v6218_v27 = vmul.f32 2.1237322e-06, %v13059_v26  ;;  %v6622_v13 = vadd.f32 %v6621_v8, %v6530_v54  ;;  %v13938_v54 = vld [vmem:[#allocation37_spill] sm:$0xff] }
 0x653   :  { %v6343_v0 = vadd.f32 0.05243302, %v6342_v62  ;;  %v6354_v33 = vadd.f32 0.112945676, %v6353_v56  ;;  %v5683_v59 = vadd.f32 %v7164_v6, %v5682_v12  ;;  %vm5684_vm0 = vweird.f32 %v13023_v20 }
 0x654   :  { %v5752_v4 = vadd.f32 0.014752088, %v5751_v15  ;;  %v6282_v11 = vmul.f32 %v13057_v44, %v6281_v61  ;;  %vm5686_vm1 = vmor %vm5684_vm0, %vm5685_vm15  ;;  %vm5689_vm2 = vcmp.eq.f32.partialorder %v5688_v18, 8.507059e+37  ;;  %v5691_v39 = vor.u32 1.1754944e-38, %v5690_v51  ;;  %6696 = vst [vmem:[#allocation8] sm:$0xff] %v6622_v13 }
 0x655   :  { %v13086_v38 = vmul.f32 0.70710677, %v13075_v29  ;;  %v6355_v12 = vmul.f32 %v6354_v33, %v13037_v60  ;;  %v5687_v20 = vsel %vm5686_vm1, %v7164_v6, %v5683_v59  ;;  %v6876_v25 = vclamps-f32 %v12725_v46, 1.0  ;;  %v13934_v6 = vld [vmem:[#allocation18_spill] sm:$0xff] }
 0x656   :  { %v5753_v56 = vmul.f32 %v5752_v4, %v12457_v19  ;;  %v6207_v18 = vsel %vm13092_vm3, %v12986_v21, %v13079_v2  ;;  %v13103_v51 = vadd.f32 0.18741608, %v6144_v53  ;;  %v6344_v34 = vmul.f32 %v6343_v0, %v13037_v60 }
 0x657   :  { %v5692_v7 = vsel %vm5689_vm2, %v5691_v39, %v5687_v20  ;;  %v6266_v16 = vmul.f32 %v6265_v5, %v12936_v14  ;;  %vm6284_vm4 = vweird.f32 %v13031_v9  ;;  %v6356_v15 = vadd.f32 0.4994258, %v6355_v12  ;;  %v6532_v20 = vpop.f32.mrf.mxu2 }
 0x658   :  { %v5693_v61 = vmul.f32 %v5692_v7, %v13934_v6  ;;  %v13935_v62 = vand.u32 2147483647, %v12941_v36  ;;  %vm6285_vm6 = vweird.f32 %v13057_v44  ;;  %v6219_v21 = vadd.f32 0.00028619796, %v6218_v27 }
 0x659   :  { %v6296_v53 = vmul.f32 %v13086_v38, %v13086_v38  ;;  %v5754_v2 = vadd.f32 0.112945676, %v5753_v56  ;;  %v6283_v14 = vadd.f32 %v13057_v44, %v6282_v11  ;;  %v6357_v8 = vmul.f32 %v6356_v15, %v13037_v60  ;;  %vm13131_vm7 = vmor %vm6284_vm4, %vm6285_vm6 }
 0x65a   :  { %vm13111_vm5 = vcmp.eq.f32.partialorder %v13935_v62, 8.507059e+37  ;;  %v6873_v5 = vclamps-f32 %v5693_v61, 1.0  ;;  %v6411_v0 = vadd.f32 1.0, %v6876_v25  ;;  %v6288_v13 = vand.u32 2147483647, %v13031_v9 }
 0x65b   :  { %v6345_v36 = vadd.f32 0.18741608, %v6344_v34  ;;  %v5755_v33 = vmul.f32 %v5754_v2, %v12457_v19  ;;  %v5829_v59 = vmul.f32 3.8918573e-05, %v12523_v32  ;;  %v6290_v4 = vand.u32 2147483648, %v13031_v9  ;;  %v6624_v9 = vpop.f32.mrf.mxu3  ;;  %v13941_v2 = vld [vmem:[#allocation16_spill] sm:$0xff] }
 0x65c   :  { %v13124_v27 = vadd.f32 1.0, %v6357_v8  ;;  %v6408_v39 = vadd.f32 1.0, %v6873_v5  ;;  %v6461_v12 = vmul.f32 %v6411_v0, %v13938_v54  ;;  %v6220_v56 = vmul.f32 %v6219_v21, %v13059_v26 }
 0x65d   :  { %v5756_v25 = vadd.f32 0.4994258, %v5755_v33  ;;  %v6533_v34 = vadd.f32 %v13066_v41, %v6532_v20  ;;  %v5830_v7 = vadd.f32 0.001143296, %v5829_v59  ;;  %v6267_v15 = vadd.f32 1.1283791, %v6266_v16 }
 0x65e   :  { %v6287_v6 = vsel %vm13131_vm7, %v13057_v44, %v6283_v14  ;;  %7167 = vrcp.f32 %v13124_v27  ;;  %v13141_v61 = vmin.f32 %v6296_v53, 16.0  ;;  %6671 = vmatmul.f32.gmra.mxu3 %v6461_v12  ;;  %v6346_v62 = vmul.f32 %v6345_v36, %v13037_v60  ;;  %v13942_v12 = vld [vmem:[#allocation40_spill] sm:$0xff] }
 0x65f   :  { %v6458_v8 = vmul.f32 %v6408_v39, %v13941_v2  ;;  %v5757_v21 = vmul.f32 %v5756_v25, %v12457_v19  ;;  %v6625_v5 = vadd.f32 %v6624_v9, %v6533_v34  ;;  %vm6289_vm8 = vcmp.eq.f32.partialorder %v6288_v13, 8.507059e+37 }
 0x660   :  { %v6291_v0 = vor.u32 1.1754944e-38, %v6290_v4  ;;  %v5831_v16 = vmul.f32 %v5830_v7, %v12523_v32  ;;  %v6878_v33 = vclamps-f32 %v12758_v52, 1.0  ;;  %v6188_v44 = vmul.f32 %v13006_v48, %v12832_v24 }
 0x661   :  { %v6221_v53 = vadd.f32 0.0036580483, %v6220_v56  ;;  %6576 = vmatmul.f32.gmra.mxu2 %v6458_v8  ;;  %v13150_v14 = vadd.f32 1.0, %v5757_v21  ;;  %6697 = vst [vmem:[#allocation8 + $0x8] sm:$0xff] %v6625_v5  ;;  %v5909_v60 = vmul.f32 3.8918573e-05, %v12657_v43  ;;  %v6212_v19 = vsel %vm13111_vm5, %v13049_v57, %v6207_v18 }
 0x662   :  { %v6292_v13 = vsel %vm6289_vm8, %v6291_v0, %v6287_v6  ;;  %v5832_v36 = vadd.f32 0.014752088, %v5831_v16  ;;  %v6413_v59 = vadd.f32 1.0, %v6878_v33  ;;  %v6347_v4 = vadd.f32 1.1283791, %v6346_v62  ;;  %v6535_v33 = vpop.f32.mrf.mxu2 }
 0x663   :  { %v6298_v52 = vmul.f32 2.1237322e-06, %v13141_v61  ;;  %7169 = vrcp.f32 %v13150_v14  ;;  %v5989_v24 = vmul.f32 3.8918573e-05, %v12762_v40  ;;  %v6268_v39 = vmul.f32 %v6267_v15, %v12922_v58 }
 0x664   :  { %v13159_v48 = vpop.eup %7167  ;;  %v5833_v54 = vmul.f32 %v5832_v36, %v12523_v32  ;;  %v6463_v20 = vmul.f32 %v6413_v59, %v13942_v12  ;;  %v5910_v46 = vadd.f32 0.001143296, %v5909_v60  ;;  %v13164_v57 = vmul.f32 %v6212_v19, %v6188_v44 }
 0x665   :  { %v13167_v18 = vmul.f32 %v6221_v53, %v13059_v26  ;;  %v6360_v11 = vmul.f32 %v13159_v48, %v13124_v27  ;;  %v6069_v56 = vmul.f32 3.8918573e-05, %v12836_v10  ;;  %v13172_v25 = vmul.f32 %v6292_v13, %v6268_v39 }
 0x666   :  { %v5834_v34 = vadd.f32 0.112945676, %v5833_v54  ;;  %6674 = vmatmul.f32.gmra.mxu3 %v6463_v20  ;;  %v5911_v58 = vmul.f32 %v5910_v46, %v12657_v43  ;;  %v6880_v7 = vclamps-f32 %v12856_v37, 1.0  ;;  %v13177_v15 = vmul.f32 %v6347_v4, %v13019_v22  ;;  %v6627_v37 = vpop.f32.mrf.mxu3 }
 0x667   :  { %v6361_v6 = vsub.f32 1.0, %v6360_v11  ;;  %v13179_v9 = vadd.f32 0.00028619796, %v6298_v52  ;;  %v5990_v62 = vadd.f32 0.001143296, %v5989_v24  ;;  %vm6364_vm9 = vweird.f32 %v13124_v27 }
 0x668   :  { %v5835_v2 = vmul.f32 %v5834_v34, %v12523_v32  ;;  %v5912_v8 = vadd.f32 0.014752088, %v5911_v58  ;;  %v6415_v21 = vadd.f32 1.0, %v6880_v7  ;;  %v6368_v0 = vand.u32 2147483647, %v13124_v27 }
 0x669   :  { %v7170_v5 = vpop.eup %7169  ;;  %v6370_v16 = vand.u32 2147483648, %v13124_v27  ;;  %v5991_v22 = vmul.f32 %v5990_v62, %v12762_v40  ;;  %v6070_v44 = vadd.f32 0.001143296, %v6069_v56  ;;  %v6362_v53 = vmul.f32 %v13159_v48, %v6361_v6 }
 0x66a   :  { %v5760_v60 = vmul.f32 %v7170_v5, %v13150_v14  ;;  %v5836_v19 = vadd.f32 0.4994258, %v5835_v2  ;;  %v6536_v13 = vadd.f32 %v13066_v41, %v6535_v33  ;;  %v5768_v36 = vand.u32 2147483647, %v13150_v14 }
 0x66b   :  { %v5770_v59 = vand.u32 2147483648, %v13150_v14  ;;  %v5913_v4 = vmul.f32 %v5912_v8, %v12657_v43  ;;  %v6465_v52 = vmul.f32 %v6415_v21, %v12728_v3  ;;  %v5992_v12 = vadd.f32 0.014752088, %v5991_v22  ;;  %v6538_v21 = vpop.f32.mrf.mxu2 }
 0x66c   :  { %v5761_v24 = vsub.f32 1.0, %v5760_v60  ;;  %v5837_v39 = vmul.f32 %v5836_v19, %v12523_v32  ;;  %v6628_v54 = vadd.f32 %v6627_v37, %v6536_v13  ;;  %vm6365_vm10 = vweird.f32 %v13159_v48 }
 0x66d   :  { %vm5765_vm11 = vweird.f32 %v7170_v5  ;;  %v5914_v20 = vadd.f32 0.112945676, %v5913_v4  ;;  %v6071_v46 = vmul.f32 %v6070_v44, %v12836_v10  ;;  %v6363_v11 = vadd.f32 %v13159_v48, %v6362_v53  ;;  %vm13205_vm13 = vmor %vm6364_vm9, %vm6365_vm10 }
 0x66e   :  { %v5762_v56 = vmul.f32 %v7170_v5, %v5761_v24  ;;  %v13197_v34 = vadd.f32 1.0, %v5837_v39  ;;  %6698 = vst [vmem:[#allocation8 + $0x10] sm:$0xff] %v6628_v54  ;;  %6677 = vmatmul.f32.gmra.mxu3 %v6465_v52  ;;  %v5993_v3 = vmul.f32 %v5992_v12, %v12762_v40  ;;  %vm5764_vm12 = vweird.f32 %v13150_v14  ;;  %v6630_v33 = vpop.f32.mrf.mxu3 }
 0x66f   :  { %v5915_v32 = vmul.f32 %v5914_v20, %v12657_v43  ;;  %v6882_v58 = vclamps-f32 %v12979_v42, 1.0  ;;  %v6072_v7 = vadd.f32 0.014752088, %v6071_v46  ;;  %vm5769_vm14 = vcmp.eq.f32.partialorder %v5768_v36, 8.507059e+37  ;;  %vm5766_vm15 = vmor %vm5764_vm12, %vm5765_vm11 }
 0x670   :  { %v5763_v62 = vadd.f32 %v7170_v5, %v5762_v56  ;;  %7171 = vrcp.f32 %v13197_v34  ;;  %v6149_v2 = vmul.f32 3.8918573e-05, %v12925_v1  ;;  %v5771_v14 = vor.u32 1.1754944e-38, %v5770_v59 }
 0x671   :  { %v5916_v8 = vadd.f32 0.4994258, %v5915_v32  ;;  %v5994_v42 = vadd.f32 0.112945676, %v5993_v3  ;;  %v6417_v37 = vadd.f32 1.0, %v6882_v58  ;;  %v6367_v27 = vsel %vm13205_vm13, %v13159_v48, %v6363_v11 }
 0x672   :  { %v5767_v22 = vsel %vm5766_vm15, %v7170_v5, %v5763_v62  ;;  %v6539_v44 = vadd.f32 %v13066_v41, %v6538_v21  ;;  %v6073_v53 = vmul.f32 %v6072_v7, %v12836_v10  ;;  %v5848_v19 = vand.u32 2147483647, %v13197_v34  ;;  %v13947_v62 = vld [vmem:[#allocation59_spill] sm:$0xff] }
 0x673   :  { %v5772_v60 = vsel %vm5769_vm14, %v5771_v14, %v5767_v22  ;;  %v5917_v13 = vmul.f32 %v5916_v8, %v12657_v43  ;;  %v5995_v36 = vmul.f32 %v5994_v42, %v12762_v40  ;;  %v6467_v52 = vmul.f32 %v6417_v37, %v12751_v17  ;;  %v6541_v32 = vpop.f32.mrf.mxu2 }
 0x674   :  { %v5773_v59 = vmul.f32 %v5772_v60, %v12731_v31  ;;  %v6631_v4 = vadd.f32 %v6630_v33, %v6539_v44  ;;  %v6074_v24 = vadd.f32 0.112945676, %v6073_v53  ;;  %v6371_v39 = vor.u32 1.1754944e-38, %v6370_v16 }
 0x675   :  { %v13222_v48 = vadd.f32 1.0, %v5917_v13  ;;  %v5996_v5 = vadd.f32 0.4994258, %v5995_v36  ;;  %v6150_v54 = vadd.f32 0.001143296, %v6149_v2  ;;  %vm6369_vm0 = vcmp.eq.f32.partialorder %v6368_v0, 8.507059e+37 }
 0x676   :  { %v7172_v12 = vpop.eup %7171  ;;  %v6875_v20 = vclamps-f32 %v5773_v59, 1.0  ;;  %6699 = vst [vmem:[#allocation8 + $0x18] sm:$0xff] %v6631_v4  ;;  %6680 = vmatmul.f32.gmra.mxu3 %v6467_v52  ;;  %v6075_v43 = vmul.f32 %v6074_v24, %v12836_v10  ;;  %v6884_v46 = vclamps-f32 %v13002_v28, 1.0  ;;  %v13226_v11 = vsel %vm6369_vm0, %v6371_v39, %v6367_v27  ;;  %v6633_v28 = vpop.f32.mrf.mxu3 }
 0x677   :  { %v5840_v31 = vmul.f32 %v7172_v12, %v13197_v34  ;;  %vm5844_vm1 = vweird.f32 %v13197_v34  ;;  %7173 = vrcp.f32 %v13222_v48  ;;  %vm13231_vm2 = vcmp.eq.f32.partialorder %v5848_v19, 8.507059e+37 }
 0x678   :  { %v6410_v17 = vadd.f32 1.0, %v6875_v20  ;;  %v5850_v0 = vand.u32 2147483648, %v13197_v34  ;;  %v5997_v56 = vmul.f32 %v5996_v5, %v12762_v40  ;;  %v6076_v58 = vadd.f32 0.4994258, %v6075_v43 }
 0x679   :  { %v5841_v3 = vsub.f32 1.0, %v5840_v31  ;;  %v6419_v7 = vadd.f32 1.0, %v6884_v46  ;;  %v6151_v6 = vmul.f32 %v6150_v54, %v12925_v1  ;;  %vm5845_vm3 = vweird.f32 %v7172_v12 }
 0x67a   :  { %v6460_v2 = vmul.f32 %v6410_v17, %v13947_v62  ;;  %v5928_v14 = vand.u32 2147483647, %v13222_v48  ;;  %v13240_v8 = vadd.f32 1.0, %v5997_v56  ;;  %v5930_v33 = vand.u32 2147483648, %v13222_v48  ;;  %vm5846_vm4 = vmor %vm5844_vm1, %vm5845_vm3 }
 0x67b   :  { %v5842_v21 = vmul.f32 %v7172_v12, %v5841_v3  ;;  %v6542_v42 = vadd.f32 %v13066_v41, %v6541_v32  ;;  %v6077_v40 = vmul.f32 %v6076_v58, %v12836_v10  ;;  %v6469_v27 = vmul.f32 %v6419_v7, %v12891_v55  ;;  %v6544_v20 = vpop.f32.mrf.mxu2 }
 0x67c   :  { %6579 = vmatmul.f32.gmra.mxu2 %v6460_v2  ;;  %7175 = vrcp.f32 %v13240_v8  ;;  %v6010_v37 = vand.u32 2147483648, %v13240_v8  ;;  %v6229_v22 = vmul.f32 3.8918573e-05, %v13059_v26  ;;  %v6152_v13 = vadd.f32 0.014752088, %v6151_v6 }
 0x67d   :  { %v7174_v44 = vpop.eup %7173  ;;  %v5843_v53 = vadd.f32 %v7172_v12, %v5842_v21  ;;  %v6634_v60 = vadd.f32 %v6633_v28, %v6542_v42  ;;  %v13249_v19 = vadd.f32 1.0, %v6077_v40  ;;  %v5851_v10 = vor.u32 1.1754944e-38, %v5850_v0 }
 0x67e   :  { %v5920_v36 = vmul.f32 %v7174_v44, %v13222_v48  ;;  %vm5924_vm5 = vweird.f32 %v13222_v48  ;;  %vm13256_vm6 = vcmp.eq.f32.partialorder %v5928_v14, 8.507059e+37  ;;  %6683 = vmatmul.f32.gmra.mxu3 %v6469_v27  ;;  %v5931_v4 = vor.u32 1.1754944e-38, %v5930_v33 }
 0x67f   :  { %v5847_v55 = vsel %vm5846_vm4, %v7172_v12, %v5843_v53  ;;  %v6008_v52 = vand.u32 2147483647, %v13240_v8  ;;  %6700 = vst [vmem:[#allocation8 + $0x20] sm:$0xff] %v6634_v60  ;;  %7177 = vrcp.f32 %v13249_v19  ;;  %vm5925_vm7 = vweird.f32 %v7174_v44  ;;  %v6636_v12 = vpop.f32.mrf.mxu3 }
 0x680   :  { %v5852_v34 = vsel %vm13231_vm2, %v5851_v10, %v5847_v55  ;;  %v5921_v24 = vsub.f32 1.0, %v5920_v36  ;;  %v6153_v39 = vmul.f32 %v6152_v13, %v12925_v1  ;;  %vm6004_vm8 = vweird.f32 %v13240_v8  ;;  %vm5926_vm11 = vmor %vm5924_vm5, %vm5925_vm7 }
 0x681   :  { %v5853_v5 = vmul.f32 %v5852_v34, %v12746_v50  ;;  %v6011_v54 = vor.u32 1.1754944e-38, %v6010_v37  ;;  %v6886_v43 = vclamps-f32 %v13164_v57, 1.0  ;;  %v6230_v46 = vadd.f32 0.001143296, %v6229_v22  ;;  %v13952_v22 = vld [vmem:[#allocation46_spill] sm:$0xff] }
 0x682   :  { %v7176_v31 = vpop.eup %7175  ;;  %v5922_v17 = vmul.f32 %v7174_v44, %v5921_v24  ;;  %v6088_v0 = vand.u32 2147483647, %v13249_v19  ;;  %v6545_v16 = vadd.f32 %v13066_v41, %v6544_v20  ;;  %v6154_v56 = vadd.f32 0.112945676, %v6153_v39 }
 0x683   :  { %v6877_v3 = vclamps-f32 %v5853_v5, 1.0  ;;  %v6000_v32 = vmul.f32 %v7176_v31, %v13240_v8  ;;  %vm13271_vm9 = vcmp.eq.f32.partialorder %v6008_v52, 8.507059e+37  ;;  %v6090_v28 = vand.u32 2147483648, %v13249_v19  ;;  %v6547_v52 = vpop.f32.mrf.mxu2 }
 0x684   :  { %v6421_v58 = vadd.f32 1.0, %v6886_v43  ;;  %v5923_v7 = vadd.f32 %v7174_v44, %v5922_v17  ;;  %vm6084_vm10 = vweird.f32 %v13249_v19  ;;  %v6637_v57 = vadd.f32 %v6636_v12, %v6545_v16 }
 0x685   :  { %v6155_v6 = vmul.f32 %v6154_v56, %v12925_v1  ;;  %v6231_v62 = vmul.f32 %v6230_v46, %v13059_v26  ;;  %v7178_v2 = vpop.eup %7177  ;;  %v6412_v14 = vadd.f32 1.0, %v6877_v3  ;;  %v6001_v21 = vsub.f32 1.0, %v6000_v32 }
 0x686   :  { %v6471_v33 = vmul.f32 %v6421_v58, %v12996_v45  ;;  %v6309_v42 = vmul.f32 3.8918573e-05, %v13141_v61  ;;  %v5927_v40 = vsel %vm5926_vm11, %v7174_v44, %v5923_v7  ;;  %vm6005_vm12 = vweird.f32 %v7176_v31  ;;  %6701 = vst [vmem:[#allocation8 + $0x28] sm:$0xff] %v6637_v57 }
 0x687   :  { %v6080_v37 = vmul.f32 %v7178_v2, %v13249_v19  ;;  %v6156_v27 = vadd.f32 0.4994258, %v6155_v6  ;;  %v6462_v53 = vmul.f32 %v6412_v14, %v13952_v22  ;;  %v5932_v60 = vsel %vm13256_vm6, %v5931_v4, %v5927_v40  ;;  %v6639_v34 = vpop.f32.mrf.mxu3  ;;  %vm6006_vm14 = vmor %vm6004_vm8, %vm6005_vm12 }
 0x688   :  { %v6002_v13 = vmul.f32 %v7176_v31, %v6001_v21  ;;  %6686 = vmatmul.f32.gmra.mxu3 %v6471_v33  ;;  %v6232_v48 = vadd.f32 0.014752088, %v6231_v62  ;;  %v5933_v10 = vmul.f32 %v5932_v60, %v12972_v23  ;;  %v6888_v44 = vclamps-f32 %v13172_v25, 1.0  ;;  %v13953_v21 = vld [vmem:[#allocation47_spill] sm:$0xff] }
 0x689   :  { %v6081_v36 = vsub.f32 1.0, %v6080_v37  ;;  %v6157_v45 = vmul.f32 %v6156_v27, %v12925_v1  ;;  %6582 = vmatmul.f32.gmra.mxu2 %v6462_v53  ;;  %vm6085_vm13 = vweird.f32 %v7178_v2  ;;  %v6310_v39 = vadd.f32 0.001143296, %v6309_v42  ;;  %v13954_v53 = vld [vmem:[#allocation19_spill] sm:$0xff] }
 0x68a   :  { %v6003_v55 = vadd.f32 %v7176_v31, %v6002_v13  ;;  %v6233_v24 = vmul.f32 %v6232_v48, %v13059_v26  ;;  %v6879_v59 = vclamps-f32 %v5933_v10, 1.0  ;;  %v6548_v5 = vadd.f32 %v13066_v41, %v6547_v52  ;;  %vm6086_vm15 = vmor %vm6084_vm10, %vm6085_vm13 }
 0x68b   :  { %v6082_v4 = vmul.f32 %v7178_v2, %v6081_v36  ;;  %v13295_v23 = vadd.f32 1.0, %v6157_v45  ;;  %v6423_v12 = vadd.f32 1.0, %v6888_v44  ;;  %v6311_v43 = vmul.f32 %v6310_v39, %v13141_v61  ;;  %v6550_v6 = vpop.f32.mrf.mxu2 }
 0x68c   :  { %v6007_v20 = vsel %vm6006_vm14, %v7176_v31, %v6003_v55  ;;  %v6234_v25 = vadd.f32 0.112945676, %v6233_v24  ;;  %v6414_v46 = vadd.f32 1.0, %v6879_v59  ;;  %v6373_v8 = vmul.f32 %v13226_v11, %v13177_v15 }
 0x68d   :  { %v6012_v17 = vsel %vm13271_vm9, %v6011_v54, %v6007_v20  ;;  %v6083_v16 = vadd.f32 %v7178_v2, %v6082_v4  ;;  %7179 = vrcp.f32 %v13295_v23  ;;  %v6300_v56 = vmul.f32 %v13179_v9, %v13141_v61 }
 0x68e   :  { %v6013_v3 = vmul.f32 %v6012_v17, %v12993_v49  ;;  %v6091_v31 = vor.u32 1.1754944e-38, %v6090_v28  ;;  %vm6089_vm0 = vcmp.eq.f32.partialorder %v6088_v0, 8.507059e+37  ;;  %v6640_v50 = vadd.f32 %v6639_v34, %v6548_v5 }
 0x68f   :  { %v6087_v32 = vsel %vm6086_vm15, %v7178_v2, %v6083_v16  ;;  %v6235_v54 = vmul.f32 %v6234_v25, %v13059_v26  ;;  %v6223_v58 = vadd.f32 0.05243302, %v13167_v18  ;;  %v6464_v7 = vmul.f32 %v6414_v46, %v12736_v63  ;;  %v6642_v62 = vpop.f32.mrf.mxu3  ;;  %v13955_v25 = vld [vmem:[#allocation42_spill] sm:$0xff] }
 0x690   :  { %v6881_v15 = vclamps-f32 %v6013_v3, 1.0  ;;  %v6092_v11 = vsel %vm6089_vm0, %v6091_v31, %v6087_v32  ;;  %v6068_v9 = vmul.f32 %v13004_v47, %v12821_v30  ;;  %6702 = vst [vmem:[#allocation8 + $0x30] sm:$0xff] %v6640_v50  ;;  %v6473_v19 = vmul.f32 %v6423_v12, %v12999_v35  ;;  %v13956_v3 = vld [vmem:[#allocation41_spill] sm:$0xff] }
 0x691   :  { %v6236_v49 = vadd.f32 0.4994258, %v6235_v54  ;;  %v6312_v57 = vadd.f32 0.014752088, %v6311_v43  ;;  %v6146_v0 = vmul.f32 %v13103_v51, %v12925_v1  ;;  %v6301_v28 = vadd.f32 0.0036580483, %v6300_v56  ;;  %6585 = vmatmul.f32.gmra.mxu2 %v6464_v7 }
 0x692   :  { %v6890_v18 = vclamps-f32 %v6373_v8, 1.0  ;;  %v6093_v63 = vmul.f32 %v6092_v11, %v6068_v9  ;;  %6689 = vmatmul.f32.gmra.mxu3 %v6473_v19  ;;  %v6551_v30 = vadd.f32 %v13066_v41, %v6550_v6  ;;  %v4316_v35 = vmul.f32 0.5, %v13953_v21 }
 0x693   :  { %v7180_v2 = vpop.eup %7179  ;;  %v6237_v14 = vmul.f32 %v6236_v49, %v13059_v26  ;;  %v6313_v47 = vmul.f32 %v6312_v57, %v13141_v61  ;;  %v6224_v33 = vmul.f32 %v6223_v58, %v13059_v26  ;;  %v6416_v42 = vadd.f32 1.0, %v6881_v15  ;;  %v6553_v5 = vpop.f32.mrf.mxu2 }
 0x694   :  { %v6160_v1 = vmul.f32 %v7180_v2, %v13295_v23  ;;  %v6643_v40 = vadd.f32 %v6642_v62, %v6551_v30  ;;  %v6425_v27 = vadd.f32 1.0, %v6890_v18  ;;  %v6147_v22 = vadd.f32 1.1283791, %v6146_v0 }
 0x695   :  { %v13324_v51 = vadd.f32 1.0, %v6237_v14  ;;  %v6314_v37 = vadd.f32 0.112945676, %v6313_v47  ;;  %v4325_v60 = vmul.f32 0.5, %v13954_v53  ;;  %v6302_v13 = vmul.f32 %v6301_v28, %v13141_v61  ;;  %v13957_v14 = vld [vmem:[#allocation56_spill] sm:$0xff] }
 0x696   :  { %v6161_v48 = vsub.f32 1.0, %v6160_v1  ;;  %v6883_v10 = vclamps-f32 %v6093_v63, 1.0  ;;  %v6168_v36 = vand.u32 2147483647, %v13295_v23  ;;  %v6170_v45 = vand.u32 2147483648, %v13295_v23  ;;  %6703 = vst [vmem:[#allocation8 + $0x38] sm:$0xff] %v6643_v40 }
 0x697   :  { %7181 = vrcp.f32 %v13324_v51  ;;  %v6466_v44 = vmul.f32 %v6416_v42, %v4316_v35  ;;  %vm6165_vm1 = vweird.f32 %v7180_v2  ;;  %v6315_v52 = vmul.f32 %v6314_v37, %v13141_v61  ;;  %v6645_v20 = vpop.f32.mrf.mxu3 }
 0x698   :  { %v6162_v55 = vmul.f32 %v7180_v2, %v6161_v48  ;;  %v6225_v34 = vadd.f32 0.18741608, %v6224_v33  ;;  %v6475_v24 = vmul.f32 %v6425_v27, %v4325_v60  ;;  %v6303_v39 = vadd.f32 0.05243302, %v6302_v13  ;;  %v13958_v33 = vld [vmem:[#allocation43_spill] sm:$0xff] }
 0x699   :  { %6588 = vmatmul.f32.gmra.mxu2 %v6466_v44  ;;  %vm6164_vm2 = vweird.f32 %v13295_v23  ;;  %v6316_v4 = vadd.f32 0.4994258, %v6315_v52  ;;  %v6148_v12 = vmul.f32 %v6147_v22, %v13955_v25  ;;  %v6171_v43 = vor.u32 1.1754944e-38, %v6170_v45 }
 0x69a   :  { %v6163_v59 = vadd.f32 %v7180_v2, %v6162_v55  ;;  %vm6166_vm3 = vmor %vm6164_vm2, %vm6165_vm1  ;;  %6692 = vmatmul.f32.gmra.mxu3 %v6475_v24  ;;  %v6554_v46 = vadd.f32 %v13066_v41, %v6553_v5  ;;  %v6418_v17 = vadd.f32 1.0, %v6883_v10  ;;  %vm6169_vm4 = vcmp.eq.f32.partialorder %v6168_v36, 8.507059e+37  ;;  %v13959_v24 = vld [vmem:[#allocation51_spill] sm:$0xff] }
 0x69b   :  { %v6317_v8 = vmul.f32 %v6316_v4, %v13141_v61  ;;  %v4318_v31 = vmul.f32 0.5, %v13956_v3  ;;  %v6226_v23 = vmul.f32 %v6225_v34, %v13059_v26  ;;  %v6304_v54 = vmul.f32 %v6303_v39, %v13141_v61  ;;  %v6556_v6 = vpop.f32.mrf.mxu2 }
 0x69c   :  { %v6167_v16 = vsel %vm6166_vm3, %v7180_v2, %v6163_v59  ;;  %v6646_v50 = vadd.f32 %v6645_v20, %v6554_v46  ;;  %v6250_v57 = vand.u32 2147483648, %v13324_v51  ;;  %v6248_v26 = vand.u32 2147483647, %v13324_v51 }
 0x69d   :  { %v7182_v56 = vpop.eup %7181  ;;  %v6172_v32 = vsel %vm6169_vm4, %v6171_v43, %v6167_v16  ;;  %v6318_v15 = vadd.f32 1.0, %v6317_v8  ;;  %v6468_v11 = vmul.f32 %v6418_v17, %v4318_v31  ;;  %v6227_v19 = vadd.f32 1.1283791, %v6226_v23 }
 0x69e   :  { %v6173_v58 = vmul.f32 %v6172_v32, %v6148_v12  ;;  %v6240_v7 = vmul.f32 %v7182_v56, %v13324_v51  ;;  %6704 = vst [vmem:[#allocation8 + $0x40] sm:$0xff] %v6646_v50  ;;  %v6305_v0 = vadd.f32 0.18741608, %v6304_v54  ;;  %vm6245_vm5 = vweird.f32 %v7182_v56 }
 0x69f   :  { %7183 = vrcp.f32 %v6318_v15  ;;  %v6648_v62 = vpop.f32.mrf.mxu3  ;;  %v6557_v18 = vadd.f32 %v13066_v41, %v6556_v6  ;;  %vm6244_vm6 = vweird.f32 %v13324_v51  ;;  %v4320_v30 = vmul.f32 0.5, %v13957_v14 }
 0x6a0   :  { %v6885_v9 = vclamps-f32 %v6173_v58, 1.0  ;;  %v6241_v49 = vsub.f32 1.0, %v6240_v7  ;;  %vm6246_vm7 = vmor %vm6244_vm6, %vm6245_vm5  ;;  %v6251_v47 = vor.u32 1.1754944e-38, %v6250_v57  ;;  %v6228_v42 = vmul.f32 %v6227_v19, %v13958_v33 }
 0x6a1   :  { %6591 = vmatmul.f32.gmra.mxu2 %v6468_v11  ;;  %v6649_v21 = vadd.f32 %v6648_v62, %v6557_v18  ;;  %v6306_v1 = vmul.f32 %v6305_v0, %v13141_v61  ;;  %vm6249_vm8 = vcmp.eq.f32.partialorder %v6248_v26, 8.507059e+37  ;;  %v6330_v48 = vand.u32 2147483648, %v6318_v15 }
 0x6a2   :  { %v6242_v28 = vmul.f32 %v7182_v56, %v6241_v49  ;;  %v6420_v2 = vadd.f32 1.0, %v6885_v9  ;;  %v6328_v44 = vand.u32 2147483647, %v6318_v15  ;;  %vm6324_vm10 = vweird.f32 %v6318_v15 }
 0x6a3   :  { %6705 = vst [vmem:[#allocation8 + $0x48] sm:$0xff] %v6649_v21  ;;  %v6307_v13 = vadd.f32 1.1283791, %v6306_v1  ;;  %v6559_v10 = vpop.f32.mrf.mxu2  ;;  %v4322_v39 = vmul.f32 0.5, %v13959_v24  ;;  %v6331_v59 = vor.u32 1.1754944e-38, %v6330_v48  ;;  %v4324_v3 = vmul.f32 0.5, %v13075_v29 }
 0x6a4   :  { %v6243_v63 = vadd.f32 %v7182_v56, %v6242_v28  ;;  %v6470_v22 = vmul.f32 %v6420_v2, %v4320_v30  ;;  %v6560_v55 = vadd.f32 %v13066_v41, %v6559_v10  ;;  %vm6329_vm12 = vcmp.eq.f32.partialorder %v6328_v44, 8.507059e+37 }
 0x6a5   :  { %v7184_v35 = vpop.eup %7183  ;;  %v6308_v4 = vmul.f32 %v6307_v13, %v13086_v38 }
 0x6a6   :  { %v6247_v40 = vsel %vm6246_vm7, %v7182_v56, %v6243_v63  ;;  %v6320_v27 = vmul.f32 %v7184_v35, %v6318_v15  ;;  %vm6325_vm9 = vweird.f32 %v7184_v35 }
 0x6a7   :  { %v6252_v37 = vsel %vm6249_vm8, %v6251_v47, %v6247_v40  ;;  %v6651_v36 = vpop.f32.mrf.mxu3  ;;  %vm6326_vm11 = vmor %vm6324_vm10, %vm6325_vm9 }
 0x6a8   :  { %v6253_v53 = vmul.f32 %v6252_v37, %v6228_v42  ;;  %v6321_v60 = vsub.f32 1.0, %v6320_v27  ;;  %v6652_v34 = vadd.f32 %v6651_v36, %v6560_v55 }
 0x6a9   :  { %6594 = vmatmul.f32.gmra.mxu2 %v6470_v22 }
 0x6aa   :  { %v6887_v51 = vclamps-f32 %v6253_v53, 1.0  ;;  %v6322_v45 = vmul.f32 %v7184_v35, %v6321_v60  ;;  %6706 = vst [vmem:[#allocation8 + $0x50] sm:$0xff] %v6652_v34 }
 0x6ab   :  { %v6562_v43 = vpop.f32.mrf.mxu2 }
 0x6ac   :  { %v6422_v61 = vadd.f32 1.0, %v6887_v51  ;;  %v6323_v52 = vadd.f32 %v7184_v35, %v6322_v45  ;;  %v6563_v16 = vadd.f32 %v13066_v41, %v6562_v43 }
 0x6ae   :  { %v6327_v5 = vsel %vm6326_vm11, %v7184_v35, %v6323_v52  ;;  %v6472_v20 = vmul.f32 %v6422_v61, %v4322_v39 }
 0x6af   :  { %v6332_v25 = vsel %vm6329_vm12, %v6331_v59, %v6327_v5  ;;  %v6654_v46 = vpop.f32.mrf.mxu3 }
 0x6b0   :  { %v6333_v12 = vmul.f32 %v6332_v25, %v6308_v4  ;;  %v6655_v56 = vadd.f32 %v6654_v46, %v6563_v16 }
 0x6b1   :  { %6597 = vmatmul.f32.gmra.mxu2 %v6472_v20 }
 0x6b2   :  { %v6889_v17 = vclamps-f32 %v6333_v12, 1.0  ;;  %6707 = vst [vmem:[#allocation8 + $0x58] sm:$0xff] %v6655_v56 }
 0x6b3   :  { %v6565_v38 = vpop.f32.mrf.mxu2 }
 0x6b4   :  { %v6424_v8 = vadd.f32 1.0, %v6889_v17  ;;  %v6566_v32 = vadd.f32 %v13066_v41, %v6565_v38 }
 0x6b6   :  { %v6474_v31 = vmul.f32 %v6424_v8, %v4324_v3 }
 0x6b7   :  { %v6657_v23 = vpop.f32.mrf.mxu3 }
 0x6b8   :  { %v6658_v50 = vadd.f32 %v6657_v23, %v6566_v32 }
 0x6b9   :  { %6600 = vmatmul.f32.gmra.mxu2 %v6474_v31 }
 0x6ba   :  { %6708 = vst [vmem:[#allocation8 + $0x60] sm:$0xff] %v6658_v50 }
 0x6bb   :  { %v6568_v54 = vpop.f32.mrf.mxu2 }
 0x6bc   :  { %v6569_v7 = vadd.f32 %v13066_v41, %v6568_v54 }
 0x6bf   :  { %v6660_v58 = vpop.f32.mrf.mxu3 }
 0x6c0   :  { %v6661_v15 = vadd.f32 %v6660_v58, %v6569_v7 }
 0x6c2   :  { %6709 = vst [vmem:[#allocation8 + $0x68] sm:$0xff] %v6661_v15 }
 0x6c3   :  { %v6571_v11 = vpop.f32.mrf.mxu2 }
 0x6c4   :  { %v6572_v9 = vadd.f32 %v13066_v41, %v6571_v11 }
 0x6c7   :  { %v6663_v49 = vpop.f32.mrf.mxu3 }
 0x6c8   :  { %v6664_v29 = vadd.f32 %v6663_v49, %v6572_v9 }
 0x6ca   :  { %6710 = vst [vmem:[#allocation8 + $0x70] sm:$0xff] %v6664_v29 }
 0x6cf   :  { %v6666_v0 = vpop.f32.mrf.mxu3 }
 0x6d4   :  { %v6574_v19 = vpop.f32.mrf.mxu2 }
 0x6d5   :  { %v6575_v57 = vadd.f32 %v13066_v41, %v6574_v19 }
 0x6d7   :  { %v6667_v28 = vadd.f32 %v6666_v0, %v6575_v57  ;;  %v6669_v62 = vpop.f32.mrf.mxu3 }
 0x6d9   :  { %6711 = vst [vmem:[#allocation8 + $0x78] sm:$0xff] %v6667_v28 }
 0x6e1   :  { %v6672_v2 = vpop.f32.mrf.mxu3 }
 0x6e4   :  { %v6577_v26 = vpop.f32.mrf.mxu2 }
 0x6e5   :  { %v6578_v6 = vadd.f32 %v13066_v41, %v6577_v26 }
 0x6e7   :  { %v6670_v18 = vadd.f32 %v6669_v62, %v6578_v6 }
 0x6e9   :  { %6712 = vst [vmem:[#allocation8 + $0x80] sm:$0xff] %v6670_v18  ;;  %v6675_v47 = vpop.f32.mrf.mxu3 }
 0x6f1   :  { %v6678_v35 = vpop.f32.mrf.mxu3 }
 0x6f9   :  { %v6681_v37 = vpop.f32.mrf.mxu3 }
 0x6ff   :  { %v6580_v63 = vpop.f32.mrf.mxu2 }
 0x700   :  { %v6581_v14 = vadd.f32 %v13066_v41, %v6580_v63 }
 0x701   :  { %v6684_v13 = vpop.f32.mrf.mxu3 }
 0x702   :  { %v6673_v30 = vadd.f32 %v6672_v2, %v6581_v14 }
 0x704   :  { %6713 = vst [vmem:[#allocation8 + $0x88] sm:$0xff] %v6673_v30 }
 0x70b   :  { %v6687_v36 = vpop.f32.mrf.mxu3 }
 0x70c   :  { %v6583_v21 = vpop.f32.mrf.mxu2 }
 0x70d   :  { %v6584_v33 = vadd.f32 %v13066_v41, %v6583_v21 }
 0x70f   :  { %v6676_v42 = vadd.f32 %v6675_v47, %v6584_v33 }
 0x711   :  { %6714 = vst [vmem:[#allocation8 + $0x90] sm:$0xff] %v6676_v42 }
 0x714   :  { %v6586_v1 = vpop.f32.mrf.mxu2 }
 0x715   :  { %v6587_v40 = vadd.f32 %v13066_v41, %v6586_v1  ;;  %v6690_v52 = vpop.f32.mrf.mxu3 }
 0x717   :  { %v6679_v27 = vadd.f32 %v6678_v35, %v6587_v40 }
 0x719   :  { %6715 = vst [vmem:[#allocation8 + $0x98] sm:$0xff] %v6679_v27 }
 0x71c   :  { %v6589_v22 = vpop.f32.mrf.mxu2 }
 0x71d   :  { %v6590_v53 = vadd.f32 %v13066_v41, %v6589_v22  ;;  %v6693_v4 = vpop.f32.mrf.mxu3 }
 0x71f   :  { %v6682_v60 = vadd.f32 %v6681_v37, %v6590_v53 }
 0x721   :  { %6716 = vst [vmem:[#allocation8 + $0xa0] sm:$0xff] %v6682_v60 }
 0x724   :  { %v6592_v51 = vpop.f32.mrf.mxu2 }
 0x725   :  { %v6593_v48 = vadd.f32 %v13066_v41, %v6592_v51 }
 0x727   :  { %v6685_v10 = vadd.f32 %v6684_v13, %v6593_v48 }
 0x729   :  { %6717 = vst [vmem:[#allocation8 + $0xa8] sm:$0xff] %v6685_v10 }
 0x72c   :  { %v6595_v45 = vpop.f32.mrf.mxu2 }
 0x72d   :  { %v6596_v44 = vadd.f32 %v13066_v41, %v6595_v45 }
 0x72f   :  { %v6688_v55 = vadd.f32 %v6687_v36, %v6596_v44 }
 0x731   :  { %6718 = vst [vmem:[#allocation8 + $0xb0] sm:$0xff] %v6688_v55 }
 0x734   :  { %v6598_v61 = vpop.f32.mrf.mxu2 }
 0x735   :  { %v6599_v34 = vadd.f32 %v13066_v41, %v6598_v61 }
 0x737   :  { %v6691_v24 = vadd.f32 %v6690_v52, %v6599_v34 }
 0x739   :  { %6719 = vst [vmem:[#allocation8 + $0xb8] sm:$0xff] %v6691_v24 }
 0x73c   :  { %v6601_v39 = vpop.f32.mrf.mxu2 }
 0x73d   :  { %v6602_v59 = vadd.f32 %v13066_v41, %v6601_v39 }
 0x73f   :  { %v6694_v5 = vadd.f32 %v6693_v4, %v6602_v59 }
 0x741   :  { %6720 = vst [vmem:[#allocation8 + $0xc0] sm:$0xff] %v6694_v5 }
 0x742   :  { %6733 = dma.vmem_to_hbm [thread:$0]  %s6726_s16, 3200, %s6728_s17, [#allocation4], %s7292_s14, %s7292_s14, %s7293_s15  }
 0x743   :  { %7285 = dma.done.wait [#allocation4], 3200  }
 0x744   :  { %7286 = vsyncadd [#allocation4], 4294964096 }
 0x745   :  { %6738 = vsyncpa [#allocation3], 1 }
 0x746   :  { %6739 = vsyncpa [#allocation6], 1 }
 0x747   :  { %6740 = vsyncpa [#allocation4], 1 }

</bundles_post_ra>
